<compile_context>
chip_gen: v6e
topology: v6e:2x2x1
jax: 0.10.0
libtpu: 0.0.40
codegen_flags: <defaults>
</compile_context>

<pallas_src>
import math
from functools import partial

import jax
import jax.numpy as jnp
from jax.experimental import pallas as pl
from jax.experimental.pallas import tpu as pltpu

PATCH_SIZE = (1, 1, 1)   # SymmetricPatchifier patch size
LN_EPS = 1e-5            # torch.nn.LayerNorm default
NEG_INF = -1e30          # finite "masked" score, safe for online softmax


def _pick_tile(dim, candidates):
    """Largest candidate tile that evenly divides `dim`, else the full dim."""
    # TODO(synk): ragged token counts should be padded to a 256 multiple (with
    # attention masking of the pad tokens) instead of taking the full-dim
    # fallback; left as-is for the small test shapes here.
    for c in candidates:
        if dim >= c and dim % c == 0:
            return c
    return dim


def _vmem_limit(block_bytes, scratch_bytes):
    """Scoped-VMEM limit: double-buffered blocks + scratch + headroom,
    floored at the 32 MiB default and capped under v7x's 64 MiB physical."""
    need = 2 * block_bytes + scratch_bytes
    return int(min(max(int(need * 1.5) + (4 << 20), 32 << 20), 48 << 20))


# ------------------------- tiled linear (MXU path) -------------------------

def _linear_kernel(x_ref, w_ref, b_ref, *rest, activation, has_residual,
                   ln_mode, eps):
    idx = 0
    g_ref = be_ref = r_ref = None
    if ln_mode is not None:
        g_ref, be_ref = rest[idx], rest[idx + 1]
        idx += 2
    if has_residual:
        r_ref = rest[idx]
        idx += 1
    o_ref, acc_ref = rest[idx], rest[idx + 1]

    @pl.when(pl.program_id(2) == 0)
    def _():
        acc_ref[...] = jnp.zeros_like(acc_ref)

    x = x_ref[...]
    if ln_mode == "pre":
        # LayerNorm fused as matmul prologue (tk == full K): f32 stats, then
        # cast back to the activation dtype so the MXU runs at native width.
        xf = x.astype(jnp.float32)
        mu = jnp.mean(xf, axis=-1, keepdims=True)
        var = jnp.mean(jnp.square(xf - mu), axis=-1, keepdims=True)
        xf = (xf - mu) * jax.lax.rsqrt(var + eps)
        xf = xf * g_ref[...].astype(jnp.float32) + be_ref[...].astype(jnp.float32)
        x = xf.astype(x_ref.dtype)

    acc_ref[...] += jnp.dot(x, w_ref[...], preferred_element_type=jnp.float32)

    @pl.when(pl.program_id(2) == pl.num_programs(2) - 1)
    def _():
        acc = acc_ref[...] + b_ref[...].astype(jnp.float32)
        if activation == "gelu":
            # TODO(synk): tanh GELU; PyTorch nn.GELU default is exact erf.
            acc = jax.nn.gelu(acc, approximate=True)
        if has_residual:
            acc = acc + r_ref[...].astype(jnp.float32)
        if ln_mode == "post":
            # LayerNorm fused as matmul epilogue (tn == full N).
            mu = jnp.mean(acc, axis=-1, keepdims=True)
            var = jnp.mean(jnp.square(acc - mu), axis=-1, keepdims=True)
            acc = (acc - mu) * jax.lax.rsqrt(var + eps)
            acc = acc * g_ref[...].astype(jnp.float32) + be_ref[...].astype(jnp.float32)
        o_ref[...] = acc.astype(o_ref.dtype)


def linear(x, w, b, *, activation=None, residual=None, ln=None, ln_out=None,
           out_dtype=None):
    """y = [ln_out]( act([ln](x) @ w + b) (+ residual) ).

    x:(M,K)  w:(K,N)  b:(1,N)  residual:(M,N)
    ln=(gamma,beta)      -> LayerNorm(x) fused as prologue  (forces tk == K)
    ln_out=(gamma,beta)  -> LayerNorm(out) fused as epilogue (forces tn == N)
    """
    M, K = x.shape
    K2, N = w.shape
    assert K == K2 and b.shape == (1, N)
    assert ln is None or ln_out is None
    out_dtype = out_dtype if out_dtype is not None else x.dtype

    ln_mode = "pre" if ln is not None else ("post" if ln_out is not None else None)

    # 256-aligned tiles preferred (2x256 MXU on v6e/v7x); 512 halves weight /
    # K-V re-read traffic vs 256 and stays far under the scoped-VMEM budget.
    tm = _pick_tile(M, (512, 256, 128))
    tk = K if ln_mode == "pre" else _pick_tile(K, (512, 256, 128))
    tn = N if ln_mode == "post" else _pick_tile(N, (512, 256, 128))
    grid = (M // tm, N // tn, K // tk)

    in_specs = [
        pl.BlockSpec((tm, tk), lambda i, j, k: (i, k)),
        pl.BlockSpec((tk, tn), lambda i, j, k: (k, j)),
        pl.BlockSpec((1, tn), lambda i, j, k: (0, j)),
    ]
    args = [x, w, b]
    if ln_mode == "pre":
        g, be = ln
        in_specs += [pl.BlockSpec((1, tk), lambda i, j, k: (0, k)),
                     pl.BlockSpec((1, tk), lambda i, j, k: (0, k))]
        args += [g, be]
    elif ln_mode == "post":
        g, be = ln_out
        in_specs += [pl.BlockSpec((1, tn), lambda i, j, k: (0, j)),
                     pl.BlockSpec((1, tn), lambda i, j, k: (0, j))]
        args += [g, be]
    if residual is not None:
        in_specs.append(pl.BlockSpec((tm, tn), lambda i, j, k: (i, j)))
        args.append(residual)

    itemsize = jnp.dtype(x.dtype).itemsize
    o_itemsize = jnp.dtype(out_dtype).itemsize
    blk_bytes = (tm * tk + tk * tn + tn) * itemsize + tm * tn * o_itemsize
    if ln_mode == "pre":
        blk_bytes += 2 * tk * itemsize
    elif ln_mode == "post":
        blk_bytes += 2 * tn * itemsize
    if residual is not None:
        blk_bytes += tm * tn * itemsize
    vmem_limit = _vmem_limit(blk_bytes, tm * tn * 4)

    bytes_accessed = (M * K + K * N + N +
                      M * N * (2 if residual is not None else 1)) * itemsize
    cost = pl.CostEstimate(
        flops=2 * M * N * K,
        transcendentals=(M * N if activation == "gelu" else 0),
        bytes_accessed=int(bytes_accessed))

    return pl.pallas_call(
        partial(_linear_kernel, activation=activation,
                has_residual=residual is not None, ln_mode=ln_mode, eps=LN_EPS),
        grid=grid,
        in_specs=in_specs,
        out_specs=pl.BlockSpec((tm, tn), lambda i, j, k: (i, j)),
        out_shape=jax.ShapeDtypeStruct((M, N), out_dtype),
        scratch_shapes=[pltpu.VMEM((tm, tn), jnp.float32)],
        compiler_params=pltpu.CompilerParams(
            dimension_semantics=("parallel", "parallel", "arbitrary"),
            vmem_limit_bytes=vmem_limit),
        cost_estimate=cost,
    )(*args)


# -------------------------- flash multi-head attention ---------------------

def _flash_attn_kernel(q_ref, k_ref, v_ref, *rest, has_mask):
    if has_mask:
        bias_ref, o_ref, m_sc, l_sc, acc_sc = rest
    else:
        bias_ref = None
        o_ref, m_sc, l_sc, acc_sc = rest
    ki = pl.program_id(3)

    @pl.when(ki == 0)
    def _():
        m_sc[...] = jnp.full_like(m_sc, NEG_INF)
        l_sc[...] = jnp.zeros_like(l_sc)
        acc_sc[...] = jnp.zeros_like(acc_sc)

    # Q/K stay in the activation dtype (bf16 under mixed precision) -> native
    # MXU throughput; scores / softmax stats accumulate in f32.  The
    # 1/sqrt(head_dim) scale is folded into the Q projection weights.
    s = jax.lax.dot_general(q_ref[...], k_ref[...], (((1,), (1,)), ((), ())),
                            preferred_element_type=jnp.float32)       # (tq,tkv)
    if has_mask:
        s = s + bias_ref[...].astype(jnp.float32)   # additive bias: single VALU add

    m_prev = m_sc[...]
    m_new = jnp.maximum(m_prev, jnp.max(s, axis=-1, keepdims=True))
    alpha = jnp.exp(m_prev - m_new)
    p = jnp.exp(s - m_new)
    l_sc[...] = alpha * l_sc[...] + jnp.sum(p, axis=-1, keepdims=True)
    acc_sc[...] = alpha * acc_sc[...] + jnp.dot(
        p.astype(v_ref.dtype), v_ref[...], preferred_element_type=jnp.float32)
    m_sc[...] = m_new

    @pl.when(ki == pl.num_programs(3) - 1)
    def _():
        o_ref[...] = (acc_sc[...] *
                      pl.reciprocal(l_sc[...], approx=True)).astype(o_ref.dtype)


def flash_attention(q, kv, *, batch, q_len, kv_len, n_heads, head_dim,
                    q_block_off, k_block_off, v_block_off, mask_bias=None):
    """Flash attention over token-major 2-D activations (no head transposes).

    q:  (batch*q_len, *),  kv: (batch*kv_len, *).  Head h of Q / K / V is the
    column block (q|k|v)_block_off + h (block width = head_dim), so fused QKV /
    KV projections are consumed in place.  mask_bias: optional (batch, 1,
    kv_len) additive bias (0 = attend, NEG_INF = masked) in the compute dtype.
    """
    # TODO(synk): head_dim < 128 needs a heads-major fallback layout to satisfy
    # the TPU lane-tiling constraint on column blocks.
    assert head_dim % 128 == 0
    tq = _pick_tile(q_len, (512, 256, 128))
    tkv = _pick_tile(kv_len, (512, 256, 128))
    nq, nkv = q_len // tq, kv_len // tkv
    grid = (batch, n_heads, nq, nkv)

    in_specs = [
        pl.BlockSpec((tq, head_dim),
                     lambda b, h, qi, ki: (b * nq + qi, q_block_off + h)),
        pl.BlockSpec((tkv, head_dim),
                     lambda b, h, qi, ki: (b * nkv + ki, k_block_off + h)),
        pl.BlockSpec((tkv, head_dim),
                     lambda b, h, qi, ki: (b * nkv + ki, v_block_off + h)),
    ]
    args = [q, kv, kv]
    if mask_bias is not None:
        in_specs.append(pl.BlockSpec((None, 1, tkv),
                                     lambda b, h, qi, ki: (b, 0, ki)))
        args.append(mask_bias)

    itemsize = jnp.dtype(q.dtype).itemsize
    o_itemsize = itemsize
    blk_bytes = (tq * head_dim + 2 * tkv * head_dim) * itemsize \
        + tq * head_dim * o_itemsize
    if mask_bias is not None:
        blk_bytes += tkv * jnp.dtype(mask_bias.dtype).itemsize
    scratch_bytes = (tq * head_dim + 2 * tq) * 4
    vmem_limit = _vmem_limit(blk_bytes, scratch_bytes)

    cost = pl.CostEstimate(
        flops=4 * batch * n_heads * q_len * kv_len * head_dim,
        transcendentals=batch * n_heads * q_len * kv_len,
        bytes_accessed=int((q.size + 2 * kv.size) * itemsize))

    return pl.pallas_call(
        partial(_flash_attn_kernel, has_mask=mask_bias is not None),
        grid=grid,
        in_specs=in_specs,
        out_specs=pl.BlockSpec((tq, head_dim),
                               lambda b, h, qi, ki: (b * nq + qi, h)),
        out_shape=jax.ShapeDtypeStruct((batch * q_len, n_heads * head_dim),
                                       q.dtype),
        scratch_shapes=[pltpu.VMEM((tq, 1), jnp.float32),
                        pltpu.VMEM((tq, 1), jnp.float32),
                        pltpu.VMEM((tq, head_dim), jnp.float32)],
        compiler_params=pltpu.CompilerParams(
            dimension_semantics=("parallel", "parallel", "parallel",
                                 "arbitrary"),
            vmem_limit_bytes=vmem_limit),
        cost_estimate=cost,
    )(*args)


# ------------------------------ glue (JAX) ------------------------------

def patchify(x):
    # (B, C, F, H, W) -> (B, F*H*W, C)   [patch_size = (1,1,1)]
    B, C, F, H, W = x.shape
    return jnp.transpose(x, (0, 2, 3, 4, 1)).reshape(B, F * H * W, C)


def unpatchify(tokens, C, F, H, W):
    B = tokens.shape[0]
    return jnp.transpose(tokens.reshape(B, F, H, W, C), (0, 4, 1, 2, 3))


def sinusoidal_embedding(t, dim):
    half = dim // 2
    freqs = jnp.exp(-math.log(10000.0) *
                    jnp.arange(half, dtype=jnp.float32) / half)
    args = t[..., None].astype(jnp.float32) * freqs
    return jnp.concatenate([jnp.sin(args), jnp.cos(args)], axis=-1)


def init_params(key, c_in, d_model, d_ctx, t_dim):
    ks = jax.random.split(key, 16)

    def w(k, shape, scale=0.02):
        return scale * jax.random.normal(k, shape, dtype=jnp.float32)

    z = lambda n: jnp.zeros((n,), dtype=jnp.float32)
    o = lambda n: jnp.ones((n,), dtype=jnp.float32)
    return {
        'proj_in_w': w(ks[0], (c_in, d_model)), 'proj_in_b': z(d_model),
        'pos_w': w(ks[1], (3, d_model)), 'pos_b': z(d_model),
        't_w1': w(ks[2], (t_dim, d_model)), 't_b1': z(d_model),
        't_w2': w(ks[3], (d_model, d_model)), 't_b2': z(d_model),
        'ln1_g': o(d_model), 'ln1_b': z(d_model),
        'sa_wq': w(ks[4], (d_model, d_model)), 'sa_bq': z(d_model),
        'sa_wk': w(ks[5], (d_model, d_model)), 'sa_bk': z(d_model),
        'sa_wv': w(ks[6], (d_model, d_model)), 'sa_bv': z(d_model),
        'sa_wo': w(ks[7], (d_model, d_model)), 'sa_bo': z(d_model),
        'ln2_g': o(d_model), 'ln2_b': z(d_model),
        'ca_wq': w(ks[8], (d_model, d_model)), 'ca_bq': z(d_model),
        'ca_wk': w(ks[9], (d_ctx, d_model)), 'ca_bk': z(d_model),
        'ca_wv': w(ks[10], (d_ctx, d_model)), 'ca_bv': z(d_model),
        'ca_wo': w(ks[11], (d_model, d_model)), 'ca_bo': z(d_model),
        'ln3_g': o(d_model), 'ln3_b': z(d_model),
        'ff_w1': w(ks[12], (d_model, 4 * d_model)), 'ff_b1': z(4 * d_model),
        'ff_w2': w(ks[13], (4 * d_model, d_model)), 'ff_b2': z(d_model),
        'lnf_g': o(d_model), 'lnf_b': z(d_model),
        'proj_out_w': w(ks[14], (d_model, c_in)), 'proj_out_b': z(c_in),
    }


def pack_params(p, n_heads):
    """One-time weight fusion: proj_in+pos packed (K zero-padded to 128x),
    QKV / cross-KV concatenated, attention scale folded into the Q projection,
    biases pre-reshaped to (1, N)."""
    r = lambda v: v.reshape(1, -1)
    d_model = p['sa_wq'].shape[0]
    scale = 1.0 / math.sqrt(d_model // n_heads)

    # proj_in and positional projection fused on the contraction axis, then
    # zero-padded to a lane-dense, non-ragged K (multiple of 128).
    in_w = jnp.concatenate([p['proj_in_w'], p['pos_w']], axis=0)
    k_raw = in_w.shape[0]
    k_pad = ((k_raw + 127) // 128) * 128
    in_w = jnp.pad(in_w, ((0, k_pad - k_raw), (0, 0)))

    return {
        'in_w': in_w,
        'in_b': r(p['proj_in_b'] + p['pos_b']),
        't_w1': p['t_w1'], 't_b1': r(p['t_b1']),
        't_w2': p['t_w2'], 't_b2': r(p['t_b2']),
        'ln1_g': r(p['ln1_g']), 'ln1_b': r(p['ln1_b']),
        # 1/sqrt(head_dim) folded into the Q slice of the fused QKV weights.
        'sa_wqkv': jnp.concatenate(
            [p['sa_wq'] * scale, p['sa_wk'], p['sa_wv']], axis=1),
        'sa_bqkv': r(jnp.concatenate(
            [p['sa_bq'] * scale, p['sa_bk'], p['sa_bv']])),
        'sa_wo': p['sa_wo'], 'sa_bo': r(p['sa_bo']),
        'ln2_g': r(p['ln2_g']), 'ln2_b': r(p['ln2_b']),
        'ca_wq': p['ca_wq'] * scale, 'ca_bq': r(p['ca_bq'] * scale),
        'ca_wkv': jnp.concatenate([p['ca_wk'], p['ca_wv']], axis=1),
        'ca_bkv': r(jnp.concatenate([p['ca_bk'], p['ca_bv']])),
        'ca_wo': p['ca_wo'], 'ca_bo': r(p['ca_bo']),
        'ln3_g': r(p['ln3_g']), 'ln3_b': r(p['ln3_b']),
        'ff_w1': p['ff_w1'], 'ff_b1': r(p['ff_b1']),
        'ff_w2': p['ff_w2'], 'ff_b2': r(p['ff_b2']),
        'lnf_g': r(p['lnf_g']), 'lnf_b': r(p['lnf_b']),
        'proj_out_w': p['proj_out_w'], 'proj_out_b': r(p['proj_out_b']),
    }


def transformer3d_forward(params, tokens, timestep_tokens, context,
                          ctx_bias, indices_grid, n_heads, comp_dtype):
    """Synthetic Transformer3DModel: tokens (B,N,C) -> noise_pred (B,N,C)."""
    B, N, C = tokens.shape
    L = context.shape[1]
    M = B * N
    D = params['sa_wo'].shape[0]
    Dh = D // n_heads
    T_DIM = params['t_w1'].shape[0]
    K_in = params['in_w'].shape[0]

    # single cast of the fused weight set to the autocast compute dtype
    p = {k: v.astype(comp_dtype) for k, v in params.items()}

    # --- fused proj_in + positional conditioning: [tokens | pos | 0] @ in_w
    # TODO(synk): real LTXV uses fractional RoPE built from indices_grid; the
    # coordinates are folded in with a learned linear projection instead.
    pos = jnp.transpose(indices_grid, (0, 2, 1)).astype(comp_dtype)   # (B,N,3)
    pad = jnp.zeros((B, N, K_in - C - 3), dtype=comp_dtype)
    xin = jnp.concatenate([tokens.astype(comp_dtype), pos, pad],
                          axis=-1).reshape(M, K_in)
    h = linear(xin, p['in_w'], p['in_b'])

    # --- per-token (masked) timestep conditioning, added in the matmul epilogue
    # TODO(synk): LTXV uses adaLN-single scale/shift/gate; simplified to additive.
    temb = sinusoidal_embedding(timestep_tokens, T_DIM).reshape(M, T_DIM)
    temb = linear(temb.astype(comp_dtype), p['t_w1'], p['t_b1'],
                  activation='gelu')
    h = linear(temb, p['t_w2'], p['t_b2'], residual=h)

    # --- self attention: LN1 fused as prologue of the fused-QKV matmul -------
    qkv = linear(h, p['sa_wqkv'], p['sa_bqkv'],
                 ln=(p['ln1_g'], p['ln1_b']))                       # (M, 3D)
    attn = flash_attention(qkv, qkv, batch=B, q_len=N, kv_len=N,
                           n_heads=n_heads, head_dim=Dh,
                           q_block_off=0, k_block_off=n_heads,
                           v_block_off=2 * n_heads)
    h = linear(attn, p['sa_wo'], p['sa_bo'], residual=h)

    # --- cross attention: LN2 fused as prologue of the Q projection ---------
    q = linear(h, p['ca_wq'], p['ca_bq'], ln=(p['ln2_g'], p['ln2_b']))  # (M, D)
    ctx = context.astype(comp_dtype).reshape(B * L, context.shape[2])
    kv = linear(ctx, p['ca_wkv'], p['ca_bkv'])                      # (B*L, 2D)
    attn = flash_attention(q, kv, batch=B, q_len=N, kv_len=L,
                           n_heads=n_heads, head_dim=Dh,
                           q_block_off=0, k_block_off=0, v_block_off=n_heads,
                           mask_bias=ctx_bias)
    h = linear(attn, p['ca_wo'], p['ca_bo'], residual=h)

    # --- feed forward: LN3 fused as prologue of w1, GELU in the w1 epilogue,
    #     residual + final LayerNorm fused in the w2 epilogue -----------------
    f1 = linear(h, p['ff_w1'], p['ff_b1'], activation='gelu',
                ln=(p['ln3_g'], p['ln3_b']))
    h = linear(f1, p['ff_w2'], p['ff_b2'], residual=h,
               ln_out=(p['lnf_g'], p['lnf_b']))

    # --- tiny proj_out (D -> C, C << 128): lane-sparse output, left to XLA ---
    out = jnp.dot(h, p['proj_out_w'], preferred_element_type=jnp.float32)
    out = out + p['proj_out_b'].astype(jnp.float32)
    return out.astype(comp_dtype).reshape(B, N, C)


def ltxv_wrapper_forward(params, x, timesteps, context, conditioning_mask,
                         indices_grid, n_heads, mixed_precision=False):
    """Mirrors LTXVTransformer3DWrapper.forward + LTXVTransformer3D.forward."""
    B, C, F, H, W = x.shape
    # mixed_precision=True <=> torch.autocast(bf16); transformer.dtype = float32
    comp_dtype = jnp.bfloat16 if mixed_precision else jnp.float32

    latent = x.astype(jnp.float32)                    # .to(transformer.dtype)
    latent_tokens = patchify(latent)                  # (B, N, C)
    mask_p = patchify(conditioning_mask)[..., 0]      # patchify + squeeze(-1)

    # timesteps_masked = timesteps.view(B, 1) * (1 - mask)  (plain XLA elementwise)
    timesteps_masked = (timesteps.reshape(B, 1).astype(jnp.float32)
                        * (1.0 - mask_p))

    # context_mask = (context != 0).any(dim=2), precomputed as an additive bias
    context_mask = jnp.any(context != 0, axis=2)                     # (B, L)
    L = context.shape[1]
    ctx_bias = jnp.where(context_mask, 0.0, NEG_INF).astype(
        comp_dtype).reshape(B, 1, L)

    noise_pred = transformer3d_forward(params, latent_tokens, timesteps_masked,
                                       context, ctx_bias, indices_grid,
                                       n_heads, comp_dtype)

    # unpatchify with out_channels = C // prod(patch_size)
    return unpatchify(noise_pred, C // math.prod(PATCH_SIZE), F, H, W)


if __name__ == "__main__":
    key = jax.random.PRNGKey(0)
    B, C, F, H, W = 2, 4, 2, 4, 4
    N = F * H * W
    L_CTX, D_CTX = 8, 32
    D_MODEL, N_HEADS, T_DIM = 256, 2, 256     # head_dim = 128 (lane-aligned)

    k_x, k_ctx, k_t, k_p = jax.random.split(key, 4)
    x = jax.random.normal(k_x, (B, C, F, H, W), dtype=jnp.float32)
    timesteps = jax.random.uniform(k_t, (B,), dtype=jnp.float32) * 1000.0
    context = jax.random.normal(k_ctx, (B, L_CTX, D_CTX), dtype=jnp.float32)
    # zero some context tokens so encoder_attention_mask is non-trivial
    context = context.at[:, -2:, :].set(0.0)

    # conditioning mask: first latent frame is conditioning (mask = 1)
    conditioning_mask = jnp.zeros((B, 1, F, H, W), dtype=jnp.float32)
    conditioning_mask = conditioning_mask.at[:, :, 0].set(1.0)

    # indices_grid: (B, 3, N) fractional (frame, row, col) coordinates
    fz, fy, fx = jnp.meshgrid(jnp.arange(F), jnp.arange(H), jnp.arange(W),
                              indexing="ij")
    grid = jnp.stack([fz, fy, fx], axis=0).reshape(3, N).astype(jnp.float32)
    denom = jnp.array([max(F - 1, 1), max(H - 1, 1), max(W - 1, 1)],
                      dtype=jnp.float32)[:, None]
    indices_grid = jnp.broadcast_to(grid / denom, (B, 3, N))

    params = pack_params(init_params(k_p, C, D_MODEL, D_CTX, T_DIM), N_HEADS)

    # mixed_precision=False mirrors the PyTorch default (transformer_options
    # fallback); set True for the bf16 production path.
    fwd = jax.jit(partial(ltxv_wrapper_forward, n_heads=N_HEADS,
                          mixed_precision=False))
    out = fwd(params, x, timesteps, context, conditioning_mask, indices_grid)
    out = jax.block_until_ready(out)
    assert out.shape == (B, C, F, H, W), out.shape
    assert out.dtype == jnp.float32, out.dtype
    assert bool(jnp.all(jnp.isfinite(out)))
    print("KERNEL_OK")
</pallas_src>

<mosaic_0001>
module attributes {stable_mosaic.version = 11 : i64} {
  func.func @_linear_kernel(%arg0: i32, %arg1: i32, %arg2: i32, %arg3: memref<64x256xf32, #tpu.memory_space<vmem>>, %arg4: memref<256x256xf32, #tpu.memory_space<vmem>>, %arg5: memref<1x256xf32, #tpu.memory_space<vmem>>, %arg6: memref<64x256xf32, #tpu.memory_space<vmem>>, %arg7: memref<64x256xf32, #tpu.memory_space<vmem>>) attributes {dimension_semantics = [#tpu.dimension_semantics<parallel>, #tpu.dimension_semantics<parallel>, #tpu.dimension_semantics<arbitrary>], iteration_bounds = array<i64: 1, 1, 1>, scalar_prefetch = 0 : i64, scratch_operands = 1 : i64, tpu.core_type = #tpu.core_type<tc>, window_params = [{transform_indices = @transform_0, window_bounds = array<i64: 64, 256>}, {transform_indices = @transform_1, window_bounds = array<i64: 256, 256>}, {transform_indices = @transform_2, window_bounds = array<i64: 1, 256>}, {transform_indices = @transform_3, window_bounds = array<i64: 64, 256>}]} {
    %c0_i32 = arith.constant 0 : i32
    %0 = arith.cmpi eq, %arg2, %c0_i32 : i32
    %1 = arith.extui %0 : i1 to i32
    %c0_i32_0 = arith.constant 0 : i32
    %2 = arith.cmpi ne, %1, %c0_i32_0 : i32
    scf.if %2 {
      %cst_10 = arith.constant 0.000000e+00 : f32
      %12 = vector.broadcast %cst_10 : f32 to vector<64x256xf32>
      %c0_11 = arith.constant 0 : index
      %c0_12 = arith.constant 0 : index
      %13 = vector.load %arg7[%c0_11, %c0_12] : memref<64x256xf32, #tpu.memory_space<vmem>>, vector<64x256xf32>
      tpu.vector_store %arg7[%c0_11, %c0_12], %12 {strides = array<i32>} : memref<64x256xf32, #tpu.memory_space<vmem>>, vector<64x256xf32>,
    } else {
    }
    %c0 = arith.constant 0 : index
    %c0_1 = arith.constant 0 : index
    %3 = vector.load %arg3[%c0, %c0_1] : memref<64x256xf32, #tpu.memory_space<vmem>>, vector<64x256xf32>
    %c0_2 = arith.constant 0 : index
    %c0_3 = arith.constant 0 : index
    %4 = vector.load %arg7[%c0_2, %c0_3] : memref<64x256xf32, #tpu.memory_space<vmem>>, vector<64x256xf32>
    %c0_4 = arith.constant 0 : index
    %c0_5 = arith.constant 0 : index
    %5 = vector.load %arg4[%c0_4, %c0_5] : memref<256x256xf32, #tpu.memory_space<vmem>>, vector<256x256xf32>
    %cst = arith.constant dense<0.000000e+00> : vector<64x256xf32>
    %6 = tpu.matmul %3, %5, %cst {dimension_numbers = #tpu.dot_dimension_numbers<[1], [0], [0], [1], [0, 0, 1, 1], [], []>} : vector<64x256xf32>, vector<256x256xf32>, vector<64x256xf32> -> vector<64x256xf32>
    %7 = arith.addf %4, %6 : vector<64x256xf32>
    %c0_6 = arith.constant 0 : index
    %c0_7 = arith.constant 0 : index
    %8 = vector.load %arg7[%c0_6, %c0_7] : memref<64x256xf32, #tpu.memory_space<vmem>>, vector<64x256xf32>
    tpu.vector_store %arg7[%c0_6, %c0_7], %7 {strides = array<i32>} : memref<64x256xf32, #tpu.memory_space<vmem>>, vector<64x256xf32>,
    %c0_i32_8 = arith.constant 0 : i32
    %9 = arith.cmpi eq, %arg2, %c0_i32_8 : i32
    %10 = arith.extui %9 : i1 to i32
    %c0_i32_9 = arith.constant 0 : i32
    %11 = arith.cmpi ne, %10, %c0_i32_9 : i32
    scf.if %11 {
      %c0_10 = arith.constant 0 : index
      %c0_11 = arith.constant 0 : index
      %12 = vector.load %arg7[%c0_10, %c0_11] : memref<64x256xf32, #tpu.memory_space<vmem>>, vector<64x256xf32>
      %c0_12 = arith.constant 0 : index
      %c0_13 = arith.constant 0 : index
      %13 = vector.load %arg5[%c0_12, %c0_13] : memref<1x256xf32, #tpu.memory_space<vmem>>, vector<1x256xf32>
      %14 = vector.broadcast %13 : vector<1x256xf32> to vector<64x256xf32>
      %15 = arith.addf %12, %14 : vector<64x256xf32>
      %16 = arith.mulf %15, %15 : vector<64x256xf32>
      %17 = arith.mulf %15, %16 : vector<64x256xf32>
      %cst_14 = arith.constant 4.471500e-02 : f32
      %18 = vector.broadcast %cst_14 : f32 to vector<64x256xf32>
      %19 = arith.mulf %18, %17 : vector<64x256xf32>
      %20 = arith.addf %15, %19 : vector<64x256xf32>
      %cst_15 = arith.constant 0.797884583 : f32
      %21 = vector.broadcast %cst_15 : f32 to vector<64x256xf32>
      %22 = arith.mulf %21, %20 : vector<64x256xf32>
      %23 = math.tanh %22 : vector<64x256xf32>
      %cst_16 = arith.constant 1.000000e+00 : f32
      %24 = vector.broadcast %cst_16 : f32 to vector<64x256xf32>
      %25 = arith.addf %24, %23 : vector<64x256xf32>
      %cst_17 = arith.constant 5.000000e-01 : f32
      %26 = vector.broadcast %cst_17 : f32 to vector<64x256xf32>
      %27 = arith.mulf %26, %25 : vector<64x256xf32>
      %28 = arith.mulf %15, %27 : vector<64x256xf32>
      %c0_18 = arith.constant 0 : index
      %c0_19 = arith.constant 0 : index
      %29 = vector.load %arg6[%c0_18, %c0_19] : memref<64x256xf32, #tpu.memory_space<vmem>>, vector<64x256xf32>
      tpu.vector_store %arg6[%c0_18, %c0_19], %28 {strides = array<i32>} : memref<64x256xf32, #tpu.memory_space<vmem>>, vector<64x256xf32>,
    } else {
    }
    return
  }
  func.func @transform_0(%arg0: i32, %arg1: i32, %arg2: i32) -> (i32, i32) {
    %c0_i32 = arith.constant 0 : i32
    return %arg0, %arg2 : i32, i32
  }
  func.func @transform_1(%arg0: i32, %arg1: i32, %arg2: i32) -> (i32, i32) {
    %c0_i32 = arith.constant 0 : i32
    return %arg2, %arg1 : i32, i32
  }
  func.func @transform_2(%arg0: i32, %arg1: i32, %arg2: i32) -> (i32, i32) {
    %c0_i32 = arith.constant 0 : i32
    %c0_i32_0 = arith.constant 0 : i32
    return %c0_i32, %arg1 : i32, i32
  }
  func.func @transform_3(%arg0: i32, %arg1: i32, %arg2: i32) -> (i32, i32) {
    %c0_i32 = arith.constant 0 : i32
    return %arg0, %arg1 : i32, i32
  }
}

module attributes {stable_mosaic.version = 11 : i64} {
  func.func @_linear_kernel(%arg0: i32, %arg1: i32, %arg2: i32, %arg3: memref<64x128xf32, #tpu.memory_space<vmem>>, %arg4: memref<128x256xf32, #tpu.memory_space<vmem>>, %arg5: memref<1x256xf32, #tpu.memory_space<vmem>>, %arg6: memref<64x256xf32, #tpu.memory_space<vmem>>, %arg7: memref<64x256xf32, #tpu.memory_space<vmem>>) attributes {dimension_semantics = [#tpu.dimension_semantics<parallel>, #tpu.dimension_semantics<parallel>, #tpu.dimension_semantics<arbitrary>], iteration_bounds = array<i64: 1, 1, 1>, scalar_prefetch = 0 : i64, scratch_operands = 1 : i64, tpu.core_type = #tpu.core_type<tc>, window_params = [{transform_indices = @transform_0, window_bounds = array<i64: 64, 128>}, {transform_indices = @transform_1, window_bounds = array<i64: 128, 256>}, {transform_indices = @transform_2, window_bounds = array<i64: 1, 256>}, {transform_indices = @transform_3, window_bounds = array<i64: 64, 256>}]} {
    %c0_i32 = arith.constant 0 : i32
    %0 = arith.cmpi eq, %arg2, %c0_i32 : i32
    %1 = arith.extui %0 : i1 to i32
    %c0_i32_0 = arith.constant 0 : i32
    %2 = arith.cmpi ne, %1, %c0_i32_0 : i32
    scf.if %2 {
      %cst_10 = arith.constant 0.000000e+00 : f32
      %12 = vector.broadcast %cst_10 : f32 to vector<64x256xf32>
      %c0_11 = arith.constant 0 : index
      %c0_12 = arith.constant 0 : index
      %13 = vector.load %arg7[%c0_11, %c0_12] : memref<64x256xf32, #tpu.memory_space<vmem>>, vector<64x256xf32>
      tpu.vector_store %arg7[%c0_11, %c0_12], %12 {strides = array<i32>} : memref<64x256xf32, #tpu.memory_space<vmem>>, vector<64x256xf32>,
    } else {
    }
    %c0 = arith.constant 0 : index
    %c0_1 = arith.constant 0 : index
    %3 = vector.load %arg3[%c0, %c0_1] : memref<64x128xf32, #tpu.memory_space<vmem>>, vector<64x128xf32>
    %c0_2 = arith.constant 0 : index
    %c0_3 = arith.constant 0 : index
    %4 = vector.load %arg7[%c0_2, %c0_3] : memref<64x256xf32, #tpu.memory_space<vmem>>, vector<64x256xf32>
    %c0_4 = arith.constant 0 : index
    %c0_5 = arith.constant 0 : index
    %5 = vector.load %arg4[%c0_4, %c0_5] : memref<128x256xf32, #tpu.memory_space<vmem>>, vector<128x256xf32>
    %cst = arith.constant dense<0.000000e+00> : vector<64x256xf32>
    %6 = tpu.matmul %3, %5, %cst {dimension_numbers = #tpu.dot_dimension_numbers<[1], [0], [0], [1], [0, 0, 1, 1], [], []>} : vector<64x128xf32>, vector<128x256xf32>, vector<64x256xf32> -> vector<64x256xf32>
    %7 = arith.addf %4, %6 : vector<64x256xf32>
    %c0_6 = arith.constant 0 : index
    %c0_7 = arith.constant 0 : index
    %8 = vector.load %arg7[%c0_6, %c0_7] : memref<64x256xf32, #tpu.memory_space<vmem>>, vector<64x256xf32>
    tpu.vector_store %arg7[%c0_6, %c0_7], %7 {strides = array<i32>} : memref<64x256xf32, #tpu.memory_space<vmem>>, vector<64x256xf32>,
    %c0_i32_8 = arith.constant 0 : i32
    %9 = arith.cmpi eq, %arg2, %c0_i32_8 : i32
    %10 = arith.extui %9 : i1 to i32
    %c0_i32_9 = arith.constant 0 : i32
    %11 = arith.cmpi ne, %10, %c0_i32_9 : i32
    scf.if %11 {
      %c0_10 = arith.constant 0 : index
      %c0_11 = arith.constant 0 : index
      %12 = vector.load %arg7[%c0_10, %c0_11] : memref<64x256xf32, #tpu.memory_space<vmem>>, vector<64x256xf32>
      %c0_12 = arith.constant 0 : index
      %c0_13 = arith.constant 0 : index
      %13 = vector.load %arg5[%c0_12, %c0_13] : memref<1x256xf32, #tpu.memory_space<vmem>>, vector<1x256xf32>
      %14 = vector.broadcast %13 : vector<1x256xf32> to vector<64x256xf32>
      %15 = arith.addf %12, %14 : vector<64x256xf32>
      %c0_14 = arith.constant 0 : index
      %c0_15 = arith.constant 0 : index
      %16 = vector.load %arg6[%c0_14, %c0_15] : memref<64x256xf32, #tpu.memory_space<vmem>>, vector<64x256xf32>
      tpu.vector_store %arg6[%c0_14, %c0_15], %15 {strides = array<i32>} : memref<64x256xf32, #tpu.memory_space<vmem>>, vector<64x256xf32>,
    } else {
    }
    return
  }
  func.func @transform_0(%arg0: i32, %arg1: i32, %arg2: i32) -> (i32, i32) {
    %c0_i32 = arith.constant 0 : i32
    return %arg0, %arg2 : i32, i32
  }
  func.func @transform_1(%arg0: i32, %arg1: i32, %arg2: i32) -> (i32, i32) {
    %c0_i32 = arith.constant 0 : i32
    return %arg2, %arg1 : i32, i32
  }
  func.func @transform_2(%arg0: i32, %arg1: i32, %arg2: i32) -> (i32, i32) {
    %c0_i32 = arith.constant 0 : i32
    %c0_i32_0 = arith.constant 0 : i32
    return %c0_i32, %arg1 : i32, i32
  }
  func.func @transform_3(%arg0: i32, %arg1: i32, %arg2: i32) -> (i32, i32) {
    %c0_i32 = arith.constant 0 : i32
    return %arg0, %arg1 : i32, i32
  }
}

module attributes {stable_mosaic.version = 11 : i64} {
  func.func @_linear_kernel(%arg0: i32, %arg1: i32, %arg2: i32, %arg3: memref<16x32xf32, #tpu.memory_space<vmem>>, %arg4: memref<32x512xf32, #tpu.memory_space<vmem>>, %arg5: memref<1x512xf32, #tpu.memory_space<vmem>>, %arg6: memref<16x512xf32, #tpu.memory_space<vmem>>, %arg7: memref<16x512xf32, #tpu.memory_space<vmem>>) attributes {dimension_semantics = [#tpu.dimension_semantics<parallel>, #tpu.dimension_semantics<parallel>, #tpu.dimension_semantics<arbitrary>], iteration_bounds = array<i64: 1, 1, 1>, scalar_prefetch = 0 : i64, scratch_operands = 1 : i64, tpu.core_type = #tpu.core_type<tc>, window_params = [{transform_indices = @transform_0, window_bounds = array<i64: 16, 32>}, {transform_indices = @transform_1, window_bounds = array<i64: 32, 512>}, {transform_indices = @transform_2, window_bounds = array<i64: 1, 512>}, {transform_indices = @transform_3, window_bounds = array<i64: 16, 512>}]} {
    %c0_i32 = arith.constant 0 : i32
    %0 = arith.cmpi eq, %arg2, %c0_i32 : i32
    %1 = arith.extui %0 : i1 to i32
    %c0_i32_0 = arith.constant 0 : i32
    %2 = arith.cmpi ne, %1, %c0_i32_0 : i32
    scf.if %2 {
      %cst_10 = arith.constant 0.000000e+00 : f32
      %12 = vector.broadcast %cst_10 : f32 to vector<16x512xf32>
      %c0_11 = arith.constant 0 : index
      %c0_12 = arith.constant 0 : index
      %13 = vector.load %arg7[%c0_11, %c0_12] : memref<16x512xf32, #tpu.memory_space<vmem>>, vector<16x512xf32>
      tpu.vector_store %arg7[%c0_11, %c0_12], %12 {strides = array<i32>} : memref<16x512xf32, #tpu.memory_space<vmem>>, vector<16x512xf32>,
    } else {
    }
    %c0 = arith.constant 0 : index
    %c0_1 = arith.constant 0 : index
    %3 = vector.load %arg3[%c0, %c0_1] : memref<16x32xf32, #tpu.memory_space<vmem>>, vector<16x32xf32>
    %c0_2 = arith.constant 0 : index
    %c0_3 = arith.constant 0 : index
    %4 = vector.load %arg7[%c0_2, %c0_3] : memref<16x512xf32, #tpu.memory_space<vmem>>, vector<16x512xf32>
    %c0_4 = arith.constant 0 : index
    %c0_5 = arith.constant 0 : index
    %5 = vector.load %arg4[%c0_4, %c0_5] : memref<32x512xf32, #tpu.memory_space<vmem>>, vector<32x512xf32>
    %cst = arith.constant dense<0.000000e+00> : vector<16x512xf32>
    %6 = tpu.matmul %3, %5, %cst {dimension_numbers = #tpu.dot_dimension_numbers<[1], [0], [0], [1], [0, 0, 1, 1], [], []>} : vector<16x32xf32>, vector<32x512xf32>, vector<16x512xf32> -> vector<16x512xf32>
    %7 = arith.addf %4, %6 : vector<16x512xf32>
    %c0_6 = arith.constant 0 : index
    %c0_7 = arith.constant 0 : index
    %8 = vector.load %arg7[%c0_6, %c0_7] : memref<16x512xf32, #tpu.memory_space<vmem>>, vector<16x512xf32>
    tpu.vector_store %arg7[%c0_6, %c0_7], %7 {strides = array<i32>} : memref<16x512xf32, #tpu.memory_space<vmem>>, vector<16x512xf32>,
    %c0_i32_8 = arith.constant 0 : i32
    %9 = arith.cmpi eq, %arg2, %c0_i32_8 : i32
    %10 = arith.extui %9 : i1 to i32
    %c0_i32_9 = arith.constant 0 : i32
    %11 = arith.cmpi ne, %10, %c0_i32_9 : i32
    scf.if %11 {
      %c0_10 = arith.constant 0 : index
      %c0_11 = arith.constant 0 : index
      %12 = vector.load %arg7[%c0_10, %c0_11] : memref<16x512xf32, #tpu.memory_space<vmem>>, vector<16x512xf32>
      %c0_12 = arith.constant 0 : index
      %c0_13 = arith.constant 0 : index
      %13 = vector.load %arg5[%c0_12, %c0_13] : memref<1x512xf32, #tpu.memory_space<vmem>>, vector<1x512xf32>
      %14 = vector.broadcast %13 : vector<1x512xf32> to vector<16x512xf32>
      %15 = arith.addf %12, %14 : vector<16x512xf32>
      %c0_14 = arith.constant 0 : index
      %c0_15 = arith.constant 0 : index
      %16 = vector.load %arg6[%c0_14, %c0_15] : memref<16x512xf32, #tpu.memory_space<vmem>>, vector<16x512xf32>
      tpu.vector_store %arg6[%c0_14, %c0_15], %15 {strides = array<i32>} : memref<16x512xf32, #tpu.memory_space<vmem>>, vector<16x512xf32>,
    } else {
    }
    return
  }
  func.func @transform_0(%arg0: i32, %arg1: i32, %arg2: i32) -> (i32, i32) {
    %c0_i32 = arith.constant 0 : i32
    return %arg0, %arg2 : i32, i32
  }
  func.func @transform_1(%arg0: i32, %arg1: i32, %arg2: i32) -> (i32, i32) {
    %c0_i32 = arith.constant 0 : i32
    return %arg2, %arg1 : i32, i32
  }
  func.func @transform_2(%arg0: i32, %arg1: i32, %arg2: i32) -> (i32, i32) {
    %c0_i32 = arith.constant 0 : i32
    %c0_i32_0 = arith.constant 0 : i32
    return %c0_i32, %arg1 : i32, i32
  }
  func.func @transform_3(%arg0: i32, %arg1: i32, %arg2: i32) -> (i32, i32) {
    %c0_i32 = arith.constant 0 : i32
    return %arg0, %arg1 : i32, i32
  }
}

module attributes {stable_mosaic.version = 11 : i64} {
  func.func @_flash_attn_kernel(%arg0: i32, %arg1: i32, %arg2: i32, %arg3: i32, %arg4: memref<32x128xf32, #tpu.memory_space<vmem>>, %arg5: memref<32x128xf32, #tpu.memory_space<vmem>>, %arg6: memref<32x128xf32, #tpu.memory_space<vmem>>, %arg7: memref<32x128xf32, #tpu.memory_space<vmem>>, %arg8: memref<32x1xf32, #tpu.memory_space<vmem>>, %arg9: memref<32x1xf32, #tpu.memory_space<vmem>>, %arg10: memref<32x128xf32, #tpu.memory_space<vmem>>) attributes {dimension_semantics = [#tpu.dimension_semantics<parallel>, #tpu.dimension_semantics<parallel>, #tpu.dimension_semantics<parallel>, #tpu.dimension_semantics<arbitrary>], iteration_bounds = array<i64: 2, 2, 1, 1>, scalar_prefetch = 0 : i64, scratch_operands = 3 : i64, tpu.core_type = #tpu.core_type<tc>, window_params = [{transform_indices = @transform_0, window_bounds = array<i64: 32, 128>}, {transform_indices = @transform_1, window_bounds = array<i64: 32, 128>}, {transform_indices = @transform_2, window_bounds = array<i64: 32, 128>}, {transform_indices = @transform_3, window_bounds = array<i64: 32, 128>}]} {
    %c0_i32 = arith.constant 0 : i32
    %0 = arith.cmpi eq, %arg3, %c0_i32 : i32
    %1 = arith.extui %0 : i1 to i32
    %c0_i32_0 = arith.constant 0 : i32
    %2 = arith.cmpi ne, %1, %c0_i32_0 : i32
    scf.if %2 {
      %cst_23 = arith.constant -1.000000e+30 : f32
      %32 = vector.broadcast %cst_23 : f32 to vector<32x1xf32>
      %c0_24 = arith.constant 0 : index
      %c0_25 = arith.constant 0 : index
      %33 = vector.load %arg8[%c0_24, %c0_25] : memref<32x1xf32, #tpu.memory_space<vmem>>, vector<32x1xf32>
      tpu.vector_store %arg8[%c0_24, %c0_25], %32 {strides = array<i32>} : memref<32x1xf32, #tpu.memory_space<vmem>>, vector<32x1xf32>,
      %cst_26 = arith.constant 0.000000e+00 : f32
      %34 = vector.broadcast %cst_26 : f32 to vector<32x1xf32>
      %c0_27 = arith.constant 0 : index
      %c0_28 = arith.constant 0 : index
      %35 = vector.load %arg9[%c0_27, %c0_28] : memref<32x1xf32, #tpu.memory_space<vmem>>, vector<32x1xf32>
      tpu.vector_store %arg9[%c0_27, %c0_28], %34 {strides = array<i32>} : memref<32x1xf32, #tpu.memory_space<vmem>>, vector<32x1xf32>,
      %cst_29 = arith.constant 0.000000e+00 : f32
      %36 = vector.broadcast %cst_29 : f32 to vector<32x128xf32>
      %c0_30 = arith.constant 0 : index
      %c0_31 = arith.constant 0 : index
      %37 = vector.load %arg10[%c0_30, %c0_31] : memref<32x128xf32, #tpu.memory_space<vmem>>, vector<32x128xf32>
      tpu.vector_store %arg10[%c0_30, %c0_31], %36 {strides = array<i32>} : memref<32x128xf32, #tpu.memory_space<vmem>>, vector<32x128xf32>,
    } else {
    }
    %c0 = arith.constant 0 : index
    %c0_1 = arith.constant 0 : index
    %3 = vector.load %arg4[%c0, %c0_1] : memref<32x128xf32, #tpu.memory_space<vmem>>, vector<32x128xf32>
    %c0_2 = arith.constant 0 : index
    %c0_3 = arith.constant 0 : index
    %4 = vector.load %arg5[%c0_2, %c0_3] : memref<32x128xf32, #tpu.memory_space<vmem>>, vector<32x128xf32>
    %cst = arith.constant dense<0.000000e+00> : vector<32x32xf32>
    %5 = tpu.matmul %3, %4, %cst {dimension_numbers = #tpu.dot_dimension_numbers<[1], [1], [0], [0], [0, 0, 1, 0], [], []>} : vector<32x128xf32>, vector<32x128xf32>, vector<32x32xf32> -> vector<32x32xf32>
    %c0_4 = arith.constant 0 : index
    %c0_5 = arith.constant 0 : index
    %6 = vector.load %arg8[%c0_4, %c0_5] : memref<32x1xf32, #tpu.memory_space<vmem>>, vector<32x1xf32>
    %cst_6 = arith.constant dense<0xFF800000> : vector<32xf32>
    %7 = vector.multi_reduction <maximumf>, %5, %cst_6 [1] : vector<32x32xf32> to vector<32xf32>
    %8 = vector.shape_cast %7 : vector<32xf32> to vector<32x1xf32>
    %9 = arith.maximumf %6, %8 : vector<32x1xf32>
    %10 = arith.subf %6, %9 : vector<32x1xf32>
    %11 = math.exp %10 : vector<32x1xf32>
    %12 = vector.broadcast %9 : vector<32x1xf32> to vector<32x32xf32>
    %13 = arith.subf %5, %12 : vector<32x32xf32>
    %14 = math.exp %13 : vector<32x32xf32>
    %c0_7 = arith.constant 0 : index
    %c0_8 = arith.constant 0 : index
    %15 = vector.load %arg9[%c0_7, %c0_8] : memref<32x1xf32, #tpu.memory_space<vmem>>, vector<32x1xf32>
    %16 = arith.mulf %11, %15 : vector<32x1xf32>
    %cst_9 = arith.constant dense<0.000000e+00> : vector<32xf32>
    %17 = vector.multi_reduction <add>, %14, %cst_9 [1] : vector<32x32xf32> to vector<32xf32>
    %18 = vector.shape_cast %17 : vector<32xf32> to vector<32x1xf32>
    %19 = arith.addf %16, %18 : vector<32x1xf32>
    %c0_10 = arith.constant 0 : index
    %c0_11 = arith.constant 0 : index
    %20 = vector.load %arg9[%c0_10, %c0_11] : memref<32x1xf32, #tpu.memory_space<vmem>>, vector<32x1xf32>
    tpu.vector_store %arg9[%c0_10, %c0_11], %19 {strides = array<i32>} : memref<32x1xf32, #tpu.memory_space<vmem>>, vector<32x1xf32>,
    %c0_12 = arith.constant 0 : index
    %c0_13 = arith.constant 0 : index
    %21 = vector.load %arg10[%c0_12, %c0_13] : memref<32x128xf32, #tpu.memory_space<vmem>>, vector<32x128xf32>
    %22 = vector.broadcast %11 : vector<32x1xf32> to vector<32x128xf32>
    %23 = arith.mulf %22, %21 : vector<32x128xf32>
    %c0_14 = arith.constant 0 : index
    %c0_15 = arith.constant 0 : index
    %24 = vector.load %arg6[%c0_14, %c0_15] : memref<32x128xf32, #tpu.memory_space<vmem>>, vector<32x128xf32>
    %cst_16 = arith.constant dense<0.000000e+00> : vector<32x128xf32>
    %25 = tpu.matmul %14, %24, %cst_16 {dimension_numbers = #tpu.dot_dimension_numbers<[1], [0], [0], [1], [0, 0, 1, 1], [], []>} : vector<32x32xf32>, vector<32x128xf32>, vector<32x128xf32> -> vector<32x128xf32>
    %26 = arith.addf %23, %25 : vector<32x128xf32>
    %c0_17 = arith.constant 0 : index
    %c0_18 = arith.constant 0 : index
    %27 = vector.load %arg10[%c0_17, %c0_18] : memref<32x128xf32, #tpu.memory_space<vmem>>, vector<32x128xf32>
    tpu.vector_store %arg10[%c0_17, %c0_18], %26 {strides = array<i32>} : memref<32x128xf32, #tpu.memory_space<vmem>>, vector<32x128xf32>,
    %c0_19 = arith.constant 0 : index
    %c0_20 = arith.constant 0 : index
    %28 = vector.load %arg8[%c0_19, %c0_20] : memref<32x1xf32, #tpu.memory_space<vmem>>, vector<32x1xf32>
    tpu.vector_store %arg8[%c0_19, %c0_20], %9 {strides = array<i32>} : memref<32x1xf32, #tpu.memory_space<vmem>>, vector<32x1xf32>,
    %c0_i32_21 = arith.constant 0 : i32
    %29 = arith.cmpi eq, %arg3, %c0_i32_21 : i32
    %30 = arith.extui %29 : i1 to i32
    %c0_i32_22 = arith.constant 0 : i32
    %31 = arith.cmpi ne, %30, %c0_i32_22 : i32
    scf.if %31 {
      %c0_23 = arith.constant 0 : index
      %c0_24 = arith.constant 0 : index
      %32 = vector.load %arg10[%c0_23, %c0_24] : memref<32x128xf32, #tpu.memory_space<vmem>>, vector<32x128xf32>
      %c0_25 = arith.constant 0 : index
      %c0_26 = arith.constant 0 : index
      %33 = vector.load %arg9[%c0_25, %c0_26] : memref<32x1xf32, #tpu.memory_space<vmem>>, vector<32x1xf32>
      %34 = tpu.reciprocal %33 {approx = true} : vector<32x1xf32> -> vector<32x1xf32>
      %35 = vector.broadcast %34 : vector<32x1xf32> to vector<32x128xf32>
      %36 = arith.mulf %32, %35 : vector<32x128xf32>
      %c0_27 = arith.constant 0 : index
      %c0_28 = arith.constant 0 : index
      %37 = vector.load %arg7[%c0_27, %c0_28] : memref<32x128xf32, #tpu.memory_space<vmem>>, vector<32x128xf32>
      tpu.vector_store %arg7[%c0_27, %c0_28], %36 {strides = array<i32>} : memref<32x128xf32, #tpu.memory_space<vmem>>, vector<32x128xf32>,
    } else {
    }
    return
  }
  func.func @transform_0(%arg0: i32, %arg1: i32, %arg2: i32, %arg3: i32) -> (i32, i32) {
    %c1_i32 = arith.constant 1 : i32
    %0 = arith.muli %arg0, %c1_i32 : i32
    %1 = arith.addi %0, %arg2 : i32
    %c0_i32 = arith.constant 0 : i32
    %2 = arith.addi %c0_i32, %arg1 : i32
    %c0_i32_0 = arith.constant 0 : i32
    return %1, %2 : i32, i32
  }
  func.func @transform_1(%arg0: i32, %arg1: i32, %arg2: i32, %arg3: i32) -> (i32, i32) {
    %c1_i32 = arith.constant 1 : i32
    %0 = arith.muli %arg0, %c1_i32 : i32
    %1 = arith.addi %0, %arg3 : i32
    %c2_i32 = arith.constant 2 : i32
    %2 = arith.addi %c2_i32, %arg1 : i32
    %c0_i32 = arith.constant 0 : i32
    return %1, %2 : i32, i32
  }
  func.func @transform_2(%arg0: i32, %arg1: i32, %arg2: i32, %arg3: i32) -> (i32, i32) {
    %c1_i32 = arith.constant 1 : i32
    %0 = arith.muli %arg0, %c1_i32 : i32
    %1 = arith.addi %0, %arg3 : i32
    %c4_i32 = arith.constant 4 : i32
    %2 = arith.addi %c4_i32, %arg1 : i32
    %c0_i32 = arith.constant 0 : i32
    return %1, %2 : i32, i32
  }
  func.func @transform_3(%arg0: i32, %arg1: i32, %arg2: i32, %arg3: i32) -> (i32, i32) {
    %c1_i32 = arith.constant 1 : i32
    %0 = arith.muli %arg0, %c1_i32 : i32
    %1 = arith.addi %0, %arg2 : i32
    %c0_i32 = arith.constant 0 : i32
    return %1, %arg1 : i32, i32
  }
}

module attributes {stable_mosaic.version = 11 : i64} {
  func.func @_linear_kernel(%arg0: i32, %arg1: i32, %arg2: i32, %arg3: memref<64x256xf32, #tpu.memory_space<vmem>>, %arg4: memref<256x256xf32, #tpu.memory_space<vmem>>, %arg5: memref<1x256xf32, #tpu.memory_space<vmem>>, %arg6: memref<64x256xf32, #tpu.memory_space<vmem>>, %arg7: memref<64x256xf32, #tpu.memory_space<vmem>>, %arg8: memref<64x256xf32, #tpu.memory_space<vmem>>) attributes {dimension_semantics = [#tpu.dimension_semantics<parallel>, #tpu.dimension_semantics<parallel>, #tpu.dimension_semantics<arbitrary>], iteration_bounds = array<i64: 1, 1, 1>, scalar_prefetch = 0 : i64, scratch_operands = 1 : i64, tpu.core_type = #tpu.core_type<tc>, window_params = [{transform_indices = @transform_0, window_bounds = array<i64: 64, 256>}, {transform_indices = @transform_1, window_bounds = array<i64: 256, 256>}, {transform_indices = @transform_2, window_bounds = array<i64: 1, 256>}, {transform_indices = @transform_3, window_bounds = array<i64: 64, 256>}, {transform_indices = @transform_4, window_bounds = array<i64: 64, 256>}]} {
    %c0_i32 = arith.constant 0 : i32
    %0 = arith.cmpi eq, %arg2, %c0_i32 : i32
    %1 = arith.extui %0 : i1 to i32
    %c0_i32_0 = arith.constant 0 : i32
    %2 = arith.cmpi ne, %1, %c0_i32_0 : i32
    scf.if %2 {
      %cst_10 = arith.constant 0.000000e+00 : f32
      %12 = vector.broadcast %cst_10 : f32 to vector<64x256xf32>
      %c0_11 = arith.constant 0 : index
      %c0_12 = arith.constant 0 : index
      %13 = vector.load %arg8[%c0_11, %c0_12] : memref<64x256xf32, #tpu.memory_space<vmem>>, vector<64x256xf32>
      tpu.vector_store %arg8[%c0_11, %c0_12], %12 {strides = array<i32>} : memref<64x256xf32, #tpu.memory_space<vmem>>, vector<64x256xf32>,
    } else {
    }
    %c0 = arith.constant 0 : index
    %c0_1 = arith.constant 0 : index
    %3 = vector.load %arg3[%c0, %c0_1] : memref<64x256xf32, #tpu.memory_space<vmem>>, vector<64x256xf32>
    %c0_2 = arith.constant 0 : index
    %c0_3 = arith.constant 0 : index
    %4 = vector.load %arg8[%c0_2, %c0_3] : memref<64x256xf32, #tpu.memory_space<vmem>>, vector<64x256xf32>
    %c0_4 = arith.constant 0 : index
    %c0_5 = arith.constant 0 : index
    %5 = vector.load %arg4[%c0_4, %c0_5] : memref<256x256xf32, #tpu.memory_space<vmem>>, vector<256x256xf32>
    %cst = arith.constant dense<0.000000e+00> : vector<64x256xf32>
    %6 = tpu.matmul %3, %5, %cst {dimension_numbers = #tpu.dot_dimension_numbers<[1], [0], [0], [1], [0, 0, 1, 1], [], []>} : vector<64x256xf32>, vector<256x256xf32>, vector<64x256xf32> -> vector<64x256xf32>
    %7 = arith.addf %4, %6 : vector<64x256xf32>
    %c0_6 = arith.constant 0 : index
    %c0_7 = arith.constant 0 : index
    %8 = vector.load %arg8[%c0_6, %c0_7] : memref<64x256xf32, #tpu.memory_space<vmem>>, vector<64x256xf32>
    tpu.vector_store %arg8[%c0_6, %c0_7], %7 {strides = array<i32>} : memref<64x256xf32, #tpu.memory_space<vmem>>, vector<64x256xf32>,
    %c0_i32_8 = arith.constant 0 : i32
    %9 = arith.cmpi eq, %arg2, %c0_i32_8 : i32
    %10 = arith.extui %9 : i1 to i32
    %c0_i32_9 = arith.constant 0 : i32
    %11 = arith.cmpi ne, %10, %c0_i32_9 : i32
    scf.if %11 {
      %c0_10 = arith.constant 0 : index
      %c0_11 = arith.constant 0 : index
      %12 = vector.load %arg8[%c0_10, %c0_11] : memref<64x256xf32, #tpu.memory_space<vmem>>, vector<64x256xf32>
      %c0_12 = arith.constant 0 : index
      %c0_13 = arith.constant 0 : index
      %13 = vector.load %arg5[%c0_12, %c0_13] : memref<1x256xf32, #tpu.memory_space<vmem>>, vector<1x256xf32>
      %14 = vector.broadcast %13 : vector<1x256xf32> to vector<64x256xf32>
      %15 = arith.addf %12, %14 : vector<64x256xf32>
      %c0_14 = arith.constant 0 : index
      %c0_15 = arith.constant 0 : index
      %16 = vector.load %arg6[%c0_14, %c0_15] : memref<64x256xf32, #tpu.memory_space<vmem>>, vector<64x256xf32>
      %17 = arith.addf %15, %16 : vector<64x256xf32>
      %c0_16 = arith.constant 0 : index
      %c0_17 = arith.constant 0 : index
      %18 = vector.load %arg7[%c0_16, %c0_17] : memref<64x256xf32, #tpu.memory_space<vmem>>, vector<64x256xf32>
      tpu.vector_store %arg7[%c0_16, %c0_17], %17 {strides = array<i32>} : memref<64x256xf32, #tpu.memory_space<vmem>>, vector<64x256xf32>,
    } else {
    }
    return
  }
  func.func @transform_0(%arg0: i32, %arg1: i32, %arg2: i32) -> (i32, i32) {
    %c0_i32 = arith.constant 0 : i32
    return %arg0, %arg2 : i32, i32
  }
  func.func @transform_1(%arg0: i32, %arg1: i32, %arg2: i32) -> (i32, i32) {
    %c0_i32 = arith.constant 0 : i32
    return %arg2, %arg1 : i32, i32
  }
  func.func @transform_2(%arg0: i32, %arg1: i32, %arg2: i32) -> (i32, i32) {
    %c0_i32 = arith.constant 0 : i32
    %c0_i32_0 = arith.constant 0 : i32
    return %c0_i32, %arg1 : i32, i32
  }
  func.func @transform_3(%arg0: i32, %arg1: i32, %arg2: i32) -> (i32, i32) {
    %c0_i32 = arith.constant 0 : i32
    return %arg0, %arg1 : i32, i32
  }
  func.func @transform_4(%arg0: i32, %arg1: i32, %arg2: i32) -> (i32, i32) {
    %c0_i32 = arith.constant 0 : i32
    return %arg0, %arg1 : i32, i32
  }
}

module attributes {stable_mosaic.version = 11 : i64} {
  func.func @_linear_kernel(%arg0: i32, %arg1: i32, %arg2: i32, %arg3: memref<64x256xf32, #tpu.memory_space<vmem>>, %arg4: memref<256x256xf32, #tpu.memory_space<vmem>>, %arg5: memref<1x256xf32, #tpu.memory_space<vmem>>, %arg6: memref<1x256xf32, #tpu.memory_space<vmem>>, %arg7: memref<1x256xf32, #tpu.memory_space<vmem>>, %arg8: memref<64x256xf32, #tpu.memory_space<vmem>>, %arg9: memref<64x256xf32, #tpu.memory_space<vmem>>) attributes {dimension_semantics = [#tpu.dimension_semantics<parallel>, #tpu.dimension_semantics<parallel>, #tpu.dimension_semantics<arbitrary>], iteration_bounds = array<i64: 1, 3, 1>, scalar_prefetch = 0 : i64, scratch_operands = 1 : i64, tpu.core_type = #tpu.core_type<tc>, window_params = [{transform_indices = @transform_0, window_bounds = array<i64: 64, 256>}, {transform_indices = @transform_1, window_bounds = array<i64: 256, 256>}, {transform_indices = @transform_2, window_bounds = array<i64: 1, 256>}, {transform_indices = @transform_3, window_bounds = array<i64: 1, 256>}, {transform_indices = @transform_4, window_bounds = array<i64: 1, 256>}, {transform_indices = @transform_5, window_bounds = array<i64: 64, 256>}]} {
    %c0_i32 = arith.constant 0 : i32
    %0 = arith.cmpi eq, %arg2, %c0_i32 : i32
    %1 = arith.extui %0 : i1 to i32
    %c0_i32_0 = arith.constant 0 : i32
    %2 = arith.cmpi ne, %1, %c0_i32_0 : i32
    scf.if %2 {
      %cst_19 = arith.constant 0.000000e+00 : f32
      %36 = vector.broadcast %cst_19 : f32 to vector<64x256xf32>
      %c0_20 = arith.constant 0 : index
      %c0_21 = arith.constant 0 : index
      %37 = vector.load %arg9[%c0_20, %c0_21] : memref<64x256xf32, #tpu.memory_space<vmem>>, vector<64x256xf32>
      tpu.vector_store %arg9[%c0_20, %c0_21], %36 {strides = array<i32>} : memref<64x256xf32, #tpu.memory_space<vmem>>, vector<64x256xf32>,
    } else {
    }
    %c0 = arith.constant 0 : index
    %c0_1 = arith.constant 0 : index
    %3 = vector.load %arg3[%c0, %c0_1] : memref<64x256xf32, #tpu.memory_space<vmem>>, vector<64x256xf32>
    %cst = arith.constant dense<0.000000e+00> : vector<64xf32>
    %4 = vector.multi_reduction <add>, %3, %cst [1] : vector<64x256xf32> to vector<64xf32>
    %5 = vector.shape_cast %4 : vector<64xf32> to vector<64x1xf32>
    %cst_2 = arith.constant 2.560000e+02 : f32
    %6 = vector.broadcast %cst_2 : f32 to vector<64x1xf32>
    %7 = arith.divf %5, %6 : vector<64x1xf32>
    %8 = vector.broadcast %7 : vector<64x1xf32> to vector<64x256xf32>
    %9 = arith.subf %3, %8 : vector<64x256xf32>
    %10 = arith.mulf %9, %9 : vector<64x256xf32>
    %cst_3 = arith.constant dense<0.000000e+00> : vector<64xf32>
    %11 = vector.multi_reduction <add>, %10, %cst_3 [1] : vector<64x256xf32> to vector<64xf32>
    %12 = vector.shape_cast %11 : vector<64xf32> to vector<64x1xf32>
    %cst_4 = arith.constant 2.560000e+02 : f32
    %13 = vector.broadcast %cst_4 : f32 to vector<64x1xf32>
    %14 = arith.divf %12, %13 : vector<64x1xf32>
    %15 = vector.broadcast %7 : vector<64x1xf32> to vector<64x256xf32>
    %16 = arith.subf %3, %15 : vector<64x256xf32>
    %cst_5 = arith.constant 9.99999974E-6 : f32
    %17 = vector.broadcast %cst_5 : f32 to vector<64x1xf32>
    %18 = arith.addf %14, %17 : vector<64x1xf32>
    %19 = math.rsqrt %18 : vector<64x1xf32>
    %20 = vector.broadcast %19 : vector<64x1xf32> to vector<64x256xf32>
    %21 = arith.mulf %16, %20 : vector<64x256xf32>
    %c0_6 = arith.constant 0 : index
    %c0_7 = arith.constant 0 : index
    %22 = vector.load %arg6[%c0_6, %c0_7] : memref<1x256xf32, #tpu.memory_space<vmem>>, vector<1x256xf32>
    %23 = vector.broadcast %22 : vector<1x256xf32> to vector<64x256xf32>
    %24 = arith.mulf %21, %23 : vector<64x256xf32>
    %c0_8 = arith.constant 0 : index
    %c0_9 = arith.constant 0 : index
    %25 = vector.load %arg7[%c0_8, %c0_9] : memref<1x256xf32, #tpu.memory_space<vmem>>, vector<1x256xf32>
    %26 = vector.broadcast %25 : vector<1x256xf32> to vector<64x256xf32>
    %27 = arith.addf %24, %26 : vector<64x256xf32>
    %c0_10 = arith.constant 0 : index
    %c0_11 = arith.constant 0 : index
    %28 = vector.load %arg9[%c0_10, %c0_11] : memref<64x256xf32, #tpu.memory_space<vmem>>, vector<64x256xf32>
    %c0_12 = arith.constant 0 : index
    %c0_13 = arith.constant 0 : index
    %29 = vector.load %arg4[%c0_12, %c0_13] : memref<256x256xf32, #tpu.memory_space<vmem>>, vector<256x256xf32>
    %cst_14 = arith.constant dense<0.000000e+00> : vector<64x256xf32>
    %30 = tpu.matmul %27, %29, %cst_14 {dimension_numbers = #tpu.dot_dimension_numbers<[1], [0], [0], [1], [0, 0, 1, 1], [], []>} : vector<64x256xf32>, vector<256x256xf32>, vector<64x256xf32> -> vector<64x256xf32>
    %31 = arith.addf %28, %30 : vector<64x256xf32>
    %c0_15 = arith.constant 0 : index
    %c0_16 = arith.constant 0 : index
    %32 = vector.load %arg9[%c0_15, %c0_16] : memref<64x256xf32, #tpu.memory_space<vmem>>, vector<64x256xf32>
    tpu.vector_store %arg9[%c0_15, %c0_16], %31 {strides = array<i32>} : memref<64x256xf32, #tpu.memory_space<vmem>>, vector<64x256xf32>,
    %c0_i32_17 = arith.constant 0 : i32
    %33 = arith.cmpi eq, %arg2, %c0_i32_17 : i32
    %34 = arith.extui %33 : i1 to i32
    %c0_i32_18 = arith.constant 0 : i32
    %35 = arith.cmpi ne, %34, %c0_i32_18 : i32
    scf.if %35 {
      %c0_19 = arith.constant 0 : index
      %c0_20 = arith.constant 0 : index
      %36 = vector.load %arg9[%c0_19, %c0_20] : memref<64x256xf32, #tpu.memory_space<vmem>>, vector<64x256xf32>
      %c0_21 = arith.constant 0 : index
      %c0_22 = arith.constant 0 : index
      %37 = vector.load %arg5[%c0_21, %c0_22] : memref<1x256xf32, #tpu.memory_space<vmem>>, vector<1x256xf32>
      %38 = vector.broadcast %37 : vector<1x256xf32> to vector<64x256xf32>
      %39 = arith.addf %36, %38 : vector<64x256xf32>
      %c0_23 = arith.constant 0 : index
      %c0_24 = arith.constant 0 : index
      %40 = vector.load %arg8[%c0_23, %c0_24] : memref<64x256xf32, #tpu.memory_space<vmem>>, vector<64x256xf32>
      tpu.vector_store %arg8[%c0_23, %c0_24], %39 {strides = array<i32>} : memref<64x256xf32, #tpu.memory_space<vmem>>, vector<64x256xf32>,
    } else {
    }
    return
  }
  func.func @transform_0(%arg0: i32, %arg1: i32, %arg2: i32) -> (i32, i32) {
    %c0_i32 = arith.constant 0 : i32
    return %arg0, %arg2 : i32, i32
  }
  func.func @transform_1(%arg0: i32, %arg1: i32, %arg2: i32) -> (i32, i32) {
    %c0_i32 = arith.constant 0 : i32
    return %arg2, %arg1 : i32, i32
  }
  func.func @transform_2(%arg0: i32, %arg1: i32, %arg2: i32) -> (i32, i32) {
    %c0_i32 = arith.constant 0 : i32
    %c0_i32_0 = arith.constant 0 : i32
    return %c0_i32, %arg1 : i32, i32
  }
  func.func @transform_3(%arg0: i32, %arg1: i32, %arg2: i32) -> (i32, i32) {
    %c0_i32 = arith.constant 0 : i32
    %c0_i32_0 = arith.constant 0 : i32
    return %c0_i32, %arg2 : i32, i32
  }
  func.func @transform_4(%arg0: i32, %arg1: i32, %arg2: i32) -> (i32, i32) {
    %c0_i32 = arith.constant 0 : i32
    %c0_i32_0 = arith.constant 0 : i32
    return %c0_i32, %arg2 : i32, i32
  }
  func.func @transform_5(%arg0: i32, %arg1: i32, %arg2: i32) -> (i32, i32) {
    %c0_i32 = arith.constant 0 : i32
    return %arg0, %arg1 : i32, i32
  }
}

module attributes {stable_mosaic.version = 11 : i64} {
  func.func @_linear_kernel(%arg0: i32, %arg1: i32, %arg2: i32, %arg3: memref<64x256xf32, #tpu.memory_space<vmem>>, %arg4: memref<256x256xf32, #tpu.memory_space<vmem>>, %arg5: memref<1x256xf32, #tpu.memory_space<vmem>>, %arg6: memref<1x256xf32, #tpu.memory_space<vmem>>, %arg7: memref<1x256xf32, #tpu.memory_space<vmem>>, %arg8: memref<64x256xf32, #tpu.memory_space<vmem>>, %arg9: memref<64x256xf32, #tpu.memory_space<vmem>>) attributes {dimension_semantics = [#tpu.dimension_semantics<parallel>, #tpu.dimension_semantics<parallel>, #tpu.dimension_semantics<arbitrary>], iteration_bounds = array<i64: 1, 1, 1>, scalar_prefetch = 0 : i64, scratch_operands = 1 : i64, tpu.core_type = #tpu.core_type<tc>, window_params = [{transform_indices = @transform_0, window_bounds = array<i64: 64, 256>}, {transform_indices = @transform_1, window_bounds = array<i64: 256, 256>}, {transform_indices = @transform_2, window_bounds = array<i64: 1, 256>}, {transform_indices = @transform_3, window_bounds = array<i64: 1, 256>}, {transform_indices = @transform_4, window_bounds = array<i64: 1, 256>}, {transform_indices = @transform_5, window_bounds = array<i64: 64, 256>}]} {
    %c0_i32 = arith.constant 0 : i32
    %0 = arith.cmpi eq, %arg2, %c0_i32 : i32
    %1 = arith.extui %0 : i1 to i32
    %c0_i32_0 = arith.constant 0 : i32
    %2 = arith.cmpi ne, %1, %c0_i32_0 : i32
    scf.if %2 {
      %cst_19 = arith.constant 0.000000e+00 : f32
      %36 = vector.broadcast %cst_19 : f32 to vector<64x256xf32>
      %c0_20 = arith.constant 0 : index
      %c0_21 = arith.constant 0 : index
      %37 = vector.load %arg9[%c0_20, %c0_21] : memref<64x256xf32, #tpu.memory_space<vmem>>, vector<64x256xf32>
      tpu.vector_store %arg9[%c0_20, %c0_21], %36 {strides = array<i32>} : memref<64x256xf32, #tpu.memory_space<vmem>>, vector<64x256xf32>,
    } else {
    }
    %c0 = arith.constant 0 : index
    %c0_1 = arith.constant 0 : index
    %3 = vector.load %arg3[%c0, %c0_1] : memref<64x256xf32, #tpu.memory_space<vmem>>, vector<64x256xf32>
    %cst = arith.constant dense<0.000000e+00> : vector<64xf32>
    %4 = vector.multi_reduction <add>, %3, %cst [1] : vector<64x256xf32> to vector<64xf32>
    %5 = vector.shape_cast %4 : vector<64xf32> to vector<64x1xf32>
    %cst_2 = arith.constant 2.560000e+02 : f32
    %6 = vector.broadcast %cst_2 : f32 to vector<64x1xf32>
    %7 = arith.divf %5, %6 : vector<64x1xf32>
    %8 = vector.broadcast %7 : vector<64x1xf32> to vector<64x256xf32>
    %9 = arith.subf %3, %8 : vector<64x256xf32>
    %10 = arith.mulf %9, %9 : vector<64x256xf32>
    %cst_3 = arith.constant dense<0.000000e+00> : vector<64xf32>
    %11 = vector.multi_reduction <add>, %10, %cst_3 [1] : vector<64x256xf32> to vector<64xf32>
    %12 = vector.shape_cast %11 : vector<64xf32> to vector<64x1xf32>
    %cst_4 = arith.constant 2.560000e+02 : f32
    %13 = vector.broadcast %cst_4 : f32 to vector<64x1xf32>
    %14 = arith.divf %12, %13 : vector<64x1xf32>
    %15 = vector.broadcast %7 : vector<64x1xf32> to vector<64x256xf32>
    %16 = arith.subf %3, %15 : vector<64x256xf32>
    %cst_5 = arith.constant 9.99999974E-6 : f32
    %17 = vector.broadcast %cst_5 : f32 to vector<64x1xf32>
    %18 = arith.addf %14, %17 : vector<64x1xf32>
    %19 = math.rsqrt %18 : vector<64x1xf32>
    %20 = vector.broadcast %19 : vector<64x1xf32> to vector<64x256xf32>
    %21 = arith.mulf %16, %20 : vector<64x256xf32>
    %c0_6 = arith.constant 0 : index
    %c0_7 = arith.constant 0 : index
    %22 = vector.load %arg6[%c0_6, %c0_7] : memref<1x256xf32, #tpu.memory_space<vmem>>, vector<1x256xf32>
    %23 = vector.broadcast %22 : vector<1x256xf32> to vector<64x256xf32>
    %24 = arith.mulf %21, %23 : vector<64x256xf32>
    %c0_8 = arith.constant 0 : index
    %c0_9 = arith.constant 0 : index
    %25 = vector.load %arg7[%c0_8, %c0_9] : memref<1x256xf32, #tpu.memory_space<vmem>>, vector<1x256xf32>
    %26 = vector.broadcast %25 : vector<1x256xf32> to vector<64x256xf32>
    %27 = arith.addf %24, %26 : vector<64x256xf32>
    %c0_10 = arith.constant 0 : index
    %c0_11 = arith.constant 0 : index
    %28 = vector.load %arg9[%c0_10, %c0_11] : memref<64x256xf32, #tpu.memory_space<vmem>>, vector<64x256xf32>
    %c0_12 = arith.constant 0 : index
    %c0_13 = arith.constant 0 : index
    %29 = vector.load %arg4[%c0_12, %c0_13] : memref<256x256xf32, #tpu.memory_space<vmem>>, vector<256x256xf32>
    %cst_14 = arith.constant dense<0.000000e+00> : vector<64x256xf32>
    %30 = tpu.matmul %27, %29, %cst_14 {dimension_numbers = #tpu.dot_dimension_numbers<[1], [0], [0], [1], [0, 0, 1, 1], [], []>} : vector<64x256xf32>, vector<256x256xf32>, vector<64x256xf32> -> vector<64x256xf32>
    %31 = arith.addf %28, %30 : vector<64x256xf32>
    %c0_15 = arith.constant 0 : index
    %c0_16 = arith.constant 0 : index
    %32 = vector.load %arg9[%c0_15, %c0_16] : memref<64x256xf32, #tpu.memory_space<vmem>>, vector<64x256xf32>
    tpu.vector_store %arg9[%c0_15, %c0_16], %31 {strides = array<i32>} : memref<64x256xf32, #tpu.memory_space<vmem>>, vector<64x256xf32>,
    %c0_i32_17 = arith.constant 0 : i32
    %33 = arith.cmpi eq, %arg2, %c0_i32_17 : i32
    %34 = arith.extui %33 : i1 to i32
    %c0_i32_18 = arith.constant 0 : i32
    %35 = arith.cmpi ne, %34, %c0_i32_18 : i32
    scf.if %35 {
      %c0_19 = arith.constant 0 : index
      %c0_20 = arith.constant 0 : index
      %36 = vector.load %arg9[%c0_19, %c0_20] : memref<64x256xf32, #tpu.memory_space<vmem>>, vector<64x256xf32>
      %c0_21 = arith.constant 0 : index
      %c0_22 = arith.constant 0 : index
      %37 = vector.load %arg5[%c0_21, %c0_22] : memref<1x256xf32, #tpu.memory_space<vmem>>, vector<1x256xf32>
      %38 = vector.broadcast %37 : vector<1x256xf32> to vector<64x256xf32>
      %39 = arith.addf %36, %38 : vector<64x256xf32>
      %c0_23 = arith.constant 0 : index
      %c0_24 = arith.constant 0 : index
      %40 = vector.load %arg8[%c0_23, %c0_24] : memref<64x256xf32, #tpu.memory_space<vmem>>, vector<64x256xf32>
      tpu.vector_store %arg8[%c0_23, %c0_24], %39 {strides = array<i32>} : memref<64x256xf32, #tpu.memory_space<vmem>>, vector<64x256xf32>,
    } else {
    }
    return
  }
  func.func @transform_0(%arg0: i32, %arg1: i32, %arg2: i32) -> (i32, i32) {
    %c0_i32 = arith.constant 0 : i32
    return %arg0, %arg2 : i32, i32
  }
  func.func @transform_1(%arg0: i32, %arg1: i32, %arg2: i32) -> (i32, i32) {
    %c0_i32 = arith.constant 0 : i32
    return %arg2, %arg1 : i32, i32
  }
  func.func @transform_2(%arg0: i32, %arg1: i32, %arg2: i32) -> (i32, i32) {
    %c0_i32 = arith.constant 0 : i32
    %c0_i32_0 = arith.constant 0 : i32
    return %c0_i32, %arg1 : i32, i32
  }
  func.func @transform_3(%arg0: i32, %arg1: i32, %arg2: i32) -> (i32, i32) {
    %c0_i32 = arith.constant 0 : i32
    %c0_i32_0 = arith.constant 0 : i32
    return %c0_i32, %arg2 : i32, i32
  }
  func.func @transform_4(%arg0: i32, %arg1: i32, %arg2: i32) -> (i32, i32) {
    %c0_i32 = arith.constant 0 : i32
    %c0_i32_0 = arith.constant 0 : i32
    return %c0_i32, %arg2 : i32, i32
  }
  func.func @transform_5(%arg0: i32, %arg1: i32, %arg2: i32) -> (i32, i32) {
    %c0_i32 = arith.constant 0 : i32
    return %arg0, %arg1 : i32, i32
  }
}

module attributes {stable_mosaic.version = 11 : i64} {
  func.func @_linear_kernel(%arg0: i32, %arg1: i32, %arg2: i32, %arg3: memref<64x256xf32, #tpu.memory_space<vmem>>, %arg4: memref<256x512xf32, #tpu.memory_space<vmem>>, %arg5: memref<1x512xf32, #tpu.memory_space<vmem>>, %arg6: memref<1x256xf32, #tpu.memory_space<vmem>>, %arg7: memref<1x256xf32, #tpu.memory_space<vmem>>, %arg8: memref<64x512xf32, #tpu.memory_space<vmem>>, %arg9: memref<64x512xf32, #tpu.memory_space<vmem>>) attributes {dimension_semantics = [#tpu.dimension_semantics<parallel>, #tpu.dimension_semantics<parallel>, #tpu.dimension_semantics<arbitrary>], iteration_bounds = array<i64: 1, 2, 1>, scalar_prefetch = 0 : i64, scratch_operands = 1 : i64, tpu.core_type = #tpu.core_type<tc>, window_params = [{transform_indices = @transform_0, window_bounds = array<i64: 64, 256>}, {transform_indices = @transform_1, window_bounds = array<i64: 256, 512>}, {transform_indices = @transform_2, window_bounds = array<i64: 1, 512>}, {transform_indices = @transform_3, window_bounds = array<i64: 1, 256>}, {transform_indices = @transform_4, window_bounds = array<i64: 1, 256>}, {transform_indices = @transform_5, window_bounds = array<i64: 64, 512>}]} {
    %c0_i32 = arith.constant 0 : i32
    %0 = arith.cmpi eq, %arg2, %c0_i32 : i32
    %1 = arith.extui %0 : i1 to i32
    %c0_i32_0 = arith.constant 0 : i32
    %2 = arith.cmpi ne, %1, %c0_i32_0 : i32
    scf.if %2 {
      %cst_19 = arith.constant 0.000000e+00 : f32
      %36 = vector.broadcast %cst_19 : f32 to vector<64x512xf32>
      %c0_20 = arith.constant 0 : index
      %c0_21 = arith.constant 0 : index
      %37 = vector.load %arg9[%c0_20, %c0_21] : memref<64x512xf32, #tpu.memory_space<vmem>>, vector<64x512xf32>
      tpu.vector_store %arg9[%c0_20, %c0_21], %36 {strides = array<i32>} : memref<64x512xf32, #tpu.memory_space<vmem>>, vector<64x512xf32>,
    } else {
    }
    %c0 = arith.constant 0 : index
    %c0_1 = arith.constant 0 : index
    %3 = vector.load %arg3[%c0, %c0_1] : memref<64x256xf32, #tpu.memory_space<vmem>>, vector<64x256xf32>
    %cst = arith.constant dense<0.000000e+00> : vector<64xf32>
    %4 = vector.multi_reduction <add>, %3, %cst [1] : vector<64x256xf32> to vector<64xf32>
    %5 = vector.shape_cast %4 : vector<64xf32> to vector<64x1xf32>
    %cst_2 = arith.constant 2.560000e+02 : f32
    %6 = vector.broadcast %cst_2 : f32 to vector<64x1xf32>
    %7 = arith.divf %5, %6 : vector<64x1xf32>
    %8 = vector.broadcast %7 : vector<64x1xf32> to vector<64x256xf32>
    %9 = arith.subf %3, %8 : vector<64x256xf32>
    %10 = arith.mulf %9, %9 : vector<64x256xf32>
    %cst_3 = arith.constant dense<0.000000e+00> : vector<64xf32>
    %11 = vector.multi_reduction <add>, %10, %cst_3 [1] : vector<64x256xf32> to vector<64xf32>
    %12 = vector.shape_cast %11 : vector<64xf32> to vector<64x1xf32>
    %cst_4 = arith.constant 2.560000e+02 : f32
    %13 = vector.broadcast %cst_4 : f32 to vector<64x1xf32>
    %14 = arith.divf %12, %13 : vector<64x1xf32>
    %15 = vector.broadcast %7 : vector<64x1xf32> to vector<64x256xf32>
    %16 = arith.subf %3, %15 : vector<64x256xf32>
    %cst_5 = arith.constant 9.99999974E-6 : f32
    %17 = vector.broadcast %cst_5 : f32 to vector<64x1xf32>
    %18 = arith.addf %14, %17 : vector<64x1xf32>
    %19 = math.rsqrt %18 : vector<64x1xf32>
    %20 = vector.broadcast %19 : vector<64x1xf32> to vector<64x256xf32>
    %21 = arith.mulf %16, %20 : vector<64x256xf32>
    %c0_6 = arith.constant 0 : index
    %c0_7 = arith.constant 0 : index
    %22 = vector.load %arg6[%c0_6, %c0_7] : memref<1x256xf32, #tpu.memory_space<vmem>>, vector<1x256xf32>
    %23 = vector.broadcast %22 : vector<1x256xf32> to vector<64x256xf32>
    %24 = arith.mulf %21, %23 : vector<64x256xf32>
    %c0_8 = arith.constant 0 : index
    %c0_9 = arith.constant 0 : index
    %25 = vector.load %arg7[%c0_8, %c0_9] : memref<1x256xf32, #tpu.memory_space<vmem>>, vector<1x256xf32>
    %26 = vector.broadcast %25 : vector<1x256xf32> to vector<64x256xf32>
    %27 = arith.addf %24, %26 : vector<64x256xf32>
    %c0_10 = arith.constant 0 : index
    %c0_11 = arith.constant 0 : index
    %28 = vector.load %arg9[%c0_10, %c0_11] : memref<64x512xf32, #tpu.memory_space<vmem>>, vector<64x512xf32>
    %c0_12 = arith.constant 0 : index
    %c0_13 = arith.constant 0 : index
    %29 = vector.load %arg4[%c0_12, %c0_13] : memref<256x512xf32, #tpu.memory_space<vmem>>, vector<256x512xf32>
    %cst_14 = arith.constant dense<0.000000e+00> : vector<64x512xf32>
    %30 = tpu.matmul %27, %29, %cst_14 {dimension_numbers = #tpu.dot_dimension_numbers<[1], [0], [0], [1], [0, 0, 1, 1], [], []>} : vector<64x256xf32>, vector<256x512xf32>, vector<64x512xf32> -> vector<64x512xf32>
    %31 = arith.addf %28, %30 : vector<64x512xf32>
    %c0_15 = arith.constant 0 : index
    %c0_16 = arith.constant 0 : index
    %32 = vector.load %arg9[%c0_15, %c0_16] : memref<64x512xf32, #tpu.memory_space<vmem>>, vector<64x512xf32>
    tpu.vector_store %arg9[%c0_15, %c0_16], %31 {strides = array<i32>} : memref<64x512xf32, #tpu.memory_space<vmem>>, vector<64x512xf32>,
    %c0_i32_17 = arith.constant 0 : i32
    %33 = arith.cmpi eq, %arg2, %c0_i32_17 : i32
    %34 = arith.extui %33 : i1 to i32
    %c0_i32_18 = arith.constant 0 : i32
    %35 = arith.cmpi ne, %34, %c0_i32_18 : i32
    scf.if %35 {
      %c0_19 = arith.constant 0 : index
      %c0_20 = arith.constant 0 : index
      %36 = vector.load %arg9[%c0_19, %c0_20] : memref<64x512xf32, #tpu.memory_space<vmem>>, vector<64x512xf32>
      %c0_21 = arith.constant 0 : index
      %c0_22 = arith.constant 0 : index
      %37 = vector.load %arg5[%c0_21, %c0_22] : memref<1x512xf32, #tpu.memory_space<vmem>>, vector<1x512xf32>
      %38 = vector.broadcast %37 : vector<1x512xf32> to vector<64x512xf32>
      %39 = arith.addf %36, %38 : vector<64x512xf32>
      %40 = arith.mulf %39, %39 : vector<64x512xf32>
      %41 = arith.mulf %39, %40 : vector<64x512xf32>
      %cst_23 = arith.constant 4.471500e-02 : f32
      %42 = vector.broadcast %cst_23 : f32 to vector<64x512xf32>
      %43 = arith.mulf %42, %41 : vector<64x512xf32>
      %44 = arith.addf %39, %43 : vector<64x512xf32>
      %cst_24 = arith.constant 0.797884583 : f32
      %45 = vector.broadcast %cst_24 : f32 to vector<64x512xf32>
      %46 = arith.mulf %45, %44 : vector<64x512xf32>
      %47 = math.tanh %46 : vector<64x512xf32>
      %cst_25 = arith.constant 1.000000e+00 : f32
      %48 = vector.broadcast %cst_25 : f32 to vector<64x512xf32>
      %49 = arith.addf %48, %47 : vector<64x512xf32>
      %cst_26 = arith.constant 5.000000e-01 : f32
      %50 = vector.broadcast %cst_26 : f32 to vector<64x512xf32>
      %51 = arith.mulf %50, %49 : vector<64x512xf32>
      %52 = arith.mulf %39, %51 : vector<64x512xf32>
      %c0_27 = arith.constant 0 : index
      %c0_28 = arith.constant 0 : index
      %53 = vector.load %arg8[%c0_27, %c0_28] : memref<64x512xf32, #tpu.memory_space<vmem>>, vector<64x512xf32>
      tpu.vector_store %arg8[%c0_27, %c0_28], %52 {strides = array<i32>} : memref<64x512xf32, #tpu.memory_space<vmem>>, vector<64x512xf32>,
    } else {
    }
    return
  }
  func.func @transform_0(%arg0: i32, %arg1: i32, %arg2: i32) -> (i32, i32) {
    %c0_i32 = arith.constant 0 : i32
    return %arg0, %arg2 : i32, i32
  }
  func.func @transform_1(%arg0: i32, %arg1: i32, %arg2: i32) -> (i32, i32) {
    %c0_i32 = arith.constant 0 : i32
    return %arg2, %arg1 : i32, i32
  }
  func.func @transform_2(%arg0: i32, %arg1: i32, %arg2: i32) -> (i32, i32) {
    %c0_i32 = arith.constant 0 : i32
    %c0_i32_0 = arith.constant 0 : i32
    return %c0_i32, %arg1 : i32, i32
  }
  func.func @transform_3(%arg0: i32, %arg1: i32, %arg2: i32) -> (i32, i32) {
    %c0_i32 = arith.constant 0 : i32
    %c0_i32_0 = arith.constant 0 : i32
    return %c0_i32, %arg2 : i32, i32
  }
  func.func @transform_4(%arg0: i32, %arg1: i32, %arg2: i32) -> (i32, i32) {
    %c0_i32 = arith.constant 0 : i32
    %c0_i32_0 = arith.constant 0 : i32
    return %c0_i32, %arg2 : i32, i32
  }
  func.func @transform_5(%arg0: i32, %arg1: i32, %arg2: i32) -> (i32, i32) {
    %c0_i32 = arith.constant 0 : i32
    return %arg0, %arg1 : i32, i32
  }
}

module attributes {stable_mosaic.version = 11 : i64} {
  func.func @_flash_attn_kernel(%arg0: i32, %arg1: i32, %arg2: i32, %arg3: i32, %arg4: memref<32x128xf32, #tpu.memory_space<vmem>>, %arg5: memref<8x128xf32, #tpu.memory_space<vmem>>, %arg6: memref<8x128xf32, #tpu.memory_space<vmem>>, %arg7: memref<1x1x8xf32, #tpu.memory_space<vmem>>, %arg8: memref<32x128xf32, #tpu.memory_space<vmem>>, %arg9: memref<32x1xf32, #tpu.memory_space<vmem>>, %arg10: memref<32x1xf32, #tpu.memory_space<vmem>>, %arg11: memref<32x128xf32, #tpu.memory_space<vmem>>) attributes {dimension_semantics = [#tpu.dimension_semantics<parallel>, #tpu.dimension_semantics<parallel>, #tpu.dimension_semantics<parallel>, #tpu.dimension_semantics<arbitrary>], iteration_bounds = array<i64: 2, 2, 1, 1>, scalar_prefetch = 0 : i64, scratch_operands = 3 : i64, tpu.core_type = #tpu.core_type<tc>, window_params = [{transform_indices = @transform_0, window_bounds = array<i64: 32, 128>}, {transform_indices = @transform_1, window_bounds = array<i64: 8, 128>}, {transform_indices = @transform_2, window_bounds = array<i64: 8, 128>}, {transform_indices = @transform_3, window_bounds = array<i64: 1, 1, 8>}, {transform_indices = @transform_4, window_bounds = array<i64: 32, 128>}]} {
    %c0_i32 = arith.constant 0 : i32
    %0 = arith.cmpi eq, %arg3, %c0_i32 : i32
    %1 = arith.extui %0 : i1 to i32
    %c0_i32_0 = arith.constant 0 : i32
    %2 = arith.cmpi ne, %1, %c0_i32_0 : i32
    scf.if %2 {
      %cst_26 = arith.constant -1.000000e+30 : f32
      %36 = vector.broadcast %cst_26 : f32 to vector<32x1xf32>
      %c0_27 = arith.constant 0 : index
      %c0_28 = arith.constant 0 : index
      %37 = vector.load %arg9[%c0_27, %c0_28] : memref<32x1xf32, #tpu.memory_space<vmem>>, vector<32x1xf32>
      tpu.vector_store %arg9[%c0_27, %c0_28], %36 {strides = array<i32>} : memref<32x1xf32, #tpu.memory_space<vmem>>, vector<32x1xf32>,
      %cst_29 = arith.constant 0.000000e+00 : f32
      %38 = vector.broadcast %cst_29 : f32 to vector<32x1xf32>
      %c0_30 = arith.constant 0 : index
      %c0_31 = arith.constant 0 : index
      %39 = vector.load %arg10[%c0_30, %c0_31] : memref<32x1xf32, #tpu.memory_space<vmem>>, vector<32x1xf32>
      tpu.vector_store %arg10[%c0_30, %c0_31], %38 {strides = array<i32>} : memref<32x1xf32, #tpu.memory_space<vmem>>, vector<32x1xf32>,
      %cst_32 = arith.constant 0.000000e+00 : f32
      %40 = vector.broadcast %cst_32 : f32 to vector<32x128xf32>
      %c0_33 = arith.constant 0 : index
      %c0_34 = arith.constant 0 : index
      %41 = vector.load %arg11[%c0_33, %c0_34] : memref<32x128xf32, #tpu.memory_space<vmem>>, vector<32x128xf32>
      tpu.vector_store %arg11[%c0_33, %c0_34], %40 {strides = array<i32>} : memref<32x128xf32, #tpu.memory_space<vmem>>, vector<32x128xf32>,
    } else {
    }
    %c0 = arith.constant 0 : index
    %c0_1 = arith.constant 0 : index
    %3 = vector.load %arg4[%c0, %c0_1] : memref<32x128xf32, #tpu.memory_space<vmem>>, vector<32x128xf32>
    %c0_2 = arith.constant 0 : index
    %c0_3 = arith.constant 0 : index
    %4 = vector.load %arg5[%c0_2, %c0_3] : memref<8x128xf32, #tpu.memory_space<vmem>>, vector<8x128xf32>
    %cst = arith.constant dense<0.000000e+00> : vector<32x8xf32>
    %5 = tpu.matmul %3, %4, %cst {dimension_numbers = #tpu.dot_dimension_numbers<[1], [1], [0], [0], [0, 0, 1, 0], [], []>} : vector<32x128xf32>, vector<8x128xf32>, vector<32x8xf32> -> vector<32x8xf32>
    %c0_4 = arith.constant 0 : index
    %c0_5 = arith.constant 0 : index
    %c0_6 = arith.constant 0 : index
    %6 = vector.load %arg7[%c0_4, %c0_5, %c0_6] : memref<1x1x8xf32, #tpu.memory_space<vmem>>, vector<1x1x8xf32>
    %7 = vector.shape_cast %6 : vector<1x1x8xf32> to vector<1x8xf32>
    %8 = vector.broadcast %7 : vector<1x8xf32> to vector<32x8xf32>
    %9 = arith.addf %5, %8 : vector<32x8xf32>
    %c0_7 = arith.constant 0 : index
    %c0_8 = arith.constant 0 : index
    %10 = vector.load %arg9[%c0_7, %c0_8] : memref<32x1xf32, #tpu.memory_space<vmem>>, vector<32x1xf32>
    %cst_9 = arith.constant dense<0xFF800000> : vector<32xf32>
    %11 = vector.multi_reduction <maximumf>, %9, %cst_9 [1] : vector<32x8xf32> to vector<32xf32>
    %12 = vector.shape_cast %11 : vector<32xf32> to vector<32x1xf32>
    %13 = arith.maximumf %10, %12 : vector<32x1xf32>
    %14 = arith.subf %10, %13 : vector<32x1xf32>
    %15 = math.exp %14 : vector<32x1xf32>
    %16 = vector.broadcast %13 : vector<32x1xf32> to vector<32x8xf32>
    %17 = arith.subf %9, %16 : vector<32x8xf32>
    %18 = math.exp %17 : vector<32x8xf32>
    %c0_10 = arith.constant 0 : index
    %c0_11 = arith.constant 0 : index
    %19 = vector.load %arg10[%c0_10, %c0_11] : memref<32x1xf32, #tpu.memory_space<vmem>>, vector<32x1xf32>
    %20 = arith.mulf %15, %19 : vector<32x1xf32>
    %cst_12 = arith.constant dense<0.000000e+00> : vector<32xf32>
    %21 = vector.multi_reduction <add>, %18, %cst_12 [1] : vector<32x8xf32> to vector<32xf32>
    %22 = vector.shape_cast %21 : vector<32xf32> to vector<32x1xf32>
    %23 = arith.addf %20, %22 : vector<32x1xf32>
    %c0_13 = arith.constant 0 : index
    %c0_14 = arith.constant 0 : index
    %24 = vector.load %arg10[%c0_13, %c0_14] : memref<32x1xf32, #tpu.memory_space<vmem>>, vector<32x1xf32>
    tpu.vector_store %arg10[%c0_13, %c0_14], %23 {strides = array<i32>} : memref<32x1xf32, #tpu.memory_space<vmem>>, vector<32x1xf32>,
    %c0_15 = arith.constant 0 : index
    %c0_16 = arith.constant 0 : index
    %25 = vector.load %arg11[%c0_15, %c0_16] : memref<32x128xf32, #tpu.memory_space<vmem>>, vector<32x128xf32>
    %26 = vector.broadcast %15 : vector<32x1xf32> to vector<32x128xf32>
    %27 = arith.mulf %26, %25 : vector<32x128xf32>
    %c0_17 = arith.constant 0 : index
    %c0_18 = arith.constant 0 : index
    %28 = vector.load %arg6[%c0_17, %c0_18] : memref<8x128xf32, #tpu.memory_space<vmem>>, vector<8x128xf32>
    %cst_19 = arith.constant dense<0.000000e+00> : vector<32x128xf32>
    %29 = tpu.matmul %18, %28, %cst_19 {dimension_numbers = #tpu.dot_dimension_numbers<[1], [0], [0], [1], [0, 0, 1, 1], [], []>} : vector<32x8xf32>, vector<8x128xf32>, vector<32x128xf32> -> vector<32x128xf32>
    %30 = arith.addf %27, %29 : vector<32x128xf32>
    %c0_20 = arith.constant 0 : index
    %c0_21 = arith.constant 0 : index
    %31 = vector.load %arg11[%c0_20, %c0_21] : memref<32x128xf32, #tpu.memory_space<vmem>>, vector<32x128xf32>
    tpu.vector_store %arg11[%c0_20, %c0_21], %30 {strides = array<i32>} : memref<32x128xf32, #tpu.memory_space<vmem>>, vector<32x128xf32>,
    %c0_22 = arith.constant 0 : index
    %c0_23 = arith.constant 0 : index
    %32 = vector.load %arg9[%c0_22, %c0_23] : memref<32x1xf32, #tpu.memory_space<vmem>>, vector<32x1xf32>
    tpu.vector_store %arg9[%c0_22, %c0_23], %13 {strides = array<i32>} : memref<32x1xf32, #tpu.memory_space<vmem>>, vector<32x1xf32>,
    %c0_i32_24 = arith.constant 0 : i32
    %33 = arith.cmpi eq, %arg3, %c0_i32_24 : i32
    %34 = arith.extui %33 : i1 to i32
    %c0_i32_25 = arith.constant 0 : i32
    %35 = arith.cmpi ne, %34, %c0_i32_25 : i32
    scf.if %35 {
      %c0_26 = arith.constant 0 : index
      %c0_27 = arith.constant 0 : index
      %36 = vector.load %arg11[%c0_26, %c0_27] : memref<32x128xf32, #tpu.memory_space<vmem>>, vector<32x128xf32>
      %c0_28 = arith.constant 0 : index
      %c0_29 = arith.constant 0 : index
      %37 = vector.load %arg10[%c0_28, %c0_29] : memref<32x1xf32, #tpu.memory_space<vmem>>, vector<32x1xf32>
      %38 = tpu.reciprocal %37 {approx = true} : vector<32x1xf32> -> vector<32x1xf32>
      %39 = vector.broadcast %38 : vector<32x1xf32> to vector<32x128xf32>
      %40 = arith.mulf %36, %39 : vector<32x128xf32>
      %c0_30 = arith.constant 0 : index
      %c0_31 = arith.constant 0 : index
      %41 = vector.load %arg8[%c0_30, %c0_31] : memref<32x128xf32, #tpu.memory_space<vmem>>, vector<32x128xf32>
      tpu.vector_store %arg8[%c0_30, %c0_31], %40 {strides = array<i32>} : memref<32x128xf32, #tpu.memory_space<vmem>>, vector<32x128xf32>,
    } else {
    }
    return
  }
  func.func @transform_0(%arg0: i32, %arg1: i32, %arg2: i32, %arg3: i32) -> (i32, i32) {
    %c1_i32 = arith.constant 1 : i32
    %0 = arith.muli %arg0, %c1_i32 : i32
    %1 = arith.addi %0, %arg2 : i32
    %c0_i32 = arith.constant 0 : i32
    %2 = arith.addi %c0_i32, %arg1 : i32
    %c0_i32_0 = arith.constant 0 : i32
    return %1, %2 : i32, i32
  }
  func.func @transform_1(%arg0: i32, %arg1: i32, %arg2: i32, %arg3: i32) -> (i32, i32) {
    %c1_i32 = arith.constant 1 : i32
    %0 = arith.muli %arg0, %c1_i32 : i32
    %1 = arith.addi %0, %arg3 : i32
    %c0_i32 = arith.constant 0 : i32
    %2 = arith.addi %c0_i32, %arg1 : i32
    %c0_i32_0 = arith.constant 0 : i32
    return %1, %2 : i32, i32
  }
  func.func @transform_2(%arg0: i32, %arg1: i32, %arg2: i32, %arg3: i32) -> (i32, i32) {
    %c1_i32 = arith.constant 1 : i32
    %0 = arith.muli %arg0, %c1_i32 : i32
    %1 = arith.addi %0, %arg3 : i32
    %c2_i32 = arith.constant 2 : i32
    %2 = arith.addi %c2_i32, %arg1 : i32
    %c0_i32 = arith.constant 0 : i32
    return %1, %2 : i32, i32
  }
  func.func @transform_3(%arg0: i32, %arg1: i32, %arg2: i32, %arg3: i32) -> (i32, i32, i32) {
    %c0_i32 = arith.constant 0 : i32
    %c0_i32_0 = arith.constant 0 : i32
    return %arg0, %c0_i32, %arg3 : i32, i32, i32
  }
  func.func @transform_4(%arg0: i32, %arg1: i32, %arg2: i32, %arg3: i32) -> (i32, i32) {
    %c1_i32 = arith.constant 1 : i32
    %0 = arith.muli %arg0, %c1_i32 : i32
    %1 = arith.addi %0, %arg2 : i32
    %c0_i32 = arith.constant 0 : i32
    return %1, %arg1 : i32, i32
  }
}

module attributes {stable_mosaic.version = 11 : i64} {
  func.func @_linear_kernel(%arg0: i32, %arg1: i32, %arg2: i32, %arg3: memref<64x512xf32, #tpu.memory_space<vmem>>, %arg4: memref<512x256xf32, #tpu.memory_space<vmem>>, %arg5: memref<1x256xf32, #tpu.memory_space<vmem>>, %arg6: memref<1x256xf32, #tpu.memory_space<vmem>>, %arg7: memref<1x256xf32, #tpu.memory_space<vmem>>, %arg8: memref<64x256xf32, #tpu.memory_space<vmem>>, %arg9: memref<64x256xf32, #tpu.memory_space<vmem>>, %arg10: memref<64x256xf32, #tpu.memory_space<vmem>>) attributes {dimension_semantics = [#tpu.dimension_semantics<parallel>, #tpu.dimension_semantics<parallel>, #tpu.dimension_semantics<arbitrary>], iteration_bounds = array<i64: 1, 1, 2>, scalar_prefetch = 0 : i64, scratch_operands = 1 : i64, tpu.core_type = #tpu.core_type<tc>, window_params = [{transform_indices = @transform_0, window_bounds = array<i64: 64, 512>}, {transform_indices = @transform_1, window_bounds = array<i64: 512, 256>}, {transform_indices = @transform_2, window_bounds = array<i64: 1, 256>}, {transform_indices = @transform_3, window_bounds = array<i64: 1, 256>}, {transform_indices = @transform_4, window_bounds = array<i64: 1, 256>}, {transform_indices = @transform_5, window_bounds = array<i64: 64, 256>}, {transform_indices = @transform_6, window_bounds = array<i64: 64, 256>}]} {
    %c0_i32 = arith.constant 0 : i32
    %0 = arith.cmpi eq, %arg2, %c0_i32 : i32
    %1 = arith.extui %0 : i1 to i32
    %c0_i32_0 = arith.constant 0 : i32
    %2 = arith.cmpi ne, %1, %c0_i32_0 : i32
    scf.if %2 {
      %cst_9 = arith.constant 0.000000e+00 : f32
      %12 = vector.broadcast %cst_9 : f32 to vector<64x256xf32>
      %c0_10 = arith.constant 0 : index
      %c0_11 = arith.constant 0 : index
      %13 = vector.load %arg10[%c0_10, %c0_11] : memref<64x256xf32, #tpu.memory_space<vmem>>, vector<64x256xf32>
      tpu.vector_store %arg10[%c0_10, %c0_11], %12 {strides = array<i32>} : memref<64x256xf32, #tpu.memory_space<vmem>>, vector<64x256xf32>,
    } else {
    }
    %c0 = arith.constant 0 : index
    %c0_1 = arith.constant 0 : index
    %3 = vector.load %arg3[%c0, %c0_1] : memref<64x512xf32, #tpu.memory_space<vmem>>, vector<64x512xf32>
    %c0_2 = arith.constant 0 : index
    %c0_3 = arith.constant 0 : index
    %4 = vector.load %arg10[%c0_2, %c0_3] : memref<64x256xf32, #tpu.memory_space<vmem>>, vector<64x256xf32>
    %c0_4 = arith.constant 0 : index
    %c0_5 = arith.constant 0 : index
    %5 = vector.load %arg4[%c0_4, %c0_5] : memref<512x256xf32, #tpu.memory_space<vmem>>, vector<512x256xf32>
    %cst = arith.constant dense<0.000000e+00> : vector<64x256xf32>
    %6 = tpu.matmul %3, %5, %cst {dimension_numbers = #tpu.dot_dimension_numbers<[1], [0], [0], [1], [0, 0, 1, 1], [], []>} : vector<64x512xf32>, vector<512x256xf32>, vector<64x256xf32> -> vector<64x256xf32>
    %7 = arith.addf %4, %6 : vector<64x256xf32>
    %c0_6 = arith.constant 0 : index
    %c0_7 = arith.constant 0 : index
    %8 = vector.load %arg10[%c0_6, %c0_7] : memref<64x256xf32, #tpu.memory_space<vmem>>, vector<64x256xf32>
    tpu.vector_store %arg10[%c0_6, %c0_7], %7 {strides = array<i32>} : memref<64x256xf32, #tpu.memory_space<vmem>>, vector<64x256xf32>,
    %c1_i32 = arith.constant 1 : i32
    %9 = arith.cmpi eq, %arg2, %c1_i32 : i32
    %10 = arith.extui %9 : i1 to i32
    %c0_i32_8 = arith.constant 0 : i32
    %11 = arith.cmpi ne, %10, %c0_i32_8 : i32
    scf.if %11 {
      %c0_9 = arith.constant 0 : index
      %c0_10 = arith.constant 0 : index
      %12 = vector.load %arg10[%c0_9, %c0_10] : memref<64x256xf32, #tpu.memory_space<vmem>>, vector<64x256xf32>
      %c0_11 = arith.constant 0 : index
      %c0_12 = arith.constant 0 : index
      %13 = vector.load %arg5[%c0_11, %c0_12] : memref<1x256xf32, #tpu.memory_space<vmem>>, vector<1x256xf32>
      %14 = vector.broadcast %13 : vector<1x256xf32> to vector<64x256xf32>
      %15 = arith.addf %12, %14 : vector<64x256xf32>
      %c0_13 = arith.constant 0 : index
      %c0_14 = arith.constant 0 : index
      %16 = vector.load %arg8[%c0_13, %c0_14] : memref<64x256xf32, #tpu.memory_space<vmem>>, vector<64x256xf32>
      %17 = arith.addf %15, %16 : vector<64x256xf32>
      %cst_15 = arith.constant dense<0.000000e+00> : vector<64xf32>
      %18 = vector.multi_reduction <add>, %17, %cst_15 [1] : vector<64x256xf32> to vector<64xf32>
      %19 = vector.shape_cast %18 : vector<64xf32> to vector<64x1xf32>
      %cst_16 = arith.constant 2.560000e+02 : f32
      %20 = vector.broadcast %cst_16 : f32 to vector<64x1xf32>
      %21 = arith.divf %19, %20 : vector<64x1xf32>
      %22 = vector.broadcast %21 : vector<64x1xf32> to vector<64x256xf32>
      %23 = arith.subf %17, %22 : vector<64x256xf32>
      %24 = arith.mulf %23, %23 : vector<64x256xf32>
      %cst_17 = arith.constant dense<0.000000e+00> : vector<64xf32>
      %25 = vector.multi_reduction <add>, %24, %cst_17 [1] : vector<64x256xf32> to vector<64xf32>
      %26 = vector.shape_cast %25 : vector<64xf32> to vector<64x1xf32>
      %cst_18 = arith.constant 2.560000e+02 : f32
      %27 = vector.broadcast %cst_18 : f32 to vector<64x1xf32>
      %28 = arith.divf %26, %27 : vector<64x1xf32>
      %29 = vector.broadcast %21 : vector<64x1xf32> to vector<64x256xf32>
      %30 = arith.subf %17, %29 : vector<64x256xf32>
      %cst_19 = arith.constant 9.99999974E-6 : f32
      %31 = vector.broadcast %cst_19 : f32 to vector<64x1xf32>
      %32 = arith.addf %28, %31 : vector<64x1xf32>
      %33 = math.rsqrt %32 : vector<64x1xf32>
      %34 = vector.broadcast %33 : vector<64x1xf32> to vector<64x256xf32>
      %35 = arith.mulf %30, %34 : vector<64x256xf32>
      %c0_20 = arith.constant 0 : index
      %c0_21 = arith.constant 0 : index
      %36 = vector.load %arg6[%c0_20, %c0_21] : memref<1x256xf32, #tpu.memory_space<vmem>>, vector<1x256xf32>
      %37 = vector.broadcast %36 : vector<1x256xf32> to vector<64x256xf32>
      %38 = arith.mulf %35, %37 : vector<64x256xf32>
      %c0_22 = arith.constant 0 : index
      %c0_23 = arith.constant 0 : index
      %39 = vector.load %arg7[%c0_22, %c0_23] : memref<1x256xf32, #tpu.memory_space<vmem>>, vector<1x256xf32>
      %40 = vector.broadcast %39 : vector<1x256xf32> to vector<64x256xf32>
      %41 = arith.addf %38, %40 : vector<64x256xf32>
      %c0_24 = arith.constant 0 : index
      %c0_25 = arith.constant 0 : index
      %42 = vector.load %arg9[%c0_24, %c0_25] : memref<64x256xf32, #tpu.memory_space<vmem>>, vector<64x256xf32>
      tpu.vector_store %arg9[%c0_24, %c0_25], %41 {strides = array<i32>} : memref<64x256xf32, #tpu.memory_space<vmem>>, vector<64x256xf32>,
    } else {
    }
    return
  }
  func.func @transform_0(%arg0: i32, %arg1: i32, %arg2: i32) -> (i32, i32) {
    %c0_i32 = arith.constant 0 : i32
    return %arg0, %arg2 : i32, i32
  }
  func.func @transform_1(%arg0: i32, %arg1: i32, %arg2: i32) -> (i32, i32) {
    %c0_i32 = arith.constant 0 : i32
    return %arg2, %arg1 : i32, i32
  }
  func.func @transform_2(%arg0: i32, %arg1: i32, %arg2: i32) -> (i32, i32) {
    %c0_i32 = arith.constant 0 : i32
    %c0_i32_0 = arith.constant 0 : i32
    return %c0_i32, %arg1 : i32, i32
  }
  func.func @transform_3(%arg0: i32, %arg1: i32, %arg2: i32) -> (i32, i32) {
    %c0_i32 = arith.constant 0 : i32
    %c0_i32_0 = arith.constant 0 : i32
    return %c0_i32, %arg1 : i32, i32
  }
  func.func @transform_4(%arg0: i32, %arg1: i32, %arg2: i32) -> (i32, i32) {
    %c0_i32 = arith.constant 0 : i32
    %c0_i32_0 = arith.constant 0 : i32
    return %c0_i32, %arg1 : i32, i32
  }
  func.func @transform_5(%arg0: i32, %arg1: i32, %arg2: i32) -> (i32, i32) {
    %c0_i32 = arith.constant 0 : i32
    return %arg0, %arg1 : i32, i32
  }
  func.func @transform_6(%arg0: i32, %arg1: i32, %arg2: i32) -> (i32, i32) {
    %c0_i32 = arith.constant 0 : i32
    return %arg0, %arg1 : i32, i32
  }
}

</mosaic_0001>

<bundles_post_ra>
// kernel: mul.6
= control target key start
LH: loop header
LB: loop body
LE: loop exit
PB: predicated region body
PF: predicated region fallthrough
CT: control target
= control target key end

     0   :  { %s34_s0 = inlined_call_operand.vmem [shape: f32[64], index: 0, kind: input, shape index: {}]   ;;  %s35_s1 = inlined_call_operand.vmem [shape: f32[64], index: 1, kind: input, shape index: {}]   ;;  %s36_s2 = inlined_call_operand.vmem [shape: f32[64], index: 2, kind: output, shape index: {}]  }
   0x1   :  { %v3_v0 = vld [vmem:[%s34_s0] sm:$0x1] }
   0x2   :  { %v4_v1 = vld [vmem:[%s35_s1] sm:$0x1] }
   0x3   :  { %v7_v2 = vmul.f32 %v4_v1, %v3_v0 }
   0x5   :  { %9 = vst [vmem:[%s36_s2] sm:$0x1] %v7_v2 }

// kernel: ltxv_wrapper_forward.19
= control target key start
LH: loop header
LB: loop body
LE: loop exit
PB: predicated region body
PF: predicated region fallthrough
CT: control target
= control target key end

     0   :  { %8 = vsyncpa [#allocation4], 0  ;;  %s424_s0 = inlined_call_operand.vmem [shape: f32[16,32], index: 0, kind: input, shape index: {}]   ;;  %s425_s1 = inlined_call_operand.hbm [shape: f32[32,512], index: 1, kind: input, shape index: {}]   ;;  %s426_s2 = inlined_call_operand.hbm [shape: f32[1,512], index: 2, kind: input, shape index: {}]   ;;  %s427_s3 = inlined_call_operand.vmem [shape: f32[16,512], index: 3, kind: output, shape index: {}]  }
   0x1   :  { %9 = vsyncpa [#allocation6], 0  ;;  %s363_s12 = smov [#allocation3]  }
   0x2   :  { %s17_s13 = sshll.u32 %s363_s12, 4  ;;  %s18_s13 = int_to_ptr.vmem [resolvable:$true] %s17_s13 }
   0x3   :  { %s327_s14 = scalar_lea.vmem %s18_s13, 2048  ;;  %p332_p1 = scmp.lt.s32.totalorder %s18_s13, %s18_s13 }
   0x4   :  { %p328_p0 = scmp.ne.s32.totalorder %s18_s13, %s327_s14  ;;  %p333_p2 = scmp.lt.s32.totalorder %s327_s14, %s327_s14 }
   0x6   :  { %p334_p3 = por %p333_p2, %p332_p1 }
   0x8   :  { %p335_p4 = pnand %p334_p3, %p328_p0 }
   0xa   :  { %338 = shalt.err (!%p335_p4)
}
   0xb   :  { %s364_s15 = smov 512   ;;  %s365_s16 = smov 32  }
   0xc   :  { %23 = dma.hbm_to_vmem [thread:$0]  %s425_s1, 2048, %s18_s13, [#allocation4], %s364_s15, %s364_s15, %s365_s16  }
   0xd   :  { %s366_s19 = smov [#allocation5]  }
   0xe   :  { %s30_s20 = sshll.u32 %s366_s19, 4  ;;  %s31_s20 = int_to_ptr.vmem [resolvable:$true] %s30_s20 }
   0xf   :  { %s347_s21 = scalar_lea.vmem %s31_s20, 64  ;;  %p352_p6 = scmp.lt.s32.totalorder %s31_s20, %s31_s20 }
  0x10   :  { %p348_p5 = scmp.ne.s32.totalorder %s31_s20, %s347_s21  ;;  %p353_p7 = scmp.lt.s32.totalorder %s347_s21, %s347_s21 }
  0x12   :  { %p354_p8 = por %p353_p7, %p352_p6 }
  0x14   :  { %p355_p9 = pnand %p354_p8, %p348_p5 }
  0x16   :  { %358 = shalt.err (!%p355_p9)
}
  0x17   :  { %33 = dma.hbm_to_vmem [thread:$0]  %s426_s2, 64, %s31_s20, [#allocation6]  }
  0x18   :  { %359 = dma.done.wait [#allocation4], 2048  }
  0x19   :  { %360 = vsyncadd [#allocation4], 4294965248 }
  0x1a   :  { %361 = dma.done.wait [#allocation6], 64  }
  0x1b   :  { %362 = vsyncadd [#allocation6], 4294967232  ;;  %v367_v0 = vmov 0.0   ;;  %v75_v1 = vld [vmem:[#allocation3 + $0x68] sm:$0xff]  ;;  %v77_v2 = vld [vmem:[#allocation3 + $0x78] sm:$0xff]  ;;  %vm78_vm0 = vcmask 261120   ;;  %v268_v19 = vlaneseq }
  0x1c   :  { %149 = vmatprep.mubr.f32.mxu0 %v367_v0  ;;  %226 = vmatprep.mubr.f32.mxu1 %v367_v0  ;;  %v74_v3 = vld [vmem:[#allocation3 + $0x60] sm:$0xff]  ;;  %v76_v4 = vld [vmem:[#allocation3 + $0x70] sm:$0xff]  ;;  %v71_v5 = vld [vmem:[#allocation3 + $0x48] sm:$0xff] }
  0x1d   :  { %109 = vmatprep.subr.mxu0 %v75_v1  ;;  %186 = vmatprep.subr.mxu1 %v77_v2  ;;  %v73_v6 = vld [vmem:[#allocation3 + $0x58] sm:$0xff]  ;;  %v70_v7 = vld [vmem:[#allocation3 + $0x40] sm:$0xff]  ;;  %v72_v8 = vld [vmem:[#allocation3 + $0x50] sm:$0xff]  ;;  %v269_v20 = vshrl.u32 %v268_v19, 7 }
  0x1e   :  { %110 = vmatpush1.msra.mxu0 %v74_v3  ;;  %187 = vmatpush1.msra.mxu1 %v76_v4  ;;  %v67_v9 = vld [vmem:[#allocation3 + $0x28] sm:$0xff]  ;;  %v69_v10 = vld [vmem:[#allocation3 + $0x38] sm:$0xff]  ;;  %v66_v11 = vld [vmem:[#allocation3 + $0x20] sm:$0xff] }
  0x1f   :  { %111 = vmatprep.subr.mxu0 %v71_v5  ;;  %188 = vmatprep.subr.mxu1 %v73_v6  ;;  %v68_v12 = vld [vmem:[#allocation3 + $0x30] sm:$0xff]  ;;  %v63_v13 = vld [vmem:[#allocation3 + $0x8] sm:$0xff]  ;;  %v65_v14 = vld [vmem:[#allocation3 + $0x18] sm:$0xff]  ;;  %v270_v21 = vsub.s32 0, %v269_v20  ;;  %v278_v22 = vsub.s32 2, %v269_v20  ;;  %v274_v24 = vsub.s32 1, %v269_v20 }
  0x20   :  { %112 = vmatpush1.msra.mxu0 %v70_v7  ;;  %189 = vmatpush1.msra.mxu1 %v72_v8  ;;  %v62_v15 = vld [vmem:[#allocation3] sm:$0xff]  ;;  %v64_v16 = vld [vmem:[#allocation3 + $0x10] sm:$0xff]  ;;  %v53_v18 = vld [vmem:[%s424_s0 + $0x8] sm:$0xff]  ;;  %v282_v25 = vsub.s32 3, %v269_v20 }
  0x21   :  { %113 = vmatprep.subr.mxu0 %v67_v9  ;;  %190 = vmatprep.subr.mxu1 %v69_v10  ;;  %v52_v17 = vld [vmem:[%s424_s0] sm:$0xff] }
  0x22   :  { %114 = vmatpush1.msra.mxu0 %v66_v11  ;;  %191 = vmatpush1.msra.mxu1 %v68_v12  ;;  %v266_v23 = vld [vmem:[#allocation5] sm:$0xf] }
  0x23   :  { %115 = vmatprep.subr.mxu0 %v63_v13  ;;  %192 = vmatprep.subr.mxu1 %v65_v14  ;;  %v271_v26 = vrot.slane %v266_v23, %v270_v21  ;;  %v279_v27 = vrot.slane %v266_v23, %v278_v22  ;;  %v275_v28 = vrot.slane %v266_v23, %v274_v24 }
  0x24   :  { %116 = vmatpush1.msra.mxu0 %v62_v15  ;;  %193 = vmatpush1.msra.mxu1 %v64_v16  ;;  %v283_v29 = vrot.slane %v266_v23, %v282_v25 }
  0x25   :  { %310 = vmatmul.mubr.msk.f32.vlgmr.msra.gmra.mxu0 %vm78_vm0, %v52_v17  ;;  %312 = vmatmul.mubr.msk.f32.vlgmr.msra.gmra.mxu1 %vm78_vm0, %v52_v17 }
  0x26   :  { %155 = vmatprep.mubr.f32.mxu0 %v367_v0  ;;  %232 = vmatprep.mubr.f32.mxu1 %v367_v0 }
  0x29   :  { %311 = vmatmul.mubr.msk.f32.gmra.mxu0 %vm78_vm0, %v53_v18  ;;  %313 = vmatmul.mubr.msk.f32.gmra.mxu1 %vm78_vm0, %v53_v18 }
  0xe5   :  { %v151_v30 = vpop.f32.mrf.mxu0  ;;  %v228_v31 = vpop.f32.mrf.mxu1 }
  0xe6   :  { %v288_v32 = vadd.f32 %v271_v26, %v151_v30  ;;  %v290_v33 = vadd.f32 %v279_v27, %v228_v31 }
  0xe7   :  { %v153_v34 = vpop.f32.mrf.mxu0  ;;  %v230_v35 = vpop.f32.mrf.mxu1 }
  0xe8   :  { %296 = vst [vmem:[%s427_s3] sm:$0xff] %v288_v32  ;;  %298 = vst [vmem:[%s427_s3 + $0x10] sm:$0xff] %v290_v33  ;;  %v289_v36 = vadd.f32 %v275_v28, %v153_v34  ;;  %v291_v37 = vadd.f32 %v283_v29, %v230_v35 }
  0xe9   :  { %v157_v38 = vpop.f32.mrf.mxu0  ;;  %v234_v39 = vpop.f32.mrf.mxu1 }
  0xea   :  { %297 = vst [vmem:[%s427_s3 + $0x8] sm:$0xff] %v289_v36  ;;  %299 = vst [vmem:[%s427_s3 + $0x18] sm:$0xff] %v291_v37  ;;  %v292_v40 = vadd.f32 %v271_v26, %v157_v38  ;;  %v294_v41 = vadd.f32 %v279_v27, %v234_v39 }
  0xeb   :  { %v159_v42 = vpop.f32.mrf.mxu0  ;;  %v236_v43 = vpop.f32.mrf.mxu1 }
  0xec   :  { %300 = vst [vmem:[%s427_s3 + $0x20] sm:$0xff] %v292_v40  ;;  %302 = vst [vmem:[%s427_s3 + $0x30] sm:$0xff] %v294_v41  ;;  %v293_v44 = vadd.f32 %v275_v28, %v159_v42  ;;  %v295_v45 = vadd.f32 %v283_v29, %v236_v43 }
  0xee   :  { %301 = vst [vmem:[%s427_s3 + $0x28] sm:$0xff] %v293_v44  ;;  %303 = vst [vmem:[%s427_s3 + $0x38] sm:$0xff] %v295_v45 }
  0xef   :  { %308 = vsyncpa [#allocation4], 1 }
  0xf0   :  { %309 = vsyncpa [#allocation6], 1 }

// kernel: ltxv_wrapper_forward.13
= control target key start
LH: loop header
LB: loop body
LE: loop exit
PB: predicated region body
PF: predicated region fallthrough
CT: control target
= control target key end

     0   :  { %8 = vsyncpa [#allocation4], 0  ;;  %s622_s12 = smov [#allocation3]   ;;  %s879_s0 = inlined_call_operand.vmem [shape: f32[64,256], index: 0, kind: input, shape index: {}]   ;;  %s880_s1 = inlined_call_operand.hbm [shape: f32[256,256], index: 1, kind: input, shape index: {}]   ;;  %s881_s2 = inlined_call_operand.vmem [shape: f32[1,256], index: 2, kind: input, shape index: {}]   ;;  %s882_s3 = inlined_call_operand.vmem [shape: f32[64,256], index: 3, kind: output, shape index: {}]  }
   0x1   :  { %s16_s13 = sshll.u32 %s622_s12, 4  ;;  %s17_s13 = int_to_ptr.vmem [resolvable:$true] %s16_s13 }
   0x2   :  { %s608_s14 = scalar_lea.vmem %s17_s13, 8192  ;;  %p613_p1 = scmp.lt.s32.totalorder %s17_s13, %s17_s13 }
   0x3   :  { %p609_p0 = scmp.ne.s32.totalorder %s17_s13, %s608_s14  ;;  %p614_p2 = scmp.lt.s32.totalorder %s608_s14, %s608_s14 }
   0x5   :  { %p615_p3 = por %p614_p2, %p613_p1 }
   0x7   :  { %p616_p4 = pnand %p615_p3, %p609_p0 }
   0x9   :  { %619 = shalt.err (!%p616_p4)
}
   0xa   :  { %s623_s15 = smov 256   ;;  %s624_s16 = smov 16  }
   0xb   :  { %22 = dma.hbm_to_vmem [thread:$0]  %s880_s1, 8192, %s17_s13, [#allocation4], %s623_s15, %s623_s15, %s624_s16  }
   0xc   :  { %620 = dma.done.wait [#allocation4], 8192  }
   0xd   :  { %621 = vsyncadd [#allocation4], 4294959104  ;;  %v111_v0 = vld [vmem:[#allocation3 + $0xf8] sm:$0xff]  ;;  %v110_v1 = vld [vmem:[#allocation3 + $0xf0] sm:$0xff] }
   0xe   :  { %v109_v2 = vld [vmem:[#allocation3 + $0xe8] sm:$0xff]  ;;  %144 = vmatprep.subr.mxu0 %v111_v0  ;;  %501 = vmatprep.subr.mxu1 %v111_v0  ;;  %v108_v3 = vld [vmem:[#allocation3 + $0xe0] sm:$0xff]  ;;  %v107_v4 = vld [vmem:[#allocation3 + $0xd8] sm:$0xff] }
   0xf   :  { %145 = vmatpush1.msra.mxu0 %v110_v1  ;;  %533 = vmatpush1.msra.mxu1 %v110_v1  ;;  %v106_v5 = vld [vmem:[#allocation3 + $0xd0] sm:$0xff]  ;;  %v105_v6 = vld [vmem:[#allocation3 + $0xc8] sm:$0xff]  ;;  %v104_v7 = vld [vmem:[#allocation3 + $0xc0] sm:$0xff] }
  0x10   :  { %146 = vmatprep.subr.mxu0 %v109_v2  ;;  %502 = vmatprep.subr.mxu1 %v109_v2  ;;  %v103_v8 = vld [vmem:[#allocation3 + $0xb8] sm:$0xff]  ;;  %v102_v9 = vld [vmem:[#allocation3 + $0xb0] sm:$0xff]  ;;  %v101_v10 = vld [vmem:[#allocation3 + $0xa8] sm:$0xff] }
  0x11   :  { %147 = vmatpush1.msra.mxu0 %v108_v3  ;;  %534 = vmatpush1.msra.mxu1 %v108_v3  ;;  %v100_v11 = vld [vmem:[#allocation3 + $0xa0] sm:$0xff]  ;;  %v99_v12 = vld [vmem:[#allocation3 + $0x98] sm:$0xff]  ;;  %v98_v13 = vld [vmem:[#allocation3 + $0x90] sm:$0xff] }
  0x12   :  { %148 = vmatprep.subr.mxu0 %v107_v4  ;;  %503 = vmatprep.subr.mxu1 %v107_v4  ;;  %v97_v14 = vld [vmem:[#allocation3 + $0x88] sm:$0xff]  ;;  %v96_v15 = vld [vmem:[#allocation3 + $0x80] sm:$0xff]  ;;  %v95_v16 = vld [vmem:[#allocation3 + $0x78] sm:$0xff] }
  0x13   :  { %149 = vmatpush1.msra.mxu0 %v106_v5  ;;  %535 = vmatpush1.msra.mxu1 %v106_v5  ;;  %v94_v17 = vld [vmem:[#allocation3 + $0x70] sm:$0xff]  ;;  %v93_v18 = vld [vmem:[#allocation3 + $0x68] sm:$0xff]  ;;  %v92_v19 = vld [vmem:[#allocation3 + $0x60] sm:$0xff] }
  0x14   :  { %150 = vmatprep.subr.mxu0 %v105_v6  ;;  %504 = vmatprep.subr.mxu1 %v105_v6  ;;  %v91_v20 = vld [vmem:[#allocation3 + $0x58] sm:$0xff]  ;;  %v90_v21 = vld [vmem:[#allocation3 + $0x50] sm:$0xff]  ;;  %v89_v22 = vld [vmem:[#allocation3 + $0x48] sm:$0xff] }
  0x15   :  { %151 = vmatpush1.msra.mxu0 %v104_v7  ;;  %536 = vmatpush1.msra.mxu1 %v104_v7  ;;  %v88_v23 = vld [vmem:[#allocation3 + $0x40] sm:$0xff]  ;;  %v87_v24 = vld [vmem:[#allocation3 + $0x38] sm:$0xff]  ;;  %v86_v25 = vld [vmem:[#allocation3 + $0x30] sm:$0xff] }
  0x16   :  { %152 = vmatprep.subr.mxu0 %v103_v8  ;;  %505 = vmatprep.subr.mxu1 %v103_v8  ;;  %v85_v26 = vld [vmem:[#allocation3 + $0x28] sm:$0xff]  ;;  %v84_v27 = vld [vmem:[#allocation3 + $0x20] sm:$0xff]  ;;  %v83_v28 = vld [vmem:[#allocation3 + $0x18] sm:$0xff] }
  0x17   :  { %153 = vmatpush1.msra.mxu0 %v102_v9  ;;  %537 = vmatpush1.msra.mxu1 %v102_v9  ;;  %v82_v29 = vld [vmem:[#allocation3 + $0x10] sm:$0xff]  ;;  %v81_v30 = vld [vmem:[#allocation3 + $0x8] sm:$0xff]  ;;  %v80_v31 = vld [vmem:[#allocation3] sm:$0xff] }
  0x18   :  { %154 = vmatprep.subr.mxu0 %v101_v10  ;;  %506 = vmatprep.subr.mxu1 %v101_v10  ;;  %v143_v32 = vld [vmem:[#allocation3 + $0x1f8] sm:$0xff]  ;;  %v142_v33 = vld [vmem:[#allocation3 + $0x1f0] sm:$0xff]  ;;  %v141_v34 = vld [vmem:[#allocation3 + $0x1e8] sm:$0xff] }
  0x19   :  { %155 = vmatpush1.msra.mxu0 %v100_v11  ;;  %538 = vmatpush1.msra.mxu1 %v100_v11  ;;  %v140_v35 = vld [vmem:[#allocation3 + $0x1e0] sm:$0xff]  ;;  %v139_v36 = vld [vmem:[#allocation3 + $0x1d8] sm:$0xff]  ;;  %v138_v37 = vld [vmem:[#allocation3 + $0x1d0] sm:$0xff] }
  0x1a   :  { %156 = vmatprep.subr.mxu0 %v99_v12  ;;  %507 = vmatprep.subr.mxu1 %v99_v12  ;;  %v137_v38 = vld [vmem:[#allocation3 + $0x1c8] sm:$0xff]  ;;  %v136_v39 = vld [vmem:[#allocation3 + $0x1c0] sm:$0xff]  ;;  %v135_v40 = vld [vmem:[#allocation3 + $0x1b8] sm:$0xff] }
  0x1b   :  { %157 = vmatpush1.msra.mxu0 %v98_v13  ;;  %539 = vmatpush1.msra.mxu1 %v98_v13  ;;  %v134_v41 = vld [vmem:[#allocation3 + $0x1b0] sm:$0xff]  ;;  %v133_v42 = vld [vmem:[#allocation3 + $0x1a8] sm:$0xff]  ;;  %v132_v43 = vld [vmem:[#allocation3 + $0x1a0] sm:$0xff] }
  0x1c   :  { %158 = vmatprep.subr.mxu0 %v97_v14  ;;  %508 = vmatprep.subr.mxu1 %v97_v14  ;;  %v131_v44 = vld [vmem:[#allocation3 + $0x198] sm:$0xff]  ;;  %v130_v45 = vld [vmem:[#allocation3 + $0x190] sm:$0xff]  ;;  %v129_v46 = vld [vmem:[#allocation3 + $0x188] sm:$0xff] }
  0x1d   :  { %159 = vmatpush1.msra.mxu0 %v96_v15  ;;  %540 = vmatpush1.msra.mxu1 %v96_v15  ;;  %v128_v47 = vld [vmem:[#allocation3 + $0x180] sm:$0xff]  ;;  %v127_v48 = vld [vmem:[#allocation3 + $0x178] sm:$0xff]  ;;  %v126_v49 = vld [vmem:[#allocation3 + $0x170] sm:$0xff] }
  0x1e   :  { %160 = vmatprep.subr.mxu0 %v95_v16  ;;  %509 = vmatprep.subr.mxu1 %v95_v16  ;;  %v125_v50 = vld [vmem:[#allocation3 + $0x168] sm:$0xff]  ;;  %v124_v51 = vld [vmem:[#allocation3 + $0x160] sm:$0xff]  ;;  %v123_v52 = vld [vmem:[#allocation3 + $0x158] sm:$0xff]  ;;  %v310_v16 = vlaneseq }
  0x1f   :  { %161 = vmatpush1.msra.mxu0 %v94_v17  ;;  %541 = vmatpush1.msra.mxu1 %v94_v17  ;;  %v122_v53 = vld [vmem:[#allocation3 + $0x150] sm:$0xff]  ;;  %v121_v54 = vld [vmem:[#allocation3 + $0x148] sm:$0xff]  ;;  %v120_v55 = vld [vmem:[#allocation3 + $0x140] sm:$0xff] }
  0x20   :  { %162 = vmatprep.subr.mxu0 %v93_v18  ;;  %510 = vmatprep.subr.mxu1 %v93_v18  ;;  %v119_v56 = vld [vmem:[#allocation3 + $0x138] sm:$0xff]  ;;  %v118_v57 = vld [vmem:[#allocation3 + $0x130] sm:$0xff]  ;;  %v117_v58 = vld [vmem:[#allocation3 + $0x128] sm:$0xff]  ;;  %v311_v17 = vshrl.u32 %v310_v16, 7 }
  0x21   :  { %163 = vmatpush1.msra.mxu0 %v92_v19  ;;  %542 = vmatpush1.msra.mxu1 %v92_v19  ;;  %v116_v59 = vld [vmem:[#allocation3 + $0x120] sm:$0xff]  ;;  %v115_v60 = vld [vmem:[#allocation3 + $0x118] sm:$0xff]  ;;  %v114_v61 = vld [vmem:[#allocation3 + $0x110] sm:$0xff] }
  0x22   :  { %164 = vmatprep.subr.mxu0 %v91_v20  ;;  %511 = vmatprep.subr.mxu1 %v91_v20  ;;  %v113_v62 = vld [vmem:[#allocation3 + $0x108] sm:$0xff]  ;;  %v112_v63 = vld [vmem:[#allocation3 + $0x100] sm:$0xff]  ;;  %v51_v4 = vld [vmem:[%s879_s0 + $0x18] sm:$0xff]  ;;  %v312_v18 = vsub.s32 0, %v311_v17  ;;  %v316_v20 = vsub.s32 1, %v311_v17 }
  0x23   :  { %165 = vmatpush1.msra.mxu0 %v90_v21  ;;  %543 = vmatpush1.msra.mxu1 %v90_v21  ;;  %v49_v0 = vld [vmem:[%s879_s0 + $0x8] sm:$0xff]  ;;  %v48_v2 = vld [vmem:[%s879_s0] sm:$0xff]  ;;  %v59_v5 = vld [vmem:[%s879_s0 + $0x58] sm:$0xff] }
  0x24   :  { %166 = vmatprep.subr.mxu0 %v89_v22  ;;  %512 = vmatprep.subr.mxu1 %v89_v22  ;;  %v57_v1 = vld [vmem:[%s879_s0 + $0x48] sm:$0xff]  ;;  %v56_v3 = vld [vmem:[%s879_s0 + $0x40] sm:$0xff]  ;;  %v50_v6 = vld [vmem:[%s879_s0 + $0x10] sm:$0xff] }
  0x25   :  { %167 = vmatpush1.msra.mxu0 %v88_v23  ;;  %544 = vmatpush1.msra.mxu1 %v88_v23  ;;  %v58_v7 = vld [vmem:[%s879_s0 + $0x50] sm:$0xff]  ;;  %v53_v8 = vld [vmem:[%s879_s0 + $0x28] sm:$0xff]  ;;  %v52_v10 = vld [vmem:[%s879_s0 + $0x20] sm:$0xff] }
  0x26   :  { %168 = vmatprep.subr.mxu0 %v87_v24  ;;  %513 = vmatprep.subr.mxu1 %v87_v24  ;;  %v61_v9 = vld [vmem:[%s879_s0 + $0x68] sm:$0xff]  ;;  %v60_v11 = vld [vmem:[%s879_s0 + $0x60] sm:$0xff]  ;;  %v55_v12 = vld [vmem:[%s879_s0 + $0x38] sm:$0xff] }
  0x27   :  { %169 = vmatpush1.msra.mxu0 %v86_v25  ;;  %545 = vmatpush1.msra.mxu1 %v86_v25  ;;  %v63_v13 = vld [vmem:[%s879_s0 + $0x78] sm:$0xff]  ;;  %v54_v14 = vld [vmem:[%s879_s0 + $0x30] sm:$0xff]  ;;  %v308_v19 = vld [vmem:[%s881_s2] sm:$0x3] }
  0x28   :  { %170 = vmatprep.subr.mxu0 %v85_v26  ;;  %514 = vmatprep.subr.mxu1 %v85_v26  ;;  %v62_v15 = vld [vmem:[%s879_s0 + $0x70] sm:$0xff]  ;;  %v699_v21 = vrot.slane %v308_v19, %v312_v18  ;;  %v701_v22 = vrot.slane %v308_v19, %v316_v20 }
  0x29   :  { %171 = vmatpush1.msra.mxu0 %v84_v27  ;;  %546 = vmatpush1.msra.mxu1 %v84_v27 }
  0x2a   :  { %172 = vmatprep.subr.mxu0 %v83_v28  ;;  %515 = vmatprep.subr.mxu1 %v83_v28 }
  0x2b   :  { %173 = vmatpush1.msra.mxu0 %v82_v29  ;;  %547 = vmatpush1.msra.mxu1 %v82_v29 }
  0x2c   :  { %174 = vmatprep.subr.mxu0 %v81_v30  ;;  %516 = vmatprep.subr.mxu1 %v81_v30 }
  0x2d   :  { %175 = vmatpush1.msra.mxu0 %v80_v31  ;;  %548 = vmatpush1.msra.mxu1 %v80_v31 }
  0x2e   :  { %176 = vmatprep.subr.mxu0 %v143_v32  ;;  %517 = vmatprep.subr.mxu1 %v143_v32 }
  0x2f   :  { %177 = vmatpush2.msra.mxu0 %v142_v33  ;;  %549 = vmatpush2.msra.mxu1 %v142_v33 }
  0x30   :  { %178 = vmatprep.subr.mxu0 %v141_v34  ;;  %518 = vmatprep.subr.mxu1 %v141_v34 }
  0x31   :  { %179 = vmatpush2.msra.mxu0 %v140_v35  ;;  %550 = vmatpush2.msra.mxu1 %v140_v35 }
  0x32   :  { %180 = vmatprep.subr.mxu0 %v139_v36  ;;  %519 = vmatprep.subr.mxu1 %v139_v36 }
  0x33   :  { %181 = vmatpush2.msra.mxu0 %v138_v37  ;;  %551 = vmatpush2.msra.mxu1 %v138_v37 }
  0x34   :  { %182 = vmatprep.subr.mxu0 %v137_v38  ;;  %520 = vmatprep.subr.mxu1 %v137_v38 }
  0x35   :  { %183 = vmatpush2.msra.mxu0 %v136_v39  ;;  %552 = vmatpush2.msra.mxu1 %v136_v39 }
  0x36   :  { %184 = vmatprep.subr.mxu0 %v135_v40  ;;  %521 = vmatprep.subr.mxu1 %v135_v40 }
  0x37   :  { %185 = vmatpush2.msra.mxu0 %v134_v41  ;;  %553 = vmatpush2.msra.mxu1 %v134_v41 }
  0x38   :  { %186 = vmatprep.subr.mxu0 %v133_v42  ;;  %522 = vmatprep.subr.mxu1 %v133_v42 }
  0x39   :  { %187 = vmatpush2.msra.mxu0 %v132_v43  ;;  %554 = vmatpush2.msra.mxu1 %v132_v43 }
  0x3a   :  { %188 = vmatprep.subr.mxu0 %v131_v44  ;;  %523 = vmatprep.subr.mxu1 %v131_v44 }
  0x3b   :  { %189 = vmatpush2.msra.mxu0 %v130_v45  ;;  %555 = vmatpush2.msra.mxu1 %v130_v45 }
  0x3c   :  { %190 = vmatprep.subr.mxu0 %v129_v46  ;;  %524 = vmatprep.subr.mxu1 %v129_v46 }
  0x3d   :  { %191 = vmatpush2.msra.mxu0 %v128_v47  ;;  %556 = vmatpush2.msra.mxu1 %v128_v47 }
  0x3e   :  { %192 = vmatprep.subr.mxu0 %v127_v48  ;;  %525 = vmatprep.subr.mxu1 %v127_v48 }
  0x3f   :  { %193 = vmatpush2.msra.mxu0 %v126_v49  ;;  %557 = vmatpush2.msra.mxu1 %v126_v49 }
  0x40   :  { %194 = vmatprep.subr.mxu0 %v125_v50  ;;  %526 = vmatprep.subr.mxu1 %v125_v50 }
  0x41   :  { %195 = vmatpush2.msra.mxu0 %v124_v51  ;;  %558 = vmatpush2.msra.mxu1 %v124_v51 }
  0x42   :  { %196 = vmatprep.subr.mxu0 %v123_v52  ;;  %527 = vmatprep.subr.mxu1 %v123_v52 }
  0x43   :  { %197 = vmatpush2.msra.mxu0 %v122_v53  ;;  %559 = vmatpush2.msra.mxu1 %v122_v53 }
  0x44   :  { %198 = vmatprep.subr.mxu0 %v121_v54  ;;  %528 = vmatprep.subr.mxu1 %v121_v54 }
  0x45   :  { %199 = vmatpush2.msra.mxu0 %v120_v55  ;;  %560 = vmatpush2.msra.mxu1 %v120_v55 }
  0x46   :  { %200 = vmatprep.subr.mxu0 %v119_v56  ;;  %529 = vmatprep.subr.mxu1 %v119_v56 }
  0x47   :  { %201 = vmatpush2.msra.mxu0 %v118_v57  ;;  %561 = vmatpush2.msra.mxu1 %v118_v57 }
  0x48   :  { %202 = vmatprep.subr.mxu0 %v117_v58  ;;  %530 = vmatprep.subr.mxu1 %v117_v58 }
  0x49   :  { %203 = vmatpush2.msra.mxu0 %v116_v59  ;;  %562 = vmatpush2.msra.mxu1 %v116_v59 }
  0x4a   :  { %204 = vmatprep.subr.mxu0 %v115_v60  ;;  %531 = vmatprep.subr.mxu1 %v115_v60 }
  0x4b   :  { %205 = vmatpush2.msra.mxu0 %v114_v61  ;;  %563 = vmatpush2.msra.mxu1 %v114_v61 }
  0x4c   :  { %206 = vmatprep.subr.mxu0 %v113_v62  ;;  %532 = vmatprep.subr.mxu1 %v113_v62 }
  0x4d   :  { %207 = vmatpush2.msra.mxu0 %v112_v63  ;;  %564 = vmatpush2.msra.mxu1 %v112_v63 }
  0x4e   :  { %208 = vmatprep.mubr.f32.mxu0 %v49_v0  ;;  %232 = vmatprep.mubr.f32.mxu1 %v57_v1 }
  0x4f   :  { %209 = vmatmul.mubr.f32.vlgmr.msra.gmra.mxu0 %v48_v2  ;;  %233 = vmatmul.mubr.f32.vlgmr.msra.gmra.mxu1 %v56_v3 }
  0x50   :  { %214 = vmatprep.mubr.f32.mxu0 %v51_v4  ;;  %238 = vmatprep.mubr.f32.mxu1 %v59_v5 }
  0x53   :  { %215 = vmatmul.mubr.f32.gmra.mxu0 %v50_v6  ;;  %239 = vmatmul.mubr.f32.gmra.mxu1 %v58_v7 }
  0x54   :  { %220 = vmatprep.mubr.f32.mxu0 %v53_v8  ;;  %244 = vmatprep.mubr.f32.mxu1 %v61_v9 }
  0x57   :  { %221 = vmatmul.mubr.f32.gmra.mxu0 %v52_v10  ;;  %245 = vmatmul.mubr.f32.gmra.mxu1 %v60_v11 }
  0x58   :  { %226 = vmatprep.mubr.f32.mxu0 %v55_v12  ;;  %250 = vmatprep.mubr.f32.mxu1 %v63_v13 }
  0x5b   :  { %227 = vmatmul.mubr.f32.gmra.mxu0 %v54_v14  ;;  %251 = vmatmul.mubr.f32.gmra.mxu1 %v62_v15 }
 0x10f   :  { %v210_v23 = vpop.f32.mrf.mxu0  ;;  %v234_v24 = vpop.f32.mrf.mxu1 }
 0x110   :  { %v704_v25 = vadd.f32 %v699_v21, %v210_v23  ;;  %v707_v26 = vadd.f32 %v699_v21, %v234_v24 }
 0x111   :  { %v212_v27 = vpop.f32.mrf.mxu0  ;;  %v236_v28 = vpop.f32.mrf.mxu1 }
 0x112   :  { %v336_v29 = vmul.f32 %v704_v25, %v704_v25  ;;  %v344_v30 = vmul.f32 %v707_v26, %v707_v26  ;;  %v714_v31 = vadd.f32 %v701_v22, %v212_v27  ;;  %v717_v32 = vadd.f32 %v701_v22, %v236_v28 }
 0x113   :  { %v216_v33 = vpop.f32.mrf.mxu0  ;;  %v240_v34 = vpop.f32.mrf.mxu1 }
 0x114   :  { %v352_v35 = vmul.f32 %v336_v29, %v704_v25  ;;  %v360_v36 = vmul.f32 %v344_v30, %v707_v26  ;;  %v337_v37 = vmul.f32 %v714_v31, %v714_v31  ;;  %v345_v38 = vmul.f32 %v717_v32, %v717_v32 }
 0x115   :  { %v726_v39 = vadd.f32 %v699_v21, %v216_v33  ;;  %v729_v40 = vadd.f32 %v699_v21, %v240_v34  ;;  %v218_v41 = vpop.f32.mrf.mxu0  ;;  %v242_v42 = vpop.f32.mrf.mxu1 }
 0x116   :  { %v368_v43 = vmul.f32 0.044715, %v352_v35  ;;  %v376_v44 = vmul.f32 0.044715, %v360_v36  ;;  %v353_v45 = vmul.f32 %v337_v37, %v714_v31  ;;  %v361_v46 = vmul.f32 %v345_v38, %v717_v32 }
 0x117   :  { %v338_v47 = vmul.f32 %v726_v39, %v726_v39  ;;  %v346_v48 = vmul.f32 %v729_v40, %v729_v40  ;;  %v738_v49 = vadd.f32 %v701_v22, %v218_v41  ;;  %v741_v50 = vadd.f32 %v701_v22, %v242_v42  ;;  %v222_v51 = vpop.f32.mrf.mxu0  ;;  %v246_v52 = vpop.f32.mrf.mxu1 }
 0x118   :  { %v384_v53 = vadd.f32 %v368_v43, %v704_v25  ;;  %v392_v54 = vadd.f32 %v376_v44, %v707_v26  ;;  %v369_v55 = vmul.f32 0.044715, %v353_v45  ;;  %v377_v56 = vmul.f32 0.044715, %v361_v46 }
 0x119   :  { %v354_v57 = vmul.f32 %v338_v47, %v726_v39  ;;  %v362_v58 = vmul.f32 %v346_v48, %v729_v40  ;;  %v339_v59 = vmul.f32 %v738_v49, %v738_v49  ;;  %v347_v60 = vmul.f32 %v741_v50, %v741_v50  ;;  %v224_v1 = vpop.f32.mrf.mxu0  ;;  %v248_v6 = vpop.f32.mrf.mxu1 }
 0x11a   :  { %v400_v61 = vmul.f32 0.7978846, %v384_v53  ;;  %v408_v62 = vmul.f32 0.7978846, %v392_v54  ;;  %v385_v63 = vadd.f32 %v369_v55, %v714_v31  ;;  %v393_v0 = vadd.f32 %v377_v56, %v717_v32 }
 0x11b   :  { %v370_v2 = vmul.f32 0.044715, %v354_v57  ;;  %v378_v3 = vmul.f32 0.044715, %v362_v58  ;;  %v355_v4 = vmul.f32 %v339_v59, %v738_v49  ;;  %v363_v5 = vmul.f32 %v347_v60, %v741_v50  ;;  %v228_v16 = vpop.f32.mrf.mxu0  ;;  %v252_v20 = vpop.f32.mrf.mxu1 }
 0x11c   :  { %568 = vtanh.f32 %v400_v61  ;;  %v401_v7 = vmul.f32 0.7978846, %v385_v63  ;;  %v409_v8 = vmul.f32 0.7978846, %v393_v0  ;;  %v756_v9 = vadd.f32 %v699_v21, %v222_v51 }
 0x11d   :  { %570 = vtanh.f32 %v408_v62  ;;  %v386_v10 = vadd.f32 %v370_v2, %v726_v39  ;;  %v394_v11 = vadd.f32 %v378_v3, %v729_v40  ;;  %v371_v12 = vmul.f32 0.044715, %v355_v4  ;;  %v230_v37 = vpop.f32.mrf.mxu0  ;;  %v254_v43 = vpop.f32.mrf.mxu1 }
 0x11e   :  { %572 = vtanh.f32 %v401_v7  ;;  %v379_v13 = vmul.f32 0.044715, %v363_v5  ;;  %v340_v14 = vmul.f32 %v756_v9, %v756_v9  ;;  %v763_v15 = vadd.f32 %v699_v21, %v246_v52 }
 0x11f   :  { %574 = vtanh.f32 %v409_v8  ;;  %v402_v17 = vmul.f32 0.7978846, %v386_v10  ;;  %v410_v18 = vmul.f32 0.7978846, %v394_v11  ;;  %v387_v19 = vadd.f32 %v371_v12, %v738_v49 }
 0x120   :  { %v395_v23 = vadd.f32 %v379_v13, %v741_v50  ;;  %v356_v24 = vmul.f32 %v340_v14, %v756_v9  ;;  %v348_v27 = vmul.f32 %v763_v15, %v763_v15  ;;  %v771_v28 = vadd.f32 %v701_v22, %v224_v1 }
 0x121   :  { %576 = vtanh.f32 %v402_v17  ;;  %v403_v29 = vmul.f32 0.7978846, %v387_v19  ;;  %v774_v30 = vadd.f32 %v701_v22, %v248_v6  ;;  %v777_v33 = vadd.f32 %v699_v21, %v228_v16 }
 0x122   :  { %578 = vtanh.f32 %v410_v18  ;;  %v411_v34 = vmul.f32 0.7978846, %v395_v23  ;;  %v372_v35 = vmul.f32 0.044715, %v356_v24  ;;  %v364_v36 = vmul.f32 %v348_v27, %v763_v15 }
 0x123   :  { %580 = vtanh.f32 %v403_v29  ;;  %v341_v38 = vmul.f32 %v771_v28, %v771_v28  ;;  %v349_v41 = vmul.f32 %v774_v30, %v774_v30  ;;  %v342_v42 = vmul.f32 %v777_v33, %v777_v33 }
 0x124   :  { %582 = vtanh.f32 %v411_v34  ;;  %v388_v44 = vadd.f32 %v372_v35, %v756_v9  ;;  %v380_v45 = vmul.f32 0.044715, %v364_v36  ;;  %v788_v46 = vadd.f32 %v699_v21, %v252_v20 }
 0x125   :  { %v357_v47 = vmul.f32 %v341_v38, %v771_v28  ;;  %v365_v48 = vmul.f32 %v349_v41, %v774_v30  ;;  %v358_v51 = vmul.f32 %v342_v42, %v777_v33  ;;  %v794_v52 = vadd.f32 %v701_v22, %v230_v37 }
 0x126   :  { %v404_v53 = vmul.f32 0.7978846, %v388_v44  ;;  %v396_v54 = vadd.f32 %v380_v45, %v763_v15  ;;  %v350_v55 = vmul.f32 %v788_v46, %v788_v46  ;;  %v800_v56 = vadd.f32 %v701_v22, %v254_v43 }
 0x127   :  { %v373_v21 = vmul.f32 0.044715, %v357_v47  ;;  %v381_v57 = vmul.f32 0.044715, %v365_v48  ;;  %v374_v58 = vmul.f32 0.044715, %v358_v51  ;;  %v343_v59 = vmul.f32 %v794_v52, %v794_v52 }
 0x128   :  { %584 = vtanh.f32 %v404_v53  ;;  %v412_v60 = vmul.f32 0.7978846, %v396_v54  ;;  %v366_v61 = vmul.f32 %v350_v55, %v788_v46  ;;  %v351_v62 = vmul.f32 %v800_v56, %v800_v56 }
 0x129   :  { %v569_v63 = vpop.eup %568  ;;  %v389_v0 = vadd.f32 %v373_v21, %v771_v28  ;;  %v397_v1 = vadd.f32 %v381_v57, %v774_v30  ;;  %v390_v22 = vadd.f32 %v374_v58, %v777_v33  ;;  %v359_v2 = vmul.f32 %v343_v59, %v794_v52 }
 0x12a   :  { %v571_v3 = vpop.eup %570  ;;  %v432_v4 = vadd.f32 1.0, %v569_v63  ;;  %586 = vtanh.f32 %v412_v60  ;;  %v382_v5 = vmul.f32 0.044715, %v366_v61  ;;  %v367_v11 = vmul.f32 %v351_v62, %v800_v56 }
 0x12b   :  { %v573_v6 = vpop.eup %572  ;;  %v440_v7 = vadd.f32 1.0, %v571_v3  ;;  %v405_v8 = vmul.f32 0.7978846, %v389_v0  ;;  %v413_v10 = vmul.f32 0.7978846, %v397_v1 }
 0x12c   :  { %v575_v12 = vpop.eup %574  ;;  %v448_v13 = vmul.f32 0.5, %v432_v4  ;;  %v433_v14 = vadd.f32 1.0, %v573_v6  ;;  %v406_v16 = vmul.f32 0.7978846, %v390_v22  ;;  %v398_v17 = vadd.f32 %v382_v5, %v788_v46 }
 0x12d   :  { %v456_v18 = vmul.f32 0.5, %v440_v7  ;;  %v441_v19 = vadd.f32 1.0, %v575_v12  ;;  %588 = vtanh.f32 %v405_v8  ;;  %v375_v20 = vmul.f32 0.044715, %v359_v2 }
 0x12e   :  { %v577_v23 = vpop.eup %576  ;;  %v464_v24 = vmul.f32 %v448_v13, %v704_v25  ;;  %v449_v27 = vmul.f32 0.5, %v433_v14  ;;  %590 = vtanh.f32 %v413_v10  ;;  %v414_v29 = vmul.f32 0.7978846, %v398_v17 }
 0x12f   :  { %v579_v34 = vpop.eup %578  ;;  %v472_v35 = vmul.f32 %v456_v18, %v707_v26  ;;  %v457_v36 = vmul.f32 0.5, %v441_v19  ;;  %v434_v37 = vadd.f32 1.0, %v577_v23  ;;  %592 = vtanh.f32 %v406_v16 }
 0x130   :  { %v581_v38 = vpop.eup %580  ;;  %480 = vst [vmem:[%s882_s3] sm:$0xff] %v464_v24  ;;  %v465_v41 = vmul.f32 %v449_v27, %v714_v31  ;;  %v442_v42 = vadd.f32 1.0, %v579_v34  ;;  %594 = vtanh.f32 %v414_v29  ;;  %v391_v25 = vadd.f32 %v375_v20, %v794_v52 }
 0x131   :  { %v583_v43 = vpop.eup %582  ;;  %488 = vst [vmem:[%s882_s3 + $0x40] sm:$0xff] %v472_v35  ;;  %v473_v26 = vmul.f32 %v457_v36, %v717_v32  ;;  %v450_v44 = vmul.f32 0.5, %v434_v37  ;;  %v435_v45 = vadd.f32 1.0, %v581_v38  ;;  %v383_v47 = vmul.f32 0.044715, %v367_v11 }
 0x132   :  { %481 = vst [vmem:[%s882_s3 + $0x8] sm:$0xff] %v465_v41  ;;  %v458_v48 = vmul.f32 0.5, %v442_v42  ;;  %v443_v31 = vadd.f32 1.0, %v583_v43  ;;  %v407_v51 = vmul.f32 0.7978846, %v391_v25 }
 0x133   :  { %489 = vst [vmem:[%s882_s3 + $0x48] sm:$0xff] %v473_v26  ;;  %v466_v53 = vmul.f32 %v450_v44, %v726_v39  ;;  %v451_v54 = vmul.f32 0.5, %v435_v45  ;;  %v399_v55 = vadd.f32 %v383_v47, %v800_v56 }
 0x134   :  { %v474_v32 = vmul.f32 %v458_v48, %v729_v40  ;;  %v459_v21 = vmul.f32 0.5, %v443_v31  ;;  %596 = vtanh.f32 %v407_v51 }
 0x135   :  { %v585_v57 = vpop.eup %584  ;;  %482 = vst [vmem:[%s882_s3 + $0x10] sm:$0xff] %v466_v53  ;;  %v467_v58 = vmul.f32 %v451_v54, %v738_v49  ;;  %v415_v59 = vmul.f32 0.7978846, %v399_v55 }
 0x136   :  { %490 = vst [vmem:[%s882_s3 + $0x50] sm:$0xff] %v474_v32  ;;  %v475_v39 = vmul.f32 %v459_v21, %v741_v50  ;;  %v436_v60 = vadd.f32 1.0, %v585_v57 }
 0x137   :  { %v587_v61 = vpop.eup %586  ;;  %483 = vst [vmem:[%s882_s3 + $0x18] sm:$0xff] %v467_v58  ;;  %598 = vtanh.f32 %v415_v59 }
 0x138   :  { %491 = vst [vmem:[%s882_s3 + $0x58] sm:$0xff] %v475_v39  ;;  %v452_v40 = vmul.f32 0.5, %v436_v60  ;;  %v444_v49 = vadd.f32 1.0, %v587_v61 }
 0x13a   :  { %v589_v62 = vpop.eup %588  ;;  %v468_v63 = vmul.f32 %v452_v40, %v756_v9  ;;  %v460_v0 = vmul.f32 0.5, %v444_v49 }
 0x13b   :  { %v591_v1 = vpop.eup %590  ;;  %v437_v22 = vadd.f32 1.0, %v589_v62 }
 0x13c   :  { %v593_v50 = vpop.eup %592  ;;  %484 = vst [vmem:[%s882_s3 + $0x20] sm:$0xff] %v468_v63  ;;  %v476_v2 = vmul.f32 %v460_v0, %v763_v15  ;;  %v445_v3 = vadd.f32 1.0, %v591_v1 }
 0x13d   :  { %v595_v4 = vpop.eup %594  ;;  %v453_v5 = vmul.f32 0.5, %v437_v22  ;;  %v438_v6 = vadd.f32 1.0, %v593_v50 }
 0x13e   :  { %492 = vst [vmem:[%s882_s3 + $0x60] sm:$0xff] %v476_v2  ;;  %v461_v7 = vmul.f32 0.5, %v445_v3  ;;  %v446_v9 = vadd.f32 1.0, %v595_v4 }
 0x13f   :  { %v469_v8 = vmul.f32 %v453_v5, %v771_v28  ;;  %v454_v10 = vmul.f32 0.5, %v438_v6 }
 0x140   :  { %v477_v11 = vmul.f32 %v461_v7, %v774_v30  ;;  %v462_v12 = vmul.f32 0.5, %v446_v9 }
 0x141   :  { %v597_v13 = vpop.eup %596  ;;  %485 = vst [vmem:[%s882_s3 + $0x28] sm:$0xff] %v469_v8  ;;  %v470_v15 = vmul.f32 %v454_v10, %v777_v33 }
 0x142   :  { %493 = vst [vmem:[%s882_s3 + $0x68] sm:$0xff] %v477_v11  ;;  %v478_v14 = vmul.f32 %v462_v12, %v788_v46  ;;  %v439_v16 = vadd.f32 1.0, %v597_v13 }
 0x143   :  { %486 = vst [vmem:[%s882_s3 + $0x30] sm:$0xff] %v470_v15 }
 0x144   :  { %v599_v28 = vpop.eup %598  ;;  %494 = vst [vmem:[%s882_s3 + $0x70] sm:$0xff] %v478_v14  ;;  %v455_v30 = vmul.f32 0.5, %v439_v16 }
 0x145   :  { %v447_v17 = vadd.f32 1.0, %v599_v28 }
 0x146   :  { %v471_v33 = vmul.f32 %v455_v30, %v794_v52 }
 0x147   :  { %v463_v18 = vmul.f32 0.5, %v447_v17 }
 0x148   :  { %487 = vst [vmem:[%s882_s3 + $0x38] sm:$0xff] %v471_v33 }
 0x149   :  { %v479_v46 = vmul.f32 %v463_v18, %v800_v56 }
 0x14b   :  { %495 = vst [vmem:[%s882_s3 + $0x78] sm:$0xff] %v479_v46 }
 0x14c   :  { %500 = vsyncpa [#allocation4], 1 }

// kernel: ltxv_wrapper_forward.12
= control target key start
LH: loop header
LB: loop body
LE: loop exit
PB: predicated region body
PF: predicated region fallthrough
CT: control target
= control target key end

     0   :  { %8 = vsyncpa [#allocation4], 0  ;;  %s371_s12 = smov [#allocation3]   ;;  %s572_s0 = inlined_call_operand.vmem [shape: f32[64,128], index: 0, kind: input, shape index: {}]   ;;  %s573_s1 = inlined_call_operand.vmem [shape: f32[128,256], index: 1, kind: input, shape index: {}]   ;;  %s574_s2 = inlined_call_operand.hbm [shape: f32[1,256], index: 2, kind: input, shape index: {}]   ;;  %s575_s3 = inlined_call_operand.vmem [shape: f32[64,256], index: 3, kind: output, shape index: {}]  }
   0x1   :  { %s19_s13 = sshll.u32 %s371_s12, 4  ;;  %s20_s13 = int_to_ptr.vmem [resolvable:$true] %s19_s13 }
   0x2   :  { %s357_s14 = scalar_lea.vmem %s20_s13, 32  ;;  %p362_p1 = scmp.lt.s32.totalorder %s20_s13, %s20_s13 }
   0x3   :  { %p358_p0 = scmp.ne.s32.totalorder %s20_s13, %s357_s14  ;;  %p363_p2 = scmp.lt.s32.totalorder %s357_s14, %s357_s14 }
   0x5   :  { %p364_p3 = por %p363_p2, %p362_p1 }
   0x7   :  { %p365_p4 = pnand %p364_p3, %p358_p0 }
   0x9   :  { %368 = shalt.err (!%p365_p4)
}
   0xa   :  { %22 = dma.hbm_to_vmem [thread:$0]  %s574_s2, 32, %s20_s13, [#allocation4]  }
   0xb   :  { %369 = dma.done.wait [#allocation4], 32  }
   0xc   :  { %370 = vsyncadd [#allocation4], 4294967264  ;;  %v372_v0 = vmov 0.0   ;;  %v101_v1 = vld [vmem:[%s573_s1 + $0xf8] sm:$0xff]  ;;  %v100_v2 = vld [vmem:[%s573_s1 + $0xf0] sm:$0xff]  ;;  %v268_v41 = vlaneseq }
   0xd   :  { %166 = vmatprep.mubr.f32.mxu0 %v372_v0  ;;  %190 = vmatprep.mubr.f32.mxu1 %v372_v0  ;;  %v99_v3 = vld [vmem:[%s573_s1 + $0xe8] sm:$0xff]  ;;  %v98_v4 = vld [vmem:[%s573_s1 + $0xe0] sm:$0xff]  ;;  %v97_v5 = vld [vmem:[%s573_s1 + $0xd8] sm:$0xff] }
   0xe   :  { %102 = vmatprep.subr.mxu0 %v101_v1  ;;  %315 = vmatprep.subr.mxu1 %v101_v1  ;;  %v96_v6 = vld [vmem:[%s573_s1 + $0xd0] sm:$0xff]  ;;  %v95_v7 = vld [vmem:[%s573_s1 + $0xc8] sm:$0xff]  ;;  %v94_v8 = vld [vmem:[%s573_s1 + $0xc0] sm:$0xff]  ;;  %v269_v42 = vshrl.u32 %v268_v41, 7 }
   0xf   :  { %103 = vmatpush1.msra.mxu0 %v100_v2  ;;  %331 = vmatpush1.msra.mxu1 %v100_v2  ;;  %v93_v9 = vld [vmem:[%s573_s1 + $0xb8] sm:$0xff]  ;;  %v92_v10 = vld [vmem:[%s573_s1 + $0xb0] sm:$0xff]  ;;  %v91_v11 = vld [vmem:[%s573_s1 + $0xa8] sm:$0xff] }
  0x10   :  { %104 = vmatprep.subr.mxu0 %v99_v3  ;;  %316 = vmatprep.subr.mxu1 %v99_v3  ;;  %v90_v12 = vld [vmem:[%s573_s1 + $0xa0] sm:$0xff]  ;;  %v89_v13 = vld [vmem:[%s573_s1 + $0x98] sm:$0xff]  ;;  %v88_v14 = vld [vmem:[%s573_s1 + $0x90] sm:$0xff]  ;;  %v270_v43 = vsub.s32 0, %v269_v42  ;;  %v274_v45 = vsub.s32 1, %v269_v42 }
  0x11   :  { %105 = vmatpush1.msra.mxu0 %v98_v4  ;;  %332 = vmatpush1.msra.mxu1 %v98_v4  ;;  %v87_v15 = vld [vmem:[%s573_s1 + $0x88] sm:$0xff]  ;;  %v86_v16 = vld [vmem:[%s573_s1 + $0x80] sm:$0xff]  ;;  %v85_v17 = vld [vmem:[%s573_s1 + $0x78] sm:$0xff] }
  0x12   :  { %106 = vmatprep.subr.mxu0 %v97_v5  ;;  %317 = vmatprep.subr.mxu1 %v97_v5  ;;  %v84_v18 = vld [vmem:[%s573_s1 + $0x70] sm:$0xff]  ;;  %v83_v19 = vld [vmem:[%s573_s1 + $0x68] sm:$0xff]  ;;  %v82_v20 = vld [vmem:[%s573_s1 + $0x60] sm:$0xff] }
  0x13   :  { %107 = vmatpush1.msra.mxu0 %v96_v6  ;;  %333 = vmatpush1.msra.mxu1 %v96_v6  ;;  %v81_v21 = vld [vmem:[%s573_s1 + $0x58] sm:$0xff]  ;;  %v80_v22 = vld [vmem:[%s573_s1 + $0x50] sm:$0xff]  ;;  %v79_v23 = vld [vmem:[%s573_s1 + $0x48] sm:$0xff] }
  0x14   :  { %108 = vmatprep.subr.mxu0 %v95_v7  ;;  %318 = vmatprep.subr.mxu1 %v95_v7  ;;  %v78_v24 = vld [vmem:[%s573_s1 + $0x40] sm:$0xff]  ;;  %v77_v25 = vld [vmem:[%s573_s1 + $0x38] sm:$0xff]  ;;  %v76_v26 = vld [vmem:[%s573_s1 + $0x30] sm:$0xff] }
  0x15   :  { %109 = vmatpush1.msra.mxu0 %v94_v8  ;;  %334 = vmatpush1.msra.mxu1 %v94_v8  ;;  %v75_v27 = vld [vmem:[%s573_s1 + $0x28] sm:$0xff]  ;;  %v74_v28 = vld [vmem:[%s573_s1 + $0x20] sm:$0xff]  ;;  %v73_v29 = vld [vmem:[%s573_s1 + $0x18] sm:$0xff] }
  0x16   :  { %110 = vmatprep.subr.mxu0 %v93_v9  ;;  %319 = vmatprep.subr.mxu1 %v93_v9  ;;  %v72_v30 = vld [vmem:[%s573_s1 + $0x10] sm:$0xff]  ;;  %v71_v31 = vld [vmem:[%s573_s1 + $0x8] sm:$0xff]  ;;  %v70_v32 = vld [vmem:[%s573_s1] sm:$0xff] }
  0x17   :  { %111 = vmatpush1.msra.mxu0 %v92_v10  ;;  %335 = vmatpush1.msra.mxu1 %v92_v10  ;;  %v46_v33 = vld [vmem:[%s572_s0] sm:$0xff]  ;;  %v47_v35 = vld [vmem:[%s572_s0 + $0x8] sm:$0xff]  ;;  %v48_v37 = vld [vmem:[%s572_s0 + $0x10] sm:$0xff] }
  0x18   :  { %112 = vmatprep.subr.mxu0 %v91_v11  ;;  %320 = vmatprep.subr.mxu1 %v91_v11  ;;  %v50_v34 = vld [vmem:[%s572_s0 + $0x20] sm:$0xff]  ;;  %v51_v36 = vld [vmem:[%s572_s0 + $0x28] sm:$0xff]  ;;  %v52_v38 = vld [vmem:[%s572_s0 + $0x30] sm:$0xff] }
  0x19   :  { %113 = vmatpush1.msra.mxu0 %v90_v12  ;;  %336 = vmatpush1.msra.mxu1 %v90_v12  ;;  %v49_v39 = vld [vmem:[%s572_s0 + $0x18] sm:$0xff]  ;;  %v266_v44 = vld [vmem:[#allocation3] sm:$0x3] }
  0x1a   :  { %114 = vmatprep.subr.mxu0 %v89_v13  ;;  %321 = vmatprep.subr.mxu1 %v89_v13  ;;  %v53_v40 = vld [vmem:[%s572_s0 + $0x38] sm:$0xff]  ;;  %v271_v46 = vrot.slane %v266_v44, %v270_v43  ;;  %v275_v47 = vrot.slane %v266_v44, %v274_v45 }
  0x1b   :  { %115 = vmatpush1.msra.mxu0 %v88_v14  ;;  %337 = vmatpush1.msra.mxu1 %v88_v14 }
  0x1c   :  { %116 = vmatprep.subr.mxu0 %v87_v15  ;;  %322 = vmatprep.subr.mxu1 %v87_v15 }
  0x1d   :  { %117 = vmatpush1.msra.mxu0 %v86_v16  ;;  %338 = vmatpush1.msra.mxu1 %v86_v16 }
  0x1e   :  { %118 = vmatprep.subr.mxu0 %v85_v17  ;;  %323 = vmatprep.subr.mxu1 %v85_v17 }
  0x1f   :  { %119 = vmatpush1.msra.mxu0 %v84_v18  ;;  %339 = vmatpush1.msra.mxu1 %v84_v18 }
  0x20   :  { %120 = vmatprep.subr.mxu0 %v83_v19  ;;  %324 = vmatprep.subr.mxu1 %v83_v19 }
  0x21   :  { %121 = vmatpush1.msra.mxu0 %v82_v20  ;;  %340 = vmatpush1.msra.mxu1 %v82_v20 }
  0x22   :  { %122 = vmatprep.subr.mxu0 %v81_v21  ;;  %325 = vmatprep.subr.mxu1 %v81_v21 }
  0x23   :  { %123 = vmatpush1.msra.mxu0 %v80_v22  ;;  %341 = vmatpush1.msra.mxu1 %v80_v22 }
  0x24   :  { %124 = vmatprep.subr.mxu0 %v79_v23  ;;  %326 = vmatprep.subr.mxu1 %v79_v23 }
  0x25   :  { %125 = vmatpush1.msra.mxu0 %v78_v24  ;;  %342 = vmatpush1.msra.mxu1 %v78_v24 }
  0x26   :  { %126 = vmatprep.subr.mxu0 %v77_v25  ;;  %327 = vmatprep.subr.mxu1 %v77_v25 }
  0x27   :  { %127 = vmatpush1.msra.mxu0 %v76_v26  ;;  %343 = vmatpush1.msra.mxu1 %v76_v26 }
  0x28   :  { %128 = vmatprep.subr.mxu0 %v75_v27  ;;  %328 = vmatprep.subr.mxu1 %v75_v27 }
  0x29   :  { %129 = vmatpush1.msra.mxu0 %v74_v28  ;;  %344 = vmatpush1.msra.mxu1 %v74_v28 }
  0x2a   :  { %130 = vmatprep.subr.mxu0 %v73_v29  ;;  %329 = vmatprep.subr.mxu1 %v73_v29 }
  0x2b   :  { %131 = vmatpush1.msra.mxu0 %v72_v30  ;;  %345 = vmatpush1.msra.mxu1 %v72_v30 }
  0x2c   :  { %132 = vmatprep.subr.mxu0 %v71_v31  ;;  %330 = vmatprep.subr.mxu1 %v71_v31 }
  0x2d   :  { %133 = vmatpush1.msra.mxu0 %v70_v32  ;;  %346 = vmatpush1.msra.mxu1 %v70_v32 }
  0x2e   :  { %167 = vmatmul.mubr.f32.vlgmr.msra.gmra.mxu0 %v46_v33  ;;  %191 = vmatmul.mubr.f32.vlgmr.msra.gmra.mxu1 %v50_v34 }
  0x2f   :  { %172 = vmatprep.mubr.f32.mxu0 %v372_v0  ;;  %196 = vmatprep.mubr.f32.mxu1 %v372_v0 }
  0x32   :  { %173 = vmatmul.mubr.f32.gmra.mxu0 %v47_v35  ;;  %197 = vmatmul.mubr.f32.gmra.mxu1 %v51_v36 }
  0x33   :  { %178 = vmatprep.mubr.f32.mxu0 %v372_v0  ;;  %202 = vmatprep.mubr.f32.mxu1 %v372_v0 }
  0x36   :  { %179 = vmatmul.mubr.f32.gmra.mxu0 %v48_v37  ;;  %203 = vmatmul.mubr.f32.gmra.mxu1 %v52_v38 }
  0x37   :  { %184 = vmatprep.mubr.f32.mxu0 %v372_v0  ;;  %208 = vmatprep.mubr.f32.mxu1 %v372_v0 }
  0x3a   :  { %185 = vmatmul.mubr.f32.gmra.mxu0 %v49_v39  ;;  %209 = vmatmul.mubr.f32.gmra.mxu1 %v53_v40 }
  0xee   :  { %v168_v48 = vpop.f32.mrf.mxu0  ;;  %v192_v49 = vpop.f32.mrf.mxu1 }
  0xef   :  { %v278_v50 = vadd.f32 %v271_v46, %v168_v48  ;;  %v286_v51 = vadd.f32 %v271_v46, %v192_v49 }
  0xf0   :  { %v170_v52 = vpop.f32.mrf.mxu0  ;;  %v194_v53 = vpop.f32.mrf.mxu1 }
  0xf1   :  { %294 = vst [vmem:[%s575_s3] sm:$0xff] %v278_v50  ;;  %302 = vst [vmem:[%s575_s3 + $0x40] sm:$0xff] %v286_v51  ;;  %v279_v54 = vadd.f32 %v275_v47, %v170_v52  ;;  %v287_v55 = vadd.f32 %v275_v47, %v194_v53 }
  0xf2   :  { %v174_v56 = vpop.f32.mrf.mxu0  ;;  %v198_v57 = vpop.f32.mrf.mxu1 }
  0xf3   :  { %295 = vst [vmem:[%s575_s3 + $0x8] sm:$0xff] %v279_v54  ;;  %303 = vst [vmem:[%s575_s3 + $0x48] sm:$0xff] %v287_v55  ;;  %v280_v58 = vadd.f32 %v271_v46, %v174_v56  ;;  %v288_v59 = vadd.f32 %v271_v46, %v198_v57 }
  0xf4   :  { %v176_v60 = vpop.f32.mrf.mxu0  ;;  %v200_v61 = vpop.f32.mrf.mxu1 }
  0xf5   :  { %296 = vst [vmem:[%s575_s3 + $0x10] sm:$0xff] %v280_v58  ;;  %304 = vst [vmem:[%s575_s3 + $0x50] sm:$0xff] %v288_v59  ;;  %v281_v62 = vadd.f32 %v275_v47, %v176_v60  ;;  %v289_v63 = vadd.f32 %v275_v47, %v200_v61 }
  0xf6   :  { %v180_v0 = vpop.f32.mrf.mxu0  ;;  %v204_v1 = vpop.f32.mrf.mxu1 }
  0xf7   :  { %297 = vst [vmem:[%s575_s3 + $0x18] sm:$0xff] %v281_v62  ;;  %305 = vst [vmem:[%s575_s3 + $0x58] sm:$0xff] %v289_v63  ;;  %v282_v2 = vadd.f32 %v271_v46, %v180_v0  ;;  %v290_v3 = vadd.f32 %v271_v46, %v204_v1 }
  0xf8   :  { %v182_v4 = vpop.f32.mrf.mxu0  ;;  %v206_v5 = vpop.f32.mrf.mxu1 }
  0xf9   :  { %298 = vst [vmem:[%s575_s3 + $0x20] sm:$0xff] %v282_v2  ;;  %306 = vst [vmem:[%s575_s3 + $0x60] sm:$0xff] %v290_v3  ;;  %v283_v6 = vadd.f32 %v275_v47, %v182_v4  ;;  %v291_v7 = vadd.f32 %v275_v47, %v206_v5 }
  0xfa   :  { %v186_v8 = vpop.f32.mrf.mxu0  ;;  %v210_v9 = vpop.f32.mrf.mxu1 }
  0xfb   :  { %299 = vst [vmem:[%s575_s3 + $0x28] sm:$0xff] %v283_v6  ;;  %307 = vst [vmem:[%s575_s3 + $0x68] sm:$0xff] %v291_v7  ;;  %v284_v10 = vadd.f32 %v271_v46, %v186_v8  ;;  %v292_v11 = vadd.f32 %v271_v46, %v210_v9 }
  0xfc   :  { %v188_v12 = vpop.f32.mrf.mxu0  ;;  %v212_v13 = vpop.f32.mrf.mxu1 }
  0xfd   :  { %300 = vst [vmem:[%s575_s3 + $0x30] sm:$0xff] %v284_v10  ;;  %308 = vst [vmem:[%s575_s3 + $0x70] sm:$0xff] %v292_v11  ;;  %v285_v14 = vadd.f32 %v275_v47, %v188_v12  ;;  %v293_v15 = vadd.f32 %v275_v47, %v212_v13 }
  0xff   :  { %301 = vst [vmem:[%s575_s3 + $0x38] sm:$0xff] %v285_v14  ;;  %309 = vst [vmem:[%s575_s3 + $0x78] sm:$0xff] %v293_v15 }
 0x100   :  { %314 = vsyncpa [#allocation4], 1 }

// kernel: ltxv_wrapper_forward.16
= control target key start
LH: loop header
LB: loop body
LE: loop exit
PB: predicated region body
PF: predicated region fallthrough
CT: control target
= control target key end

     0   :  { %s1558_s0 = inlined_call_operand.vmem [shape: f32[64,768], index: 0, kind: input, shape index: {}, may-alias: {0,1,2}]   ;;  %s1559_s1 = inlined_call_operand.vmem [shape: f32[64,768], index: 1, kind: input, shape index: {}, may-alias: {0,1,2}]   ;;  %s1560_s2 = inlined_call_operand.vmem [shape: f32[64,768], index: 2, kind: input, shape index: {}, may-alias: {0,1,2}]   ;;  %s1561_s3 = inlined_call_operand.vmem [shape: f32[64,256], index: 3, kind: output, shape index: {}]  }
   0x1   :  { %1563 = sst [smem:[#allocation10_spill]] %s1561_s3 }
   0x2   :  { %s1295_s12 = smov 0   ;;  %s1297_s13 = smov 0  }
   0x3   :  { %s1299_s14 = smov 0   ;;  %s1301_s15 = smov 0  }
   0x4   :  { %s1303_s16 = smov 0   ;;  %s1305_s17 = smov 0  }
   0x5   :  { %s1307_s18 = smov 0   ;;  %s1309_s19 = smov 0  }
   0x6   :  { %s1311_s20 = smov 0   ;;  %s1313_s21 = smov 0  }
   0x7   :  { %s1315_s22 = smov 0  }
   0x8 LB: > { %s35_s24 = sadd.s32 1, %s1262_s20  ;;  %s39_s25 = sadd.s32 1, %s1266_s21  ;;  %s1270_s22 = sphi %s1315_s22, %s13_s22   ;;  %s1266_s21 = sphi %s1313_s21, %s1581_s21   ;;  %s1262_s20 = sphi %s1311_s20, %s1580_s20   ;;  %s1258_s19 = sphi %s1309_s19, %s1579_s19   ;;  %s1254_s18 = sphi %s1307_s18, %s1578_s18   ;;  %s1250_s17 = sphi %s1305_s17, %s1577_s17   ;;  %s1246_s16 = sphi %s1303_s16, %s1576_s16   ;;  %s1242_s15 = sphi %s1301_s15, %s1575_s15   ;;  %s1238_s14 = sphi %s1299_s14, %s1574_s14   ;;  %s1234_s13 = sphi %s1297_s13, %s1573_s13   ;;  %s1230_s12 = sphi %s1295_s12, %s1572_s12  }
   0x9   : > { %p37_p0 = scmp.ge.s32.totalorder %s35_s24, 2  ;;  %s50_s26 = sadd.s32 1, %s1250_s17 }
   0xa   : > { %p57_p1 = scmp.ne.s32.totalorder %s1250_s17, %s1246_s16  ;;  %p58_p2 = scmp.eq.s32.totalorder %s1270_s22, 0 }
   0xb   : > { %s1583_s24 = smov (%p37_p0, %s35_s24), 0  ;;  %s1585_s25 = smov (!%p37_p0, %s39_s25), %s1266_s21 }
   0xc   : > { %s46_s27 = ssub.s32 %s1262_s20, %s1583_s24  ;;  %p41_p3 = scmp.ge.s32.totalorder %s1585_s25, 2 }
   0xd   : > { %s74_s28 = sadd.s32 2, %s1262_s20  ;;  %p1368_p4 = por %p58_p2, %p57_p1 }
   0xe   : > { %s76_s30 = sadd.s32 2, %s1583_s24  ;;  %s1587_s25 = smov (%p41_p3, %s1585_s25), 0 }
   0xf   : > { %1565 = sst [smem:[#allocation9_spill]] %s1587_s25  ;;  %s78_s4 = ssub.s32 %s74_s28, %s76_s30 }
  0x10   : > { %s82_s5 = sadd.s32 1, %s1242_s15  ;;  %s45_s6 = ssub.s32 %s1266_s21, %s1587_s25 }
  0x11   : > { %p89_p5 = scmp.ne.s32.totalorder %s1242_s15, %s1238_s14  ;;  %s47_s7 = sor.u32 %s46_s27, %s45_s6 }
  0x12   : > { %s79_s8 = sor.u32 %s78_s4, %s45_s6  ;;  %p48_p6 = scmp.eq.s32.totalorder %s47_s7, 0 }
  0x13   : > { %p80_p7 = scmp.eq.s32.totalorder %s79_s8, 0  ;;  %p1382_p8 = por %p89_p5, %p58_p2 }
  0x14   : > { %s106_s10 = sadd.s32 4, %s1262_s20  ;;  %s108_s30 = sadd.s32 4, %s1583_s24 }
  0x15   : > { %s1388_s11 = scalar_select %p48_p6, %s1250_s17, %s50_s26  }
  0x16   : > { %s1391_s28 = scalar_select %p80_p7, %s1242_s15, %s82_s5  }
  0x17   : > { %s114_s23 = sadd.s32 1, %s1234_s13  ;;  %s110_s25 = ssub.s32 %s106_s10, %s108_s30 }
  0x18   : > { %p121_p9 = scmp.ne.s32.totalorder %s1234_s13, %s1230_s12  ;;  %s111_s27 = sor.u32 %s110_s25, %s45_s6 }
  0x19   : > { %s1567_s3 = sadd.s32 4294967295, %s1270_s22   ;;  %p112_p11 = scmp.eq.s32.totalorder %s111_s27, 0 }
  0x1a   : > { %p155_p10 = scmp.eq.s32.totalorder %s1567_s3, 3  ;;  %p1401_p12 = por %p121_p9, %p58_p2 }
  0x1b   : > { %s1413_s26 = scalar_select %p112_p11, %s1234_s13, %s114_s23  }
  0x1c   : > { %p1408_p13 = por %p155_p10, %p57_p1  ;;  %p989_p0 = scmp.ge.s32.totalorder %s1270_s22, 4 }
  0x1e   : > { %177 = sbr.rel (%p989_p0) target bundleno = 62 (0x3e), region = 16 }
  0x23   : > { %180 = sbr.rel (!%p1368_p4) target bundleno = 44 (0x2c), region = 20  ;;  %s182_s3 = sand.u32 (%p1368_p4), 1, %s1250_s17  }
  0x24   : > { %s1066_s25 = smul.u32 (%p1368_p4), 24, %s1266_s21  ;;  %s990_s5 = sshll.u32 (%p1368_p4), %s182_s3, 5 }
  0x25   : > { %s184_s23 = scalar_lea.vmem (%p1368_p4), [#allocation5], %s990_s5 }
  0x26   : > { %s188_s6 = sadd.s32 (%p1368_p4), %s1262_s20, %s1066_s25 }
  0x27   : > { %s993_s8 = sshll.u32 (%p1368_p4), %s188_s6, 3 }
  0x28   : > { %s190_s27 = scalar_lea.vmem %s1558_s0, %s993_s8 }
  0x29   : > { %v225_v0 = vld [vmem:[%s190_s27] sm:$0xff]  ;;  %v227_v1 = vld [vmem:[%s190_s27 + $0x30] sm:$0xff] }
  0x2a   : > { %v229_v2 = vld [vmem:[%s190_s27 + $0x60] sm:$0xff]  ;;  %226 = vst [vmem:[%s184_s23] sm:$0xff] %v225_v0  ;;  %228 = vst [vmem:[%s184_s23 + $0x8] sm:$0xff] %v227_v1  ;;  %v231_v3 = vld [vmem:[%s190_s27 + $0x90] sm:$0xff] }
  0x2b   : > { %230 = vst [vmem:[%s184_s23 + $0x10] sm:$0xff] %v229_v2  ;;  %232 = vst [vmem:[%s184_s23 + $0x18] sm:$0xff] %v231_v3 }
  0x2c PF: > { %238 = sbr.rel (!%p1382_p8) target bundleno = 53 (0x35), region = 58  ;;  %s240_s29 = sand.u32 (%p1382_p8), 1, %s1242_s15  }
  0x2d   : > { %s884_s3 = smul.u32 (%p1382_p8), 24, %s1266_s21  ;;  %s994_s25 = sshll.u32 (%p1382_p8), %s240_s29, 5 }
  0x2e   : > { %s242_s27 = scalar_lea.vmem (%p1382_p8), [#allocation6], %s994_s25 }
  0x2f   : > { %s885_s6 = sadd.s32 (%p1382_p8), %s1262_s20, %s884_s3 }
  0x30   : > { %s995_s8 = sshll.u32 (%p1382_p8), %s885_s6, 3 }
  0x31   : > { %s887_s5 = scalar_lea.vmem %s1559_s1, %s995_s8 }
  0x32   : > { %v996_v4 = vld [vmem:[%s887_s5 + $0x10] sm:$0xff]  ;;  %v997_v5 = vld [vmem:[%s887_s5 + $0x40] sm:$0xff] }
  0x33   : > { %v998_v6 = vld [vmem:[%s887_s5 + $0x70] sm:$0xff]  ;;  %285 = vst [vmem:[%s242_s27] sm:$0xff] %v996_v4  ;;  %287 = vst [vmem:[%s242_s27 + $0x8] sm:$0xff] %v997_v5  ;;  %v999_v7 = vld [vmem:[%s887_s5 + $0xa0] sm:$0xff] }
  0x34   : > { %289 = vst [vmem:[%s242_s27 + $0x10] sm:$0xff] %v998_v6  ;;  %291 = vst [vmem:[%s242_s27 + $0x18] sm:$0xff] %v999_v7 }
  0x35 PF: > { %297 = sbr.rel (!%p1401_p12) target bundleno = 62 (0x3e), region = 96  ;;  %s299_s9 = sand.u32 (%p1401_p12), 1, %s1234_s13  }
  0x36   : > { %s892_s23 = smul.u32 (%p1401_p12), 24, %s1266_s21  ;;  %s1000_s29 = sshll.u32 (%p1401_p12), %s299_s9, 5 }
  0x37   : > { %s301_s30 = scalar_lea.vmem (%p1401_p12), [#allocation7], %s1000_s29 }
  0x38   : > { %s893_s3 = sadd.s32 (%p1401_p12), %s1262_s20, %s892_s23 }
  0x39   : > { %s1001_s6 = sshll.u32 (%p1401_p12), %s893_s3, 3 }
  0x3a   : > { %s895_s25 = scalar_lea.vmem %s1560_s2, %s1001_s6 }
  0x3b   : > { %v1002_v8 = vld [vmem:[%s895_s25 + $0x20] sm:$0xff]  ;;  %v1003_v9 = vld [vmem:[%s895_s25 + $0x50] sm:$0xff] }
  0x3c   : > { %v1004_v10 = vld [vmem:[%s895_s25 + $0x80] sm:$0xff]  ;;  %344 = vst [vmem:[%s301_s30] sm:$0xff] %v1002_v8  ;;  %346 = vst [vmem:[%s301_s30 + $0x8] sm:$0xff] %v1003_v9  ;;  %v1005_v11 = vld [vmem:[%s895_s25 + $0xb0] sm:$0xff] }
  0x3d   : > { %348 = vst [vmem:[%s301_s30 + $0x10] sm:$0xff] %v1004_v10  ;;  %350 = vst [vmem:[%s301_s30 + $0x18] sm:$0xff] %v1005_v11 }
  0x3e PF: > { %p1006_p1 = scmp.ge.s32.totalorder %s1270_s22, 1  ;;  %p355_p2 = scmp.lt.s32.totalorder %s1270_s22, 5 }
  0x40   : > { %p356_p3 = pnand %p1006_p1, %p355_p2 }
  0x41   : > { %s369_s4 = sand.u32 (!%p356_p3), 1, %s1238_s14   ;;  %s362_s5 = sand.u32 (!%p356_p3), 1, %s1246_s16  }
  0x42   : > { %359 = sbr.rel (%p356_p3) target bundleno = 876 (0x36c), region = 134  ;;  %s1008_s27 = sshll.u32 (!%p356_p3), %s369_s4, 5 }
  0x43   : > { %s1444_s9 = sshll.u32 (!%p356_p3), %s362_s5, 5  ;;  %s371_s23 = scalar_lea.vmem (!%p356_p3), [#allocation6], %s1008_s27 }
  0x44   : > { %s364_s29 = scalar_lea.vmem (!%p356_p3), [#allocation5], %s1444_s9  ;;  %s376_s14 = sand.u32 (!%p356_p3), 1, %s1230_s12  }
  0x45   : > { %s1009_s16 = sshll.u32 (!%p356_p3), %s376_s14, 5  ;;  %s405_s12 = scalar_lea.vmem (!%p356_p3), [#allocation8], %s1444_s9 }
  0x46   : > { %s378_s3 = scalar_lea.vmem (!%p356_p3), [#allocation7], %s1009_s16 }
  0x47   : > { %v440_v12 = vld [vmem:[%s371_s23 + $0x18] sm:$0xff]  ;;  %v439_v13 = vld [vmem:[%s371_s23 + $0x10] sm:$0xff]  ;;  %v433_v14 = vld [vmem:[%s364_s29] sm:$0xff]  ;;  %vm420_vm0 = vcmask 7168   ;;  %v1272_v20 = vmov -1e+30  }
  0x48   : > { %1038 = vmatprep.subr.mxu0 %v440_v12  ;;  %1046 = vmatprep.mubr.f32.mxu0 %v433_v14  ;;  %v438_v15 = vld [vmem:[%s371_s23 + $0x8] sm:$0xff]  ;;  %v437_v16 = vld [vmem:[%s371_s23] sm:$0xff]  ;;  %v435_v18 = vld [vmem:[%s364_s29 + $0x10] sm:$0xff]  ;;  %421 = vst.msk [vmem:[#allocation2] sm:$0xff] %vm420_vm0, %v1272_v20  ;;  %vm530_vm1 = vcmask 261120   ;;  %v1273_v29 = vmov 0  }
  0x49   : > { %1039 = vmatpush3.xpose.msra.mxu0 %v440_v12  ;;  %v434_v17 = vld [vmem:[%s364_s29 + $0x8] sm:$0xff]  ;;  %v436_v19 = vld [vmem:[%s364_s29 + $0x18] sm:$0xff]  ;;  %422 = vst.msk [vmem:[#allocation2 + $0x8] sm:$0xff] %vm420_vm0, %v1272_v20  ;;  %423 = vst.msk [vmem:[#allocation2 + $0x10] sm:$0xff] %vm420_vm0, %v1272_v20  ;;  %1158 = vset.pattern.permute.xlu0 %v1273_v29  ;;  %v1274_v30 = vmov 0.0   ;;  %s1021_s6 = sshll.u32 (%p1408_p13), %s1258_s19, 3 }
  0x4a   : > { %1040 = vmatprep.subr.mxu0 %v439_v13  ;;  %424 = vst.msk [vmem:[#allocation2 + $0x18] sm:$0xff] %vm420_vm0, %v1272_v20  ;;  %1159 = vset.pattern.permute.xlu1 %v1273_v29  ;;  %425 = vst.msk [vmem:[#allocation3] sm:$0xff] %vm420_vm0, %v1274_v30  ;;  %v651_v47 = vld [vmem:[%s378_s3 + $0x18] sm:$0xff]  ;;  %v650_v48 = vld [vmem:[%s378_s3 + $0x10] sm:$0xff]  ;;  %s814_s8 = sadd.s32 (%p1408_p13), %s1254_s18, %s1021_s6  ;;  %s1570_s4 = sld [smem:[#allocation10_spill]] (%p1408_p13) }
  0x4b   : > { %426 = vst.msk [vmem:[#allocation3 + $0x8] sm:$0xff] %vm420_vm0, %v1274_v30  ;;  %427 = vst.msk [vmem:[#allocation3 + $0x10] sm:$0xff] %vm420_vm0, %v1274_v30  ;;  %1052 = vmatprep.subr.mxu1 %v651_v47  ;;  %v649_v49 = vld [vmem:[%s378_s3 + $0x8] sm:$0xff]  ;;  %v648_v50 = vld [vmem:[%s378_s3] sm:$0xff]  ;;  %s1018_s10 = sshll.u32 (%p1408_p13), %s814_s8, 3 }
  0x4c   : > { %428 = vst.msk [vmem:[#allocation3 + $0x18] sm:$0xff] %vm420_vm0, %v1274_v30  ;;  %1053 = vmatpush3.msra.mxu1 %v651_v47 }
  0x4d   : > { %1041 = vmatpush3.xpose.msra.mxu0 %v439_v13  ;;  %1054 = vmatprep.subr.mxu1 %v650_v48 }
  0x4e   : > { %1042 = vmatprep.subr.mxu0 %v438_v15  ;;  %1055 = vmatpush3.msra.mxu1 %v650_v48 }
  0x4f   : > { %v1468_v31 = vld [vmem:[#allocation2] sm:$0xff]  ;;  %1056 = vmatprep.subr.mxu1 %v649_v49 }
  0x50   : > { %v1473_v34 = vld [vmem:[#allocation2 + $0x8] sm:$0xff]  ;;  %v1475_v35 = vld [vmem:[#allocation2 + $0x10] sm:$0xff]  ;;  %1057 = vmatpush3.msra.mxu1 %v649_v49  ;;  %s816_s5 = scalar_lea.vmem (%p1408_p13), %s1570_s4, %s1018_s10 }
  0x51   : > { %1043 = vmatpush3.xpose.msra.mxu0 %v438_v15  ;;  %v1486_v41 = vld [vmem:[#allocation2 + $0x18] sm:$0xff]  ;;  %1058 = vmatprep.subr.mxu1 %v648_v50  ;;  %v591_v15 = vld [vmem:[#allocation3] sm:$0xff] }
  0x52   : > { %1044 = vmatprep.subr.mxu0 %v437_v16  ;;  %1059 = vmatpush3.msra.mxu1 %v648_v50 }
  0x55   : > { %1045 = vmatpush3.xpose.msra.mxu0 %v437_v16 }
  0x58   : > { %1047 = vmatmul.mubr.f32.vlgmr.msra.gmra.mxu0 %v434_v17 }
  0x59   : > { %1049 = vmatprep.mubr.f32.mxu0 %v435_v18  ;;  %v592_v18 = vld [vmem:[#allocation3 + $0x8] sm:$0xff] }
  0x5c   : > { %1050 = vmatmul.mubr.f32.gmra.mxu0 %v436_v19 }
 0x118   : > { %v1451_v21 = vpop.f32.mrf.mxu0 }
 0x119   : > { %v534_v26 = vsel %vm530_vm1, %v1451_v21, -inf }
 0x11a   : > { %v507_v22 = vpop.f32.mrf.mxu0 }
 0x11b   : > { %v531_v23 = vsel %vm530_vm1, %v507_v22, -inf }
 0x11c   : > { %532 = vmax.xlane.f32.xlu0 %v531_v23  ;;  %v1454_v24 = vpop.f32.mrf.mxu0 }
 0x11d   : > { %v540_v28 = vsel %vm530_vm1, %v1454_v24, -inf }
 0x11e   : > { %v1456_v25 = vpop.f32.mrf.mxu0 }
 0x11f   : > { %v537_v27 = vsel %vm530_vm1, %v1456_v25, -inf }
 0x120   : > { %535 = vmax.xlane.f32.xlu0 %v534_v26  ;;  %538 = vmax.xlane.f32.xlu1 %v537_v27  ;;  %v594_v26 = vld [vmem:[#allocation3 + $0x18] sm:$0xff] }
 0x124   : > { %541 = vmax.xlane.f32.xlu1 %v540_v28 }
 0x1a5   : > { %v533_v32 = vpop.xlane.xlu0 %532 }
 0x1a6   : > { %v1471_v33 = vmax.f32 %v1468_v31, %v533_v32 }
 0x1a8   : > { %v547_v36 = vsub.f32 %v1468_v31, %v1471_v33  ;;  %757 = vst.msk [vmem:[#allocation2] sm:$0xff] %vm420_vm0, %v1471_v33  ;;  %561 = vperm.xlu0 %1158, %v1471_v33  }
 0x1a9   : > { %v536_v37 = vpop.xlane.xlu0 %535  ;;  %v539_v38 = vpop.xlane.xlu1 %538 }
 0x1aa   : > { %v544_v39 = vmax.f32 %v1473_v34, %v536_v37  ;;  %v1484_v40 = vmax.f32 %v1475_v35, %v539_v38  ;;  %v551_v7 = vmul.f32 1.442695, %v547_v36 }
 0x1ac   : > { %v548_v42 = vsub.f32 %v1473_v34, %v544_v39  ;;  %758 = vst.msk [vmem:[#allocation2 + $0x8] sm:$0xff] %vm420_vm0, %v544_v39  ;;  %v549_v43 = vsub.f32 %v1475_v35, %v1484_v40  ;;  %759 = vst.msk [vmem:[#allocation2 + $0x10] sm:$0xff] %vm420_vm0, %v1484_v40  ;;  %566 = vperm.xlu1 %1159, %v544_v39  }
 0x1ad   : > { %v542_v44 = vpop.xlane.xlu1 %541 }
 0x1ae   : > { %v546_v45 = vmax.f32 %v1486_v41, %v542_v44  ;;  %v553_v5 = vmul.f32 1.442695, %v548_v42  ;;  %v555_v9 = vmul.f32 1.442695, %v549_v43 }
 0x1b0   : > { %v550_v46 = vsub.f32 %v1486_v41, %v546_v45  ;;  %760 = vst.msk [vmem:[#allocation2 + $0x18] sm:$0xff] %vm420_vm0, %v546_v45  ;;  %571 = vperm.xlu1 %1159, %v1484_v40  }
 0x1b2   : > { %v557_v10 = vmul.f32 1.442695, %v550_v46 }
 0x1b4   : > { %576 = vperm.xlu1 %1159, %v546_v45  }
 0x223   : > { %v562_v51 = vpop.permute.xlu0 %561 }
 0x224   : > { %v579_v52 = vsub.f32 %v507_v22, %v562_v51  ;;  %v593_v22 = vld [vmem:[#allocation3 + $0x10] sm:$0xff] }
 0x226   : > { %v583_v53 = vmul.f32 1.442695, %v579_v52 }
 0x227   : > { %v567_v54 = vpop.permute.xlu1 %566 }
 0x228   : > { %1160 = vpow2.f32 %v583_v53  ;;  %v580_v55 = vsub.f32 %v1451_v21, %v567_v54 }
 0x22a   : > { %v585_v56 = vmul.f32 1.442695, %v580_v55 }
 0x22b   : > { %v572_v57 = vpop.permute.xlu1 %571 }
 0x22c   : > { %1162 = vpow2.f32 %v585_v56  ;;  %v581_v58 = vsub.f32 %v1456_v25, %v572_v57 }
 0x22e   : > { %v587_v59 = vmul.f32 1.442695, %v581_v58 }
 0x22f   : > { %v577_v60 = vpop.permute.xlu1 %576 }
 0x230   : > { %1164 = vpow2.f32 %v587_v59  ;;  %v582_v61 = vsub.f32 %v1454_v24, %v577_v60 }
 0x232   : > { %v589_v62 = vmul.f32 1.442695, %v582_v61 }
 0x234   : > { %1166 = vpow2.f32 %v589_v62 }
 0x235   : > { %v1161_v63 = vpop.eup %1160  ;;  %1168 = vpow2.f32 %v553_v5 }
 0x236   : > { %1060 = vmatprep.mubr.msk.f32.mxu1 %vm530_vm1, %v1161_v63  ;;  %v599_v0 = vsel %vm530_vm1, %v1161_v63, 0.0  ;;  %1170 = vpow2.f32 %v551_v7 }
 0x237   : > { %600 = vadd.xlane.f32.xlu1 %v599_v0  ;;  %1172 = vpow2.f32 %v555_v9 }
 0x238   : > { %1174 = vpow2.f32 %v557_v10 }
 0x239   : > { %v1163_v1 = vpop.eup %1162 }
 0x23a   : > { %1061 = vmatmul.mubr.msk.f32.vlgmr.msra.gmra.mxu1 %vm530_vm1, %v1163_v1  ;;  %v602_v2 = vsel %vm530_vm1, %v1163_v1, 0.0 }
 0x23b   : > { %603 = vadd.xlane.f32.xlu0 %v602_v2 }
 0x23d   : > { %v1165_v3 = vpop.eup %1164 }
 0x23e   : > { %1063 = vmatprep.mubr.msk.f32.mxu1 %vm530_vm1, %v1165_v3  ;;  %v605_v4 = vsel %vm530_vm1, %v1165_v3, 0.0 }
 0x23f   : > { %606 = vadd.xlane.f32.xlu1 %v605_v4 }
 0x241   : > { %v1167_v6 = vpop.eup %1166 }
 0x242   : > { %1064 = vmatmul.mubr.msk.f32.gmra.mxu1 %vm530_vm1, %v1167_v6  ;;  %v608_v8 = vsel %vm530_vm1, %v1167_v6, 0.0  ;;  %v1169_v11 = vpop.eup %1168 }
 0x243   : > { %609 = vadd.xlane.f32.xlu1 %v608_v8  ;;  %v1171_v12 = vpop.eup %1170  ;;  %v596_v20 = vmul.f32 %v1169_v11, %v592_v18 }
 0x244   : > { %v1173_v13 = vpop.eup %1172  ;;  %v595_v16 = vmul.f32 %v1171_v12, %v591_v15 }
 0x245   : > { %v1175_v14 = vpop.eup %1174  ;;  %v597_v24 = vmul.f32 %v1173_v13, %v593_v22 }
 0x246   : > { %v598_v29 = vmul.f32 %v1175_v14, %v594_v26 }
 0x251   : > { %631 = vperm.xlu0 %1158, %v1169_v11  }
 0x254   : > { %626 = vperm.xlu1 %1159, %v1171_v12  }
 0x258   : > { %636 = vperm.xlu1 %1159, %v1173_v13  }
 0x25c   : > { %641 = vperm.xlu1 %1159, %v1175_v14  }
 0x2c0   : > { %v601_v17 = vpop.xlane.xlu1 %600 }
 0x2c1   : > { %v611_v19 = vadd.f32 %v601_v17, %v595_v16 }
 0x2c3   : > { %616 = vst.msk [vmem:[#allocation3] sm:$0xff] %vm420_vm0, %v611_v19 }
 0x2c4   : > { %v604_v21 = vpop.xlane.xlu0 %603 }
 0x2c5   : > { %v612_v23 = vadd.f32 %v604_v21, %v596_v20 }
 0x2c7   : > { %617 = vst.msk [vmem:[#allocation3 + $0x8] sm:$0xff] %vm420_vm0, %v612_v23 }
 0x2c8   : > { %v607_v25 = vpop.xlane.xlu1 %606 }
 0x2c9   : > { %v613_v27 = vadd.f32 %v607_v25, %v597_v24 }
 0x2ca   : > { %v768_v28 = vld [vmem:[#allocation3] sm:$0xff] }
 0x2cb   : > { %618 = vst.msk [vmem:[#allocation3 + $0x10] sm:$0xff] %vm420_vm0, %v613_v27  ;;  %1176 = vrcp.f32 %v768_v28 }
 0x2cc   : > { %v610_v30 = vpop.xlane.xlu1 %609  ;;  %v632_v45 = vpop.permute.xlu0 %631 }
 0x2cd   : > { %v614_v31 = vadd.f32 %v610_v30, %v598_v29  ;;  %v645_v49 = vmul.f32 0.0, %v632_v45 }
 0x2ce   : > { %v769_v32 = vld [vmem:[#allocation3 + $0x8] sm:$0xff] }
 0x2cf   : > { %619 = vst.msk [vmem:[#allocation3 + $0x18] sm:$0xff] %vm420_vm0, %v614_v31  ;;  %1178 = vrcp.f32 %v769_v32 }
 0x2d0   : > { %v627_v39 = vpop.permute.xlu1 %626 }
 0x2d1   : > { %v644_v44 = vmul.f32 0.0, %v627_v39 }
 0x2d2   : > { %v770_v33 = vld [vmem:[#allocation3 + $0x10] sm:$0xff] }
 0x2d3   : > { %1180 = vrcp.f32 %v770_v33 }
 0x2d4   : > { %v637_v40 = vpop.permute.xlu1 %636 }
 0x2d5   : > { %v646_v54 = vmul.f32 0.0, %v637_v40 }
 0x2d6   : > { %v771_v34 = vld [vmem:[#allocation3 + $0x18] sm:$0xff] }
 0x2d7   : > { %1182 = vrcp.f32 %v771_v34 }
 0x2d8   : > { %v1177_v35 = vpop.eup %1176  ;;  %v642_v42 = vpop.permute.xlu1 %641 }
 0x2d9   : > { %778 = vperm.xlu1 %1159, %v1177_v35   ;;  %v647_v58 = vmul.f32 0.0, %v642_v42 }
 0x2dc   : > { %v1179_v36 = vpop.eup %1178 }
 0x2dd   : > { %783 = vperm.xlu0 %1158, %v1179_v36  }
 0x2e0   : > { %v1181_v37 = vpop.eup %1180 }
 0x2e1   : > { %788 = vperm.xlu1 %1159, %v1181_v37  }
 0x2e4   : > { %v1183_v38 = vpop.eup %1182 }
 0x2e5   : > { %793 = vperm.xlu0 %1158, %v1183_v38  }
 0x2fa   : > { %v1062_v41 = vpop.f32.mrf.mxu1 }
 0x2fb   : > { %v750_v51 = vadd.f32 %v1062_v41, %v645_v49 }
 0x2fc   : > { %v730_v43 = vpop.f32.mrf.mxu1 }
 0x2fd   : > { %v749_v46 = vadd.f32 %v730_v43, %v644_v44 }
 0x302   : > { %v1065_v47 = vpop.f32.mrf.mxu1 }
 0x303   : > { %v752_v60 = vadd.f32 %v1065_v47, %v647_v58 }
 0x304   : > { %v740_v52 = vpop.f32.mrf.mxu1 }
 0x305   : > { %v751_v56 = vadd.f32 %v740_v52, %v646_v54 }
 0x354   : > { %v779_v48 = vpop.permute.xlu1 %778 }
 0x355   : > { %v796_v50 = vmul.f32 %v779_v48, %v749_v46 }
 0x357   : > { %800 = vst [vmem:[%s405_s12] sm:$0xff] %v796_v50 }
 0x358   : > { %v784_v53 = vpop.permute.xlu0 %783 }
 0x359   : > { %v797_v55 = vmul.f32 %v784_v53, %v750_v51 }
 0x35b   : > { %801 = vst [vmem:[%s405_s12 + $0x8] sm:$0xff] %v797_v55 }
 0x35c   : > { %v789_v57 = vpop.permute.xlu1 %788 }
 0x35d   : > { %v798_v59 = vmul.f32 %v789_v57, %v751_v56 }
 0x35e   : > { %v851_v63 = vld [vmem:[%s405_s12] sm:$0xff] (%p1408_p13) }
 0x35f   : > { %802 = vst [vmem:[%s405_s12 + $0x10] sm:$0xff] %v798_v59  ;;  %810 = sbr.rel (!%p1408_p13) target bundleno = 876 (0x36c), region = 158  ;;  %852 = vst [vmem:[%s816_s5] sm:$0xff] (%p1408_p13), %v851_v63 }
 0x360   : > { %v794_v61 = vpop.permute.xlu0 %793 }
 0x361   : > { %v799_v62 = vmul.f32 %v794_v61, %v752_v60 }
 0x362   : > { %v853_v0 = vld [vmem:[%s405_s12 + $0x8] sm:$0xff] (%p1408_p13) }
 0x363   : > { %803 = vst [vmem:[%s405_s12 + $0x18] sm:$0xff] %v799_v62  ;;  %854 = vst [vmem:[%s816_s5 + $0x10] sm:$0xff] (%p1408_p13), %v853_v0 }
 0x366   : > { %v855_v1 = vld [vmem:[%s405_s12 + $0x10] sm:$0xff] }
 0x367   : > { %856 = vst [vmem:[%s816_s5 + $0x20] sm:$0xff] %v855_v1 }
 0x36a   : > { %v857_v2 = vld [vmem:[%s405_s12 + $0x18] sm:$0xff] }
 0x36b   : > { %858 = vst [vmem:[%s816_s5 + $0x30] sm:$0xff] %v857_v2 }
 0x36c PF: > { %s13_s22 = sadd.s32 1, %s1270_s22   ;;  %s1571_s7 = sld [smem:[#allocation9_spill]] }
 0x36d   : > { %p10_p4 = scmp.ge.s32.totalorder %s13_s22, 6   ;;  %s1572_s12 = smov %s1234_s13 }
 0x36e   : > { %s1573_s13 = smov %s1413_s26  ;;  %s1574_s14 = smov %s1242_s15 }
 0x36f   : > { %s1575_s15 = smov %s1391_s28  ;;  %s1576_s16 = smov %s1250_s17 }
 0x370   : > { %s1577_s17 = smov %s1388_s11  ;;  %s1578_s18 = smov %s1262_s20 }
 0x371   : > { %s1579_s19 = smov %s1266_s21  ;;  %s1580_s20 = smov %s1583_s24 }
 0x372   : > { %s1581_s21 = smov %s1571_s7  ;;  %12 = sbr.rel (!%p10_p4) target bundleno = 8 (0x8), region = 243 }

// kernel: ltxv_wrapper_forward.14
= control target key start
LH: loop header
LB: loop body
LE: loop exit
PB: predicated region body
PF: predicated region fallthrough
CT: control target
= control target key end

     0   :  { %s825_s1 = inlined_call_operand.vmem [shape: f32[256,256], index: 1, kind: input, shape index: {}]   ;;  %s826_s0 = inlined_call_operand.vmem [shape: f32[64,256], index: 0, kind: input, shape index: {}]   ;;  %s827_s2 = inlined_call_operand.vmem [shape: f32[1,256], index: 2, kind: input, shape index: {}]   ;;  %s828_s3 = inlined_call_operand.vmem [shape: f32[64,256], index: 3, kind: input, shape index: {}]   ;;  %s829_s4 = inlined_call_operand.vmem [shape: f32[64,256], index: 4, kind: output, shape index: {}]  }
   0x1   :  { %v100_v0 = vld [vmem:[%s825_s1 + $0xf8] sm:$0xff]  ;;  %v99_v1 = vld [vmem:[%s825_s1 + $0xf0] sm:$0xff]  ;;  %v98_v2 = vld [vmem:[%s825_s1 + $0xe8] sm:$0xff] }
   0x2   :  { %133 = vmatprep.subr.mxu0 %v100_v0  ;;  %377 = vmatprep.subr.mxu1 %v100_v0  ;;  %v97_v3 = vld [vmem:[%s825_s1 + $0xe0] sm:$0xff]  ;;  %v96_v4 = vld [vmem:[%s825_s1 + $0xd8] sm:$0xff]  ;;  %v95_v5 = vld [vmem:[%s825_s1 + $0xd0] sm:$0xff] }
   0x3   :  { %134 = vmatpush1.msra.mxu0 %v99_v1  ;;  %409 = vmatpush1.msra.mxu1 %v99_v1  ;;  %v94_v6 = vld [vmem:[%s825_s1 + $0xc8] sm:$0xff]  ;;  %v93_v7 = vld [vmem:[%s825_s1 + $0xc0] sm:$0xff]  ;;  %v92_v8 = vld [vmem:[%s825_s1 + $0xb8] sm:$0xff] }
   0x4   :  { %135 = vmatprep.subr.mxu0 %v98_v2  ;;  %378 = vmatprep.subr.mxu1 %v98_v2  ;;  %v91_v9 = vld [vmem:[%s825_s1 + $0xb0] sm:$0xff]  ;;  %v90_v10 = vld [vmem:[%s825_s1 + $0xa8] sm:$0xff]  ;;  %v89_v11 = vld [vmem:[%s825_s1 + $0xa0] sm:$0xff] }
   0x5   :  { %136 = vmatpush1.msra.mxu0 %v97_v3  ;;  %410 = vmatpush1.msra.mxu1 %v97_v3  ;;  %v88_v12 = vld [vmem:[%s825_s1 + $0x98] sm:$0xff]  ;;  %v87_v13 = vld [vmem:[%s825_s1 + $0x90] sm:$0xff]  ;;  %v86_v14 = vld [vmem:[%s825_s1 + $0x88] sm:$0xff] }
   0x6   :  { %137 = vmatprep.subr.mxu0 %v96_v4  ;;  %379 = vmatprep.subr.mxu1 %v96_v4  ;;  %v85_v15 = vld [vmem:[%s825_s1 + $0x80] sm:$0xff]  ;;  %v84_v16 = vld [vmem:[%s825_s1 + $0x78] sm:$0xff]  ;;  %v83_v17 = vld [vmem:[%s825_s1 + $0x70] sm:$0xff] }
   0x7   :  { %138 = vmatpush1.msra.mxu0 %v95_v5  ;;  %411 = vmatpush1.msra.mxu1 %v95_v5  ;;  %v82_v18 = vld [vmem:[%s825_s1 + $0x68] sm:$0xff]  ;;  %v81_v19 = vld [vmem:[%s825_s1 + $0x60] sm:$0xff]  ;;  %v80_v20 = vld [vmem:[%s825_s1 + $0x58] sm:$0xff] }
   0x8   :  { %139 = vmatprep.subr.mxu0 %v94_v6  ;;  %380 = vmatprep.subr.mxu1 %v94_v6  ;;  %v79_v21 = vld [vmem:[%s825_s1 + $0x50] sm:$0xff]  ;;  %v78_v22 = vld [vmem:[%s825_s1 + $0x48] sm:$0xff]  ;;  %v77_v23 = vld [vmem:[%s825_s1 + $0x40] sm:$0xff] }
   0x9   :  { %140 = vmatpush1.msra.mxu0 %v93_v7  ;;  %412 = vmatpush1.msra.mxu1 %v93_v7  ;;  %v76_v24 = vld [vmem:[%s825_s1 + $0x38] sm:$0xff]  ;;  %v75_v25 = vld [vmem:[%s825_s1 + $0x30] sm:$0xff]  ;;  %v74_v26 = vld [vmem:[%s825_s1 + $0x28] sm:$0xff] }
   0xa   :  { %141 = vmatprep.subr.mxu0 %v92_v8  ;;  %381 = vmatprep.subr.mxu1 %v92_v8  ;;  %v73_v27 = vld [vmem:[%s825_s1 + $0x20] sm:$0xff]  ;;  %v72_v28 = vld [vmem:[%s825_s1 + $0x18] sm:$0xff]  ;;  %v71_v29 = vld [vmem:[%s825_s1 + $0x10] sm:$0xff] }
   0xb   :  { %142 = vmatpush1.msra.mxu0 %v91_v9  ;;  %413 = vmatpush1.msra.mxu1 %v91_v9  ;;  %v70_v30 = vld [vmem:[%s825_s1 + $0x8] sm:$0xff]  ;;  %v69_v31 = vld [vmem:[%s825_s1] sm:$0xff]  ;;  %v132_v32 = vld [vmem:[%s825_s1 + $0x1f8] sm:$0xff] }
   0xc   :  { %143 = vmatprep.subr.mxu0 %v90_v10  ;;  %382 = vmatprep.subr.mxu1 %v90_v10  ;;  %v131_v33 = vld [vmem:[%s825_s1 + $0x1f0] sm:$0xff]  ;;  %v130_v34 = vld [vmem:[%s825_s1 + $0x1e8] sm:$0xff]  ;;  %v129_v35 = vld [vmem:[%s825_s1 + $0x1e0] sm:$0xff] }
   0xd   :  { %144 = vmatpush1.msra.mxu0 %v89_v11  ;;  %414 = vmatpush1.msra.mxu1 %v89_v11  ;;  %v128_v36 = vld [vmem:[%s825_s1 + $0x1d8] sm:$0xff]  ;;  %v127_v37 = vld [vmem:[%s825_s1 + $0x1d0] sm:$0xff]  ;;  %v126_v38 = vld [vmem:[%s825_s1 + $0x1c8] sm:$0xff] }
   0xe   :  { %145 = vmatprep.subr.mxu0 %v88_v12  ;;  %383 = vmatprep.subr.mxu1 %v88_v12  ;;  %v125_v39 = vld [vmem:[%s825_s1 + $0x1c0] sm:$0xff]  ;;  %v124_v40 = vld [vmem:[%s825_s1 + $0x1b8] sm:$0xff]  ;;  %v123_v41 = vld [vmem:[%s825_s1 + $0x1b0] sm:$0xff] }
   0xf   :  { %146 = vmatpush1.msra.mxu0 %v87_v13  ;;  %415 = vmatpush1.msra.mxu1 %v87_v13  ;;  %v122_v42 = vld [vmem:[%s825_s1 + $0x1a8] sm:$0xff]  ;;  %v121_v43 = vld [vmem:[%s825_s1 + $0x1a0] sm:$0xff]  ;;  %v120_v44 = vld [vmem:[%s825_s1 + $0x198] sm:$0xff] }
  0x10   :  { %147 = vmatprep.subr.mxu0 %v86_v14  ;;  %384 = vmatprep.subr.mxu1 %v86_v14  ;;  %v119_v45 = vld [vmem:[%s825_s1 + $0x190] sm:$0xff]  ;;  %v118_v46 = vld [vmem:[%s825_s1 + $0x188] sm:$0xff]  ;;  %v117_v47 = vld [vmem:[%s825_s1 + $0x180] sm:$0xff] }
  0x11   :  { %148 = vmatpush1.msra.mxu0 %v85_v15  ;;  %416 = vmatpush1.msra.mxu1 %v85_v15  ;;  %v116_v48 = vld [vmem:[%s825_s1 + $0x178] sm:$0xff]  ;;  %v115_v49 = vld [vmem:[%s825_s1 + $0x170] sm:$0xff]  ;;  %v114_v50 = vld [vmem:[%s825_s1 + $0x168] sm:$0xff] }
  0x12   :  { %149 = vmatprep.subr.mxu0 %v84_v16  ;;  %385 = vmatprep.subr.mxu1 %v84_v16  ;;  %v113_v51 = vld [vmem:[%s825_s1 + $0x160] sm:$0xff]  ;;  %v112_v52 = vld [vmem:[%s825_s1 + $0x158] sm:$0xff]  ;;  %v111_v53 = vld [vmem:[%s825_s1 + $0x150] sm:$0xff]  ;;  %v299_v16 = vlaneseq }
  0x13   :  { %150 = vmatpush1.msra.mxu0 %v83_v17  ;;  %417 = vmatpush1.msra.mxu1 %v83_v17  ;;  %v110_v54 = vld [vmem:[%s825_s1 + $0x148] sm:$0xff]  ;;  %v109_v55 = vld [vmem:[%s825_s1 + $0x140] sm:$0xff]  ;;  %v108_v56 = vld [vmem:[%s825_s1 + $0x138] sm:$0xff] }
  0x14   :  { %151 = vmatprep.subr.mxu0 %v82_v18  ;;  %386 = vmatprep.subr.mxu1 %v82_v18  ;;  %v107_v57 = vld [vmem:[%s825_s1 + $0x130] sm:$0xff]  ;;  %v106_v58 = vld [vmem:[%s825_s1 + $0x128] sm:$0xff]  ;;  %v105_v59 = vld [vmem:[%s825_s1 + $0x120] sm:$0xff]  ;;  %v300_v17 = vshrl.u32 %v299_v16, 7 }
  0x15   :  { %152 = vmatpush1.msra.mxu0 %v81_v19  ;;  %418 = vmatpush1.msra.mxu1 %v81_v19  ;;  %v104_v60 = vld [vmem:[%s825_s1 + $0x118] sm:$0xff]  ;;  %v103_v61 = vld [vmem:[%s825_s1 + $0x110] sm:$0xff]  ;;  %v102_v62 = vld [vmem:[%s825_s1 + $0x108] sm:$0xff] }
  0x16   :  { %153 = vmatprep.subr.mxu0 %v80_v20  ;;  %387 = vmatprep.subr.mxu1 %v80_v20  ;;  %v101_v63 = vld [vmem:[%s825_s1 + $0x100] sm:$0xff]  ;;  %v38_v0 = vld [vmem:[%s826_s0 + $0x8] sm:$0xff]  ;;  %v40_v4 = vld [vmem:[%s826_s0 + $0x18] sm:$0xff]  ;;  %v301_v18 = vsub.s32 0, %v300_v17  ;;  %v305_v20 = vsub.s32 1, %v300_v17 }
  0x17   :  { %154 = vmatpush1.msra.mxu0 %v79_v21  ;;  %419 = vmatpush1.msra.mxu1 %v79_v21  ;;  %v46_v1 = vld [vmem:[%s826_s0 + $0x48] sm:$0xff]  ;;  %v37_v2 = vld [vmem:[%s826_s0] sm:$0xff]  ;;  %v48_v5 = vld [vmem:[%s826_s0 + $0x58] sm:$0xff] }
  0x18   :  { %155 = vmatprep.subr.mxu0 %v78_v22  ;;  %388 = vmatprep.subr.mxu1 %v78_v22  ;;  %v45_v3 = vld [vmem:[%s826_s0 + $0x40] sm:$0xff]  ;;  %v39_v6 = vld [vmem:[%s826_s0 + $0x10] sm:$0xff]  ;;  %v42_v8 = vld [vmem:[%s826_s0 + $0x28] sm:$0xff] }
  0x19   :  { %156 = vmatpush1.msra.mxu0 %v77_v23  ;;  %420 = vmatpush1.msra.mxu1 %v77_v23  ;;  %v47_v7 = vld [vmem:[%s826_s0 + $0x50] sm:$0xff]  ;;  %v50_v9 = vld [vmem:[%s826_s0 + $0x68] sm:$0xff]  ;;  %v41_v10 = vld [vmem:[%s826_s0 + $0x20] sm:$0xff] }
  0x1a   :  { %157 = vmatprep.subr.mxu0 %v76_v24  ;;  %389 = vmatprep.subr.mxu1 %v76_v24  ;;  %v49_v11 = vld [vmem:[%s826_s0 + $0x60] sm:$0xff]  ;;  %v44_v12 = vld [vmem:[%s826_s0 + $0x38] sm:$0xff]  ;;  %v43_v14 = vld [vmem:[%s826_s0 + $0x30] sm:$0xff] }
  0x1b   :  { %158 = vmatpush1.msra.mxu0 %v75_v25  ;;  %421 = vmatpush1.msra.mxu1 %v75_v25  ;;  %v52_v13 = vld [vmem:[%s826_s0 + $0x78] sm:$0xff]  ;;  %v51_v15 = vld [vmem:[%s826_s0 + $0x70] sm:$0xff]  ;;  %v297_v19 = vld [vmem:[%s827_s2] sm:$0x3] }
  0x1c   :  { %159 = vmatprep.subr.mxu0 %v74_v26  ;;  %390 = vmatprep.subr.mxu1 %v74_v26  ;;  %v709_v21 = vrot.slane %v297_v19, %v301_v18  ;;  %v711_v22 = vrot.slane %v297_v19, %v305_v20  ;;  %v325_v24 = vld [vmem:[%s828_s3] sm:$0xff]  ;;  %v340_v16 = vld [vmem:[%s828_s3 + $0x78] sm:$0xff] }
  0x1d   :  { %160 = vmatpush1.msra.mxu0 %v73_v27  ;;  %422 = vmatpush1.msra.mxu1 %v73_v27  ;;  %v333_v26 = vld [vmem:[%s828_s3 + $0x40] sm:$0xff] }
  0x1e   :  { %161 = vmatprep.subr.mxu0 %v72_v28  ;;  %391 = vmatprep.subr.mxu1 %v72_v28 }
  0x1f   :  { %162 = vmatpush1.msra.mxu0 %v71_v29  ;;  %423 = vmatpush1.msra.mxu1 %v71_v29 }
  0x20   :  { %163 = vmatprep.subr.mxu0 %v70_v30  ;;  %392 = vmatprep.subr.mxu1 %v70_v30  ;;  %v326_v30 = vld [vmem:[%s828_s3 + $0x8] sm:$0xff] }
  0x21   :  { %164 = vmatpush1.msra.mxu0 %v69_v31  ;;  %424 = vmatpush1.msra.mxu1 %v69_v31 }
  0x22   :  { %165 = vmatprep.subr.mxu0 %v132_v32  ;;  %393 = vmatprep.subr.mxu1 %v132_v32  ;;  %v334_v32 = vld [vmem:[%s828_s3 + $0x48] sm:$0xff] }
  0x23   :  { %166 = vmatpush2.msra.mxu0 %v131_v33  ;;  %425 = vmatpush2.msra.mxu1 %v131_v33 }
  0x24   :  { %167 = vmatprep.subr.mxu0 %v130_v34  ;;  %394 = vmatprep.subr.mxu1 %v130_v34 }
  0x25   :  { %168 = vmatpush2.msra.mxu0 %v129_v35  ;;  %426 = vmatpush2.msra.mxu1 %v129_v35 }
  0x26   :  { %169 = vmatprep.subr.mxu0 %v128_v36  ;;  %395 = vmatprep.subr.mxu1 %v128_v36 }
  0x27   :  { %170 = vmatpush2.msra.mxu0 %v127_v37  ;;  %427 = vmatpush2.msra.mxu1 %v127_v37 }
  0x28   :  { %171 = vmatprep.subr.mxu0 %v126_v38  ;;  %396 = vmatprep.subr.mxu1 %v126_v38  ;;  %v327_v38 = vld [vmem:[%s828_s3 + $0x10] sm:$0xff] }
  0x29   :  { %172 = vmatpush2.msra.mxu0 %v125_v39  ;;  %428 = vmatpush2.msra.mxu1 %v125_v39 }
  0x2a   :  { %173 = vmatprep.subr.mxu0 %v124_v40  ;;  %397 = vmatprep.subr.mxu1 %v124_v40  ;;  %v335_v40 = vld [vmem:[%s828_s3 + $0x50] sm:$0xff] }
  0x2b   :  { %174 = vmatpush2.msra.mxu0 %v123_v41  ;;  %429 = vmatpush2.msra.mxu1 %v123_v41 }
  0x2c   :  { %175 = vmatprep.subr.mxu0 %v122_v42  ;;  %398 = vmatprep.subr.mxu1 %v122_v42 }
  0x2d   :  { %176 = vmatpush2.msra.mxu0 %v121_v43  ;;  %430 = vmatpush2.msra.mxu1 %v121_v43 }
  0x2e   :  { %177 = vmatprep.subr.mxu0 %v120_v44  ;;  %399 = vmatprep.subr.mxu1 %v120_v44 }
  0x2f   :  { %178 = vmatpush2.msra.mxu0 %v119_v45  ;;  %431 = vmatpush2.msra.mxu1 %v119_v45 }
  0x30   :  { %179 = vmatprep.subr.mxu0 %v118_v46  ;;  %400 = vmatprep.subr.mxu1 %v118_v46  ;;  %v328_v46 = vld [vmem:[%s828_s3 + $0x18] sm:$0xff] }
  0x31   :  { %180 = vmatpush2.msra.mxu0 %v117_v47  ;;  %432 = vmatpush2.msra.mxu1 %v117_v47 }
  0x32   :  { %181 = vmatprep.subr.mxu0 %v116_v48  ;;  %401 = vmatprep.subr.mxu1 %v116_v48  ;;  %v336_v48 = vld [vmem:[%s828_s3 + $0x58] sm:$0xff] }
  0x33   :  { %182 = vmatpush2.msra.mxu0 %v115_v49  ;;  %433 = vmatpush2.msra.mxu1 %v115_v49 }
  0x34   :  { %183 = vmatprep.subr.mxu0 %v114_v50  ;;  %402 = vmatprep.subr.mxu1 %v114_v50 }
  0x35   :  { %184 = vmatpush2.msra.mxu0 %v113_v51  ;;  %434 = vmatpush2.msra.mxu1 %v113_v51 }
  0x36   :  { %185 = vmatprep.subr.mxu0 %v112_v52  ;;  %403 = vmatprep.subr.mxu1 %v112_v52 }
  0x37   :  { %186 = vmatpush2.msra.mxu0 %v111_v53  ;;  %435 = vmatpush2.msra.mxu1 %v111_v53 }
  0x38   :  { %187 = vmatprep.subr.mxu0 %v110_v54  ;;  %404 = vmatprep.subr.mxu1 %v110_v54  ;;  %v329_v54 = vld [vmem:[%s828_s3 + $0x20] sm:$0xff] }
  0x39   :  { %188 = vmatpush2.msra.mxu0 %v109_v55  ;;  %436 = vmatpush2.msra.mxu1 %v109_v55 }
  0x3a   :  { %189 = vmatprep.subr.mxu0 %v108_v56  ;;  %405 = vmatprep.subr.mxu1 %v108_v56  ;;  %v337_v56 = vld [vmem:[%s828_s3 + $0x60] sm:$0xff] }
  0x3b   :  { %190 = vmatpush2.msra.mxu0 %v107_v57  ;;  %437 = vmatpush2.msra.mxu1 %v107_v57 }
  0x3c   :  { %191 = vmatprep.subr.mxu0 %v106_v58  ;;  %406 = vmatprep.subr.mxu1 %v106_v58 }
  0x3d   :  { %192 = vmatpush2.msra.mxu0 %v105_v59  ;;  %438 = vmatpush2.msra.mxu1 %v105_v59 }
  0x3e   :  { %193 = vmatprep.subr.mxu0 %v104_v60  ;;  %407 = vmatprep.subr.mxu1 %v104_v60 }
  0x3f   :  { %194 = vmatpush2.msra.mxu0 %v103_v61  ;;  %439 = vmatpush2.msra.mxu1 %v103_v61 }
  0x40   :  { %195 = vmatprep.subr.mxu0 %v102_v62  ;;  %408 = vmatprep.subr.mxu1 %v102_v62  ;;  %v330_v62 = vld [vmem:[%s828_s3 + $0x28] sm:$0xff] }
  0x41   :  { %196 = vmatpush2.msra.mxu0 %v101_v63  ;;  %440 = vmatpush2.msra.mxu1 %v101_v63 }
  0x42   :  { %197 = vmatprep.mubr.f32.mxu0 %v38_v0  ;;  %221 = vmatprep.mubr.f32.mxu1 %v46_v1  ;;  %v338_v0 = vld [vmem:[%s828_s3 + $0x68] sm:$0xff] }
  0x43   :  { %198 = vmatmul.mubr.f32.vlgmr.msra.gmra.mxu0 %v37_v2  ;;  %222 = vmatmul.mubr.f32.vlgmr.msra.gmra.mxu1 %v45_v3 }
  0x44   :  { %203 = vmatprep.mubr.f32.mxu0 %v40_v4  ;;  %227 = vmatprep.mubr.f32.mxu1 %v48_v5 }
  0x47   :  { %204 = vmatmul.mubr.f32.gmra.mxu0 %v39_v6  ;;  %228 = vmatmul.mubr.f32.gmra.mxu1 %v47_v7  ;;  %v331_v6 = vld [vmem:[%s828_s3 + $0x30] sm:$0xff] }
  0x48   :  { %209 = vmatprep.mubr.f32.mxu0 %v42_v8  ;;  %233 = vmatprep.mubr.f32.mxu1 %v50_v9  ;;  %v339_v8 = vld [vmem:[%s828_s3 + $0x70] sm:$0xff] }
  0x4b   :  { %210 = vmatmul.mubr.f32.gmra.mxu0 %v41_v10  ;;  %234 = vmatmul.mubr.f32.gmra.mxu1 %v49_v11 }
  0x4c   :  { %215 = vmatprep.mubr.f32.mxu0 %v44_v12  ;;  %239 = vmatprep.mubr.f32.mxu1 %v52_v13 }
  0x4f   :  { %216 = vmatmul.mubr.f32.gmra.mxu0 %v43_v14  ;;  %240 = vmatmul.mubr.f32.gmra.mxu1 %v51_v15  ;;  %v332_v14 = vld [vmem:[%s828_s3 + $0x38] sm:$0xff] }
 0x103   :  { %v199_v23 = vpop.f32.mrf.mxu0  ;;  %v223_v25 = vpop.f32.mrf.mxu1 }
 0x104   :  { %v309_v27 = vadd.f32 %v709_v21, %v199_v23  ;;  %v317_v28 = vadd.f32 %v709_v21, %v223_v25 }
 0x105   :  { %v201_v29 = vpop.f32.mrf.mxu0  ;;  %v225_v31 = vpop.f32.mrf.mxu1 }
 0x106   :  { %v341_v33 = vadd.f32 %v325_v24, %v309_v27  ;;  %v349_v34 = vadd.f32 %v333_v26, %v317_v28  ;;  %v310_v35 = vadd.f32 %v711_v22, %v201_v29  ;;  %v318_v36 = vadd.f32 %v711_v22, %v225_v31 }
 0x107   :  { %v205_v37 = vpop.f32.mrf.mxu0  ;;  %v229_v39 = vpop.f32.mrf.mxu1 }
 0x108   :  { %357 = vst [vmem:[%s829_s4] sm:$0xff] %v341_v33  ;;  %365 = vst [vmem:[%s829_s4 + $0x40] sm:$0xff] %v349_v34  ;;  %v342_v41 = vadd.f32 %v326_v30, %v310_v35  ;;  %v350_v42 = vadd.f32 %v334_v32, %v318_v36  ;;  %v311_v43 = vadd.f32 %v709_v21, %v205_v37 }
 0x109   :  { %v319_v44 = vadd.f32 %v709_v21, %v229_v39  ;;  %v207_v45 = vpop.f32.mrf.mxu0  ;;  %v231_v47 = vpop.f32.mrf.mxu1 }
 0x10a   :  { %358 = vst [vmem:[%s829_s4 + $0x8] sm:$0xff] %v342_v41  ;;  %366 = vst [vmem:[%s829_s4 + $0x48] sm:$0xff] %v350_v42  ;;  %v343_v49 = vadd.f32 %v327_v38, %v311_v43  ;;  %v312_v51 = vadd.f32 %v711_v22, %v207_v45  ;;  %v320_v52 = vadd.f32 %v711_v22, %v231_v47 }
 0x10b   :  { %v351_v50 = vadd.f32 %v335_v40, %v319_v44  ;;  %v211_v53 = vpop.f32.mrf.mxu0  ;;  %v235_v55 = vpop.f32.mrf.mxu1 }
 0x10c   :  { %359 = vst [vmem:[%s829_s4 + $0x10] sm:$0xff] %v343_v49  ;;  %v344_v57 = vadd.f32 %v328_v46, %v312_v51  ;;  %v352_v58 = vadd.f32 %v336_v48, %v320_v52  ;;  %v313_v59 = vadd.f32 %v709_v21, %v211_v53  ;;  %v321_v60 = vadd.f32 %v709_v21, %v235_v55 }
 0x10d   :  { %367 = vst [vmem:[%s829_s4 + $0x50] sm:$0xff] %v351_v50  ;;  %v213_v61 = vpop.f32.mrf.mxu0  ;;  %v237_v63 = vpop.f32.mrf.mxu1 }
 0x10e   :  { %360 = vst [vmem:[%s829_s4 + $0x18] sm:$0xff] %v344_v57  ;;  %368 = vst [vmem:[%s829_s4 + $0x58] sm:$0xff] %v352_v58  ;;  %v345_v1 = vadd.f32 %v329_v54, %v313_v59  ;;  %v353_v2 = vadd.f32 %v337_v56, %v321_v60  ;;  %v314_v3 = vadd.f32 %v711_v22, %v213_v61 }
 0x10f   :  { %v322_v4 = vadd.f32 %v711_v22, %v237_v63  ;;  %v217_v5 = vpop.f32.mrf.mxu0  ;;  %v241_v7 = vpop.f32.mrf.mxu1 }
 0x110   :  { %361 = vst [vmem:[%s829_s4 + $0x20] sm:$0xff] %v345_v1  ;;  %369 = vst [vmem:[%s829_s4 + $0x60] sm:$0xff] %v353_v2  ;;  %v346_v9 = vadd.f32 %v330_v62, %v314_v3  ;;  %v315_v11 = vadd.f32 %v709_v21, %v217_v5  ;;  %v323_v12 = vadd.f32 %v709_v21, %v241_v7 }
 0x111   :  { %v354_v10 = vadd.f32 %v338_v0, %v322_v4  ;;  %v219_v13 = vpop.f32.mrf.mxu0  ;;  %v243_v15 = vpop.f32.mrf.mxu1 }
 0x112   :  { %362 = vst [vmem:[%s829_s4 + $0x28] sm:$0xff] %v346_v9  ;;  %v347_v17 = vadd.f32 %v331_v6, %v315_v11  ;;  %v355_v18 = vadd.f32 %v339_v8, %v323_v12  ;;  %v316_v19 = vadd.f32 %v711_v22, %v219_v13  ;;  %v324_v20 = vadd.f32 %v711_v22, %v243_v15 }
 0x113   :  { %370 = vst [vmem:[%s829_s4 + $0x68] sm:$0xff] %v354_v10 }
 0x114   :  { %363 = vst [vmem:[%s829_s4 + $0x30] sm:$0xff] %v347_v17  ;;  %371 = vst [vmem:[%s829_s4 + $0x70] sm:$0xff] %v355_v18  ;;  %v348_v21 = vadd.f32 %v332_v14, %v316_v19  ;;  %v356_v23 = vadd.f32 %v340_v16, %v324_v20 }
 0x116   :  { %364 = vst [vmem:[%s829_s4 + $0x38] sm:$0xff] %v348_v21  ;;  %372 = vst [vmem:[%s829_s4 + $0x78] sm:$0xff] %v356_v23 }

// kernel: ltxv_wrapper_forward.18
= control target key start
LH: loop header
LB: loop body
LE: loop exit
PB: predicated region body
PF: predicated region fallthrough
CT: control target
= control target key end

     0   :  { %s1134_s0 = inlined_call_operand.vmem [shape: f32[64,256], index: 0, kind: input, shape index: {}]   ;;  %s1135_s1 = inlined_call_operand.vmem [shape: f32[256,256], index: 1, kind: input, shape index: {}]   ;;  %s1136_s3 = inlined_call_operand.vmem [shape: f32[1,256], index: 3, kind: input, shape index: {}]   ;;  %s1137_s4 = inlined_call_operand.vmem [shape: f32[1,256], index: 4, kind: input, shape index: {}]   ;;  %s1138_s2 = inlined_call_operand.vmem [shape: f32[1,256], index: 2, kind: input, shape index: {}]   ;;  %s1139_s5 = inlined_call_operand.vmem [shape: f32[64,256], index: 5, kind: output, shape index: {}]  }
   0x1   :  { %v646_v0 = vld [vmem:[%s1134_s0] sm:$0xff]  ;;  %v651_v1 = vld [vmem:[%s1134_s0 + $0x8] sm:$0xff]  ;;  %v656_v2 = vld [vmem:[%s1134_s0 + $0x10] sm:$0xff] }
   0x2   :  { %v56_v3 = vadd.f32 %v651_v1, %v646_v0  ;;  %v663_v4 = vld [vmem:[%s1134_s0 + $0x18] sm:$0xff]  ;;  %v668_v5 = vld [vmem:[%s1134_s0 + $0x40] sm:$0xff]  ;;  %v673_v6 = vld [vmem:[%s1134_s0 + $0x48] sm:$0xff] }
   0x3   :  { %v59_v7 = vadd.f32 %v663_v4, %v656_v2  ;;  %v680_v8 = vld [vmem:[%s1134_s0 + $0x50] sm:$0xff]  ;;  %v685_v9 = vld [vmem:[%s1134_s0 + $0x58] sm:$0xff]  ;;  %v68_v10 = vadd.f32 %v673_v6, %v668_v5  ;;  %v694_v12 = vld [vmem:[%s1134_s0 + $0x20] sm:$0xff] }
   0x4   :  { %57 = vadd.xlane.f32.xlu0 %v56_v3  ;;  %v71_v11 = vadd.f32 %v685_v9, %v680_v8  ;;  %v699_v13 = vld [vmem:[%s1134_s0 + $0x28] sm:$0xff]  ;;  %v704_v14 = vld [vmem:[%s1134_s0 + $0x60] sm:$0xff]  ;;  %v718_v18 = vld [vmem:[%s1134_s0 + $0x30] sm:$0xff] }
   0x5   :  { %60 = vadd.xlane.f32.xlu1 %v59_v7  ;;  %v709_v15 = vld [vmem:[%s1134_s0 + $0x68] sm:$0xff]  ;;  %v62_v16 = vadd.f32 %v699_v13, %v694_v12  ;;  %v723_v19 = vld [vmem:[%s1134_s0 + $0x38] sm:$0xff]  ;;  %v728_v20 = vld [vmem:[%s1134_s0 + $0x70] sm:$0xff] }
   0x6   :  { %v74_v17 = vadd.f32 %v709_v15, %v704_v14  ;;  %v733_v21 = vld [vmem:[%s1134_s0 + $0x78] sm:$0xff]  ;;  %v65_v22 = vadd.f32 %v723_v19, %v718_v18  ;;  %v287_v25 = vld [vmem:[%s1135_s1 + $0xf0] sm:$0xff]  ;;  %v286_v26 = vld [vmem:[%s1135_s1 + $0xe8] sm:$0xff] }
   0x7   :  { %v77_v23 = vadd.f32 %v733_v21, %v728_v20  ;;  %v288_v24 = vld [vmem:[%s1135_s1 + $0xf8] sm:$0xff]  ;;  %v285_v27 = vld [vmem:[%s1135_s1 + $0xe0] sm:$0xff]  ;;  %v283_v29 = vld [vmem:[%s1135_s1 + $0xd0] sm:$0xff] }
   0x8   :  { %69 = vadd.xlane.f32.xlu0 %v68_v10  ;;  %321 = vmatprep.subr.mxu0 %v288_v24  ;;  %v284_v28 = vld [vmem:[%s1135_s1 + $0xd8] sm:$0xff]  ;;  %v282_v30 = vld [vmem:[%s1135_s1 + $0xc8] sm:$0xff]  ;;  %v281_v31 = vld [vmem:[%s1135_s1 + $0xc0] sm:$0xff] }
   0x9   :  { %72 = vadd.xlane.f32.xlu1 %v71_v11  ;;  %533 = vmatprep.subr.mxu1 %v288_v24  ;;  %v280_v32 = vld [vmem:[%s1135_s1 + $0xb8] sm:$0xff]  ;;  %v279_v33 = vld [vmem:[%s1135_s1 + $0xb0] sm:$0xff]  ;;  %v278_v34 = vld [vmem:[%s1135_s1 + $0xa8] sm:$0xff] }
   0xa   :  { %322 = vmatpush1.msra.mxu0 %v287_v25  ;;  %565 = vmatpush1.msra.mxu1 %v287_v25  ;;  %v277_v35 = vld [vmem:[%s1135_s1 + $0xa0] sm:$0xff]  ;;  %v276_v36 = vld [vmem:[%s1135_s1 + $0x98] sm:$0xff]  ;;  %v275_v37 = vld [vmem:[%s1135_s1 + $0x90] sm:$0xff] }
   0xb   :  { %323 = vmatprep.subr.mxu0 %v286_v26  ;;  %534 = vmatprep.subr.mxu1 %v286_v26  ;;  %v274_v38 = vld [vmem:[%s1135_s1 + $0x88] sm:$0xff]  ;;  %v273_v39 = vld [vmem:[%s1135_s1 + $0x80] sm:$0xff]  ;;  %v272_v40 = vld [vmem:[%s1135_s1 + $0x78] sm:$0xff] }
   0xc   :  { %63 = vadd.xlane.f32.xlu0 %v62_v16  ;;  %324 = vmatpush1.msra.mxu0 %v285_v27  ;;  %v271_v41 = vld [vmem:[%s1135_s1 + $0x70] sm:$0xff]  ;;  %v270_v42 = vld [vmem:[%s1135_s1 + $0x68] sm:$0xff]  ;;  %v269_v43 = vld [vmem:[%s1135_s1 + $0x60] sm:$0xff] }
   0xd   :  { %75 = vadd.xlane.f32.xlu1 %v74_v17  ;;  %566 = vmatpush1.msra.mxu1 %v285_v27  ;;  %v268_v44 = vld [vmem:[%s1135_s1 + $0x58] sm:$0xff]  ;;  %v267_v45 = vld [vmem:[%s1135_s1 + $0x50] sm:$0xff]  ;;  %v266_v46 = vld [vmem:[%s1135_s1 + $0x48] sm:$0xff] }
   0xe   :  { %325 = vmatprep.subr.mxu0 %v284_v28  ;;  %535 = vmatprep.subr.mxu1 %v284_v28  ;;  %v265_v47 = vld [vmem:[%s1135_s1 + $0x40] sm:$0xff]  ;;  %v264_v48 = vld [vmem:[%s1135_s1 + $0x38] sm:$0xff]  ;;  %v263_v49 = vld [vmem:[%s1135_s1 + $0x30] sm:$0xff] }
   0xf   :  { %326 = vmatpush1.msra.mxu0 %v283_v29  ;;  %567 = vmatpush1.msra.mxu1 %v283_v29  ;;  %v262_v50 = vld [vmem:[%s1135_s1 + $0x28] sm:$0xff]  ;;  %v261_v51 = vld [vmem:[%s1135_s1 + $0x20] sm:$0xff]  ;;  %v260_v52 = vld [vmem:[%s1135_s1 + $0x18] sm:$0xff] }
  0x10   :  { %66 = vadd.xlane.f32.xlu0 %v65_v22  ;;  %327 = vmatprep.subr.mxu0 %v282_v30  ;;  %v259_v53 = vld [vmem:[%s1135_s1 + $0x10] sm:$0xff]  ;;  %v258_v54 = vld [vmem:[%s1135_s1 + $0x8] sm:$0xff]  ;;  %v257_v55 = vld [vmem:[%s1135_s1] sm:$0xff] }
  0x11   :  { %78 = vadd.xlane.f32.xlu1 %v77_v23  ;;  %536 = vmatprep.subr.mxu1 %v282_v30  ;;  %v320_v56 = vld [vmem:[%s1135_s1 + $0x1f8] sm:$0xff]  ;;  %v319_v57 = vld [vmem:[%s1135_s1 + $0x1f0] sm:$0xff]  ;;  %v318_v58 = vld [vmem:[%s1135_s1 + $0x1e8] sm:$0xff] }
  0x12   :  { %328 = vmatpush1.msra.mxu0 %v281_v31  ;;  %568 = vmatpush1.msra.mxu1 %v281_v31  ;;  %v317_v59 = vld [vmem:[%s1135_s1 + $0x1e0] sm:$0xff]  ;;  %v316_v60 = vld [vmem:[%s1135_s1 + $0x1d8] sm:$0xff]  ;;  %v315_v61 = vld [vmem:[%s1135_s1 + $0x1d0] sm:$0xff] }
  0x13   :  { %329 = vmatprep.subr.mxu0 %v280_v32  ;;  %537 = vmatprep.subr.mxu1 %v280_v32  ;;  %v314_v62 = vld [vmem:[%s1135_s1 + $0x1c8] sm:$0xff] }
  0x14   :  { %330 = vmatpush1.msra.mxu0 %v279_v33  ;;  %569 = vmatpush1.msra.mxu1 %v279_v33 }
  0x15   :  { %331 = vmatprep.subr.mxu0 %v278_v34  ;;  %538 = vmatprep.subr.mxu1 %v278_v34 }
  0x16   :  { %332 = vmatpush1.msra.mxu0 %v277_v35  ;;  %570 = vmatpush1.msra.mxu1 %v277_v35 }
  0x17   :  { %333 = vmatprep.subr.mxu0 %v276_v36  ;;  %539 = vmatprep.subr.mxu1 %v276_v36 }
  0x18   :  { %334 = vmatpush1.msra.mxu0 %v275_v37  ;;  %571 = vmatpush1.msra.mxu1 %v275_v37 }
  0x19   :  { %335 = vmatprep.subr.mxu0 %v274_v38  ;;  %540 = vmatprep.subr.mxu1 %v274_v38 }
  0x1a   :  { %336 = vmatpush1.msra.mxu0 %v273_v39  ;;  %572 = vmatpush1.msra.mxu1 %v273_v39 }
  0x1b   :  { %337 = vmatprep.subr.mxu0 %v272_v40  ;;  %541 = vmatprep.subr.mxu1 %v272_v40 }
  0x1c   :  { %338 = vmatpush1.msra.mxu0 %v271_v41  ;;  %573 = vmatpush1.msra.mxu1 %v271_v41 }
  0x1d   :  { %339 = vmatprep.subr.mxu0 %v270_v42  ;;  %542 = vmatprep.subr.mxu1 %v270_v42 }
  0x1e   :  { %340 = vmatpush1.msra.mxu0 %v269_v43  ;;  %574 = vmatpush1.msra.mxu1 %v269_v43 }
  0x1f   :  { %341 = vmatprep.subr.mxu0 %v268_v44  ;;  %543 = vmatprep.subr.mxu1 %v268_v44 }
  0x20   :  { %342 = vmatpush1.msra.mxu0 %v267_v45  ;;  %575 = vmatpush1.msra.mxu1 %v267_v45 }
  0x21   :  { %343 = vmatprep.subr.mxu0 %v266_v46  ;;  %544 = vmatprep.subr.mxu1 %v266_v46 }
  0x22   :  { %344 = vmatpush1.msra.mxu0 %v265_v47  ;;  %576 = vmatpush1.msra.mxu1 %v265_v47 }
  0x23   :  { %345 = vmatprep.subr.mxu0 %v264_v48  ;;  %545 = vmatprep.subr.mxu1 %v264_v48 }
  0x24   :  { %346 = vmatpush1.msra.mxu0 %v263_v49  ;;  %577 = vmatpush1.msra.mxu1 %v263_v49 }
  0x25   :  { %347 = vmatprep.subr.mxu0 %v262_v50  ;;  %546 = vmatprep.subr.mxu1 %v262_v50 }
  0x26   :  { %348 = vmatpush1.msra.mxu0 %v261_v51  ;;  %578 = vmatpush1.msra.mxu1 %v261_v51 }
  0x27   :  { %349 = vmatprep.subr.mxu0 %v260_v52  ;;  %547 = vmatprep.subr.mxu1 %v260_v52 }
  0x28   :  { %350 = vmatpush1.msra.mxu0 %v259_v53  ;;  %579 = vmatpush1.msra.mxu1 %v259_v53 }
  0x29   :  { %351 = vmatprep.subr.mxu0 %v258_v54  ;;  %548 = vmatprep.subr.mxu1 %v258_v54 }
  0x2a   :  { %352 = vmatpush1.msra.mxu0 %v257_v55  ;;  %580 = vmatpush1.msra.mxu1 %v257_v55  ;;  %v312_v55 = vld [vmem:[%s1135_s1 + $0x1b8] sm:$0xff] }
  0x2b   :  { %353 = vmatprep.subr.mxu0 %v320_v56  ;;  %549 = vmatprep.subr.mxu1 %v320_v56  ;;  %v311_v56 = vld [vmem:[%s1135_s1 + $0x1b0] sm:$0xff] }
  0x2c   :  { %354 = vmatpush2.msra.mxu0 %v319_v57  ;;  %581 = vmatpush2.msra.mxu1 %v319_v57 }
  0x2d   :  { %355 = vmatprep.subr.mxu0 %v318_v58  ;;  %550 = vmatprep.subr.mxu1 %v318_v58  ;;  %v310_v58 = vld [vmem:[%s1135_s1 + $0x1a8] sm:$0xff] }
  0x2e   :  { %356 = vmatpush2.msra.mxu0 %v317_v59  ;;  %582 = vmatpush2.msra.mxu1 %v317_v59  ;;  %v309_v59 = vld [vmem:[%s1135_s1 + $0x1a0] sm:$0xff] }
  0x2f   :  { %357 = vmatprep.subr.mxu0 %v316_v60  ;;  %551 = vmatprep.subr.mxu1 %v316_v60  ;;  %v308_v60 = vld [vmem:[%s1135_s1 + $0x198] sm:$0xff] }
  0x30   :  { %358 = vmatpush2.msra.mxu0 %v315_v61  ;;  %583 = vmatpush2.msra.mxu1 %v315_v61  ;;  %v307_v61 = vld [vmem:[%s1135_s1 + $0x190] sm:$0xff] }
  0x31   :  { %359 = vmatprep.subr.mxu0 %v314_v62  ;;  %552 = vmatprep.subr.mxu1 %v314_v62  ;;  %v306_v62 = vld [vmem:[%s1135_s1 + $0x188] sm:$0xff] }
  0x8d   :  { %v58_v63 = vpop.xlane.xlu0 %57 }
  0x8e   :  { %v81_v3 = vmul.f32 0.00390625, %v58_v63  ;;  %v61_v7 = vpop.xlane.xlu1 %60  ;;  %v305_v63 = vld [vmem:[%s1135_s1 + $0x180] sm:$0xff] }
  0x8f   :  { %v82_v10 = vmul.f32 0.00390625, %v61_v7  ;;  %v303_v7 = vld [vmem:[%s1135_s1 + $0x170] sm:$0xff] }
  0x90   :  { %v857_v11 = vsub.f32 %v646_v0, %v81_v3  ;;  %v860_v16 = vsub.f32 %v651_v1, %v81_v3  ;;  %v304_v3 = vld [vmem:[%s1135_s1 + $0x178] sm:$0xff] }
  0x91   :  { %v863_v17 = vsub.f32 %v656_v2, %v82_v10  ;;  %v866_v22 = vsub.f32 %v663_v4, %v82_v10  ;;  %v70_v23 = vpop.xlane.xlu0 %69  ;;  %v302_v10 = vld [vmem:[%s1135_s1 + $0x168] sm:$0xff] }
  0x92   :  { %v85_v24 = vmul.f32 0.00390625, %v70_v23  ;;  %v73_v25 = vpop.xlane.xlu1 %72  ;;  %v105_v26 = vmul.f32 %v857_v11, %v857_v11  ;;  %v106_v27 = vmul.f32 %v860_v16, %v860_v16  ;;  %v301_v23 = vld [vmem:[%s1135_s1 + $0x160] sm:$0xff] }
  0x93   :  { %v86_v0 = vmul.f32 0.00390625, %v73_v25  ;;  %v107_v1 = vmul.f32 %v863_v17, %v863_v17  ;;  %v108_v2 = vmul.f32 %v866_v22, %v866_v22  ;;  %v299_v25 = vld [vmem:[%s1135_s1 + $0x150] sm:$0xff] }
  0x94   :  { %v877_v28 = vsub.f32 %v668_v5, %v85_v24  ;;  %v880_v4 = vsub.f32 %v673_v6, %v85_v24  ;;  %v121_v29 = vadd.f32 %v106_v27, %v105_v26  ;;  %v300_v24 = vld [vmem:[%s1135_s1 + $0x158] sm:$0xff]  ;;  %v298_v26 = vld [vmem:[%s1135_s1 + $0x148] sm:$0xff]  ;;  %v297_v27 = vld [vmem:[%s1135_s1 + $0x140] sm:$0xff] }
  0x95   :  { %v883_v30 = vsub.f32 %v680_v8, %v86_v0  ;;  %v886_v31 = vsub.f32 %v685_v9, %v86_v0  ;;  %v64_v32 = vpop.xlane.xlu0 %63  ;;  %v124_v35 = vadd.f32 %v108_v2, %v107_v1  ;;  %v296_v0 = vld [vmem:[%s1135_s1 + $0x138] sm:$0xff]  ;;  %v295_v1 = vld [vmem:[%s1135_s1 + $0x130] sm:$0xff]  ;;  %v294_v2 = vld [vmem:[%s1135_s1 + $0x128] sm:$0xff] }
  0x96   :  { %v83_v33 = vmul.f32 0.00390625, %v64_v32  ;;  %122 = vadd.xlane.f32.xlu0 %v121_v29  ;;  %v76_v34 = vpop.xlane.xlu1 %75  ;;  %v113_v36 = vmul.f32 %v877_v28, %v877_v28  ;;  %v114_v5 = vmul.f32 %v880_v4, %v880_v4  ;;  %v293_v29 = vld [vmem:[%s1135_s1 + $0x120] sm:$0xff]  ;;  %v292_v32 = vld [vmem:[%s1135_s1 + $0x118] sm:$0xff] }
  0x97   :  { %v87_v6 = vmul.f32 0.00390625, %v76_v34  ;;  %v115_v37 = vmul.f32 %v883_v30, %v883_v30  ;;  %v116_v8 = vmul.f32 %v886_v31, %v886_v31  ;;  %v290_v34 = vld [vmem:[%s1135_s1 + $0x108] sm:$0xff] }
  0x98   :  { %v897_v9 = vsub.f32 %v694_v12, %v83_v33  ;;  %v900_v38 = vsub.f32 %v699_v13, %v83_v33  ;;  %v133_v39 = vadd.f32 %v114_v5, %v113_v36  ;;  %v291_v33 = vld [vmem:[%s1135_s1 + $0x110] sm:$0xff] }
  0x99   :  { %v903_v40 = vsub.f32 %v704_v14, %v87_v6  ;;  %v906_v41 = vsub.f32 %v709_v15, %v87_v6  ;;  %v67_v42 = vpop.xlane.xlu0 %66  ;;  %v136_v45 = vadd.f32 %v116_v8, %v115_v37 }
  0x9a   :  { %v84_v43 = vmul.f32 0.00390625, %v67_v42  ;;  %125 = vadd.xlane.f32.xlu0 %v124_v35  ;;  %134 = vadd.xlane.f32.xlu1 %v133_v39  ;;  %v79_v44 = vpop.xlane.xlu1 %78  ;;  %v109_v12 = vmul.f32 %v897_v9, %v897_v9  ;;  %v110_v13 = vmul.f32 %v900_v38, %v900_v38  ;;  %v289_v35 = vld [vmem:[%s1135_s1 + $0x100] sm:$0xff]  ;;  %v187_v39 = vlaneseq }
  0x9b   :  { %v88_v46 = vmul.f32 0.00390625, %v79_v44  ;;  %v117_v14 = vmul.f32 %v903_v40, %v903_v40  ;;  %v118_v15 = vmul.f32 %v906_v41, %v906_v41 }
  0x9c   :  { %v917_v47 = vsub.f32 %v718_v18, %v84_v43  ;;  %v920_v48 = vsub.f32 %v723_v19, %v84_v43  ;;  %v127_v49 = vadd.f32 %v110_v13, %v109_v12 }
  0x9d   :  { %v923_v50 = vsub.f32 %v728_v20, %v88_v46  ;;  %v926_v51 = vsub.f32 %v733_v21, %v88_v46  ;;  %v139_v52 = vadd.f32 %v118_v15, %v117_v14  ;;  %v313_v20 = vld [vmem:[%s1135_s1 + $0x1c0] sm:$0xff]  ;;  %v188_v46 = vshrl.u32 %v187_v39, 7 }
  0x9e   :  { %137 = vadd.xlane.f32.xlu1 %v136_v45  ;;  %128 = vadd.xlane.f32.xlu0 %v127_v49  ;;  %v111_v53 = vmul.f32 %v917_v47, %v917_v47  ;;  %v112_v18 = vmul.f32 %v920_v48, %v920_v48 }
  0x9f   :  { %v119_v19 = vmul.f32 %v923_v50, %v923_v50  ;;  %v120_v54 = vmul.f32 %v926_v51, %v926_v51  ;;  %360 = vmatpush2.msra.mxu0 %v313_v20  ;;  %584 = vmatpush2.msra.mxu1 %v313_v20 }
  0xa0   :  { %v130_v21 = vadd.f32 %v112_v18, %v111_v53  ;;  %361 = vmatprep.subr.mxu0 %v312_v55  ;;  %553 = vmatprep.subr.mxu1 %v312_v55  ;;  %v185_v55 = vld [vmem:[%s1136_s3] sm:$0x3] }
  0xa1   :  { %v142_v57 = vadd.f32 %v120_v54, %v119_v19  ;;  %362 = vmatpush2.msra.mxu0 %v311_v56  ;;  %585 = vmatpush2.msra.mxu1 %v311_v56  ;;  %v1011_v19 = vsub.s32 0, %v188_v46 }
  0xa2   :  { %140 = vadd.xlane.f32.xlu1 %v139_v52  ;;  %131 = vadd.xlane.f32.xlu0 %v130_v21  ;;  %v1013_v21 = vsub.s32 1, %v188_v46 }
  0xa3   :  { %363 = vmatprep.subr.mxu0 %v310_v58  ;;  %554 = vmatprep.subr.mxu1 %v310_v58  ;;  %v213_v58 = vld [vmem:[%s1137_s4] sm:$0x3] }
  0xa4   :  { %364 = vmatpush2.msra.mxu0 %v309_v59  ;;  %586 = vmatpush2.msra.mxu1 %v309_v59 }
  0xa5   :  { %365 = vmatprep.subr.mxu0 %v308_v60  ;;  %555 = vmatprep.subr.mxu1 %v308_v60 }
  0xa6   :  { %143 = vadd.xlane.f32.xlu1 %v142_v57  ;;  %366 = vmatpush2.msra.mxu0 %v307_v61 }
  0xa7   :  { %367 = vmatprep.subr.mxu0 %v306_v62  ;;  %587 = vmatpush2.msra.mxu1 %v307_v61  ;;  %v1022_v61 = vrot.slane %v185_v55, %v1011_v19 }
  0xa8   :  { %368 = vmatpush2.msra.mxu0 %v305_v63  ;;  %556 = vmatprep.subr.mxu1 %v306_v62  ;;  %v1025_v62 = vrot.slane %v185_v55, %v1013_v21 }
  0xa9   :  { %369 = vmatprep.subr.mxu0 %v304_v3  ;;  %588 = vmatpush2.msra.mxu1 %v305_v63 }
  0xaa   :  { %370 = vmatpush2.msra.mxu0 %v303_v7  ;;  %557 = vmatprep.subr.mxu1 %v304_v3  ;;  %v1028_v3 = vrot.slane %v213_v58, %v1011_v19 }
  0xab   :  { %371 = vmatprep.subr.mxu0 %v302_v10  ;;  %589 = vmatpush2.msra.mxu1 %v303_v7 }
  0xac   :  { %372 = vmatpush2.msra.mxu0 %v301_v23  ;;  %558 = vmatprep.subr.mxu1 %v302_v10 }
  0xad   :  { %373 = vmatprep.subr.mxu0 %v300_v24  ;;  %590 = vmatpush2.msra.mxu1 %v301_v23  ;;  %v1032_v23 = vrot.slane %v213_v58, %v1013_v21 }
  0xae   :  { %374 = vmatpush2.msra.mxu0 %v299_v25  ;;  %559 = vmatprep.subr.mxu1 %v300_v24 }
  0xaf   :  { %375 = vmatprep.subr.mxu0 %v298_v26  ;;  %591 = vmatpush2.msra.mxu1 %v299_v25 }
  0xb0   :  { %376 = vmatpush2.msra.mxu0 %v297_v27  ;;  %560 = vmatprep.subr.mxu1 %v298_v26 }
  0xb1   :  { %377 = vmatprep.subr.mxu0 %v296_v0  ;;  %592 = vmatpush2.msra.mxu1 %v297_v27 }
  0xb2   :  { %378 = vmatpush2.msra.mxu0 %v295_v1  ;;  %561 = vmatprep.subr.mxu1 %v296_v0 }
  0xb3   :  { %379 = vmatprep.subr.mxu0 %v294_v2  ;;  %593 = vmatpush2.msra.mxu1 %v295_v1 }
  0xb4   :  { %380 = vmatpush2.msra.mxu0 %v293_v29  ;;  %562 = vmatprep.subr.mxu1 %v294_v2 }
  0xb5   :  { %381 = vmatprep.subr.mxu0 %v292_v32  ;;  %594 = vmatpush2.msra.mxu1 %v293_v29 }
  0xb6   :  { %382 = vmatpush2.msra.mxu0 %v291_v33  ;;  %563 = vmatprep.subr.mxu1 %v292_v32 }
  0xb7   :  { %383 = vmatprep.subr.mxu0 %v290_v34  ;;  %595 = vmatpush2.msra.mxu1 %v291_v33 }
  0xb8   :  { %384 = vmatpush2.msra.mxu0 %v289_v35  ;;  %564 = vmatprep.subr.mxu1 %v290_v34 }
  0xb9   :  { %596 = vmatpush2.msra.mxu1 %v289_v35 }
 0x11f   :  { %v123_v36 = vpop.xlane.xlu0 %122 }
 0x120   :  { %v145_v5 = vmul.f32 0.00390625, %v123_v36 }
 0x122   :  { %v153_v6 = vadd.f32 1e-05, %v145_v5 }
 0x123   :  { %v135_v37 = vpop.xlane.xlu1 %134  ;;  %v126_v8 = vpop.xlane.xlu0 %125 }
 0x124   :  { %597 = vrsqrt.f32 %v153_v6  ;;  %v149_v42 = vmul.f32 0.00390625, %v135_v37  ;;  %v146_v43 = vmul.f32 0.00390625, %v126_v8 }
 0x126   :  { %v157_v44 = vadd.f32 1e-05, %v149_v42  ;;  %v154_v45 = vadd.f32 1e-05, %v146_v43 }
 0x127   :  { %v138_v12 = vpop.xlane.xlu1 %137  ;;  %v129_v13 = vpop.xlane.xlu0 %128 }
 0x128   :  { %599 = vrsqrt.f32 %v157_v44  ;;  %v150_v14 = vmul.f32 0.00390625, %v138_v12  ;;  %v147_v15 = vmul.f32 0.00390625, %v129_v13 }
 0x129   :  { %601 = vrsqrt.f32 %v154_v45 }
 0x12a   :  { %v158_v49 = vadd.f32 1e-05, %v150_v14  ;;  %v155_v52 = vadd.f32 1e-05, %v147_v15 }
 0x12b   :  { %v141_v53 = vpop.xlane.xlu1 %140  ;;  %v132_v18 = vpop.xlane.xlu0 %131 }
 0x12c   :  { %603 = vrsqrt.f32 %v158_v49  ;;  %v151_v54 = vmul.f32 0.00390625, %v141_v53  ;;  %v148_v20 = vmul.f32 0.00390625, %v132_v18 }
 0x12d   :  { %605 = vrsqrt.f32 %v155_v52 }
 0x12e   :  { %v159_v56 = vadd.f32 1e-05, %v151_v54  ;;  %v156_v57 = vadd.f32 1e-05, %v148_v20 }
 0x12f   :  { %v144_v59 = vpop.xlane.xlu1 %143 }
 0x130   :  { %607 = vrsqrt.f32 %v159_v56  ;;  %v152_v60 = vmul.f32 0.00390625, %v144_v59 }
 0x131   :  { %v598_v63 = vpop.eup %597  ;;  %609 = vrsqrt.f32 %v156_v57 }
 0x132   :  { %v160_v7 = vadd.f32 1e-05, %v152_v60  ;;  %v170_v10 = vmul.f32 %v598_v63, %v860_v16  ;;  %v169_v24 = vmul.f32 %v598_v63, %v857_v11 }
 0x134   :  { %611 = vrsqrt.f32 %v160_v7  ;;  %v198_v25 = vmul.f32 %v1025_v62, %v170_v10  ;;  %v197_v26 = vmul.f32 %v1022_v61, %v169_v24 }
 0x135   :  { %v600_v27 = vpop.eup %599 }
 0x136   :  { %v602_v0 = vpop.eup %601  ;;  %v226_v1 = vadd.f32 %v1032_v23, %v198_v25  ;;  %v225_v2 = vadd.f32 %v1028_v3, %v197_v26  ;;  %v178_v29 = vmul.f32 %v600_v27, %v880_v4  ;;  %v177_v16 = vmul.f32 %v600_v27, %v877_v28 }
 0x137   :  { %v172_v32 = vmul.f32 %v602_v0, %v866_v22  ;;  %v171_v33 = vmul.f32 %v602_v0, %v863_v17 }
 0x138   :  { %385 = vmatprep.mubr.f32.mxu0 %v226_v1  ;;  %v206_v11 = vmul.f32 %v1025_v62, %v178_v29  ;;  %v205_v34 = vmul.f32 %v1022_v61, %v177_v16 }
 0x139   :  { %v604_v35 = vpop.eup %603  ;;  %386 = vmatmul.mubr.f32.vlgmr.msra.gmra.mxu0 %v225_v2  ;;  %v200_v36 = vmul.f32 %v1025_v62, %v172_v32  ;;  %v199_v5 = vmul.f32 %v1022_v61, %v171_v33 }
 0x13a   :  { %v606_v6 = vpop.eup %605  ;;  %v234_v4 = vadd.f32 %v1032_v23, %v206_v11  ;;  %v233_v28 = vadd.f32 %v1028_v3, %v205_v34  ;;  %v180_v22 = vmul.f32 %v604_v35, %v886_v31  ;;  %v179_v17 = vmul.f32 %v604_v35, %v883_v30 }
 0x13b   :  { %v228_v37 = vadd.f32 %v1032_v23, %v200_v36  ;;  %v227_v8 = vadd.f32 %v1028_v3, %v199_v5  ;;  %v174_v39 = vmul.f32 %v606_v6, %v900_v38  ;;  %v173_v42 = vmul.f32 %v606_v6, %v897_v9 }
 0x13c   :  { %409 = vmatprep.mubr.f32.mxu1 %v234_v4  ;;  %v208_v43 = vmul.f32 %v1025_v62, %v180_v22  ;;  %v207_v44 = vmul.f32 %v1022_v61, %v179_v17 }
 0x13d   :  { %v608_v45 = vpop.eup %607  ;;  %391 = vmatprep.mubr.f32.mxu0 %v228_v37  ;;  %410 = vmatmul.mubr.f32.vlgmr.msra.gmra.mxu1 %v233_v28  ;;  %v202_v31 = vmul.f32 %v1025_v62, %v174_v39  ;;  %v201_v30 = vmul.f32 %v1022_v61, %v173_v42 }
 0x13e   :  { %v610_v12 = vpop.eup %609  ;;  %392 = vmatmul.mubr.f32.gmra.mxu0 %v227_v8  ;;  %v236_v13 = vadd.f32 %v1032_v23, %v208_v43  ;;  %v235_v38 = vadd.f32 %v1028_v3, %v207_v44  ;;  %v182_v9 = vmul.f32 %v608_v45, %v906_v41  ;;  %v181_v46 = vmul.f32 %v608_v45, %v903_v40 }
 0x13f   :  { %v230_v14 = vadd.f32 %v1032_v23, %v202_v31  ;;  %v229_v15 = vadd.f32 %v1028_v3, %v201_v30  ;;  %v176_v49 = vmul.f32 %v610_v12, %v920_v48  ;;  %v175_v52 = vmul.f32 %v610_v12, %v917_v47 }
 0x140   :  { %415 = vmatprep.mubr.f32.mxu1 %v236_v13  ;;  %v210_v53 = vmul.f32 %v1025_v62, %v182_v9  ;;  %v209_v18 = vmul.f32 %v1022_v61, %v181_v46 }
 0x141   :  { %v612_v54 = vpop.eup %611  ;;  %397 = vmatprep.mubr.f32.mxu0 %v230_v14  ;;  %416 = vmatmul.mubr.f32.gmra.mxu1 %v235_v38  ;;  %v204_v41 = vmul.f32 %v1025_v62, %v176_v49  ;;  %v203_v40 = vmul.f32 %v1022_v61, %v175_v52 }
 0x142   :  { %398 = vmatmul.mubr.f32.gmra.mxu0 %v229_v15  ;;  %v238_v20 = vadd.f32 %v1032_v23, %v210_v53  ;;  %v237_v55 = vadd.f32 %v1028_v3, %v209_v18  ;;  %v184_v48 = vmul.f32 %v612_v54, %v926_v51  ;;  %v183_v47 = vmul.f32 %v612_v54, %v923_v50  ;;  %v485_v50 = vld [vmem:[%s1138_s2] sm:$0x3] }
 0x143   :  { %v232_v56 = vadd.f32 %v1032_v23, %v204_v41  ;;  %v231_v57 = vadd.f32 %v1028_v3, %v203_v40  ;;  %v490_v51 = vrot.slane %v485_v50, %v1011_v19  ;;  %v494_v7 = vrot.slane %v485_v50, %v1013_v21 }
 0x144   :  { %421 = vmatprep.mubr.f32.mxu1 %v238_v20  ;;  %v212_v58 = vmul.f32 %v1025_v62, %v184_v48  ;;  %v211_v59 = vmul.f32 %v1022_v61, %v183_v47 }
 0x145   :  { %403 = vmatprep.mubr.f32.mxu0 %v232_v56  ;;  %422 = vmatmul.mubr.f32.gmra.mxu1 %v237_v55 }
 0x146   :  { %404 = vmatmul.mubr.f32.gmra.mxu0 %v231_v57  ;;  %v240_v60 = vadd.f32 %v1032_v23, %v212_v58  ;;  %v239_v63 = vadd.f32 %v1028_v3, %v211_v59 }
 0x148   :  { %427 = vmatprep.mubr.f32.mxu1 %v240_v60 }
 0x149   :  { %428 = vmatmul.mubr.f32.gmra.mxu1 %v239_v63 }
 0x1f9   :  { %v387_v62 = vpop.f32.mrf.mxu0 }
 0x1fa   :  { %v497_v10 = vadd.f32 %v490_v51, %v387_v62 }
 0x1fb   :  { %v389_v61 = vpop.f32.mrf.mxu0 }
 0x1fc   :  { %513 = vst [vmem:[%s1139_s5] sm:$0xff] %v497_v10  ;;  %v498_v23 = vadd.f32 %v494_v7, %v389_v61 }
 0x1fd   :  { %v411_v24 = vpop.f32.mrf.mxu1 }
 0x1fe   :  { %514 = vst [vmem:[%s1139_s5 + $0x8] sm:$0xff] %v498_v23  ;;  %v393_v3 = vpop.f32.mrf.mxu0  ;;  %v505_v25 = vadd.f32 %v490_v51, %v411_v24 }
 0x1ff   :  { %v499_v26 = vadd.f32 %v490_v51, %v393_v3  ;;  %v413_v27 = vpop.f32.mrf.mxu1 }
 0x200   :  { %521 = vst [vmem:[%s1139_s5 + $0x40] sm:$0xff] %v505_v25  ;;  %v395_v19 = vpop.f32.mrf.mxu0  ;;  %v506_v21 = vadd.f32 %v494_v7, %v413_v27 }
 0x201   :  { %515 = vst [vmem:[%s1139_s5 + $0x10] sm:$0xff] %v499_v26  ;;  %v500_v0 = vadd.f32 %v494_v7, %v395_v19  ;;  %v417_v1 = vpop.f32.mrf.mxu1 }
 0x202   :  { %522 = vst [vmem:[%s1139_s5 + $0x48] sm:$0xff] %v506_v21  ;;  %v399_v2 = vpop.f32.mrf.mxu0  ;;  %v507_v29 = vadd.f32 %v490_v51, %v417_v1 }
 0x203   :  { %516 = vst [vmem:[%s1139_s5 + $0x18] sm:$0xff] %v500_v0  ;;  %v501_v16 = vadd.f32 %v490_v51, %v399_v2  ;;  %v419_v32 = vpop.f32.mrf.mxu1 }
 0x204   :  { %523 = vst [vmem:[%s1139_s5 + $0x50] sm:$0xff] %v507_v29  ;;  %v401_v33 = vpop.f32.mrf.mxu0  ;;  %v508_v11 = vadd.f32 %v494_v7, %v419_v32 }
 0x205   :  { %517 = vst [vmem:[%s1139_s5 + $0x20] sm:$0xff] %v501_v16  ;;  %v502_v34 = vadd.f32 %v494_v7, %v401_v33  ;;  %v423_v35 = vpop.f32.mrf.mxu1 }
 0x206   :  { %524 = vst [vmem:[%s1139_s5 + $0x58] sm:$0xff] %v508_v11  ;;  %v405_v36 = vpop.f32.mrf.mxu0  ;;  %v509_v5 = vadd.f32 %v490_v51, %v423_v35 }
 0x207   :  { %518 = vst [vmem:[%s1139_s5 + $0x28] sm:$0xff] %v502_v34  ;;  %v503_v6 = vadd.f32 %v490_v51, %v405_v36  ;;  %v425_v4 = vpop.f32.mrf.mxu1 }
 0x208   :  { %525 = vst [vmem:[%s1139_s5 + $0x60] sm:$0xff] %v509_v5  ;;  %v407_v28 = vpop.f32.mrf.mxu0  ;;  %v510_v22 = vadd.f32 %v494_v7, %v425_v4 }
 0x209   :  { %519 = vst [vmem:[%s1139_s5 + $0x30] sm:$0xff] %v503_v6  ;;  %v504_v17 = vadd.f32 %v494_v7, %v407_v28  ;;  %v429_v37 = vpop.f32.mrf.mxu1 }
 0x20a   :  { %526 = vst [vmem:[%s1139_s5 + $0x68] sm:$0xff] %v510_v22  ;;  %v511_v8 = vadd.f32 %v490_v51, %v429_v37 }
 0x20b   :  { %520 = vst [vmem:[%s1139_s5 + $0x38] sm:$0xff] %v504_v17  ;;  %v431_v39 = vpop.f32.mrf.mxu1 }
 0x20c   :  { %527 = vst [vmem:[%s1139_s5 + $0x70] sm:$0xff] %v511_v8  ;;  %v512_v42 = vadd.f32 %v494_v7, %v431_v39 }
 0x20e   :  { %528 = vst [vmem:[%s1139_s5 + $0x78] sm:$0xff] %v512_v42 }

// kernel: ltxv_wrapper_forward.15
= control target key start
LH: loop header
LB: loop body
LE: loop exit
PB: predicated region body
PF: predicated region fallthrough
CT: control target
= control target key end

     0   :  { %s1401_s18 = smov 0   ;;  %s1403_s19 = smov 0   ;;  %s1961_s0 = inlined_call_operand.vmem [shape: f32[64,256], index: 0, kind: input, shape index: {}]   ;;  %s1962_s1 = inlined_call_operand.vmem [shape: f32[256,768], index: 1, kind: input, shape index: {}]   ;;  %s1963_s2 = inlined_call_operand.vmem [shape: f32[1,768], index: 2, kind: input, shape index: {}]   ;;  %s1964_s3 = inlined_call_operand.vmem [shape: f32[1,256], index: 3, kind: input, shape index: {}]   ;;  %s1965_s4 = inlined_call_operand.vmem [shape: f32[1,256], index: 4, kind: input, shape index: {}]   ;;  %s1966_s5 = inlined_call_operand.vmem [shape: f32[64,768], index: 5, kind: output, shape index: {}]  }
   0x1   :  { %s1405_s20 = smov 0   ;;  %s1407_s21 = smov 0  }
   0x2   :  { %s1409_s22 = smov 0  }
   0x3 LB: > { %s30_s23 = sadd.s32 1, %s1365_s21  ;;  %s1190_s24 = sadd.s32 4294967295, %s1369_s22   ;;  %s1369_s22 = sphi %s1409_s22, %s15_s22   ;;  %s1365_s21 = sphi %s1407_s21, %s1971_s21   ;;  %s1361_s20 = sphi %s1405_s20, %s1970_s20   ;;  %s1357_s19 = sphi %s1403_s19, %s1969_s19   ;;  %s1353_s18 = sphi %s1401_s18, %s1968_s18  }
   0x4   : > { %p32_p0 = scmp.ge.s32.totalorder %s30_s23, 3  ;;  %p78_p1 = scmp.ne.s32.totalorder %s1357_s19, %s1353_s18 }
   0x5   : > { %p79_p2 = scmp.eq.s32.totalorder %s1369_s22, 0  ;;  %p188_p4 = scmp.eq.s32.totalorder %s1190_s24, 2 }
   0x6   : > { %s1973_s23 = smov (%p32_p0, %s30_s23), 0  ;;  %s71_s26 = sadd.s32 1, %s1357_s19 }
   0x7   : > { %p80_p3 = por %p79_p2, %p78_p1  ;;  %s67_s25 = ssub.s32 %s1365_s21, %s1973_s23 }
   0x8   : > { %p69_p5 = scmp.eq.s32.totalorder %s67_s25, 0  ;;  %p1436_p6 = por %p188_p4, %p78_p1 }
   0x9   : > { %p1196_p7 = scmp.ge.s32.totalorder %s1369_s22, 3 }
   0xa   : > { %s1441_s28 = scalar_select %p69_p5, %s1357_s19, %s71_s26  }
   0xb   : > { %241 = sbr.rel (%p1196_p7) target bundleno = 52 (0x34), region = 28 }
  0x10   : > { %244 = sbr.rel (!%p80_p3) target bundleno = 52 (0x34), region = 32  ;;  %s246_s29 = sand.u32 (%p80_p3), 1, %s1357_s19  }
  0x11   : > { %s1209_s30 = sshll.u32 (%p80_p3), %s1365_s21, 4  ;;  %s1197_s6 = sshll.u32 (%p80_p3), %s246_s29, 9 }
  0x12   : > { %s1449_s9 = scalar_lea.vmem (%p80_p3), %s1962_s1, %s1209_s30  ;;  %s1454_s10 = scalar_lea.vmem (%p80_p3), [#allocation3], %s1197_s6 }
  0x13   : > { %v267_v0 = vld [vmem:[%s1449_s9] sm:$0xff] (%p80_p3)  ;;  %v269_v1 = vld [vmem:[%s1449_s9 + $0x8] sm:$0xff] (%p80_p3)  ;;  %v271_v2 = vld [vmem:[%s1449_s9 + $0x30] sm:$0xff] (%p80_p3) }
  0x14   : > { %268 = vst [vmem:[%s1454_s10] sm:$0xff] (%p80_p3), %v267_v0  ;;  %270 = vst [vmem:[%s1454_s10 + $0x8] sm:$0xff] (%p80_p3), %v269_v1  ;;  %v273_v3 = vld [vmem:[%s1449_s9 + $0x38] sm:$0xff] (%p80_p3)  ;;  %v275_v4 = vld [vmem:[%s1449_s9 + $0x60] sm:$0xff] (%p80_p3) }
  0x15   : > { %272 = vst [vmem:[%s1454_s10 + $0x10] sm:$0xff] %v271_v2  ;;  %v277_v5 = vld [vmem:[%s1449_s9 + $0x68] sm:$0xff]  ;;  %274 = vst [vmem:[%s1454_s10 + $0x18] sm:$0xff] %v273_v3  ;;  %v279_v6 = vld [vmem:[%s1449_s9 + $0x90] sm:$0xff] }
  0x16   : > { %276 = vst [vmem:[%s1454_s10 + $0x20] sm:$0xff] %v275_v4  ;;  %278 = vst [vmem:[%s1454_s10 + $0x28] sm:$0xff] %v277_v5  ;;  %v281_v7 = vld [vmem:[%s1449_s9 + $0x98] sm:$0xff]  ;;  %v283_v8 = vld [vmem:[%s1449_s9 + $0xc0] sm:$0xff] }
  0x17   : > { %280 = vst [vmem:[%s1454_s10 + $0x30] sm:$0xff] %v279_v6  ;;  %282 = vst [vmem:[%s1454_s10 + $0x38] sm:$0xff] %v281_v7  ;;  %v285_v9 = vld [vmem:[%s1449_s9 + $0xc8] sm:$0xff]  ;;  %v287_v10 = vld [vmem:[%s1449_s9 + $0xf0] sm:$0xff] }
  0x18   : > { %284 = vst [vmem:[%s1454_s10 + $0x40] sm:$0xff] %v283_v8  ;;  %v289_v11 = vld [vmem:[%s1449_s9 + $0xf8] sm:$0xff]  ;;  %286 = vst [vmem:[%s1454_s10 + $0x48] sm:$0xff] %v285_v9  ;;  %v291_v12 = vld [vmem:[%s1449_s9 + $0x120] sm:$0xff] }
  0x19   : > { %288 = vst [vmem:[%s1454_s10 + $0x50] sm:$0xff] %v287_v10  ;;  %290 = vst [vmem:[%s1454_s10 + $0x58] sm:$0xff] %v289_v11  ;;  %v293_v13 = vld [vmem:[%s1449_s9 + $0x128] sm:$0xff]  ;;  %v295_v14 = vld [vmem:[%s1449_s9 + $0x150] sm:$0xff] }
  0x1a   : > { %292 = vst [vmem:[%s1454_s10 + $0x60] sm:$0xff] %v291_v12  ;;  %294 = vst [vmem:[%s1454_s10 + $0x68] sm:$0xff] %v293_v13  ;;  %v297_v15 = vld [vmem:[%s1449_s9 + $0x158] sm:$0xff]  ;;  %v299_v16 = vld [vmem:[%s1449_s9 + $0x180] sm:$0xff] }
  0x1b   : > { %296 = vst [vmem:[%s1454_s10 + $0x70] sm:$0xff] %v295_v14  ;;  %v301_v17 = vld [vmem:[%s1449_s9 + $0x188] sm:$0xff]  ;;  %298 = vst [vmem:[%s1454_s10 + $0x78] sm:$0xff] %v297_v15  ;;  %v303_v18 = vld [vmem:[%s1449_s9 + $0x1b0] sm:$0xff] }
  0x1c   : > { %300 = vst [vmem:[%s1454_s10 + $0x80] sm:$0xff] %v299_v16  ;;  %302 = vst [vmem:[%s1454_s10 + $0x88] sm:$0xff] %v301_v17  ;;  %v305_v19 = vld [vmem:[%s1449_s9 + $0x1b8] sm:$0xff]  ;;  %v307_v20 = vld [vmem:[%s1449_s9 + $0x1e0] sm:$0xff] }
  0x1d   : > { %304 = vst [vmem:[%s1454_s10 + $0x90] sm:$0xff] %v303_v18  ;;  %306 = vst [vmem:[%s1454_s10 + $0x98] sm:$0xff] %v305_v19  ;;  %v309_v21 = vld [vmem:[%s1449_s9 + $0x1e8] sm:$0xff]  ;;  %v311_v22 = vld [vmem:[%s1449_s9 + $0x210] sm:$0xff] }
  0x1e   : > { %308 = vst [vmem:[%s1454_s10 + $0xa0] sm:$0xff] %v307_v20  ;;  %v313_v23 = vld [vmem:[%s1449_s9 + $0x218] sm:$0xff]  ;;  %310 = vst [vmem:[%s1454_s10 + $0xa8] sm:$0xff] %v309_v21  ;;  %v315_v24 = vld [vmem:[%s1449_s9 + $0x240] sm:$0xff] }
  0x1f   : > { %312 = vst [vmem:[%s1454_s10 + $0xb0] sm:$0xff] %v311_v22  ;;  %314 = vst [vmem:[%s1454_s10 + $0xb8] sm:$0xff] %v313_v23  ;;  %v317_v25 = vld [vmem:[%s1449_s9 + $0x248] sm:$0xff]  ;;  %v319_v26 = vld [vmem:[%s1449_s9 + $0x270] sm:$0xff] }
  0x20   : > { %316 = vst [vmem:[%s1454_s10 + $0xc0] sm:$0xff] %v315_v24  ;;  %318 = vst [vmem:[%s1454_s10 + $0xc8] sm:$0xff] %v317_v25  ;;  %v321_v27 = vld [vmem:[%s1449_s9 + $0x278] sm:$0xff]  ;;  %v323_v28 = vld [vmem:[%s1449_s9 + $0x2a0] sm:$0xff] }
  0x21   : > { %320 = vst [vmem:[%s1454_s10 + $0xd0] sm:$0xff] %v319_v26  ;;  %v325_v29 = vld [vmem:[%s1449_s9 + $0x2a8] sm:$0xff]  ;;  %322 = vst [vmem:[%s1454_s10 + $0xd8] sm:$0xff] %v321_v27  ;;  %v327_v30 = vld [vmem:[%s1449_s9 + $0x2d0] sm:$0xff] }
  0x22   : > { %324 = vst [vmem:[%s1454_s10 + $0xe0] sm:$0xff] %v323_v28  ;;  %326 = vst [vmem:[%s1454_s10 + $0xe8] sm:$0xff] %v325_v29  ;;  %v329_v31 = vld [vmem:[%s1449_s9 + $0x2d8] sm:$0xff]  ;;  %v331_v32 = vld [vmem:[%s1449_s9 + $0x300] sm:$0xff] }
  0x23   : > { %328 = vst [vmem:[%s1454_s10 + $0xf0] sm:$0xff] %v327_v30  ;;  %330 = vst [vmem:[%s1454_s10 + $0xf8] sm:$0xff] %v329_v31  ;;  %v333_v33 = vld [vmem:[%s1449_s9 + $0x308] sm:$0xff]  ;;  %v335_v34 = vld [vmem:[%s1449_s9 + $0x330] sm:$0xff] }
  0x24   : > { %332 = vst [vmem:[%s1454_s10 + $0x100] sm:$0xff] %v331_v32  ;;  %v337_v35 = vld [vmem:[%s1449_s9 + $0x338] sm:$0xff]  ;;  %334 = vst [vmem:[%s1454_s10 + $0x108] sm:$0xff] %v333_v33  ;;  %v339_v36 = vld [vmem:[%s1449_s9 + $0x360] sm:$0xff] }
  0x25   : > { %336 = vst [vmem:[%s1454_s10 + $0x110] sm:$0xff] %v335_v34  ;;  %338 = vst [vmem:[%s1454_s10 + $0x118] sm:$0xff] %v337_v35  ;;  %v341_v37 = vld [vmem:[%s1449_s9 + $0x368] sm:$0xff]  ;;  %v343_v38 = vld [vmem:[%s1449_s9 + $0x390] sm:$0xff] }
  0x26   : > { %340 = vst [vmem:[%s1454_s10 + $0x120] sm:$0xff] %v339_v36  ;;  %342 = vst [vmem:[%s1454_s10 + $0x128] sm:$0xff] %v341_v37  ;;  %v345_v39 = vld [vmem:[%s1449_s9 + $0x398] sm:$0xff]  ;;  %v347_v40 = vld [vmem:[%s1449_s9 + $0x3c0] sm:$0xff] }
  0x27   : > { %344 = vst [vmem:[%s1454_s10 + $0x130] sm:$0xff] %v343_v38  ;;  %v349_v41 = vld [vmem:[%s1449_s9 + $0x3c8] sm:$0xff]  ;;  %346 = vst [vmem:[%s1454_s10 + $0x138] sm:$0xff] %v345_v39  ;;  %v351_v42 = vld [vmem:[%s1449_s9 + $0x3f0] sm:$0xff] }
  0x28   : > { %348 = vst [vmem:[%s1454_s10 + $0x140] sm:$0xff] %v347_v40  ;;  %350 = vst [vmem:[%s1454_s10 + $0x148] sm:$0xff] %v349_v41  ;;  %v353_v43 = vld [vmem:[%s1449_s9 + $0x3f8] sm:$0xff]  ;;  %v355_v44 = vld [vmem:[%s1449_s9 + $0x420] sm:$0xff] }
  0x29   : > { %352 = vst [vmem:[%s1454_s10 + $0x150] sm:$0xff] %v351_v42  ;;  %354 = vst [vmem:[%s1454_s10 + $0x158] sm:$0xff] %v353_v43  ;;  %v357_v45 = vld [vmem:[%s1449_s9 + $0x428] sm:$0xff]  ;;  %v359_v46 = vld [vmem:[%s1449_s9 + $0x450] sm:$0xff] }
  0x2a   : > { %356 = vst [vmem:[%s1454_s10 + $0x160] sm:$0xff] %v355_v44  ;;  %v361_v47 = vld [vmem:[%s1449_s9 + $0x458] sm:$0xff]  ;;  %358 = vst [vmem:[%s1454_s10 + $0x168] sm:$0xff] %v357_v45  ;;  %v363_v48 = vld [vmem:[%s1449_s9 + $0x480] sm:$0xff] }
  0x2b   : > { %360 = vst [vmem:[%s1454_s10 + $0x170] sm:$0xff] %v359_v46  ;;  %362 = vst [vmem:[%s1454_s10 + $0x178] sm:$0xff] %v361_v47  ;;  %v365_v49 = vld [vmem:[%s1449_s9 + $0x488] sm:$0xff]  ;;  %v367_v50 = vld [vmem:[%s1449_s9 + $0x4b0] sm:$0xff] }
  0x2c   : > { %364 = vst [vmem:[%s1454_s10 + $0x180] sm:$0xff] %v363_v48  ;;  %366 = vst [vmem:[%s1454_s10 + $0x188] sm:$0xff] %v365_v49  ;;  %v369_v51 = vld [vmem:[%s1449_s9 + $0x4b8] sm:$0xff]  ;;  %v371_v52 = vld [vmem:[%s1449_s9 + $0x4e0] sm:$0xff] }
  0x2d   : > { %368 = vst [vmem:[%s1454_s10 + $0x190] sm:$0xff] %v367_v50  ;;  %v373_v53 = vld [vmem:[%s1449_s9 + $0x4e8] sm:$0xff]  ;;  %370 = vst [vmem:[%s1454_s10 + $0x198] sm:$0xff] %v369_v51  ;;  %v375_v54 = vld [vmem:[%s1449_s9 + $0x510] sm:$0xff] }
  0x2e   : > { %372 = vst [vmem:[%s1454_s10 + $0x1a0] sm:$0xff] %v371_v52  ;;  %374 = vst [vmem:[%s1454_s10 + $0x1a8] sm:$0xff] %v373_v53  ;;  %v377_v55 = vld [vmem:[%s1449_s9 + $0x518] sm:$0xff]  ;;  %v379_v56 = vld [vmem:[%s1449_s9 + $0x540] sm:$0xff] }
  0x2f   : > { %376 = vst [vmem:[%s1454_s10 + $0x1b0] sm:$0xff] %v375_v54  ;;  %378 = vst [vmem:[%s1454_s10 + $0x1b8] sm:$0xff] %v377_v55  ;;  %v381_v57 = vld [vmem:[%s1449_s9 + $0x548] sm:$0xff]  ;;  %v383_v58 = vld [vmem:[%s1449_s9 + $0x570] sm:$0xff] }
  0x30   : > { %380 = vst [vmem:[%s1454_s10 + $0x1c0] sm:$0xff] %v379_v56  ;;  %v385_v59 = vld [vmem:[%s1449_s9 + $0x578] sm:$0xff]  ;;  %382 = vst [vmem:[%s1454_s10 + $0x1c8] sm:$0xff] %v381_v57  ;;  %v387_v60 = vld [vmem:[%s1449_s9 + $0x5a0] sm:$0xff] }
  0x31   : > { %384 = vst [vmem:[%s1454_s10 + $0x1d0] sm:$0xff] %v383_v58  ;;  %386 = vst [vmem:[%s1454_s10 + $0x1d8] sm:$0xff] %v385_v59  ;;  %v389_v61 = vld [vmem:[%s1449_s9 + $0x5a8] sm:$0xff]  ;;  %v391_v62 = vld [vmem:[%s1449_s9 + $0x5d0] sm:$0xff] }
  0x32   : > { %388 = vst [vmem:[%s1454_s10 + $0x1e0] sm:$0xff] %v387_v60  ;;  %390 = vst [vmem:[%s1454_s10 + $0x1e8] sm:$0xff] %v389_v61  ;;  %v393_v63 = vld [vmem:[%s1449_s9 + $0x5d8] sm:$0xff] }
  0x33   : > { %392 = vst [vmem:[%s1454_s10 + $0x1f0] sm:$0xff] %v391_v62  ;;  %394 = vst [vmem:[%s1454_s10 + $0x1f8] sm:$0xff] %v393_v63 }
  0x34 PF: > { %p1200_p8 = scmp.ge.s32.totalorder %s1369_s22, 1  ;;  %p407_p9 = scmp.lt.s32.totalorder %s1369_s22, 4 }
  0x36   : > { %p408_p10 = pnand %p1200_p8, %p407_p9 }
  0x37   : > { %s414_s9 = sand.u32 (!%p408_p10), 1, %s1353_s18   ;;  %s1203_s16 = sshll.u32 (!%p408_p10), %s1361_s20, 1 }
  0x38   : > { %411 = sbr.rel (%p408_p10) target bundleno = 595 (0x253), region = 59  ;;  %s1201_s10 = sshll.u32 (!%p408_p10), %s414_s9, 9 }
  0x39   : > { %s1682_s11 = scalar_lea.vmem (!%p408_p10), [#allocation3], %s1201_s10  ;;  %p477_p11 = scmp.lt.s32.totalorder (!%p408_p10), %s1203_s16, 5 }
  0x3a   : > { %s1202_s26 = sshll.u32 (!%p408_p10), %s414_s9, 7 }
  0x3b   : > { %s1906_s29 = scalar_lea.vmem (!%p408_p10), [#allocation4], %s1202_s26 }
  0x3d   : > { %v1586_v0 = vld [vmem:[%s1961_s0] sm:$0xff]  ;;  %v1591_v1 = vld [vmem:[%s1961_s0 + $0x8] sm:$0xff]  ;;  %v1596_v2 = vld [vmem:[%s1961_s0 + $0x10] sm:$0xff]  ;;  %s1975_s16 = smov (!%p477_p11, %s1203_s16), 5  ;;  %s1210_s18 = sshll.u32 (%p1436_p6), %s1361_s20, 4 }
  0x3e   : > { %v529_v3 = vadd.f32 %v1591_v1, %v1586_v0  ;;  %v1603_v4 = vld [vmem:[%s1961_s0 + $0x18] sm:$0xff]  ;;  %v1608_v5 = vld [vmem:[%s1961_s0 + $0x40] sm:$0xff]  ;;  %v1613_v6 = vld [vmem:[%s1961_s0 + $0x48] sm:$0xff]  ;;  %s479_s25 = scalar_lea.vmem %s1963_s2, %s1975_s16  ;;  %s1014_s7 = scalar_lea.vmem (%p1436_p6), %s1966_s5, %s1210_s18 }
  0x3f   : > { %v532_v7 = vadd.f32 %v1603_v4, %v1596_v2  ;;  %v1620_v8 = vld [vmem:[%s1961_s0 + $0x50] sm:$0xff]  ;;  %v1625_v9 = vld [vmem:[%s1961_s0 + $0x58] sm:$0xff]  ;;  %v541_v10 = vadd.f32 %v1613_v6, %v1608_v5  ;;  %v1634_v12 = vld [vmem:[%s1961_s0 + $0x20] sm:$0xff] }
  0x40   : > { %530 = vadd.xlane.f32.xlu0 %v529_v3  ;;  %v544_v11 = vadd.f32 %v1625_v9, %v1620_v8  ;;  %v1639_v13 = vld [vmem:[%s1961_s0 + $0x28] sm:$0xff]  ;;  %v1644_v14 = vld [vmem:[%s1961_s0 + $0x60] sm:$0xff]  ;;  %v1658_v18 = vld [vmem:[%s1961_s0 + $0x30] sm:$0xff] }
  0x41   : > { %533 = vadd.xlane.f32.xlu1 %v532_v7  ;;  %v1649_v15 = vld [vmem:[%s1961_s0 + $0x68] sm:$0xff]  ;;  %v535_v16 = vadd.f32 %v1639_v13, %v1634_v12  ;;  %v1663_v19 = vld [vmem:[%s1961_s0 + $0x38] sm:$0xff]  ;;  %v1668_v20 = vld [vmem:[%s1961_s0 + $0x70] sm:$0xff] }
  0x42   : > { %v547_v17 = vadd.f32 %v1649_v15, %v1644_v14  ;;  %v1673_v21 = vld [vmem:[%s1961_s0 + $0x78] sm:$0xff]  ;;  %v538_v22 = vadd.f32 %v1663_v19, %v1658_v18  ;;  %v760_v25 = vld [vmem:[%s1682_s11 + $0xf0] sm:$0xff]  ;;  %v759_v26 = vld [vmem:[%s1682_s11 + $0xe8] sm:$0xff] }
  0x43   : > { %v550_v23 = vadd.f32 %v1673_v21, %v1668_v20  ;;  %v761_v24 = vld [vmem:[%s1682_s11 + $0xf8] sm:$0xff]  ;;  %v758_v27 = vld [vmem:[%s1682_s11 + $0xe0] sm:$0xff]  ;;  %v756_v29 = vld [vmem:[%s1682_s11 + $0xd0] sm:$0xff] }
  0x44   : > { %542 = vadd.xlane.f32.xlu0 %v541_v10  ;;  %794 = vmatprep.subr.mxu0 %v761_v24  ;;  %v757_v28 = vld [vmem:[%s1682_s11 + $0xd8] sm:$0xff]  ;;  %v755_v30 = vld [vmem:[%s1682_s11 + $0xc8] sm:$0xff]  ;;  %v754_v31 = vld [vmem:[%s1682_s11 + $0xc0] sm:$0xff] }
  0x45   : > { %545 = vadd.xlane.f32.xlu1 %v544_v11  ;;  %1211 = vmatprep.subr.mxu1 %v761_v24  ;;  %v753_v32 = vld [vmem:[%s1682_s11 + $0xb8] sm:$0xff]  ;;  %v752_v33 = vld [vmem:[%s1682_s11 + $0xb0] sm:$0xff]  ;;  %v751_v34 = vld [vmem:[%s1682_s11 + $0xa8] sm:$0xff] }
  0x46   : > { %795 = vmatpush1.msra.mxu0 %v760_v25  ;;  %1243 = vmatpush1.msra.mxu1 %v760_v25  ;;  %v750_v35 = vld [vmem:[%s1682_s11 + $0xa0] sm:$0xff]  ;;  %v749_v36 = vld [vmem:[%s1682_s11 + $0x98] sm:$0xff]  ;;  %v748_v37 = vld [vmem:[%s1682_s11 + $0x90] sm:$0xff] }
  0x47   : > { %796 = vmatprep.subr.mxu0 %v759_v26  ;;  %1212 = vmatprep.subr.mxu1 %v759_v26  ;;  %v747_v38 = vld [vmem:[%s1682_s11 + $0x88] sm:$0xff]  ;;  %v746_v39 = vld [vmem:[%s1682_s11 + $0x80] sm:$0xff]  ;;  %v745_v40 = vld [vmem:[%s1682_s11 + $0x78] sm:$0xff] }
  0x48   : > { %536 = vadd.xlane.f32.xlu0 %v535_v16  ;;  %797 = vmatpush1.msra.mxu0 %v758_v27  ;;  %v744_v41 = vld [vmem:[%s1682_s11 + $0x70] sm:$0xff]  ;;  %v743_v42 = vld [vmem:[%s1682_s11 + $0x68] sm:$0xff]  ;;  %v742_v43 = vld [vmem:[%s1682_s11 + $0x60] sm:$0xff] }
  0x49   : > { %548 = vadd.xlane.f32.xlu1 %v547_v17  ;;  %1244 = vmatpush1.msra.mxu1 %v758_v27  ;;  %v741_v44 = vld [vmem:[%s1682_s11 + $0x58] sm:$0xff]  ;;  %v740_v45 = vld [vmem:[%s1682_s11 + $0x50] sm:$0xff]  ;;  %v739_v46 = vld [vmem:[%s1682_s11 + $0x48] sm:$0xff] }
  0x4a   : > { %798 = vmatprep.subr.mxu0 %v757_v28  ;;  %1213 = vmatprep.subr.mxu1 %v757_v28  ;;  %v738_v47 = vld [vmem:[%s1682_s11 + $0x40] sm:$0xff]  ;;  %v737_v48 = vld [vmem:[%s1682_s11 + $0x38] sm:$0xff]  ;;  %v736_v49 = vld [vmem:[%s1682_s11 + $0x30] sm:$0xff] }
  0x4b   : > { %799 = vmatpush1.msra.mxu0 %v756_v29  ;;  %1245 = vmatpush1.msra.mxu1 %v756_v29  ;;  %v735_v50 = vld [vmem:[%s1682_s11 + $0x28] sm:$0xff]  ;;  %v734_v51 = vld [vmem:[%s1682_s11 + $0x20] sm:$0xff]  ;;  %v733_v52 = vld [vmem:[%s1682_s11 + $0x18] sm:$0xff] }
  0x4c   : > { %539 = vadd.xlane.f32.xlu0 %v538_v22  ;;  %800 = vmatprep.subr.mxu0 %v755_v30  ;;  %v732_v53 = vld [vmem:[%s1682_s11 + $0x10] sm:$0xff]  ;;  %v731_v54 = vld [vmem:[%s1682_s11 + $0x8] sm:$0xff]  ;;  %v730_v55 = vld [vmem:[%s1682_s11] sm:$0xff] }
  0x4d   : > { %551 = vadd.xlane.f32.xlu1 %v550_v23  ;;  %1214 = vmatprep.subr.mxu1 %v755_v30  ;;  %v793_v56 = vld [vmem:[%s1682_s11 + $0x1f8] sm:$0xff]  ;;  %v792_v57 = vld [vmem:[%s1682_s11 + $0x1f0] sm:$0xff]  ;;  %v791_v58 = vld [vmem:[%s1682_s11 + $0x1e8] sm:$0xff] }
  0x4e   : > { %801 = vmatpush1.msra.mxu0 %v754_v31  ;;  %1246 = vmatpush1.msra.mxu1 %v754_v31  ;;  %v790_v59 = vld [vmem:[%s1682_s11 + $0x1e0] sm:$0xff]  ;;  %v789_v60 = vld [vmem:[%s1682_s11 + $0x1d8] sm:$0xff]  ;;  %v788_v61 = vld [vmem:[%s1682_s11 + $0x1d0] sm:$0xff] }
  0x4f   : > { %802 = vmatprep.subr.mxu0 %v753_v32  ;;  %1215 = vmatprep.subr.mxu1 %v753_v32 }
  0x50   : > { %803 = vmatpush1.msra.mxu0 %v752_v33  ;;  %1247 = vmatpush1.msra.mxu1 %v752_v33 }
  0x51   : > { %804 = vmatprep.subr.mxu0 %v751_v34  ;;  %1216 = vmatprep.subr.mxu1 %v751_v34 }
  0x52   : > { %805 = vmatpush1.msra.mxu0 %v750_v35  ;;  %1248 = vmatpush1.msra.mxu1 %v750_v35 }
  0x53   : > { %806 = vmatprep.subr.mxu0 %v749_v36  ;;  %1217 = vmatprep.subr.mxu1 %v749_v36 }
  0x54   : > { %807 = vmatpush1.msra.mxu0 %v748_v37  ;;  %1249 = vmatpush1.msra.mxu1 %v748_v37 }
  0x55   : > { %808 = vmatprep.subr.mxu0 %v747_v38  ;;  %1218 = vmatprep.subr.mxu1 %v747_v38 }
  0x56   : > { %809 = vmatpush1.msra.mxu0 %v746_v39  ;;  %1250 = vmatpush1.msra.mxu1 %v746_v39 }
  0x57   : > { %810 = vmatprep.subr.mxu0 %v745_v40  ;;  %1219 = vmatprep.subr.mxu1 %v745_v40 }
  0x58   : > { %811 = vmatpush1.msra.mxu0 %v744_v41  ;;  %1251 = vmatpush1.msra.mxu1 %v744_v41 }
  0x59   : > { %812 = vmatprep.subr.mxu0 %v743_v42  ;;  %1220 = vmatprep.subr.mxu1 %v743_v42 }
  0x5a   : > { %813 = vmatpush1.msra.mxu0 %v742_v43  ;;  %1252 = vmatpush1.msra.mxu1 %v742_v43 }
  0x5b   : > { %814 = vmatprep.subr.mxu0 %v741_v44  ;;  %1221 = vmatprep.subr.mxu1 %v741_v44 }
  0x5c   : > { %815 = vmatpush1.msra.mxu0 %v740_v45  ;;  %1253 = vmatpush1.msra.mxu1 %v740_v45 }
  0x5d   : > { %816 = vmatprep.subr.mxu0 %v739_v46  ;;  %1222 = vmatprep.subr.mxu1 %v739_v46 }
  0x5e   : > { %817 = vmatpush1.msra.mxu0 %v738_v47  ;;  %1254 = vmatpush1.msra.mxu1 %v738_v47 }
  0x5f   : > { %818 = vmatprep.subr.mxu0 %v737_v48  ;;  %1223 = vmatprep.subr.mxu1 %v737_v48 }
  0x60   : > { %819 = vmatpush1.msra.mxu0 %v736_v49  ;;  %1255 = vmatpush1.msra.mxu1 %v736_v49 }
  0x61   : > { %820 = vmatprep.subr.mxu0 %v735_v50  ;;  %1224 = vmatprep.subr.mxu1 %v735_v50 }
  0x62   : > { %821 = vmatpush1.msra.mxu0 %v734_v51  ;;  %1256 = vmatpush1.msra.mxu1 %v734_v51 }
  0x63   : > { %822 = vmatprep.subr.mxu0 %v733_v52  ;;  %1225 = vmatprep.subr.mxu1 %v733_v52 }
  0x64   : > { %823 = vmatpush1.msra.mxu0 %v732_v53  ;;  %1257 = vmatpush1.msra.mxu1 %v732_v53 }
  0x65   : > { %824 = vmatprep.subr.mxu0 %v731_v54  ;;  %1226 = vmatprep.subr.mxu1 %v731_v54 }
  0x66   : > { %825 = vmatpush1.msra.mxu0 %v730_v55  ;;  %1258 = vmatpush1.msra.mxu1 %v730_v55  ;;  %v785_v55 = vld [vmem:[%s1682_s11 + $0x1b8] sm:$0xff] }
  0x67   : > { %826 = vmatprep.subr.mxu0 %v793_v56  ;;  %1227 = vmatprep.subr.mxu1 %v793_v56  ;;  %v784_v56 = vld [vmem:[%s1682_s11 + $0x1b0] sm:$0xff] }
  0x68   : > { %827 = vmatpush2.msra.mxu0 %v792_v57  ;;  %1259 = vmatpush2.msra.mxu1 %v792_v57 }
  0x69   : > { %828 = vmatprep.subr.mxu0 %v791_v58  ;;  %1228 = vmatprep.subr.mxu1 %v791_v58  ;;  %v783_v58 = vld [vmem:[%s1682_s11 + $0x1a8] sm:$0xff] }
  0x6a   : > { %829 = vmatpush2.msra.mxu0 %v790_v59  ;;  %1260 = vmatpush2.msra.mxu1 %v790_v59  ;;  %v782_v59 = vld [vmem:[%s1682_s11 + $0x1a0] sm:$0xff] }
  0x6b   : > { %830 = vmatprep.subr.mxu0 %v789_v60  ;;  %1229 = vmatprep.subr.mxu1 %v789_v60  ;;  %v781_v60 = vld [vmem:[%s1682_s11 + $0x198] sm:$0xff] }
  0x6c   : > { %831 = vmatpush2.msra.mxu0 %v788_v61  ;;  %1261 = vmatpush2.msra.mxu1 %v788_v61  ;;  %v780_v61 = vld [vmem:[%s1682_s11 + $0x190] sm:$0xff] }
  0xc9   : > { %v531_v62 = vpop.xlane.xlu0 %530 }
  0xca   : > { %v554_v63 = vmul.f32 0.00390625, %v531_v62  ;;  %v534_v3 = vpop.xlane.xlu1 %533  ;;  %v779_v62 = vld [vmem:[%s1682_s11 + $0x188] sm:$0xff] }
  0xcb   : > { %v555_v7 = vmul.f32 0.00390625, %v534_v3  ;;  %v777_v3 = vld [vmem:[%s1682_s11 + $0x178] sm:$0xff] }
  0xcc   : > { %v1723_v10 = vsub.f32 %v1586_v0, %v554_v63  ;;  %v1726_v11 = vsub.f32 %v1591_v1, %v554_v63  ;;  %v778_v63 = vld [vmem:[%s1682_s11 + $0x180] sm:$0xff] }
  0xcd   : > { %v1729_v16 = vsub.f32 %v1596_v2, %v555_v7  ;;  %v1732_v17 = vsub.f32 %v1603_v4, %v555_v7  ;;  %v543_v22 = vpop.xlane.xlu0 %542  ;;  %v776_v7 = vld [vmem:[%s1682_s11 + $0x170] sm:$0xff] }
  0xce   : > { %v558_v23 = vmul.f32 0.00390625, %v543_v22  ;;  %v546_v24 = vpop.xlane.xlu1 %545  ;;  %v578_v25 = vmul.f32 %v1723_v10, %v1723_v10  ;;  %v579_v26 = vmul.f32 %v1726_v11, %v1726_v11  ;;  %v775_v22 = vld [vmem:[%s1682_s11 + $0x168] sm:$0xff] }
  0xcf   : > { %v559_v0 = vmul.f32 0.00390625, %v546_v24  ;;  %v580_v1 = vmul.f32 %v1729_v16, %v1729_v16  ;;  %v581_v2 = vmul.f32 %v1732_v17, %v1732_v17  ;;  %v773_v24 = vld [vmem:[%s1682_s11 + $0x158] sm:$0xff] }
  0xd0   : > { %v1743_v27 = vsub.f32 %v1608_v5, %v558_v23  ;;  %v1746_v4 = vsub.f32 %v1613_v6, %v558_v23  ;;  %v594_v28 = vadd.f32 %v579_v26, %v578_v25  ;;  %v774_v23 = vld [vmem:[%s1682_s11 + $0x160] sm:$0xff]  ;;  %v772_v25 = vld [vmem:[%s1682_s11 + $0x150] sm:$0xff]  ;;  %v771_v26 = vld [vmem:[%s1682_s11 + $0x148] sm:$0xff] }
  0xd1   : > { %v1749_v29 = vsub.f32 %v1620_v8, %v559_v0  ;;  %v1752_v30 = vsub.f32 %v1625_v9, %v559_v0  ;;  %v537_v31 = vpop.xlane.xlu0 %536  ;;  %v597_v34 = vadd.f32 %v581_v2, %v580_v1  ;;  %v770_v0 = vld [vmem:[%s1682_s11 + $0x140] sm:$0xff]  ;;  %v769_v1 = vld [vmem:[%s1682_s11 + $0x138] sm:$0xff]  ;;  %v768_v2 = vld [vmem:[%s1682_s11 + $0x130] sm:$0xff] }
  0xd2   : > { %v556_v32 = vmul.f32 0.00390625, %v537_v31  ;;  %595 = vadd.xlane.f32.xlu0 %v594_v28  ;;  %v549_v33 = vpop.xlane.xlu1 %548  ;;  %v586_v35 = vmul.f32 %v1743_v27, %v1743_v27  ;;  %v587_v5 = vmul.f32 %v1746_v4, %v1746_v4  ;;  %v767_v28 = vld [vmem:[%s1682_s11 + $0x128] sm:$0xff]  ;;  %v766_v31 = vld [vmem:[%s1682_s11 + $0x120] sm:$0xff] }
  0xd3   : > { %v560_v6 = vmul.f32 0.00390625, %v549_v33  ;;  %v588_v36 = vmul.f32 %v1749_v29, %v1749_v29  ;;  %v589_v8 = vmul.f32 %v1752_v30, %v1752_v30  ;;  %v764_v33 = vld [vmem:[%s1682_s11 + $0x110] sm:$0xff] }
  0xd4   : > { %v1763_v9 = vsub.f32 %v1634_v12, %v556_v32  ;;  %v1766_v37 = vsub.f32 %v1639_v13, %v556_v32  ;;  %v606_v38 = vadd.f32 %v587_v5, %v586_v35  ;;  %v765_v32 = vld [vmem:[%s1682_s11 + $0x118] sm:$0xff]  ;;  %v762_v35 = vld [vmem:[%s1682_s11 + $0x100] sm:$0xff] }
  0xd5   : > { %v1769_v39 = vsub.f32 %v1644_v14, %v560_v6  ;;  %v1772_v40 = vsub.f32 %v1649_v15, %v560_v6  ;;  %v540_v41 = vpop.xlane.xlu0 %539  ;;  %v609_v44 = vadd.f32 %v589_v8, %v588_v36 }
  0xd6   : > { %v557_v42 = vmul.f32 0.00390625, %v540_v41  ;;  %598 = vadd.xlane.f32.xlu0 %v597_v34  ;;  %607 = vadd.xlane.f32.xlu1 %v606_v38  ;;  %v552_v43 = vpop.xlane.xlu1 %551  ;;  %v582_v12 = vmul.f32 %v1763_v9, %v1763_v9  ;;  %v583_v13 = vmul.f32 %v1766_v37, %v1766_v37  ;;  %v763_v34 = vld [vmem:[%s1682_s11 + $0x108] sm:$0xff]  ;;  %v660_v41 = vlaneseq }
  0xd7   : > { %v561_v45 = vmul.f32 0.00390625, %v552_v43  ;;  %v590_v14 = vmul.f32 %v1769_v39, %v1769_v39  ;;  %v591_v15 = vmul.f32 %v1772_v40, %v1772_v40 }
  0xd8   : > { %v1783_v46 = vsub.f32 %v1658_v18, %v557_v42  ;;  %v1786_v47 = vsub.f32 %v1663_v19, %v557_v42  ;;  %v600_v48 = vadd.f32 %v583_v13, %v582_v12  ;;  %v787_v19 = vld [vmem:[%s1682_s11 + $0x1c8] sm:$0xff] }
  0xd9   : > { %v1789_v49 = vsub.f32 %v1668_v20, %v561_v45  ;;  %v1792_v50 = vsub.f32 %v1673_v21, %v561_v45  ;;  %v612_v51 = vadd.f32 %v591_v15, %v590_v14  ;;  %832 = vmatprep.subr.mxu0 %v787_v19  ;;  %v786_v21 = vld [vmem:[%s1682_s11 + $0x1c0] sm:$0xff]  ;;  %1230 = vmatprep.subr.mxu1 %v787_v19  ;;  %v661_v14 = vshrl.u32 %v660_v41, 7 }
  0xda   : > { %610 = vadd.xlane.f32.xlu1 %v609_v44  ;;  %601 = vadd.xlane.f32.xlu0 %v600_v48  ;;  %v584_v52 = vmul.f32 %v1783_v46, %v1783_v46  ;;  %v585_v18 = vmul.f32 %v1786_v47, %v1786_v47 }
  0xdb   : > { %v592_v53 = vmul.f32 %v1789_v49, %v1789_v49  ;;  %v593_v20 = vmul.f32 %v1792_v50, %v1792_v50  ;;  %833 = vmatpush2.msra.mxu0 %v786_v21  ;;  %1262 = vmatpush2.msra.mxu1 %v786_v21 }
  0xdc   : > { %v603_v54 = vadd.f32 %v585_v18, %v584_v52  ;;  %834 = vmatprep.subr.mxu0 %v785_v55  ;;  %1231 = vmatprep.subr.mxu1 %v785_v55  ;;  %v658_v55 = vld [vmem:[%s1964_s3] sm:$0x3] }
  0xdd   : > { %v615_v57 = vadd.f32 %v593_v20, %v592_v53  ;;  %835 = vmatpush2.msra.mxu0 %v784_v56  ;;  %1263 = vmatpush2.msra.mxu1 %v784_v56  ;;  %v1828_v53 = vsub.s32 0, %v661_v14 }
  0xde   : > { %613 = vadd.xlane.f32.xlu1 %v612_v51  ;;  %604 = vadd.xlane.f32.xlu0 %v603_v54  ;;  %v1830_v54 = vsub.s32 1, %v661_v14 }
  0xdf   : > { %836 = vmatprep.subr.mxu0 %v783_v58  ;;  %1232 = vmatprep.subr.mxu1 %v783_v58  ;;  %v686_v58 = vld [vmem:[%s1965_s4] sm:$0x3] }
  0xe0   : > { %837 = vmatpush2.msra.mxu0 %v782_v59  ;;  %1264 = vmatpush2.msra.mxu1 %v782_v59 }
  0xe1   : > { %838 = vmatprep.subr.mxu0 %v781_v60  ;;  %1233 = vmatprep.subr.mxu1 %v781_v60 }
  0xe2   : > { %616 = vadd.xlane.f32.xlu1 %v615_v57  ;;  %839 = vmatpush2.msra.mxu0 %v780_v61 }
  0xe3   : > { %840 = vmatprep.subr.mxu0 %v779_v62  ;;  %1265 = vmatpush2.msra.mxu1 %v780_v61  ;;  %v1839_v61 = vrot.slane %v658_v55, %v1828_v53 }
  0xe4   : > { %841 = vmatpush2.msra.mxu0 %v778_v63  ;;  %1234 = vmatprep.subr.mxu1 %v779_v62  ;;  %v1842_v62 = vrot.slane %v658_v55, %v1830_v54 }
  0xe5   : > { %842 = vmatprep.subr.mxu0 %v777_v3  ;;  %1266 = vmatpush2.msra.mxu1 %v778_v63 }
  0xe6   : > { %843 = vmatpush2.msra.mxu0 %v776_v7  ;;  %1235 = vmatprep.subr.mxu1 %v777_v3  ;;  %v1845_v3 = vrot.slane %v686_v58, %v1828_v53 }
  0xe7   : > { %844 = vmatprep.subr.mxu0 %v775_v22  ;;  %1267 = vmatpush2.msra.mxu1 %v776_v7 }
  0xe8   : > { %845 = vmatpush2.msra.mxu0 %v774_v23  ;;  %1236 = vmatprep.subr.mxu1 %v775_v22 }
  0xe9   : > { %846 = vmatprep.subr.mxu0 %v773_v24  ;;  %1268 = vmatpush2.msra.mxu1 %v774_v23  ;;  %v1849_v23 = vrot.slane %v686_v58, %v1830_v54 }
  0xea   : > { %847 = vmatpush2.msra.mxu0 %v772_v25  ;;  %1237 = vmatprep.subr.mxu1 %v773_v24 }
  0xeb   : > { %848 = vmatprep.subr.mxu0 %v771_v26  ;;  %1269 = vmatpush2.msra.mxu1 %v772_v25 }
  0xec   : > { %849 = vmatpush2.msra.mxu0 %v770_v0  ;;  %1238 = vmatprep.subr.mxu1 %v771_v26 }
  0xed   : > { %850 = vmatprep.subr.mxu0 %v769_v1  ;;  %1270 = vmatpush2.msra.mxu1 %v770_v0 }
  0xee   : > { %851 = vmatpush2.msra.mxu0 %v768_v2  ;;  %1239 = vmatprep.subr.mxu1 %v769_v1 }
  0xef   : > { %852 = vmatprep.subr.mxu0 %v767_v28  ;;  %1271 = vmatpush2.msra.mxu1 %v768_v2 }
  0xf0   : > { %853 = vmatpush2.msra.mxu0 %v766_v31  ;;  %1240 = vmatprep.subr.mxu1 %v767_v28 }
  0xf1   : > { %854 = vmatprep.subr.mxu0 %v765_v32  ;;  %1272 = vmatpush2.msra.mxu1 %v766_v31 }
  0xf2   : > { %855 = vmatpush2.msra.mxu0 %v764_v33  ;;  %1241 = vmatprep.subr.mxu1 %v765_v32 }
  0xf3   : > { %856 = vmatprep.subr.mxu0 %v763_v34  ;;  %1273 = vmatpush2.msra.mxu1 %v764_v33 }
  0xf4   : > { %857 = vmatpush2.msra.mxu0 %v762_v35  ;;  %1242 = vmatprep.subr.mxu1 %v763_v34 }
  0xf5   : > { %1274 = vmatpush2.msra.mxu1 %v762_v35 }
 0x15b   : > { %v596_v5 = vpop.xlane.xlu0 %595 }
 0x15c   : > { %v618_v6 = vmul.f32 0.00390625, %v596_v5 }
 0x15e   : > { %v626_v36 = vadd.f32 1e-05, %v618_v6 }
 0x15f   : > { %v608_v8 = vpop.xlane.xlu1 %607  ;;  %v599_v38 = vpop.xlane.xlu0 %598 }
 0x160   : > { %1315 = vrsqrt.f32 %v626_v36  ;;  %v622_v42 = vmul.f32 0.00390625, %v608_v8  ;;  %v619_v43 = vmul.f32 0.00390625, %v599_v38 }
 0x162   : > { %v630_v44 = vadd.f32 1e-05, %v622_v42  ;;  %v627_v12 = vadd.f32 1e-05, %v619_v43 }
 0x163   : > { %v611_v13 = vpop.xlane.xlu1 %610  ;;  %v602_v45 = vpop.xlane.xlu0 %601 }
 0x164   : > { %1317 = vrsqrt.f32 %v630_v44  ;;  %v623_v15 = vmul.f32 0.00390625, %v611_v13  ;;  %v620_v48 = vmul.f32 0.00390625, %v602_v45 }
 0x165   : > { %1319 = vrsqrt.f32 %v627_v12 }
 0x166   : > { %v631_v51 = vadd.f32 1e-05, %v623_v15  ;;  %v628_v52 = vadd.f32 1e-05, %v620_v48 }
 0x167   : > { %v614_v18 = vpop.xlane.xlu1 %613  ;;  %v605_v19 = vpop.xlane.xlu0 %604 }
 0x168   : > { %1321 = vrsqrt.f32 %v631_v51  ;;  %v624_v20 = vmul.f32 0.00390625, %v614_v18  ;;  %v621_v21 = vmul.f32 0.00390625, %v605_v19 }
 0x169   : > { %1323 = vrsqrt.f32 %v628_v52 }
 0x16a   : > { %v632_v56 = vadd.f32 1e-05, %v624_v20  ;;  %v629_v57 = vadd.f32 1e-05, %v621_v21 }
 0x16b   : > { %v617_v59 = vpop.xlane.xlu1 %616 }
 0x16c   : > { %1325 = vrsqrt.f32 %v632_v56  ;;  %v625_v60 = vmul.f32 0.00390625, %v617_v59 }
 0x16d   : > { %v1316_v63 = vpop.eup %1315  ;;  %1327 = vrsqrt.f32 %v629_v57 }
 0x16e   : > { %v633_v7 = vadd.f32 1e-05, %v625_v60  ;;  %v643_v22 = vmul.f32 %v1316_v63, %v1726_v11  ;;  %v642_v24 = vmul.f32 %v1316_v63, %v1723_v10 }
 0x170   : > { %1329 = vrsqrt.f32 %v633_v7  ;;  %v671_v25 = vmul.f32 %v1842_v62, %v643_v22  ;;  %v670_v26 = vmul.f32 %v1839_v61, %v642_v24 }
 0x171   : > { %v1318_v0 = vpop.eup %1317 }
 0x172   : > { %v1320_v1 = vpop.eup %1319  ;;  %v699_v2 = vadd.f32 %v1849_v23, %v671_v25  ;;  %v698_v28 = vadd.f32 %v1845_v3, %v670_v26  ;;  %v651_v31 = vmul.f32 %v1318_v0, %v1746_v4  ;;  %v650_v11 = vmul.f32 %v1318_v0, %v1743_v27 }
 0x173   : > { %v645_v32 = vmul.f32 %v1320_v1, %v1732_v17  ;;  %v644_v33 = vmul.f32 %v1320_v1, %v1729_v16 }
 0x174   : > { %858 = vmatprep.mubr.f32.mxu0 %v699_v2  ;;  %v679_v10 = vmul.f32 %v1842_v62, %v651_v31  ;;  %v678_v34 = vmul.f32 %v1839_v61, %v650_v11 }
 0x175   : > { %v1322_v35 = vpop.eup %1321  ;;  %859 = vmatmul.mubr.f32.vlgmr.msra.gmra.mxu0 %v698_v28  ;;  %v673_v5 = vmul.f32 %v1842_v62, %v645_v32  ;;  %v672_v6 = vmul.f32 %v1839_v61, %v644_v33 }
 0x176   : > { %v1324_v36 = vpop.eup %1323  ;;  %v707_v4 = vadd.f32 %v1849_v23, %v679_v10  ;;  %v706_v27 = vadd.f32 %v1845_v3, %v678_v34  ;;  %v653_v17 = vmul.f32 %v1322_v35, %v1752_v30  ;;  %v652_v16 = vmul.f32 %v1322_v35, %v1749_v29 }
 0x177   : > { %v701_v8 = vadd.f32 %v1849_v23, %v673_v5  ;;  %v700_v38 = vadd.f32 %v1845_v3, %v672_v6  ;;  %v647_v41 = vmul.f32 %v1324_v36, %v1766_v37  ;;  %v646_v42 = vmul.f32 %v1324_v36, %v1763_v9 }
 0x178   : > { %882 = vmatprep.mubr.f32.mxu1 %v707_v4  ;;  %v681_v43 = vmul.f32 %v1842_v62, %v653_v17  ;;  %v680_v44 = vmul.f32 %v1839_v61, %v652_v16 }
 0x179   : > { %v1326_v12 = vpop.eup %1325  ;;  %864 = vmatprep.mubr.f32.mxu0 %v701_v8  ;;  %883 = vmatmul.mubr.f32.vlgmr.msra.gmra.mxu1 %v706_v27  ;;  %v675_v30 = vmul.f32 %v1842_v62, %v647_v41  ;;  %v674_v29 = vmul.f32 %v1839_v61, %v646_v42 }
 0x17a   : > { %v1328_v13 = vpop.eup %1327  ;;  %865 = vmatmul.mubr.f32.gmra.mxu0 %v700_v38  ;;  %v709_v45 = vadd.f32 %v1849_v23, %v681_v43  ;;  %v708_v37 = vadd.f32 %v1845_v3, %v680_v44  ;;  %v655_v9 = vmul.f32 %v1326_v12, %v1772_v40  ;;  %v654_v14 = vmul.f32 %v1326_v12, %v1769_v39 }
 0x17b   : > { %v703_v15 = vadd.f32 %v1849_v23, %v675_v30  ;;  %v702_v48 = vadd.f32 %v1845_v3, %v674_v29  ;;  %v649_v51 = vmul.f32 %v1328_v13, %v1786_v47  ;;  %v648_v52 = vmul.f32 %v1328_v13, %v1783_v46 }
 0x17c   : > { %888 = vmatprep.mubr.f32.mxu1 %v709_v45  ;;  %v683_v18 = vmul.f32 %v1842_v62, %v655_v9  ;;  %v682_v19 = vmul.f32 %v1839_v61, %v654_v14 }
 0x17d   : > { %v1330_v20 = vpop.eup %1329  ;;  %870 = vmatprep.mubr.f32.mxu0 %v703_v15  ;;  %889 = vmatmul.mubr.f32.gmra.mxu1 %v708_v37  ;;  %v677_v40 = vmul.f32 %v1842_v62, %v649_v51  ;;  %v676_v39 = vmul.f32 %v1839_v61, %v648_v52 }
 0x17e   : > { %871 = vmatmul.mubr.f32.gmra.mxu0 %v702_v48  ;;  %v711_v21 = vadd.f32 %v1849_v23, %v683_v18  ;;  %v710_v47 = vadd.f32 %v1845_v3, %v682_v19  ;;  %v657_v46 = vmul.f32 %v1330_v20, %v1792_v50  ;;  %v656_v55 = vmul.f32 %v1330_v20, %v1789_v49  ;;  %v958_v49 = vld [vmem:[%s479_s25] sm:$0x3] }
 0x17f   : > { %v705_v56 = vadd.f32 %v1849_v23, %v677_v40  ;;  %v704_v57 = vadd.f32 %v1845_v3, %v676_v39  ;;  %v963_v50 = vrot.slane %v958_v49, %v1828_v53 }
 0x180   : > { %894 = vmatprep.mubr.f32.mxu1 %v711_v21  ;;  %v685_v58 = vmul.f32 %v1842_v62, %v657_v46  ;;  %v684_v59 = vmul.f32 %v1839_v61, %v656_v55  ;;  %v967_v61 = vrot.slane %v958_v49, %v1830_v54 }
 0x181   : > { %876 = vmatprep.mubr.f32.mxu0 %v705_v56  ;;  %895 = vmatmul.mubr.f32.gmra.mxu1 %v710_v47 }
 0x182   : > { %877 = vmatmul.mubr.f32.gmra.mxu0 %v704_v57  ;;  %v713_v60 = vadd.f32 %v1849_v23, %v685_v58  ;;  %v712_v63 = vadd.f32 %v1845_v3, %v684_v59 }
 0x184   : > { %900 = vmatprep.mubr.f32.mxu1 %v713_v60 }
 0x185   : > { %901 = vmatmul.mubr.f32.gmra.mxu1 %v712_v63 }
 0x235   : > { %v860_v62 = vpop.f32.mrf.mxu0 }
 0x236   : > { %v970_v7 = vadd.f32 %v963_v50, %v860_v62 }
 0x237   : > { %v862_v22 = vpop.f32.mrf.mxu0 }
 0x238   : > { %986 = vst [vmem:[%s1906_s29] sm:$0xff] %v970_v7  ;;  %v971_v3 = vadd.f32 %v967_v61, %v862_v22 }
 0x239   : > { %v884_v23 = vpop.f32.mrf.mxu1 }
 0x23a   : > { %987 = vst [vmem:[%s1906_s29 + $0x8] sm:$0xff] %v971_v3  ;;  %v866_v24 = vpop.f32.mrf.mxu0  ;;  %v978_v53 = vadd.f32 %v963_v50, %v884_v23 }
 0x23b   : > { %v972_v25 = vadd.f32 %v963_v50, %v866_v24  ;;  %v886_v54 = vpop.f32.mrf.mxu1 }
 0x23c   : > { %994 = vst [vmem:[%s1906_s29 + $0x40] sm:$0xff] %v978_v53  ;;  %v868_v26 = vpop.f32.mrf.mxu0  ;;  %v979_v0 = vadd.f32 %v967_v61, %v886_v54 }
 0x23d   : > { %988 = vst [vmem:[%s1906_s29 + $0x10] sm:$0xff] %v972_v25  ;;  %v973_v1 = vadd.f32 %v967_v61, %v868_v26  ;;  %v890_v2 = vpop.f32.mrf.mxu1 }
 0x23e   : > { %995 = vst [vmem:[%s1906_s29 + $0x48] sm:$0xff] %v979_v0  ;;  %v872_v28 = vpop.f32.mrf.mxu0  ;;  %v980_v31 = vadd.f32 %v963_v50, %v890_v2 }
 0x23f   : > { %989 = vst [vmem:[%s1906_s29 + $0x18] sm:$0xff] %v973_v1  ;;  %v974_v11 = vadd.f32 %v963_v50, %v872_v28  ;;  %v892_v32 = vpop.f32.mrf.mxu1  ;;  %v1027_v43 = vld [vmem:[%s1906_s29] sm:$0xff] (%p1436_p6) }
 0x240   : > { %996 = vst [vmem:[%s1906_s29 + $0x50] sm:$0xff] %v980_v31  ;;  %v874_v33 = vpop.f32.mrf.mxu0  ;;  %v981_v10 = vadd.f32 %v967_v61, %v892_v32  ;;  %1028 = vst [vmem:[%s1014_s7] sm:$0xff] (%p1436_p6), %v1027_v43 }
 0x241   : > { %990 = vst [vmem:[%s1906_s29 + $0x20] sm:$0xff] %v974_v11  ;;  %v975_v34 = vadd.f32 %v967_v61, %v874_v33  ;;  %v896_v35 = vpop.f32.mrf.mxu1  ;;  %v1029_v44 = vld [vmem:[%s1906_s29 + $0x8] sm:$0xff] (%p1436_p6) }
 0x242   : > { %997 = vst [vmem:[%s1906_s29 + $0x58] sm:$0xff] %v981_v10  ;;  %v878_v5 = vpop.f32.mrf.mxu0  ;;  %v982_v6 = vadd.f32 %v963_v50, %v896_v35  ;;  %1030 = vst [vmem:[%s1014_s7 + $0x8] sm:$0xff] (%p1436_p6), %v1029_v44 }
 0x243   : > { %991 = vst [vmem:[%s1906_s29 + $0x28] sm:$0xff] %v975_v34  ;;  %v976_v36 = vadd.f32 %v963_v50, %v878_v5  ;;  %v898_v4 = vpop.f32.mrf.mxu1  ;;  %v1043_v9 = vld [vmem:[%s1906_s29 + $0x40] sm:$0xff] (%p1436_p6) }
 0x244   : > { %998 = vst [vmem:[%s1906_s29 + $0x60] sm:$0xff] %v982_v6  ;;  %v880_v27 = vpop.f32.mrf.mxu0  ;;  %v983_v17 = vadd.f32 %v967_v61, %v898_v4  ;;  %v1031_v12 = vld [vmem:[%s1906_s29 + $0x10] sm:$0xff] (%p1436_p6)  ;;  %1044 = vst [vmem:[%s1014_s7 + $0xc0] sm:$0xff] (%p1436_p6), %v1043_v9 }
 0x245   : > { %992 = vst [vmem:[%s1906_s29 + $0x30] sm:$0xff] %v976_v36  ;;  %v977_v16 = vadd.f32 %v967_v61, %v880_v27  ;;  %v902_v8 = vpop.f32.mrf.mxu1  ;;  %1032 = vst [vmem:[%s1014_s7 + $0x30] sm:$0xff] (%p1436_p6), %v1031_v12  ;;  %v1045_v14 = vld [vmem:[%s1906_s29 + $0x48] sm:$0xff] (%p1436_p6) }
 0x246   : > { %999 = vst [vmem:[%s1906_s29 + $0x68] sm:$0xff] %v983_v17  ;;  %v984_v38 = vadd.f32 %v963_v50, %v902_v8  ;;  %1008 = sbr.rel (!%p1436_p6) target bundleno = 595 (0x253), region = 75  ;;  %v1033_v30 = vld [vmem:[%s1906_s29 + $0x18] sm:$0xff] (%p1436_p6)  ;;  %1046 = vst [vmem:[%s1014_s7 + $0xc8] sm:$0xff] (%p1436_p6), %v1045_v14 }
 0x247   : > { %993 = vst [vmem:[%s1906_s29 + $0x38] sm:$0xff] %v977_v16  ;;  %v904_v41 = vpop.f32.mrf.mxu1  ;;  %1034 = vst [vmem:[%s1014_s7 + $0x38] sm:$0xff] (%p1436_p6), %v1033_v30  ;;  %v1047_v15 = vld [vmem:[%s1906_s29 + $0x50] sm:$0xff] (%p1436_p6) }
 0x248   : > { %1000 = vst [vmem:[%s1906_s29 + $0x70] sm:$0xff] %v984_v38  ;;  %v985_v42 = vadd.f32 %v967_v61, %v904_v41  ;;  %v1035_v29 = vld [vmem:[%s1906_s29 + $0x20] sm:$0xff] (%p1436_p6)  ;;  %1048 = vst [vmem:[%s1014_s7 + $0xf0] sm:$0xff] (%p1436_p6), %v1047_v15 }
 0x249   : > { %1036 = vst [vmem:[%s1014_s7 + $0x60] sm:$0xff] (%p1436_p6), %v1035_v29  ;;  %v1049_v48 = vld [vmem:[%s1906_s29 + $0x58] sm:$0xff] (%p1436_p6) }
 0x24a   : > { %1001 = vst [vmem:[%s1906_s29 + $0x78] sm:$0xff] %v985_v42  ;;  %v1037_v13 = vld [vmem:[%s1906_s29 + $0x28] sm:$0xff] (%p1436_p6)  ;;  %1050 = vst [vmem:[%s1014_s7 + $0xf8] sm:$0xff] (%p1436_p6), %v1049_v48 }
 0x24b   : > { %1038 = vst [vmem:[%s1014_s7 + $0x68] sm:$0xff] %v1037_v13  ;;  %v1051_v51 = vld [vmem:[%s1906_s29 + $0x60] sm:$0xff] }
 0x24c   : > { %v1039_v45 = vld [vmem:[%s1906_s29 + $0x30] sm:$0xff]  ;;  %1052 = vst [vmem:[%s1014_s7 + $0x120] sm:$0xff] %v1051_v51 }
 0x24d   : > { %1040 = vst [vmem:[%s1014_s7 + $0x90] sm:$0xff] %v1039_v45  ;;  %v1053_v52 = vld [vmem:[%s1906_s29 + $0x68] sm:$0xff] }
 0x24e   : > { %v1041_v37 = vld [vmem:[%s1906_s29 + $0x38] sm:$0xff]  ;;  %1054 = vst [vmem:[%s1014_s7 + $0x128] sm:$0xff] %v1053_v52 }
 0x24f   : > { %1042 = vst [vmem:[%s1014_s7 + $0x98] sm:$0xff] %v1041_v37  ;;  %v1055_v18 = vld [vmem:[%s1906_s29 + $0x70] sm:$0xff] }
 0x250   : > { %1056 = vst [vmem:[%s1014_s7 + $0x150] sm:$0xff] %v1055_v18 }
 0x251   : > { %v1057_v19 = vld [vmem:[%s1906_s29 + $0x78] sm:$0xff] }
 0x252   : > { %1058 = vst [vmem:[%s1014_s7 + $0x158] sm:$0xff] %v1057_v19 }
 0x253 PF: > { %s15_s22 = sadd.s32 1, %s1369_s22   ;;  %s1968_s18 = smov %s1357_s19 }
 0x254   : > { %p12_p12 = scmp.ge.s32.totalorder %s15_s22, 5   ;;  %s1969_s19 = smov %s1441_s28 }
 0x255   : > { %s1970_s20 = smov %s1365_s21  ;;  %s1971_s21 = smov %s1973_s23 }
 0x256   :  { %14 = sbr.rel (!%p12_p12) target bundleno = 3 (0x3), region = 141 }

// kernel: ltxv_wrapper_forward.20
= control target key start
LH: loop header
LB: loop body
LE: loop exit
PB: predicated region body
PF: predicated region fallthrough
CT: control target
= control target key end

     0   :  { %s1187_s15 = smov 0   ;;  %s1189_s16 = smov 0   ;;  %s1345_s0 = inlined_call_operand.vmem [shape: f32[64,256], index: 0, kind: input, shape index: {}]   ;;  %s1346_s1 = inlined_call_operand.vmem [shape: f32[16,512], index: 1, kind: input, shape index: {}, may-alias: {1,2}]   ;;  %s1347_s2 = inlined_call_operand.vmem [shape: f32[16,512], index: 2, kind: input, shape index: {}, may-alias: {1,2}]   ;;  %s1348_s3 = inlined_call_operand.vmem [shape: f32[2,1,8], index: 3, kind: input, shape index: {}]   ;;  %s1349_s4 = inlined_call_operand.vmem [shape: f32[64,256], index: 4, kind: output, shape index: {}]  }
   0x1   :  { %s1191_s17 = smov 0   ;;  %s1193_s18 = smov 0  }
   0x2   :  { %s1195_s19 = smov 0   ;;  %s1197_s20 = smov 0  }
   0x3   :  { %s1199_s21 = smov 0  }
   0x4 LB: > { %s36_s22 = sadd.s32 1, %s1149_s19  ;;  %s40_s23 = sadd.s32 1, %s1153_s20  ;;  %s1157_s21 = sphi %s1199_s21, %s14_s21   ;;  %s1153_s20 = sphi %s1197_s20, %s1356_s20   ;;  %s1149_s19 = sphi %s1195_s19, %s1355_s19   ;;  %s1145_s18 = sphi %s1193_s18, %s1354_s18   ;;  %s1141_s17 = sphi %s1191_s17, %s1353_s17   ;;  %s1137_s16 = sphi %s1189_s16, %s1352_s16   ;;  %s1133_s15 = sphi %s1187_s15, %s1351_s15  }
   0x5   : > { %p38_p0 = scmp.ge.s32.totalorder %s36_s22, 2  ;;  %s964_s24 = sadd.s32 4294967295, %s1157_s21  }
   0x6   : > { %p58_p1 = scmp.ne.s32.totalorder %s1137_s16, %s1133_s15  ;;  %p59_p2 = scmp.eq.s32.totalorder %s1157_s21, 0 }
   0x7   : > { %s1358_s22 = smov (%p38_p0, %s36_s22), 0  ;;  %s1360_s23 = smov (!%p38_p0, %s40_s23), %s1153_s20 }
   0x8   : > { %p42_p3 = scmp.ge.s32.totalorder %s1360_s23, 2  ;;  %p182_p4 = scmp.eq.s32.totalorder %s964_s24, 3 }
   0x9   : > { %s47_s25 = ssub.s32 %s1149_s19, %s1358_s22  ;;  %p60_p5 = por %p59_p2, %p58_p1 }
   0xa   : > { %s1362_s23 = smov (%p42_p3, %s1360_s23), 0  ;;  %p1235_p6 = por %p182_p4, %p58_p1 }
   0xb   : > { %s46_s27 = ssub.s32 %s1153_s20, %s1362_s23  ;;  %s51_s29 = sadd.s32 1, %s1137_s16 }
   0xc   : > { %s48_s28 = sor.u32 %s47_s25, %s46_s27  ;;  %p967_p8 = scmp.ge.s32.totalorder %s1157_s21, 4 }
   0xd   : > { %p49_p7 = scmp.eq.s32.totalorder %s48_s28, 0 }
   0xe   : > { %204 = sbr.rel (%p967_p8) target bundleno = 27 (0x1b), region = 16 }
   0xf   : > { %s1243_s30 = scalar_select %p49_p7, %s1137_s16, %s51_s29  }
  0x13   : > { %207 = sbr.rel (!%p60_p5) target bundleno = 27 (0x1b), region = 20  ;;  %s209_s5 = sand.u32 (%p60_p5), 1, %s1137_s16  }
  0x14   : > { %s990_s6 = sshll.u32 (%p60_p5), %s1153_s20, 3  ;;  %s968_s7 = sshll.u32 (%p60_p5), %s209_s5, 5 }
  0x15   : > { %s215_s8 = sadd.s32 (%p60_p5), %s1149_s19, %s990_s6  ;;  %s211_s13 = scalar_lea.vmem (%p60_p5), [#allocation5], %s968_s7 }
  0x16   : > { %s971_s9 = sshll.u32 (%p60_p5), %s215_s8, 3 }
  0x17   : > { %s217_s12 = scalar_lea.vmem (%p60_p5), %s1345_s0, %s971_s9 }
  0x18   : > { %v252_v0 = vld [vmem:[%s217_s12] sm:$0xff]  ;;  %v254_v1 = vld [vmem:[%s217_s12 + $0x10] sm:$0xff] }
  0x19   : > { %v256_v2 = vld [vmem:[%s217_s12 + $0x20] sm:$0xff]  ;;  %253 = vst [vmem:[%s211_s13] sm:$0xff] %v252_v0  ;;  %255 = vst [vmem:[%s211_s13 + $0x8] sm:$0xff] %v254_v1  ;;  %v258_v3 = vld [vmem:[%s217_s12 + $0x30] sm:$0xff] }
  0x1a   : > { %257 = vst [vmem:[%s211_s13 + $0x10] sm:$0xff] %v256_v2  ;;  %259 = vst [vmem:[%s211_s13 + $0x18] sm:$0xff] %v258_v3 }
  0x1b PF: > { %p972_p9 = scmp.ge.s32.totalorder %s1157_s21, 1  ;;  %p301_p10 = scmp.lt.s32.totalorder %s1157_s21, 5 }
  0x1d   : > { %p302_p11 = pnand %p972_p9, %p301_p10 }
  0x1e   : > { %p360_p12 = scmp.lt.s32.totalorder (!%p302_p11), %s1145_s18, 1  ;;  %p362_p13 = scmp.lt.s32.totalorder (!%p302_p11), %s1141_s17, 3 }
  0x1f   : > { %305 = sbr.rel (%p302_p11) target bundleno = 837 (0x345), region = 70  ;;  %s308_s14 = sand.u32 (!%p302_p11), 1, %s1133_s15  }
  0x20   : > { %s1262_s28 = sshll.u32 (!%p302_p11), %s308_s14, 5  ;;  %s370_s12 = sadd.s32 (!%p302_p11), 2, %s1141_s17 }
  0x21   : > { %s310_s6 = scalar_lea.vmem (!%p302_p11), [#allocation5], %s1262_s28  ;;  %p373_p0 = scmp.lt.s32.totalorder (!%p302_p11), %s370_s12, 3 }
  0x24   : > { %s1258_s24 = scalar_select %p360_p12, %s1145_s18, 1  ;;  %v406_v4 = vld [vmem:[%s310_s6] sm:$0xff]  ;;  %v407_v6 = vld [vmem:[%s310_s6 + $0x8] sm:$0xff]  ;;  %v408_v7 = vld [vmem:[%s310_s6 + $0x10] sm:$0xff]  ;;  %vm393_vm0 = vcmask 7168   ;;  %vm507_vm1 = vcmask 64512  }
  0x25   : > { %s363_s25 = scalar_select %p362_p13, %s1141_s17, 3  ;;  %1004 = vmatprep.mubr.f32.mxu0 %v406_v4  ;;  %v409_v8 = vld [vmem:[%s310_s6 + $0x18] sm:$0xff]  ;;  %v1159_v9 = vmov -1e+30   ;;  %v1160_v23 = vmov 0   ;;  %v1161_v24 = vmov 0.0  }
  0x26   : > { %s975_s27 = sshll.u32 %s1258_s24, 2  ;;  %394 = vst.msk [vmem:[#allocation2] sm:$0xff] %vm393_vm0, %v1159_v9  ;;  %395 = vst.msk [vmem:[#allocation2 + $0x8] sm:$0xff] %vm393_vm0, %v1159_v9  ;;  %s386_s11 = scalar_lea.vmem %s1348_s3, %s1258_s24  ;;  %1077 = vset.pattern.permute.xlu0 %v1160_v23  ;;  %1078 = vset.pattern.permute.xlu1 %v1160_v23 }
  0x27   : > { %s365_s29 = sadd.s32 %s975_s27, %s363_s25  ;;  %396 = vst.msk [vmem:[#allocation2 + $0x10] sm:$0xff] %vm393_vm0, %v1159_v9  ;;  %397 = vst.msk [vmem:[#allocation2 + $0x18] sm:$0xff] %vm393_vm0, %v1159_v9  ;;  %v979_v11 = vld [vmem:[%s386_s11] ss:$0 sm:$0xff]  ;;  %s1364_s12 = smov (!%p373_p0, %s370_s12), 3 }
  0x28   : > { %s976_s5 = sshll.u32 %s365_s29, 3  ;;  %398 = vst.msk [vmem:[#allocation3] sm:$0xff] %vm393_vm0, %v1161_v24  ;;  %399 = vst.msk [vmem:[#allocation3 + $0x8] sm:$0xff] %vm393_vm0, %v1161_v24  ;;  %s376_s13 = sadd.s32 %s975_s27, %s1364_s12 }
  0x29   : > { %s367_s9 = scalar_lea.vmem %s1346_s1, %s976_s5  ;;  %400 = vst.msk [vmem:[#allocation3 + $0x10] sm:$0xff] %vm393_vm0, %v1161_v24  ;;  %401 = vst.msk [vmem:[#allocation3 + $0x18] sm:$0xff] %vm393_vm0, %v1161_v24  ;;  %s978_s14 = sshll.u32 %s376_s13, 3 }
  0x2a   : > { %v410_v5 = vld [vmem:[%s367_s9] sm:$0xff]  ;;  %s378_s5 = scalar_lea.vmem %s1347_s2, %s978_s14  ;;  %s356_s24 = scalar_lea.vmem [#allocation6], %s1262_s28 }
  0x2b   : > { %1002 = vmatprep.subr.mxu0 %v410_v5  ;;  %v625_v41 = vld [vmem:[%s378_s5] sm:$0xff]  ;;  %s991_s27 = sshll.u32 (%p1235_p6), %s1145_s18, 3 }
  0x2c   : > { %1003 = vmatpush3.xpose.msra.mxu0 %v410_v5  ;;  %1010 = vmatprep.subr.mxu1 %v625_v41  ;;  %s788_s28 = sadd.s32 (%p1235_p6), %s1141_s17, %s991_s27 }
  0x2d   : > { %v1286_v25 = vld [vmem:[#allocation2] sm:$0xff]  ;;  %v504_v29 = vld [vmem:[#allocation2 + $0x8] sm:$0xff]  ;;  %1011 = vmatpush3.msra.mxu1 %v625_v41  ;;  %s987_s6 = sshll.u32 (%p1235_p6), %s788_s28, 3 }
  0x2e   : > { %v1289_v28 = vld [vmem:[#allocation2 + $0x10] sm:$0xff]  ;;  %v506_v35 = vld [vmem:[#allocation2 + $0x18] sm:$0xff]  ;;  %s790_s9 = scalar_lea.vmem (%p1235_p6), %s1349_s4, %s987_s6 }
  0x2f   : > { %1005 = vmatmul.mubr.f32.vlgmr.msra.gmra.mxu0 %v407_v6  ;;  %v568_v6 = vld [vmem:[#allocation3] sm:$0xff]  ;;  %v569_v9 = vld [vmem:[#allocation3 + $0x8] sm:$0xff] }
  0x30   : > { %1007 = vmatprep.mubr.f32.mxu0 %v408_v7 }
  0x33   : > { %1008 = vmatmul.mubr.f32.gmra.mxu0 %v409_v8 }
  0xef   : > { %v1006_v10 = vpop.f32.mrf.mxu0 }
  0xf0   : > { %v490_v15 = vadd.f32 %v1006_v10, %v979_v11 }
  0xf1   : > { %v484_v12 = vpop.f32.mrf.mxu0 }
  0xf2   : > { %v485_v13 = vadd.f32 %v979_v11, %v484_v12  ;;  %v511_v21 = vsel %vm507_vm1, %v490_v15, -inf }
  0xf3   : > { %v1009_v14 = vpop.f32.mrf.mxu0 }
  0xf4   : > { %v508_v16 = vsel %vm507_vm1, %v485_v13, -inf  ;;  %v500_v19 = vadd.f32 %v1009_v14, %v979_v11 }
  0xf5   : > { %v494_v17 = vpop.f32.mrf.mxu0  ;;  %509 = vmax.xlane.f32.xlu0 %v508_v16 }
  0xf6   : > { %v495_v18 = vadd.f32 %v979_v11, %v494_v17  ;;  %v517_v22 = vsel %vm507_vm1, %v500_v19, -inf  ;;  %v571_v17 = vld [vmem:[#allocation3 + $0x18] sm:$0xff] }
  0xf8   : > { %v514_v20 = vsel %vm507_vm1, %v495_v18, -inf }
  0xf9   : > { %515 = vmax.xlane.f32.xlu1 %v514_v20  ;;  %512 = vmax.xlane.f32.xlu0 %v511_v21 }
  0xfd   : > { %518 = vmax.xlane.f32.xlu1 %v517_v22 }
 0x17e   : > { %v510_v26 = vpop.xlane.xlu0 %509 }
 0x17f   : > { %v520_v27 = vmax.f32 %v1286_v25, %v510_v26 }
 0x181   : > { %v524_v30 = vsub.f32 %v1286_v25, %v520_v27  ;;  %731 = vst.msk [vmem:[#allocation2] sm:$0xff] %vm393_vm0, %v520_v27  ;;  %538 = vperm.xlu0 %1077, %v520_v27  }
 0x182   : > { %v516_v31 = vpop.xlane.xlu1 %515  ;;  %v513_v32 = vpop.xlane.xlu0 %512 }
 0x183   : > { %v522_v33 = vmax.f32 %v1289_v28, %v516_v31  ;;  %v521_v34 = vmax.f32 %v504_v29, %v513_v32  ;;  %v528_v62 = vmul.f32 1.442695, %v524_v30 }
 0x185   : > { %v526_v36 = vsub.f32 %v1289_v28, %v522_v33  ;;  %733 = vst.msk [vmem:[#allocation2 + $0x10] sm:$0xff] %vm393_vm0, %v522_v33  ;;  %v525_v37 = vsub.f32 %v504_v29, %v521_v34  ;;  %732 = vst.msk [vmem:[#allocation2 + $0x8] sm:$0xff] %vm393_vm0, %v521_v34  ;;  %543 = vperm.xlu1 %1078, %v521_v34  }
 0x186   : > { %v519_v38 = vpop.xlane.xlu1 %518 }
 0x187   : > { %v523_v39 = vmax.f32 %v506_v35, %v519_v38  ;;  %v530_v60 = vmul.f32 1.442695, %v525_v37  ;;  %v532_v0 = vmul.f32 1.442695, %v526_v36 }
 0x189   : > { %v527_v40 = vsub.f32 %v506_v35, %v523_v39  ;;  %734 = vst.msk [vmem:[#allocation2 + $0x18] sm:$0xff] %vm393_vm0, %v523_v39  ;;  %548 = vperm.xlu1 %1078, %v522_v33  }
 0x18b   : > { %v534_v1 = vmul.f32 1.442695, %v527_v40 }
 0x18d   : > { %553 = vperm.xlu1 %1078, %v523_v39  }
 0x1fc   : > { %v539_v42 = vpop.permute.xlu0 %538 }
 0x1fd   : > { %v556_v43 = vsub.f32 %v485_v13, %v539_v42  ;;  %v570_v13 = vld [vmem:[#allocation3 + $0x10] sm:$0xff] }
 0x1ff   : > { %v560_v44 = vmul.f32 1.442695, %v556_v43 }
 0x200   : > { %v544_v45 = vpop.permute.xlu1 %543 }
 0x201   : > { %1079 = vpow2.f32 %v560_v44  ;;  %v557_v46 = vsub.f32 %v490_v15, %v544_v45 }
 0x203   : > { %v562_v47 = vmul.f32 1.442695, %v557_v46 }
 0x204   : > { %v549_v48 = vpop.permute.xlu1 %548 }
 0x205   : > { %1081 = vpow2.f32 %v562_v47  ;;  %v558_v49 = vsub.f32 %v495_v18, %v549_v48 }
 0x207   : > { %v564_v50 = vmul.f32 1.442695, %v558_v49 }
 0x208   : > { %v554_v51 = vpop.permute.xlu1 %553 }
 0x209   : > { %1083 = vpow2.f32 %v564_v50  ;;  %v559_v52 = vsub.f32 %v500_v19, %v554_v51 }
 0x20b   : > { %v566_v53 = vmul.f32 1.442695, %v559_v52 }
 0x20d   : > { %1085 = vpow2.f32 %v566_v53 }
 0x20e   : > { %v1080_v54 = vpop.eup %1079  ;;  %1087 = vpow2.f32 %v530_v60 }
 0x20f   : > { %1012 = vmatprep.mubr.msk.f32.mxu1 %vm507_vm1, %v1080_v54  ;;  %v576_v55 = vsel %vm507_vm1, %v1080_v54, 0.0  ;;  %1089 = vpow2.f32 %v528_v62 }
 0x210   : > { %577 = vadd.xlane.f32.xlu1 %v576_v55  ;;  %1091 = vpow2.f32 %v532_v0 }
 0x211   : > { %1093 = vpow2.f32 %v534_v1 }
 0x212   : > { %v1082_v56 = vpop.eup %1081 }
 0x213   : > { %1013 = vmatmul.mubr.msk.f32.vlgmr.msra.gmra.mxu1 %vm507_vm1, %v1082_v56  ;;  %v579_v57 = vsel %vm507_vm1, %v1082_v56, 0.0 }
 0x214   : > { %580 = vadd.xlane.f32.xlu0 %v579_v57 }
 0x216   : > { %v1084_v58 = vpop.eup %1083 }
 0x217   : > { %1015 = vmatprep.mubr.msk.f32.mxu1 %vm507_vm1, %v1084_v58  ;;  %v582_v59 = vsel %vm507_vm1, %v1084_v58, 0.0 }
 0x218   : > { %583 = vadd.xlane.f32.xlu1 %v582_v59 }
 0x21a   : > { %v1086_v61 = vpop.eup %1085 }
 0x21b   : > { %1016 = vmatmul.mubr.msk.f32.gmra.mxu1 %vm507_vm1, %v1086_v61  ;;  %v585_v63 = vsel %vm507_vm1, %v1086_v61, 0.0  ;;  %v1088_v2 = vpop.eup %1087 }
 0x21c   : > { %586 = vadd.xlane.f32.xlu1 %v585_v63  ;;  %v1090_v3 = vpop.eup %1089  ;;  %v573_v11 = vmul.f32 %v1088_v2, %v569_v9 }
 0x21d   : > { %v1092_v4 = vpop.eup %1091  ;;  %v572_v7 = vmul.f32 %v1090_v3, %v568_v6 }
 0x21e   : > { %v1094_v5 = vpop.eup %1093  ;;  %v574_v15 = vmul.f32 %v1092_v4, %v570_v13 }
 0x21f   : > { %v575_v20 = vmul.f32 %v1094_v5, %v571_v17 }
 0x22a   : > { %608 = vperm.xlu0 %1077, %v1088_v2  }
 0x22d   : > { %603 = vperm.xlu1 %1078, %v1090_v3  }
 0x231   : > { %613 = vperm.xlu1 %1078, %v1092_v4  }
 0x235   : > { %618 = vperm.xlu1 %1078, %v1094_v5  }
 0x299   : > { %v578_v8 = vpop.xlane.xlu1 %577 }
 0x29a   : > { %v588_v10 = vadd.f32 %v578_v8, %v572_v7 }
 0x29c   : > { %593 = vst.msk [vmem:[#allocation3] sm:$0xff] %vm393_vm0, %v588_v10 }
 0x29d   : > { %v581_v12 = vpop.xlane.xlu0 %580 }
 0x29e   : > { %v589_v14 = vadd.f32 %v581_v12, %v573_v11 }
 0x2a0   : > { %594 = vst.msk [vmem:[#allocation3 + $0x8] sm:$0xff] %vm393_vm0, %v589_v14 }
 0x2a1   : > { %v584_v16 = vpop.xlane.xlu1 %583 }
 0x2a2   : > { %v590_v18 = vadd.f32 %v584_v16, %v574_v15 }
 0x2a3   : > { %v742_v19 = vld [vmem:[#allocation3] sm:$0xff] }
 0x2a4   : > { %595 = vst.msk [vmem:[#allocation3 + $0x10] sm:$0xff] %vm393_vm0, %v590_v18  ;;  %1095 = vrcp.f32 %v742_v19 }
 0x2a5   : > { %v587_v21 = vpop.xlane.xlu1 %586  ;;  %v609_v36 = vpop.permute.xlu0 %608 }
 0x2a6   : > { %v591_v22 = vadd.f32 %v587_v21, %v575_v20  ;;  %v622_v40 = vmul.f32 0.0, %v609_v36 }
 0x2a7   : > { %v743_v23 = vld [vmem:[#allocation3 + $0x8] sm:$0xff] }
 0x2a8   : > { %596 = vst.msk [vmem:[#allocation3 + $0x18] sm:$0xff] %vm393_vm0, %v591_v22  ;;  %1097 = vrcp.f32 %v743_v23 }
 0x2a9   : > { %v604_v30 = vpop.permute.xlu1 %603 }
 0x2aa   : > { %v621_v35 = vmul.f32 0.0, %v604_v30 }
 0x2ab   : > { %v744_v24 = vld [vmem:[#allocation3 + $0x10] sm:$0xff] }
 0x2ac   : > { %1099 = vrcp.f32 %v744_v24 }
 0x2ad   : > { %v614_v31 = vpop.permute.xlu1 %613 }
 0x2ae   : > { %v623_v45 = vmul.f32 0.0, %v614_v31 }
 0x2af   : > { %v745_v25 = vld [vmem:[#allocation3 + $0x18] sm:$0xff] }
 0x2b0   : > { %1101 = vrcp.f32 %v745_v25 }
 0x2b1   : > { %v1096_v26 = vpop.eup %1095  ;;  %v619_v33 = vpop.permute.xlu1 %618 }
 0x2b2   : > { %752 = vperm.xlu1 %1078, %v1096_v26   ;;  %v624_v49 = vmul.f32 0.0, %v619_v33 }
 0x2b5   : > { %v1098_v27 = vpop.eup %1097 }
 0x2b6   : > { %757 = vperm.xlu0 %1077, %v1098_v27  }
 0x2b9   : > { %v1100_v28 = vpop.eup %1099 }
 0x2ba   : > { %762 = vperm.xlu1 %1078, %v1100_v28  }
 0x2bd   : > { %v1102_v29 = vpop.eup %1101 }
 0x2be   : > { %767 = vperm.xlu0 %1077, %v1102_v29  }
 0x2d3   : > { %v1014_v32 = vpop.f32.mrf.mxu1 }
 0x2d4   : > { %v724_v42 = vadd.f32 %v1014_v32, %v622_v40 }
 0x2d5   : > { %v704_v34 = vpop.f32.mrf.mxu1 }
 0x2d6   : > { %v723_v37 = vadd.f32 %v704_v34, %v621_v35 }
 0x2db   : > { %v1017_v38 = vpop.f32.mrf.mxu1 }
 0x2dc   : > { %v726_v51 = vadd.f32 %v1017_v38, %v624_v49 }
 0x2dd   : > { %v714_v43 = vpop.f32.mrf.mxu1 }
 0x2de   : > { %v725_v47 = vadd.f32 %v714_v43, %v623_v45 }
 0x32d   : > { %v753_v39 = vpop.permute.xlu1 %752 }
 0x32e   : > { %v770_v41 = vmul.f32 %v753_v39, %v723_v37 }
 0x330   : > { %774 = vst [vmem:[%s356_s24] sm:$0xff] %v770_v41 }
 0x331   : > { %v758_v44 = vpop.permute.xlu0 %757 }
 0x332   : > { %v771_v46 = vmul.f32 %v758_v44, %v724_v42 }
 0x334   : > { %775 = vst [vmem:[%s356_s24 + $0x8] sm:$0xff] %v771_v46 }
 0x335   : > { %v763_v48 = vpop.permute.xlu1 %762 }
 0x336   : > { %v772_v50 = vmul.f32 %v763_v48, %v725_v47 }
 0x337   : > { %v825_v54 = vld [vmem:[%s356_s24] sm:$0xff] (%p1235_p6) }
 0x338   : > { %776 = vst [vmem:[%s356_s24 + $0x10] sm:$0xff] %v772_v50  ;;  %784 = sbr.rel (!%p1235_p6) target bundleno = 837 (0x345), region = 86  ;;  %826 = vst [vmem:[%s790_s9] sm:$0xff] (%p1235_p6), %v825_v54 }
 0x339   : > { %v768_v52 = vpop.permute.xlu0 %767 }
 0x33a   : > { %v773_v53 = vmul.f32 %v768_v52, %v726_v51 }
 0x33b   : > { %v827_v55 = vld [vmem:[%s356_s24 + $0x8] sm:$0xff] (%p1235_p6) }
 0x33c   : > { %777 = vst [vmem:[%s356_s24 + $0x18] sm:$0xff] %v773_v53  ;;  %828 = vst [vmem:[%s790_s9 + $0x10] sm:$0xff] (%p1235_p6), %v827_v55 }
 0x33f   : > { %v829_v56 = vld [vmem:[%s356_s24 + $0x10] sm:$0xff] }
 0x340   : > { %830 = vst [vmem:[%s790_s9 + $0x20] sm:$0xff] %v829_v56 }
 0x343   : > { %v831_v57 = vld [vmem:[%s356_s24 + $0x18] sm:$0xff] }
 0x344   : > { %832 = vst [vmem:[%s790_s9 + $0x30] sm:$0xff] %v831_v57 }
 0x345 PF: > { %s14_s21 = sadd.s32 1, %s1157_s21   ;;  %s1351_s15 = smov %s1137_s16 }
 0x346   : > { %p11_p1 = scmp.ge.s32.totalorder %s14_s21, 6   ;;  %s1352_s16 = smov %s1243_s30 }
 0x347   : > { %s1353_s17 = smov %s1149_s19  ;;  %s1354_s18 = smov %s1153_s20 }
 0x348   : > { %s1355_s19 = smov %s1358_s22  ;;  %s1356_s20 = smov %s1362_s23 }
 0x349   :  { %13 = sbr.rel (!%p11_p1) target bundleno = 4 (0x4), region = 164 }

// kernel: ltxv_wrapper_forward.23
= control target key start
LH: loop header
LB: loop body
LE: loop exit
PB: predicated region body
PF: predicated region fallthrough
CT: control target
= control target key end

     0   :  { %s1572_s21 = smov 0   ;;  %s1574_s22 = smov 0   ;;  %s2122_s0 = inlined_call_operand.vmem [shape: f32[64,1024], index: 0, kind: input, shape index: {}]   ;;  %s2123_s1 = inlined_call_operand.vmem [shape: f32[1024,256], index: 1, kind: input, shape index: {}]   ;;  %s2124_s2 = inlined_call_operand.vmem [shape: f32[1,256], index: 2, kind: input, shape index: {}]   ;;  %s2125_s3 = inlined_call_operand.vmem [shape: f32[1,256], index: 3, kind: input, shape index: {}]   ;;  %s2126_s4 = inlined_call_operand.vmem [shape: f32[1,256], index: 4, kind: input, shape index: {}]   ;;  %s2127_s5 = inlined_call_operand.vmem [shape: f32[64,256], index: 5, kind: input, shape index: {}]   ;;  %s2128_s6 = inlined_call_operand.vmem [shape: f32[64,256], index: 6, kind: output, shape index: {}]  }
   0x1   :  { %s1576_s23 = smov 0   ;;  %s1578_s24 = smov 0  }
   0x2   :  { %s1580_s25 = smov 0  }
   0x3 LB: > { %s28_s26 = sadd.s32 1, %s1530_s24  ;;  %p51_p1 = scmp.ne.s32.totalorder %s1522_s22, %s1518_s21  ;;  %s1534_s25 = sphi %s1580_s25, %s16_s25   ;;  %s1530_s24 = sphi %s1578_s24, %s2132_s24   ;;  %s1526_s23 = sphi %s1576_s23, %s2131_s23   ;;  %s1522_s22 = sphi %s1574_s22, %s2130_s22   ;;  %s1518_s21 = sphi %s1572_s21, %s2129_s21  }
   0x4   : > { %p29_p0 = scmp.ge.s32.totalorder %s28_s26, 2  ;;  %p52_p2 = scmp.eq.s32.totalorder %s1534_s25, 0 }
   0x5   : > { %s44_s28 = sadd.s32 1, %s1522_s22  ;;  %p1422_p5 = scmp.ge.s32.totalorder %s1534_s25, 2 }
   0x6   : > { %s2134_s26 = smov (%p29_p0, %s28_s26), 0  ;;  %p53_p3 = por %p52_p2, %p51_p1 }
   0x7   : > { %s40_s27 = ssub.s32 %s1530_s24, %s2134_s26  ;;  %278 = sbr.rel (%p1422_p5) target bundleno = 32 (0x20), region = 32 }
   0x8   : > { %p42_p4 = scmp.eq.s32.totalorder %s40_s27, 0 }
   0xa   : > { %s1607_s29 = scalar_select %p42_p4, %s1522_s22, %s44_s28  }
   0xc   : > { %281 = sbr.rel (!%p53_p3) target bundleno = 32 (0x20), region = 36  ;;  %s283_s30 = sand.u32 (%p53_p3), 1, %s1522_s22  }
   0xd   : > { %s1437_s7 = sshll.u32 (%p53_p3), %s1530_s24, 5  ;;  %s1423_s8 = sshll.u32 (%p53_p3), %s283_s30, 8 }
   0xe   : > { %s1615_s11 = scalar_lea.vmem (%p53_p3), %s2122_s0, %s1437_s7  ;;  %s1620_s12 = scalar_lea.vmem (%p53_p3), [#allocation3], %s1423_s8 }
   0xf   : > { %v304_v0 = vld [vmem:[%s1615_s11] sm:$0xff] (%p53_p3)  ;;  %v306_v1 = vld [vmem:[%s1615_s11 + $0x8] sm:$0xff] (%p53_p3)  ;;  %v308_v2 = vld [vmem:[%s1615_s11 + $0x10] sm:$0xff] (%p53_p3) }
  0x10   : > { %305 = vst [vmem:[%s1620_s12] sm:$0xff] (%p53_p3), %v304_v0  ;;  %307 = vst [vmem:[%s1620_s12 + $0x8] sm:$0xff] (%p53_p3), %v306_v1  ;;  %v310_v3 = vld [vmem:[%s1615_s11 + $0x18] sm:$0xff] (%p53_p3)  ;;  %v312_v4 = vld [vmem:[%s1615_s11 + $0x40] sm:$0xff] (%p53_p3) }
  0x11   : > { %309 = vst [vmem:[%s1620_s12 + $0x10] sm:$0xff] %v308_v2  ;;  %v314_v5 = vld [vmem:[%s1615_s11 + $0x48] sm:$0xff]  ;;  %311 = vst [vmem:[%s1620_s12 + $0x18] sm:$0xff] %v310_v3  ;;  %v316_v6 = vld [vmem:[%s1615_s11 + $0x50] sm:$0xff] }
  0x12   : > { %313 = vst [vmem:[%s1620_s12 + $0x20] sm:$0xff] %v312_v4  ;;  %315 = vst [vmem:[%s1620_s12 + $0x28] sm:$0xff] %v314_v5  ;;  %v318_v7 = vld [vmem:[%s1615_s11 + $0x58] sm:$0xff]  ;;  %v320_v8 = vld [vmem:[%s1615_s11 + $0x80] sm:$0xff] }
  0x13   : > { %317 = vst [vmem:[%s1620_s12 + $0x30] sm:$0xff] %v316_v6  ;;  %319 = vst [vmem:[%s1620_s12 + $0x38] sm:$0xff] %v318_v7  ;;  %v322_v9 = vld [vmem:[%s1615_s11 + $0x88] sm:$0xff]  ;;  %v324_v10 = vld [vmem:[%s1615_s11 + $0x90] sm:$0xff] }
  0x14   : > { %321 = vst [vmem:[%s1620_s12 + $0x40] sm:$0xff] %v320_v8  ;;  %v326_v11 = vld [vmem:[%s1615_s11 + $0x98] sm:$0xff]  ;;  %323 = vst [vmem:[%s1620_s12 + $0x48] sm:$0xff] %v322_v9  ;;  %v328_v12 = vld [vmem:[%s1615_s11 + $0xc0] sm:$0xff] }
  0x15   : > { %325 = vst [vmem:[%s1620_s12 + $0x50] sm:$0xff] %v324_v10  ;;  %327 = vst [vmem:[%s1620_s12 + $0x58] sm:$0xff] %v326_v11  ;;  %v330_v13 = vld [vmem:[%s1615_s11 + $0xc8] sm:$0xff]  ;;  %v332_v14 = vld [vmem:[%s1615_s11 + $0xd0] sm:$0xff] }
  0x16   : > { %329 = vst [vmem:[%s1620_s12 + $0x60] sm:$0xff] %v328_v12  ;;  %331 = vst [vmem:[%s1620_s12 + $0x68] sm:$0xff] %v330_v13  ;;  %v334_v15 = vld [vmem:[%s1615_s11 + $0xd8] sm:$0xff]  ;;  %v336_v16 = vld [vmem:[%s1615_s11 + $0x100] sm:$0xff] }
  0x17   : > { %333 = vst [vmem:[%s1620_s12 + $0x70] sm:$0xff] %v332_v14  ;;  %v338_v17 = vld [vmem:[%s1615_s11 + $0x108] sm:$0xff]  ;;  %335 = vst [vmem:[%s1620_s12 + $0x78] sm:$0xff] %v334_v15  ;;  %v340_v18 = vld [vmem:[%s1615_s11 + $0x110] sm:$0xff] }
  0x18   : > { %337 = vst [vmem:[%s1620_s12 + $0x80] sm:$0xff] %v336_v16  ;;  %339 = vst [vmem:[%s1620_s12 + $0x88] sm:$0xff] %v338_v17  ;;  %v342_v19 = vld [vmem:[%s1615_s11 + $0x118] sm:$0xff]  ;;  %v344_v20 = vld [vmem:[%s1615_s11 + $0x140] sm:$0xff] }
  0x19   : > { %341 = vst [vmem:[%s1620_s12 + $0x90] sm:$0xff] %v340_v18  ;;  %343 = vst [vmem:[%s1620_s12 + $0x98] sm:$0xff] %v342_v19  ;;  %v346_v21 = vld [vmem:[%s1615_s11 + $0x148] sm:$0xff]  ;;  %v348_v22 = vld [vmem:[%s1615_s11 + $0x150] sm:$0xff] }
  0x1a   : > { %345 = vst [vmem:[%s1620_s12 + $0xa0] sm:$0xff] %v344_v20  ;;  %v350_v23 = vld [vmem:[%s1615_s11 + $0x158] sm:$0xff]  ;;  %347 = vst [vmem:[%s1620_s12 + $0xa8] sm:$0xff] %v346_v21  ;;  %v352_v24 = vld [vmem:[%s1615_s11 + $0x180] sm:$0xff] }
  0x1b   : > { %349 = vst [vmem:[%s1620_s12 + $0xb0] sm:$0xff] %v348_v22  ;;  %351 = vst [vmem:[%s1620_s12 + $0xb8] sm:$0xff] %v350_v23  ;;  %v354_v25 = vld [vmem:[%s1615_s11 + $0x188] sm:$0xff]  ;;  %v356_v26 = vld [vmem:[%s1615_s11 + $0x190] sm:$0xff] }
  0x1c   : > { %353 = vst [vmem:[%s1620_s12 + $0xc0] sm:$0xff] %v352_v24  ;;  %355 = vst [vmem:[%s1620_s12 + $0xc8] sm:$0xff] %v354_v25  ;;  %v358_v27 = vld [vmem:[%s1615_s11 + $0x198] sm:$0xff]  ;;  %v360_v28 = vld [vmem:[%s1615_s11 + $0x1c0] sm:$0xff] }
  0x1d   : > { %357 = vst [vmem:[%s1620_s12 + $0xd0] sm:$0xff] %v356_v26  ;;  %v362_v29 = vld [vmem:[%s1615_s11 + $0x1c8] sm:$0xff]  ;;  %359 = vst [vmem:[%s1620_s12 + $0xd8] sm:$0xff] %v358_v27  ;;  %v364_v30 = vld [vmem:[%s1615_s11 + $0x1d0] sm:$0xff] }
  0x1e   : > { %361 = vst [vmem:[%s1620_s12 + $0xe0] sm:$0xff] %v360_v28  ;;  %363 = vst [vmem:[%s1620_s12 + $0xe8] sm:$0xff] %v362_v29  ;;  %v366_v31 = vld [vmem:[%s1615_s11 + $0x1d8] sm:$0xff] }
  0x1f   : > { %365 = vst [vmem:[%s1620_s12 + $0xf0] sm:$0xff] %v364_v30  ;;  %367 = vst [vmem:[%s1620_s12 + $0xf8] sm:$0xff] %v366_v31 }
  0x20 PF: > { %p1426_p6 = scmp.ge.s32.totalorder %s1534_s25, 1  ;;  %p387_p7 = scmp.lt.s32.totalorder %s1534_s25, 3 }
  0x22   : > { %p388_p8 = pnand %p1426_p6, %p387_p7 }
  0x23   : > { %s394_s13 = sand.u32 (!%p388_p8), 1, %s1518_s21   ;;  %s1428_s14 = sshll.u32 (!%p388_p8), %s1526_s23, 6 }
  0x24   : > { %391 = sbr.rel (%p388_p8) target bundleno = 690 (0x2b2), region = 63  ;;  %s1427_s15 = sshll.u32 (!%p388_p8), %s394_s13, 8 }
  0x25   : > { %p464_p9 = scmp.lt.s32.totalorder (!%p388_p8), %s1428_s14, 127  ;;  %s1692_s20 = scalar_lea.vmem (!%p388_p8), [#allocation3], %s1427_s15 }
  0x26   : > { %p1431_p10 = scmp.ne.s32.totalorder (!%p388_p8), %s1526_s23, 0 }
  0x29   : > { %s2136_s14 = smov (!%p464_p9, %s1428_s14), 127  ;;  %516 = sbr.rel (%p1431_p10) target bundleno = 55 (0x37), region = 71 }
  0x2a   : > { %s1438_s16 = sshll.u32 %s2136_s14, 4 }
  0x2b   : > { %s1690_s19 = scalar_lea.vmem %s2123_s1, %s1438_s16 }
  0x2e   : > { %v1536_v32 = vmov 0.0  }
  0x2f   : > { %517 = vst [vmem:[#allocation2 + $0x30] sm:$0xff] %v1536_v32  ;;  %518 = vst [vmem:[#allocation2] sm:$0xff] %v1536_v32 }
  0x30   : > { %519 = vst [vmem:[#allocation2 + $0x58] sm:$0xff] %v1536_v32  ;;  %520 = vst [vmem:[#allocation2 + $0x18] sm:$0xff] %v1536_v32 }
  0x31   : > { %521 = vst [vmem:[#allocation2 + $0x50] sm:$0xff] %v1536_v32  ;;  %522 = vst [vmem:[#allocation2 + $0x68] sm:$0xff] %v1536_v32 }
  0x32   : > { %523 = vst [vmem:[#allocation2 + $0x8] sm:$0xff] %v1536_v32  ;;  %524 = vst [vmem:[#allocation2 + $0x48] sm:$0xff] %v1536_v32 }
  0x33   : > { %525 = vst [vmem:[#allocation2 + $0x40] sm:$0xff] %v1536_v32  ;;  %526 = vst [vmem:[#allocation2 + $0x20] sm:$0xff] %v1536_v32 }
  0x34   : > { %527 = vst [vmem:[#allocation2 + $0x10] sm:$0xff] %v1536_v32  ;;  %528 = vst [vmem:[#allocation2 + $0x38] sm:$0xff] %v1536_v32 }
  0x35   : > { %529 = vst [vmem:[#allocation2 + $0x60] sm:$0xff] %v1536_v32  ;;  %530 = vst [vmem:[#allocation2 + $0x70] sm:$0xff] %v1536_v32 }
  0x36   : > { %531 = vst [vmem:[#allocation2 + $0x78] sm:$0xff] %v1536_v32  ;;  %532 = vst [vmem:[#allocation2 + $0x28] sm:$0xff] %v1536_v32 }
  0x37 PF: > { %v612_v33 = vld [vmem:[%s1690_s19 + $0xf8] sm:$0xff]  ;;  %v611_v35 = vld [vmem:[%s1690_s19 + $0xf0] sm:$0xff]  ;;  %v610_v37 = vld [vmem:[%s1690_s19 + $0xe8] sm:$0xff]  ;;  %p1432_p11 = scmp.ne.s32.totalorder %s1526_s23, 1 }
  0x38   : > { %v676_v34 = vld [vmem:[%s1690_s19 + $0x2f8] sm:$0xff]  ;;  %709 = vmatprep.subr.mxu0 %v612_v33  ;;  %v675_v36 = vld [vmem:[%s1690_s19 + $0x2f0] sm:$0xff]  ;;  %v674_v38 = vld [vmem:[%s1690_s19 + $0x2e8] sm:$0xff] }
  0x39   : > { %822 = vmatprep.subr.mxu1 %v676_v34  ;;  %710 = vmatpush1.msra.mxu0 %v611_v35  ;;  %v609_v39 = vld [vmem:[%s1690_s19 + $0xe0] sm:$0xff]  ;;  %v608_v41 = vld [vmem:[%s1690_s19 + $0xd8] sm:$0xff]  ;;  %v607_v43 = vld [vmem:[%s1690_s19 + $0xd0] sm:$0xff] }
  0x3a   : > { %823 = vmatpush1.msra.mxu1 %v675_v36  ;;  %v673_v40 = vld [vmem:[%s1690_s19 + $0x2e0] sm:$0xff]  ;;  %711 = vmatprep.subr.mxu0 %v610_v37  ;;  %v672_v42 = vld [vmem:[%s1690_s19 + $0x2d8] sm:$0xff]  ;;  %v671_v44 = vld [vmem:[%s1690_s19 + $0x2d0] sm:$0xff] }
  0x3b   : > { %824 = vmatprep.subr.mxu1 %v674_v38  ;;  %712 = vmatpush1.msra.mxu0 %v609_v39  ;;  %v606_v45 = vld [vmem:[%s1690_s19 + $0xc8] sm:$0xff]  ;;  %v605_v47 = vld [vmem:[%s1690_s19 + $0xc0] sm:$0xff]  ;;  %v604_v49 = vld [vmem:[%s1690_s19 + $0xb8] sm:$0xff] }
  0x3c   : > { %825 = vmatpush1.msra.mxu1 %v673_v40  ;;  %v670_v46 = vld [vmem:[%s1690_s19 + $0x2c8] sm:$0xff]  ;;  %713 = vmatprep.subr.mxu0 %v608_v41  ;;  %v669_v48 = vld [vmem:[%s1690_s19 + $0x2c0] sm:$0xff]  ;;  %v668_v50 = vld [vmem:[%s1690_s19 + $0x2b8] sm:$0xff] }
  0x3d   : > { %826 = vmatprep.subr.mxu1 %v672_v42  ;;  %714 = vmatpush1.msra.mxu0 %v607_v43  ;;  %v603_v51 = vld [vmem:[%s1690_s19 + $0xb0] sm:$0xff]  ;;  %v602_v53 = vld [vmem:[%s1690_s19 + $0xa8] sm:$0xff]  ;;  %v601_v55 = vld [vmem:[%s1690_s19 + $0xa0] sm:$0xff] }
  0x3e   : > { %827 = vmatpush1.msra.mxu1 %v671_v44  ;;  %715 = vmatprep.subr.mxu0 %v606_v45  ;;  %v667_v52 = vld [vmem:[%s1690_s19 + $0x2b0] sm:$0xff]  ;;  %v666_v54 = vld [vmem:[%s1690_s19 + $0x2a8] sm:$0xff]  ;;  %v665_v56 = vld [vmem:[%s1690_s19 + $0x2a0] sm:$0xff] }
  0x3f   : > { %828 = vmatprep.subr.mxu1 %v670_v46  ;;  %716 = vmatpush1.msra.mxu0 %v605_v47  ;;  %v600_v57 = vld [vmem:[%s1690_s19 + $0x98] sm:$0xff]  ;;  %v599_v59 = vld [vmem:[%s1690_s19 + $0x90] sm:$0xff]  ;;  %v598_v61 = vld [vmem:[%s1690_s19 + $0x88] sm:$0xff] }
  0x40   : > { %829 = vmatpush1.msra.mxu1 %v669_v48  ;;  %717 = vmatprep.subr.mxu0 %v604_v49  ;;  %v664_v58 = vld [vmem:[%s1690_s19 + $0x298] sm:$0xff]  ;;  %v663_v60 = vld [vmem:[%s1690_s19 + $0x290] sm:$0xff]  ;;  %v662_v62 = vld [vmem:[%s1690_s19 + $0x288] sm:$0xff] }
  0x41   : > { %830 = vmatprep.subr.mxu1 %v668_v50  ;;  %718 = vmatpush1.msra.mxu0 %v603_v51  ;;  %v597_v63 = vld [vmem:[%s1690_s19 + $0x80] sm:$0xff]  ;;  %v596_v1 = vld [vmem:[%s1690_s19 + $0x78] sm:$0xff]  ;;  %v595_v3 = vld [vmem:[%s1690_s19 + $0x70] sm:$0xff] }
  0x42   : > { %831 = vmatpush1.msra.mxu1 %v667_v52  ;;  %719 = vmatprep.subr.mxu0 %v602_v53  ;;  %v661_v0 = vld [vmem:[%s1690_s19 + $0x280] sm:$0xff]  ;;  %v660_v2 = vld [vmem:[%s1690_s19 + $0x278] sm:$0xff]  ;;  %v659_v4 = vld [vmem:[%s1690_s19 + $0x270] sm:$0xff] }
  0x43   : > { %832 = vmatprep.subr.mxu1 %v666_v54  ;;  %720 = vmatpush1.msra.mxu0 %v601_v55  ;;  %v594_v5 = vld [vmem:[%s1690_s19 + $0x68] sm:$0xff]  ;;  %v593_v7 = vld [vmem:[%s1690_s19 + $0x60] sm:$0xff]  ;;  %v592_v9 = vld [vmem:[%s1690_s19 + $0x58] sm:$0xff] }
  0x44   : > { %833 = vmatpush1.msra.mxu1 %v665_v56  ;;  %721 = vmatprep.subr.mxu0 %v600_v57  ;;  %v658_v6 = vld [vmem:[%s1690_s19 + $0x268] sm:$0xff]  ;;  %v657_v8 = vld [vmem:[%s1690_s19 + $0x260] sm:$0xff]  ;;  %v656_v10 = vld [vmem:[%s1690_s19 + $0x258] sm:$0xff] }
  0x45   : > { %834 = vmatprep.subr.mxu1 %v664_v58  ;;  %722 = vmatpush1.msra.mxu0 %v599_v59  ;;  %v591_v11 = vld [vmem:[%s1690_s19 + $0x50] sm:$0xff]  ;;  %v590_v13 = vld [vmem:[%s1690_s19 + $0x48] sm:$0xff]  ;;  %v589_v15 = vld [vmem:[%s1690_s19 + $0x40] sm:$0xff] }
  0x46   : > { %835 = vmatpush1.msra.mxu1 %v663_v60  ;;  %723 = vmatprep.subr.mxu0 %v598_v61  ;;  %v655_v12 = vld [vmem:[%s1690_s19 + $0x250] sm:$0xff]  ;;  %v654_v14 = vld [vmem:[%s1690_s19 + $0x248] sm:$0xff]  ;;  %v653_v16 = vld [vmem:[%s1690_s19 + $0x240] sm:$0xff] }
  0x47   : > { %836 = vmatprep.subr.mxu1 %v662_v62  ;;  %724 = vmatpush1.msra.mxu0 %v597_v63  ;;  %v588_v17 = vld [vmem:[%s1690_s19 + $0x38] sm:$0xff]  ;;  %v587_v19 = vld [vmem:[%s1690_s19 + $0x30] sm:$0xff]  ;;  %v586_v21 = vld [vmem:[%s1690_s19 + $0x28] sm:$0xff] }
  0x48   : > { %837 = vmatpush1.msra.mxu1 %v661_v0  ;;  %725 = vmatprep.subr.mxu0 %v596_v1  ;;  %v652_v18 = vld [vmem:[%s1690_s19 + $0x238] sm:$0xff]  ;;  %v651_v20 = vld [vmem:[%s1690_s19 + $0x230] sm:$0xff]  ;;  %v650_v22 = vld [vmem:[%s1690_s19 + $0x228] sm:$0xff] }
  0x49   : > { %838 = vmatprep.subr.mxu1 %v660_v2  ;;  %726 = vmatpush1.msra.mxu0 %v595_v3  ;;  %v585_v23 = vld [vmem:[%s1690_s19 + $0x20] sm:$0xff]  ;;  %v584_v25 = vld [vmem:[%s1690_s19 + $0x18] sm:$0xff]  ;;  %v583_v27 = vld [vmem:[%s1690_s19 + $0x10] sm:$0xff] }
  0x4a   : > { %839 = vmatpush1.msra.mxu1 %v659_v4  ;;  %727 = vmatprep.subr.mxu0 %v594_v5  ;;  %v649_v24 = vld [vmem:[%s1690_s19 + $0x220] sm:$0xff]  ;;  %v648_v26 = vld [vmem:[%s1690_s19 + $0x218] sm:$0xff]  ;;  %v647_v28 = vld [vmem:[%s1690_s19 + $0x210] sm:$0xff] }
  0x4b   : > { %840 = vmatprep.subr.mxu1 %v658_v6  ;;  %728 = vmatpush1.msra.mxu0 %v593_v7  ;;  %v582_v29 = vld [vmem:[%s1690_s19 + $0x8] sm:$0xff]  ;;  %v581_v31 = vld [vmem:[%s1690_s19] sm:$0xff]  ;;  %v644_v33 = vld [vmem:[%s1690_s19 + $0x1f8] sm:$0xff] }
  0x4c   : > { %841 = vmatpush1.msra.mxu1 %v657_v8  ;;  %729 = vmatprep.subr.mxu0 %v592_v9  ;;  %v646_v30 = vld [vmem:[%s1690_s19 + $0x208] sm:$0xff]  ;;  %v645_v32 = vld [vmem:[%s1690_s19 + $0x200] sm:$0xff]  ;;  %v708_v34 = vld [vmem:[%s1690_s19 + $0x3f8] sm:$0xff] }
  0x4d   : > { %842 = vmatprep.subr.mxu1 %v656_v10  ;;  %730 = vmatpush1.msra.mxu0 %v591_v11  ;;  %v643_v35 = vld [vmem:[%s1690_s19 + $0x1f0] sm:$0xff]  ;;  %v642_v37 = vld [vmem:[%s1690_s19 + $0x1e8] sm:$0xff]  ;;  %v641_v39 = vld [vmem:[%s1690_s19 + $0x1e0] sm:$0xff] }
  0x4e   : > { %843 = vmatpush1.msra.mxu1 %v655_v12  ;;  %731 = vmatprep.subr.mxu0 %v590_v13  ;;  %v707_v36 = vld [vmem:[%s1690_s19 + $0x3f0] sm:$0xff]  ;;  %v706_v38 = vld [vmem:[%s1690_s19 + $0x3e8] sm:$0xff]  ;;  %v705_v40 = vld [vmem:[%s1690_s19 + $0x3e0] sm:$0xff] }
  0x4f   : > { %844 = vmatprep.subr.mxu1 %v654_v14  ;;  %732 = vmatpush1.msra.mxu0 %v589_v15  ;;  %v640_v41 = vld [vmem:[%s1690_s19 + $0x1d8] sm:$0xff]  ;;  %v639_v43 = vld [vmem:[%s1690_s19 + $0x1d0] sm:$0xff]  ;;  %v638_v45 = vld [vmem:[%s1690_s19 + $0x1c8] sm:$0xff] }
  0x50   : > { %845 = vmatpush1.msra.mxu1 %v653_v16  ;;  %733 = vmatprep.subr.mxu0 %v588_v17  ;;  %v704_v42 = vld [vmem:[%s1690_s19 + $0x3d8] sm:$0xff]  ;;  %v703_v44 = vld [vmem:[%s1690_s19 + $0x3d0] sm:$0xff]  ;;  %v702_v46 = vld [vmem:[%s1690_s19 + $0x3c8] sm:$0xff] }
  0x51   : > { %846 = vmatprep.subr.mxu1 %v652_v18  ;;  %734 = vmatpush1.msra.mxu0 %v587_v19  ;;  %v637_v47 = vld [vmem:[%s1690_s19 + $0x1c0] sm:$0xff]  ;;  %v636_v49 = vld [vmem:[%s1690_s19 + $0x1b8] sm:$0xff]  ;;  %v635_v51 = vld [vmem:[%s1690_s19 + $0x1b0] sm:$0xff] }
  0x52   : > { %847 = vmatpush1.msra.mxu1 %v651_v20  ;;  %735 = vmatprep.subr.mxu0 %v586_v21  ;;  %v701_v48 = vld [vmem:[%s1690_s19 + $0x3c0] sm:$0xff]  ;;  %v700_v50 = vld [vmem:[%s1690_s19 + $0x3b8] sm:$0xff]  ;;  %v699_v52 = vld [vmem:[%s1690_s19 + $0x3b0] sm:$0xff] }
  0x53   : > { %848 = vmatprep.subr.mxu1 %v650_v22  ;;  %736 = vmatpush1.msra.mxu0 %v585_v23  ;;  %v634_v53 = vld [vmem:[%s1690_s19 + $0x1a8] sm:$0xff]  ;;  %v633_v55 = vld [vmem:[%s1690_s19 + $0x1a0] sm:$0xff]  ;;  %v632_v57 = vld [vmem:[%s1690_s19 + $0x198] sm:$0xff] }
  0x54   : > { %849 = vmatpush1.msra.mxu1 %v649_v24  ;;  %737 = vmatprep.subr.mxu0 %v584_v25  ;;  %v698_v54 = vld [vmem:[%s1690_s19 + $0x3a8] sm:$0xff]  ;;  %v697_v56 = vld [vmem:[%s1690_s19 + $0x3a0] sm:$0xff]  ;;  %v696_v58 = vld [vmem:[%s1690_s19 + $0x398] sm:$0xff] }
  0x55   : > { %850 = vmatprep.subr.mxu1 %v648_v26  ;;  %738 = vmatpush1.msra.mxu0 %v583_v27  ;;  %v631_v59 = vld [vmem:[%s1690_s19 + $0x190] sm:$0xff]  ;;  %v630_v61 = vld [vmem:[%s1690_s19 + $0x188] sm:$0xff]  ;;  %v629_v63 = vld [vmem:[%s1690_s19 + $0x180] sm:$0xff] }
  0x56   : > { %851 = vmatpush1.msra.mxu1 %v647_v28  ;;  %739 = vmatprep.subr.mxu0 %v582_v29  ;;  %v695_v60 = vld [vmem:[%s1690_s19 + $0x390] sm:$0xff]  ;;  %v694_v62 = vld [vmem:[%s1690_s19 + $0x388] sm:$0xff]  ;;  %v693_v0 = vld [vmem:[%s1690_s19 + $0x380] sm:$0xff] }
  0x57   : > { %852 = vmatprep.subr.mxu1 %v646_v30  ;;  %740 = vmatpush1.msra.mxu0 %v581_v31  ;;  %v628_v1 = vld [vmem:[%s1690_s19 + $0x178] sm:$0xff]  ;;  %v627_v3 = vld [vmem:[%s1690_s19 + $0x170] sm:$0xff]  ;;  %v626_v5 = vld [vmem:[%s1690_s19 + $0x168] sm:$0xff] }
  0x58   : > { %853 = vmatpush1.msra.mxu1 %v645_v32  ;;  %741 = vmatprep.subr.mxu0 %v644_v33  ;;  %v692_v2 = vld [vmem:[%s1690_s19 + $0x378] sm:$0xff]  ;;  %v691_v4 = vld [vmem:[%s1690_s19 + $0x370] sm:$0xff]  ;;  %v690_v6 = vld [vmem:[%s1690_s19 + $0x368] sm:$0xff] }
  0x59   : > { %854 = vmatprep.subr.mxu1 %v708_v34  ;;  %742 = vmatpush2.msra.mxu0 %v643_v35  ;;  %v625_v7 = vld [vmem:[%s1690_s19 + $0x160] sm:$0xff]  ;;  %v624_v9 = vld [vmem:[%s1690_s19 + $0x158] sm:$0xff]  ;;  %v623_v11 = vld [vmem:[%s1690_s19 + $0x150] sm:$0xff] }
  0x5a   : > { %855 = vmatpush2.msra.mxu1 %v707_v36  ;;  %743 = vmatprep.subr.mxu0 %v642_v37  ;;  %v689_v8 = vld [vmem:[%s1690_s19 + $0x360] sm:$0xff]  ;;  %v688_v10 = vld [vmem:[%s1690_s19 + $0x358] sm:$0xff]  ;;  %v687_v12 = vld [vmem:[%s1690_s19 + $0x350] sm:$0xff] }
  0x5b   : > { %856 = vmatprep.subr.mxu1 %v706_v38  ;;  %744 = vmatpush2.msra.mxu0 %v641_v39  ;;  %v622_v13 = vld [vmem:[%s1690_s19 + $0x148] sm:$0xff]  ;;  %v621_v15 = vld [vmem:[%s1690_s19 + $0x140] sm:$0xff]  ;;  %v620_v17 = vld [vmem:[%s1690_s19 + $0x138] sm:$0xff] }
  0x5c   : > { %857 = vmatpush2.msra.mxu1 %v705_v40  ;;  %745 = vmatprep.subr.mxu0 %v640_v41  ;;  %v686_v14 = vld [vmem:[%s1690_s19 + $0x348] sm:$0xff]  ;;  %v685_v16 = vld [vmem:[%s1690_s19 + $0x340] sm:$0xff]  ;;  %v684_v18 = vld [vmem:[%s1690_s19 + $0x338] sm:$0xff] }
  0x5d   : > { %858 = vmatprep.subr.mxu1 %v704_v42  ;;  %746 = vmatpush2.msra.mxu0 %v639_v43  ;;  %v619_v19 = vld [vmem:[%s1690_s19 + $0x130] sm:$0xff]  ;;  %v618_v21 = vld [vmem:[%s1690_s19 + $0x128] sm:$0xff]  ;;  %v617_v23 = vld [vmem:[%s1690_s19 + $0x120] sm:$0xff] }
  0x5e   : > { %859 = vmatpush2.msra.mxu1 %v703_v44  ;;  %747 = vmatprep.subr.mxu0 %v638_v45  ;;  %v683_v20 = vld [vmem:[%s1690_s19 + $0x330] sm:$0xff]  ;;  %v682_v22 = vld [vmem:[%s1690_s19 + $0x328] sm:$0xff]  ;;  %v681_v24 = vld [vmem:[%s1690_s19 + $0x320] sm:$0xff] }
  0x5f   : > { %860 = vmatprep.subr.mxu1 %v702_v46  ;;  %748 = vmatpush2.msra.mxu0 %v637_v47  ;;  %v616_v25 = vld [vmem:[%s1690_s19 + $0x118] sm:$0xff]  ;;  %v615_v27 = vld [vmem:[%s1690_s19 + $0x110] sm:$0xff]  ;;  %v614_v29 = vld [vmem:[%s1690_s19 + $0x108] sm:$0xff] }
  0x60   : > { %861 = vmatpush2.msra.mxu1 %v701_v48  ;;  %749 = vmatprep.subr.mxu0 %v636_v49  ;;  %v680_v26 = vld [vmem:[%s1690_s19 + $0x318] sm:$0xff]  ;;  %v679_v28 = vld [vmem:[%s1690_s19 + $0x310] sm:$0xff]  ;;  %v678_v30 = vld [vmem:[%s1690_s19 + $0x308] sm:$0xff] }
  0x61   : > { %862 = vmatprep.subr.mxu1 %v700_v50  ;;  %750 = vmatpush2.msra.mxu0 %v635_v51  ;;  %v613_v31 = vld [vmem:[%s1690_s19 + $0x100] sm:$0xff]  ;;  %v534_v32 = vld [vmem:[%s1692_s20 + $0x8] sm:$0xff]  ;;  %v536_v34 = vld [vmem:[%s1692_s20 + $0x18] sm:$0xff] }
  0x62   : > { %863 = vmatpush2.msra.mxu1 %v699_v52  ;;  %751 = vmatprep.subr.mxu0 %v634_v53  ;;  %v677_v33 = vld [vmem:[%s1690_s19 + $0x300] sm:$0xff]  ;;  %v535_v36 = vld [vmem:[%s1692_s20 + $0x10] sm:$0xff]  ;;  %v538_v37 = vld [vmem:[%s1692_s20 + $0x28] sm:$0xff] }
  0x63   : > { %864 = vmatprep.subr.mxu1 %v698_v54  ;;  %752 = vmatpush2.msra.mxu0 %v633_v55  ;;  %v533_v35 = vld [vmem:[%s1692_s20] sm:$0xff]  ;;  %v540_v38 = vld [vmem:[%s1692_s20 + $0x38] sm:$0xff]  ;;  %v539_v40 = vld [vmem:[%s1692_s20 + $0x30] sm:$0xff] }
  0x64   : > { %865 = vmatpush2.msra.mxu1 %v697_v56  ;;  %753 = vmatprep.subr.mxu0 %v632_v57  ;;  %v537_v39 = vld [vmem:[%s1692_s20 + $0x20] sm:$0xff]  ;;  %v542_v41 = vld [vmem:[%s1692_s20 + $0x48] sm:$0xff]  ;;  %v544_v42 = vld [vmem:[%s1692_s20 + $0x58] sm:$0xff] }
  0x65   : > { %866 = vmatprep.subr.mxu1 %v696_v58  ;;  %754 = vmatpush2.msra.mxu0 %v631_v59  ;;  %v541_v43 = vld [vmem:[%s1692_s20 + $0x40] sm:$0xff]  ;;  %v543_v44 = vld [vmem:[%s1692_s20 + $0x50] sm:$0xff]  ;;  %v546_v45 = vld [vmem:[%s1692_s20 + $0x68] sm:$0xff] }
  0x66   : > { %867 = vmatpush2.msra.mxu1 %v695_v60  ;;  %755 = vmatprep.subr.mxu0 %v630_v61  ;;  %v548_v46 = vld [vmem:[%s1692_s20 + $0x78] sm:$0xff]  ;;  %v545_v47 = vld [vmem:[%s1692_s20 + $0x60] sm:$0xff]  ;;  %v547_v48 = vld [vmem:[%s1692_s20 + $0x70] sm:$0xff] }
  0x67   : > { %868 = vmatprep.subr.mxu1 %v694_v62  ;;  %756 = vmatpush2.msra.mxu0 %v629_v63  ;;  %v550_v49 = vld [vmem:[%s1692_s20 + $0x88] sm:$0xff]  ;;  %v552_v50 = vld [vmem:[%s1692_s20 + $0x98] sm:$0xff]  ;;  %v549_v51 = vld [vmem:[%s1692_s20 + $0x80] sm:$0xff] }
  0x68   : > { %869 = vmatpush2.msra.mxu1 %v693_v0  ;;  %757 = vmatprep.subr.mxu0 %v628_v1  ;;  %v551_v52 = vld [vmem:[%s1692_s20 + $0x90] sm:$0xff]  ;;  %v554_v53 = vld [vmem:[%s1692_s20 + $0xa8] sm:$0xff]  ;;  %v556_v54 = vld [vmem:[%s1692_s20 + $0xb8] sm:$0xff] }
  0x69   : > { %870 = vmatprep.subr.mxu1 %v692_v2  ;;  %758 = vmatpush2.msra.mxu0 %v627_v3  ;;  %v553_v55 = vld [vmem:[%s1692_s20 + $0xa0] sm:$0xff]  ;;  %v555_v56 = vld [vmem:[%s1692_s20 + $0xb0] sm:$0xff]  ;;  %v558_v57 = vld [vmem:[%s1692_s20 + $0xc8] sm:$0xff] }
  0x6a   : > { %871 = vmatpush2.msra.mxu1 %v691_v4  ;;  %759 = vmatprep.subr.mxu0 %v626_v5  ;;  %v560_v58 = vld [vmem:[%s1692_s20 + $0xd8] sm:$0xff]  ;;  %v557_v59 = vld [vmem:[%s1692_s20 + $0xc0] sm:$0xff]  ;;  %v559_v60 = vld [vmem:[%s1692_s20 + $0xd0] sm:$0xff] }
  0x6b   : > { %872 = vmatprep.subr.mxu1 %v690_v6  ;;  %760 = vmatpush2.msra.mxu0 %v625_v7  ;;  %v562_v61 = vld [vmem:[%s1692_s20 + $0xe8] sm:$0xff]  ;;  %v564_v62 = vld [vmem:[%s1692_s20 + $0xf8] sm:$0xff]  ;;  %v561_v63 = vld [vmem:[%s1692_s20 + $0xe0] sm:$0xff] }
  0x6c   : > { %873 = vmatpush2.msra.mxu1 %v689_v8  ;;  %761 = vmatprep.subr.mxu0 %v624_v9  ;;  %v563_v0 = vld [vmem:[%s1692_s20 + $0xf0] sm:$0xff]  ;;  %v566_v6 = vld [vmem:[#allocation2] sm:$0xff] }
  0x6d   : > { %874 = vmatprep.subr.mxu1 %v688_v10  ;;  %762 = vmatpush2.msra.mxu0 %v623_v11  ;;  %v565_v2 = vld [vmem:[#allocation2 + $0x30] sm:$0xff]  ;;  %v567_v11 = vld [vmem:[#allocation2 + $0x58] sm:$0xff] }
  0x6e   : > { %875 = vmatpush2.msra.mxu1 %v687_v12  ;;  %763 = vmatprep.subr.mxu0 %v622_v13 }
  0x6f   : > { %876 = vmatprep.subr.mxu1 %v686_v14  ;;  %764 = vmatpush2.msra.mxu0 %v621_v15 }
  0x70   : > { %877 = vmatpush2.msra.mxu1 %v685_v16  ;;  %765 = vmatprep.subr.mxu0 %v620_v17  ;;  %v568_v16 = vld [vmem:[#allocation2 + $0x18] sm:$0xff] }
  0x71   : > { %878 = vmatprep.subr.mxu1 %v684_v18  ;;  %766 = vmatpush2.msra.mxu0 %v619_v19 }
  0x72   : > { %879 = vmatpush2.msra.mxu1 %v683_v20  ;;  %767 = vmatprep.subr.mxu0 %v618_v21  ;;  %v569_v21 = vld [vmem:[#allocation2 + $0x50] sm:$0xff] }
  0x73   : > { %880 = vmatprep.subr.mxu1 %v682_v22  ;;  %768 = vmatpush2.msra.mxu0 %v617_v23 }
  0x74   : > { %881 = vmatpush2.msra.mxu1 %v681_v24  ;;  %769 = vmatprep.subr.mxu0 %v616_v25 }
  0x75   : > { %882 = vmatprep.subr.mxu1 %v680_v26  ;;  %770 = vmatpush2.msra.mxu0 %v615_v27  ;;  %v570_v26 = vld [vmem:[#allocation2 + $0x68] sm:$0xff] }
  0x76   : > { %883 = vmatpush2.msra.mxu1 %v679_v28  ;;  %771 = vmatprep.subr.mxu0 %v614_v29 }
  0x77   : > { %884 = vmatprep.subr.mxu1 %v678_v30  ;;  %772 = vmatpush2.msra.mxu0 %v613_v31  ;;  %v571_v31 = vld [vmem:[#allocation2 + $0x8] sm:$0xff] }
  0x78   : > { %773 = vmatprep.mubr.f32.mxu0 %v534_v32  ;;  %885 = vmatpush2.msra.mxu1 %v677_v33 }
  0x79   : > { %886 = vmatprep.mubr.f32.mxu1 %v536_v34  ;;  %774 = vmatmul.mubr.f32.vlgmr.msra.gmra.mxu0 %v533_v35 }
  0x7a   : > { %887 = vmatmul.mubr.f32.vlgmr.msra.gmra.mxu1 %v535_v36  ;;  %779 = vmatprep.mubr.f32.mxu0 %v538_v37  ;;  %v572_v36 = vld [vmem:[#allocation2 + $0x48] sm:$0xff] }
  0x7b   : > { %892 = vmatprep.mubr.f32.mxu1 %v540_v38 }
  0x7d   : > { %780 = vmatmul.mubr.f32.gmra.mxu0 %v537_v39 }
  0x7e   : > { %893 = vmatmul.mubr.f32.gmra.mxu1 %v539_v40  ;;  %785 = vmatprep.mubr.f32.mxu0 %v542_v41  ;;  %v573_v41 = vld [vmem:[#allocation2 + $0x40] sm:$0xff] }
  0x7f   : > { %898 = vmatprep.mubr.f32.mxu1 %v544_v42 }
  0x81   : > { %786 = vmatmul.mubr.f32.gmra.mxu0 %v541_v43 }
  0x82   : > { %899 = vmatmul.mubr.f32.gmra.mxu1 %v543_v44  ;;  %791 = vmatprep.mubr.f32.mxu0 %v546_v45 }
  0x83   : > { %904 = vmatprep.mubr.f32.mxu1 %v548_v46  ;;  %v574_v46 = vld [vmem:[#allocation2 + $0x20] sm:$0xff] }
  0x85   : > { %792 = vmatmul.mubr.f32.gmra.mxu0 %v545_v47 }
  0x86   : > { %905 = vmatmul.mubr.f32.gmra.mxu1 %v547_v48  ;;  %797 = vmatprep.mubr.f32.mxu0 %v550_v49 }
  0x87   : > { %910 = vmatprep.mubr.f32.mxu1 %v552_v50 }
  0x89   : > { %798 = vmatmul.mubr.f32.gmra.mxu0 %v549_v51  ;;  %v575_v51 = vld [vmem:[#allocation2 + $0x10] sm:$0xff] }
  0x8a   : > { %911 = vmatmul.mubr.f32.gmra.mxu1 %v551_v52  ;;  %803 = vmatprep.mubr.f32.mxu0 %v554_v53 }
  0x8b   : > { %916 = vmatprep.mubr.f32.mxu1 %v556_v54 }
  0x8d   : > { %804 = vmatmul.mubr.f32.gmra.mxu0 %v553_v55 }
  0x8e   : > { %917 = vmatmul.mubr.f32.gmra.mxu1 %v555_v56  ;;  %809 = vmatprep.mubr.f32.mxu0 %v558_v57  ;;  %v576_v56 = vld [vmem:[#allocation2 + $0x38] sm:$0xff] }
  0x8f   : > { %922 = vmatprep.mubr.f32.mxu1 %v560_v58 }
  0x91   : > { %810 = vmatmul.mubr.f32.gmra.mxu0 %v557_v59 }
  0x92   : > { %923 = vmatmul.mubr.f32.gmra.mxu1 %v559_v60  ;;  %815 = vmatprep.mubr.f32.mxu0 %v562_v61  ;;  %v577_v61 = vld [vmem:[#allocation2 + $0x60] sm:$0xff] }
  0x93   : > { %928 = vmatprep.mubr.f32.mxu1 %v564_v62 }
  0x95   : > { %816 = vmatmul.mubr.f32.gmra.mxu0 %v561_v63 }
  0x96   : > { %929 = vmatmul.mubr.f32.gmra.mxu1 %v563_v0 }
 0x139   : > { %v775_v1 = vpop.f32.mrf.mxu0 }
 0x13a   : > { %v888_v3 = vpop.f32.mrf.mxu1 }
 0x13b   : > { %v889_v4 = vadd.f32 %v888_v3, %v775_v1  ;;  %v777_v5 = vpop.f32.mrf.mxu0 }
 0x13c   : > { %v890_v7 = vpop.f32.mrf.mxu1 }
 0x13d   : > { %v935_v8 = vadd.f32 %v889_v4, %v565_v2  ;;  %v891_v9 = vadd.f32 %v890_v7, %v777_v5  ;;  %v781_v10 = vpop.f32.mrf.mxu0  ;;  %v578_v2 = vld [vmem:[#allocation2 + $0x70] sm:$0xff]  ;;  %v579_v7 = vld [vmem:[#allocation2 + $0x78] sm:$0xff] }
 0x13e   : > { %v894_v12 = vpop.f32.mrf.mxu1 }
 0x13f   : > { %951 = vst [vmem:[#allocation2 + $0x30] sm:$0xff] %v935_v8  ;;  %v936_v13 = vadd.f32 %v891_v9, %v566_v6  ;;  %v895_v14 = vadd.f32 %v894_v12, %v781_v10  ;;  %v783_v15 = vpop.f32.mrf.mxu0  ;;  %v580_v12 = vld [vmem:[#allocation2 + $0x28] sm:$0xff] }
 0x140   : > { %v896_v17 = vpop.f32.mrf.mxu1 }
 0x141   : > { %952 = vst [vmem:[#allocation2] sm:$0xff] %v936_v13  ;;  %v937_v18 = vadd.f32 %v895_v14, %v567_v11  ;;  %v897_v19 = vadd.f32 %v896_v17, %v783_v15  ;;  %v787_v20 = vpop.f32.mrf.mxu0 }
 0x142   : > { %v900_v22 = vpop.f32.mrf.mxu1 }
 0x143   : > { %953 = vst [vmem:[#allocation2 + $0x58] sm:$0xff] %v937_v18  ;;  %v938_v23 = vadd.f32 %v897_v19, %v568_v16  ;;  %v901_v24 = vadd.f32 %v900_v22, %v787_v20  ;;  %v789_v25 = vpop.f32.mrf.mxu0 }
 0x144   : > { %v902_v27 = vpop.f32.mrf.mxu1 }
 0x145   : > { %954 = vst [vmem:[#allocation2 + $0x18] sm:$0xff] %v938_v23  ;;  %v939_v28 = vadd.f32 %v901_v24, %v569_v21  ;;  %v903_v29 = vadd.f32 %v902_v27, %v789_v25  ;;  %v793_v30 = vpop.f32.mrf.mxu0 }
 0x146   : > { %v906_v32 = vpop.f32.mrf.mxu1 }
 0x147   : > { %955 = vst [vmem:[#allocation2 + $0x50] sm:$0xff] %v939_v28  ;;  %v940_v33 = vadd.f32 %v903_v29, %v570_v26  ;;  %v907_v34 = vadd.f32 %v906_v32, %v793_v30  ;;  %v795_v35 = vpop.f32.mrf.mxu0 }
 0x148   : > { %v908_v37 = vpop.f32.mrf.mxu1 }
 0x149   : > { %956 = vst [vmem:[#allocation2 + $0x68] sm:$0xff] %v940_v33  ;;  %v941_v38 = vadd.f32 %v907_v34, %v571_v31  ;;  %v909_v39 = vadd.f32 %v908_v37, %v795_v35  ;;  %v799_v40 = vpop.f32.mrf.mxu0 }
 0x14a   : > { %v912_v42 = vpop.f32.mrf.mxu1 }
 0x14b   : > { %957 = vst [vmem:[#allocation2 + $0x8] sm:$0xff] %v941_v38  ;;  %v942_v43 = vadd.f32 %v909_v39, %v572_v36  ;;  %v913_v44 = vadd.f32 %v912_v42, %v799_v40  ;;  %v801_v45 = vpop.f32.mrf.mxu0 }
 0x14c   : > { %v914_v47 = vpop.f32.mrf.mxu1 }
 0x14d   : > { %958 = vst [vmem:[#allocation2 + $0x48] sm:$0xff] %v942_v43  ;;  %v943_v48 = vadd.f32 %v913_v44, %v573_v41  ;;  %v915_v49 = vadd.f32 %v914_v47, %v801_v45  ;;  %v805_v50 = vpop.f32.mrf.mxu0 }
 0x14e   : > { %v918_v52 = vpop.f32.mrf.mxu1 }
 0x14f   : > { %959 = vst [vmem:[#allocation2 + $0x40] sm:$0xff] %v943_v48  ;;  %v944_v53 = vadd.f32 %v915_v49, %v574_v46  ;;  %v919_v54 = vadd.f32 %v918_v52, %v805_v50  ;;  %v807_v55 = vpop.f32.mrf.mxu0 }
 0x150   : > { %v920_v57 = vpop.f32.mrf.mxu1 }
 0x151   : > { %960 = vst [vmem:[#allocation2 + $0x20] sm:$0xff] %v944_v53  ;;  %v945_v58 = vadd.f32 %v919_v54, %v575_v51  ;;  %v921_v59 = vadd.f32 %v920_v57, %v807_v55  ;;  %v811_v60 = vpop.f32.mrf.mxu0 }
 0x152   : > { %v924_v62 = vpop.f32.mrf.mxu1 }
 0x153   : > { %961 = vst [vmem:[#allocation2 + $0x10] sm:$0xff] %v945_v58  ;;  %v946_v63 = vadd.f32 %v921_v59, %v576_v56  ;;  %v925_v0 = vadd.f32 %v924_v62, %v811_v60  ;;  %v813_v1 = vpop.f32.mrf.mxu0 }
 0x154   : > { %v926_v3 = vpop.f32.mrf.mxu1 }
 0x155   : > { %962 = vst [vmem:[#allocation2 + $0x38] sm:$0xff] %v946_v63  ;;  %v947_v4 = vadd.f32 %v925_v0, %v577_v61  ;;  %v927_v5 = vadd.f32 %v926_v3, %v813_v1  ;;  %v817_v6 = vpop.f32.mrf.mxu0 }
 0x156   : > { %v930_v8 = vpop.f32.mrf.mxu1 }
 0x157   : > { %963 = vst [vmem:[#allocation2 + $0x60] sm:$0xff] %v947_v4  ;;  %v948_v9 = vadd.f32 %v927_v5, %v578_v2  ;;  %v931_v10 = vadd.f32 %v930_v8, %v817_v6  ;;  %v819_v11 = vpop.f32.mrf.mxu0 }
 0x158   : > { %v932_v13 = vpop.f32.mrf.mxu1 }
 0x159   : > { %964 = vst [vmem:[#allocation2 + $0x70] sm:$0xff] %v948_v9  ;;  %v949_v14 = vadd.f32 %v931_v10, %v579_v7  ;;  %v933_v15 = vadd.f32 %v932_v13, %v819_v11  ;;  %970 = sbr.rel (%p1432_p11) target bundleno = 690 (0x2b2), region = 75 }
 0x15b   : > { %965 = vst [vmem:[#allocation2 + $0x78] sm:$0xff] %v949_v14  ;;  %v950_v16 = vadd.f32 %v933_v15, %v580_v12 }
 0x15d   : > { %966 = vst [vmem:[#allocation2 + $0x28] sm:$0xff] %v950_v16 }
 0x15e   : > { %v989_v17 = vlaneseq  ;;  %v987_v19 = vld [vmem:[%s2124_s2] sm:$0x3]  ;;  %v971_v20 = vld [vmem:[#allocation2 + $0x30] sm:$0xff]  ;;  %v1016_v25 = vld [vmem:[%s2127_s5 + $0x8] sm:$0xff] }
 0x15f   : > { %v972_v21 = vld [vmem:[#allocation2] sm:$0xff]  ;;  %v975_v26 = vld [vmem:[#allocation2 + $0x50] sm:$0xff]  ;;  %v976_v27 = vld [vmem:[#allocation2 + $0x68] sm:$0xff] }
 0x160   : > { %v990_v18 = vshrl.u32 %v989_v17, 7  ;;  %v1015_v24 = vld [vmem:[%s2127_s5] sm:$0xff]  ;;  %v973_v28 = vld [vmem:[#allocation2 + $0x58] sm:$0xff]  ;;  %v977_v32 = vld [vmem:[#allocation2 + $0x8] sm:$0xff] }
 0x161   : > { %v974_v31 = vld [vmem:[#allocation2 + $0x18] sm:$0xff]  ;;  %v978_v33 = vld [vmem:[#allocation2 + $0x48] sm:$0xff]  ;;  %v1019_v34 = vld [vmem:[%s2127_s5 + $0x20] sm:$0xff] }
 0x162   : > { %v1859_v22 = vsub.s32 0, %v990_v18  ;;  %v1861_v23 = vsub.s32 1, %v990_v18  ;;  %v1020_v35 = vld [vmem:[%s2127_s5 + $0x28] sm:$0xff]  ;;  %v1017_v36 = vld [vmem:[%s2127_s5 + $0x10] sm:$0xff]  ;;  %v1018_v41 = vld [vmem:[%s2127_s5 + $0x18] sm:$0xff] }
 0x163   : > { %v1021_v42 = vld [vmem:[%s2127_s5 + $0x30] sm:$0xff]  ;;  %v1022_v43 = vld [vmem:[%s2127_s5 + $0x38] sm:$0xff]  ;;  %v979_v48 = vld [vmem:[#allocation2 + $0x40] sm:$0xff] }
 0x164   : > { %v992_v29 = vrot.slane %v987_v19, %v1859_v22  ;;  %v996_v30 = vrot.slane %v987_v19, %v1861_v23  ;;  %v980_v49 = vld [vmem:[#allocation2 + $0x20] sm:$0xff]  ;;  %v981_v55 = vld [vmem:[#allocation2 + $0x10] sm:$0xff]  ;;  %v982_v56 = vld [vmem:[#allocation2 + $0x38] sm:$0xff] }
 0x165   : > { %v1023_v54 = vld [vmem:[%s2127_s5 + $0x40] sm:$0xff]  ;;  %v1024_v61 = vld [vmem:[%s2127_s5 + $0x48] sm:$0xff]  ;;  %v1025_v62 = vld [vmem:[%s2127_s5 + $0x50] sm:$0xff] }
 0x166   : > { %v999_v37 = vadd.f32 %v992_v29, %v971_v20  ;;  %v1000_v38 = vadd.f32 %v996_v30, %v972_v21  ;;  %v1003_v39 = vadd.f32 %v992_v29, %v975_v26  ;;  %v1004_v40 = vadd.f32 %v996_v30, %v976_v27  ;;  %v983_v63 = vld [vmem:[#allocation2 + $0x60] sm:$0xff]  ;;  %v1026_v4 = vld [vmem:[%s2127_s5 + $0x58] sm:$0xff]  ;;  %v984_v5 = vld [vmem:[#allocation2 + $0x70] sm:$0xff] }
 0x167   : > { %v1001_v44 = vadd.f32 %v992_v29, %v973_v28  ;;  %v1002_v45 = vadd.f32 %v996_v30, %v974_v31  ;;  %v1005_v46 = vadd.f32 %v992_v29, %v977_v32  ;;  %v1006_v47 = vadd.f32 %v996_v30, %v978_v33  ;;  %v985_v6 = vld [vmem:[#allocation2 + $0x78] sm:$0xff]  ;;  %v986_v11 = vld [vmem:[#allocation2 + $0x28] sm:$0xff]  ;;  %v1027_v15 = vld [vmem:[%s2127_s5 + $0x60] sm:$0xff] }
 0x168   : > { %v1031_v50 = vadd.f32 %v1015_v24, %v999_v37  ;;  %v1032_v51 = vadd.f32 %v1016_v25, %v1000_v38  ;;  %v1035_v52 = vadd.f32 %v1019_v34, %v1003_v39  ;;  %v1036_v53 = vadd.f32 %v1020_v35, %v1004_v40  ;;  %v1028_v19 = vld [vmem:[%s2127_s5 + $0x68] sm:$0xff]  ;;  %v1029_v21 = vld [vmem:[%s2127_s5 + $0x70] sm:$0xff]  ;;  %v1030_v24 = vld [vmem:[%s2127_s5 + $0x78] sm:$0xff] }
 0x169   : > { %v1892_v57 = vadd.f32 %v1017_v36, %v1001_v44  ;;  %v1894_v58 = vadd.f32 %v1018_v41, %v1002_v45  ;;  %v1896_v59 = vadd.f32 %v1021_v42, %v1005_v46  ;;  %v1898_v60 = vadd.f32 %v1022_v43, %v1006_v47 }
 0x16a   : > { %v1047_v0 = vadd.f32 %v1032_v51, %v1031_v50  ;;  %v1053_v1 = vadd.f32 %v1036_v53, %v1035_v52  ;;  %v1007_v2 = vadd.f32 %v992_v29, %v979_v48  ;;  %v1008_v3 = vadd.f32 %v996_v30, %v980_v49 }
 0x16b   : > { %v1050_v7 = vadd.f32 %v1894_v58, %v1892_v57  ;;  %v1056_v8 = vadd.f32 %v1898_v60, %v1896_v59  ;;  %v1009_v9 = vadd.f32 %v992_v29, %v981_v55  ;;  %v1010_v10 = vadd.f32 %v996_v30, %v982_v56 }
 0x16c   : > { %1048 = vadd.xlane.f32.xlu0 %v1047_v0  ;;  %1054 = vadd.xlane.f32.xlu1 %v1053_v1  ;;  %v1039_v12 = vadd.f32 %v1023_v54, %v1007_v2  ;;  %v1040_v13 = vadd.f32 %v1024_v61, %v1008_v3  ;;  %v1011_v14 = vadd.f32 %v992_v29, %v983_v63 }
 0x16d   : > { %v1041_v16 = vadd.f32 %v1025_v62, %v1009_v9  ;;  %v1042_v17 = vadd.f32 %v1026_v4, %v1010_v10  ;;  %v1012_v18 = vadd.f32 %v996_v30, %v984_v5  ;;  %v1013_v20 = vadd.f32 %v992_v29, %v985_v6 }
 0x16e   : > { %v1014_v25 = vadd.f32 %v996_v30, %v986_v11  ;;  %v1059_v26 = vadd.f32 %v1040_v13, %v1039_v12  ;;  %v1043_v28 = vadd.f32 %v1027_v15, %v1011_v14 }
 0x16f   : > { %v1062_v27 = vadd.f32 %v1042_v17, %v1041_v16  ;;  %v1044_v31 = vadd.f32 %v1028_v19, %v1012_v18  ;;  %v1045_v32 = vadd.f32 %v1029_v21, %v1013_v20 }
 0x170   : > { %1051 = vadd.xlane.f32.xlu0 %v1050_v7  ;;  %1057 = vadd.xlane.f32.xlu1 %v1056_v8  ;;  %v1046_v33 = vadd.f32 %v1030_v24, %v1014_v25 }
 0x171   : > { %v1065_v29 = vadd.f32 %v1044_v31, %v1043_v28 }
 0x172   : > { %v1068_v34 = vadd.f32 %v1046_v33, %v1045_v32 }
 0x174   : > { %1060 = vadd.xlane.f32.xlu0 %v1059_v26  ;;  %1063 = vadd.xlane.f32.xlu1 %v1062_v27 }
 0x178   : > { %1066 = vadd.xlane.f32.xlu0 %v1065_v29  ;;  %1069 = vadd.xlane.f32.xlu1 %v1068_v34 }
 0x1f5   : > { %v1049_v35 = vpop.xlane.xlu0 %1048  ;;  %v1055_v36 = vpop.xlane.xlu1 %1054 }
 0x1f6   : > { %v1072_v37 = vmul.f32 0.00390625, %v1049_v35  ;;  %v1074_v38 = vmul.f32 0.00390625, %v1055_v36 }
 0x1f8   : > { %v1925_v39 = vsub.f32 %v1031_v50, %v1072_v37  ;;  %v1927_v30 = vsub.f32 %v1032_v51, %v1072_v37  ;;  %v1929_v40 = vsub.f32 %v1035_v52, %v1074_v38  ;;  %v1931_v41 = vsub.f32 %v1036_v53, %v1074_v38 }
 0x1f9   : > { %v1052_v42 = vpop.xlane.xlu0 %1051  ;;  %v1058_v43 = vpop.xlane.xlu1 %1057 }
 0x1fa   : > { %v1073_v44 = vmul.f32 0.00390625, %v1052_v42  ;;  %v1075_v45 = vmul.f32 0.00390625, %v1058_v43  ;;  %v1096_v46 = vmul.f32 %v1925_v39, %v1925_v39  ;;  %v1097_v47 = vmul.f32 %v1927_v30, %v1927_v30 }
 0x1fb   : > { %v1100_v48 = vmul.f32 %v1929_v40, %v1929_v40  ;;  %v1101_v49 = vmul.f32 %v1931_v41, %v1931_v41 }
 0x1fc   : > { %v1942_v50 = vsub.f32 %v1892_v57, %v1073_v44  ;;  %v1945_v51 = vsub.f32 %v1894_v58, %v1073_v44  ;;  %v1948_v52 = vsub.f32 %v1896_v59, %v1075_v45  ;;  %v1951_v53 = vsub.f32 %v1898_v60, %v1075_v45 }
 0x1fd   : > { %v1061_v54 = vpop.xlane.xlu0 %1060  ;;  %v1112_v55 = vadd.f32 %v1097_v47, %v1096_v46  ;;  %v1064_v56 = vpop.xlane.xlu1 %1063  ;;  %v1118_v58 = vadd.f32 %v1101_v49, %v1100_v48 }
 0x1fe   : > { %v1076_v61 = vmul.f32 0.00390625, %v1061_v54  ;;  %v1077_v62 = vmul.f32 0.00390625, %v1064_v56  ;;  %v1098_v63 = vmul.f32 %v1942_v50, %v1942_v50  ;;  %v1099_v57 = vmul.f32 %v1945_v51, %v1945_v51  ;;  %v1204_v56 = vld [vmem:[%s2126_s4] sm:$0x3] }
 0x1ff   : > { %1113 = vadd.xlane.f32.xlu0 %v1112_v55  ;;  %v1102_v59 = vmul.f32 %v1948_v52, %v1948_v52  ;;  %v1103_v60 = vmul.f32 %v1951_v53, %v1951_v53  ;;  %v1176_v55 = vld [vmem:[%s2125_s3] sm:$0x3] }
 0x200   : > { %v1961_v0 = vsub.f32 %v1039_v12, %v1076_v61  ;;  %v1963_v1 = vsub.f32 %v1040_v13, %v1076_v61  ;;  %v1965_v2 = vsub.f32 %v1041_v16, %v1077_v62  ;;  %v1967_v3 = vsub.f32 %v1042_v17, %v1077_v62 }
 0x201   : > { %v1067_v4 = vpop.xlane.xlu0 %1066  ;;  %v1115_v5 = vadd.f32 %v1099_v57, %v1098_v63  ;;  %v1070_v6 = vpop.xlane.xlu1 %1069  ;;  %v1121_v11 = vadd.f32 %v1103_v60, %v1102_v59  ;;  %v2000_v57 = vrot.slane %v1176_v55, %v1859_v22 }
 0x202   : > { %v1078_v7 = vmul.f32 0.00390625, %v1067_v4  ;;  %v1079_v8 = vmul.f32 0.00390625, %v1070_v6  ;;  %v1104_v9 = vmul.f32 %v1961_v0, %v1961_v0  ;;  %v1105_v10 = vmul.f32 %v1963_v1, %v1963_v1 }
 0x203   : > { %1119 = vadd.xlane.f32.xlu0 %v1118_v58  ;;  %1116 = vadd.xlane.f32.xlu1 %v1115_v5  ;;  %v1106_v12 = vmul.f32 %v1965_v2, %v1965_v2  ;;  %v1107_v13 = vmul.f32 %v1967_v3, %v1967_v3  ;;  %v2003_v58 = vrot.slane %v1176_v55, %v1861_v23 }
 0x204   : > { %v1977_v14 = vsub.f32 %v1043_v28, %v1078_v7  ;;  %v1979_v15 = vsub.f32 %v1044_v31, %v1078_v7  ;;  %v1981_v16 = vsub.f32 %v1045_v32, %v1079_v8  ;;  %v1983_v17 = vsub.f32 %v1046_v33, %v1079_v8 }
 0x205   : > { %v1124_v18 = vadd.f32 %v1105_v10, %v1104_v9  ;;  %v1127_v21 = vadd.f32 %v1107_v13, %v1106_v12  ;;  %v2006_v4 = vrot.slane %v1204_v56, %v1859_v22  ;;  %v2009_v5 = vrot.slane %v1204_v56, %v1861_v23 }
 0x206   : > { %v1108_v19 = vmul.f32 %v1977_v14, %v1977_v14  ;;  %v1109_v20 = vmul.f32 %v1979_v15, %v1979_v15  ;;  %v1110_v24 = vmul.f32 %v1981_v16, %v1981_v16  ;;  %v1111_v25 = vmul.f32 %v1983_v17, %v1983_v17 }
 0x207   : > { %1122 = vadd.xlane.f32.xlu1 %v1121_v11  ;;  %1125 = vadd.xlane.f32.xlu0 %v1124_v18 }
 0x208   : > { %v1130_v26 = vadd.f32 %v1109_v20, %v1108_v19  ;;  %v1133_v27 = vadd.f32 %v1111_v25, %v1110_v24 }
 0x20b   : > { %1128 = vadd.xlane.f32.xlu1 %v1127_v21  ;;  %1131 = vadd.xlane.f32.xlu0 %v1130_v26 }
 0x20f   : > { %1134 = vadd.xlane.f32.xlu1 %v1133_v27 }
 0x288   : > { %v1114_v28 = vpop.xlane.xlu0 %1113 }
 0x289   : > { %v1136_v31 = vmul.f32 0.00390625, %v1114_v28 }
 0x28b   : > { %v1144_v32 = vadd.f32 1e-05, %v1136_v31 }
 0x28c   : > { %v1117_v33 = vpop.xlane.xlu1 %1116  ;;  %v1120_v29 = vpop.xlane.xlu0 %1119 }
 0x28d   : > { %1480 = vrsqrt.f32 %v1144_v32  ;;  %v1137_v34 = vmul.f32 0.00390625, %v1117_v33  ;;  %v1138_v35 = vmul.f32 0.00390625, %v1120_v29 }
 0x28f   : > { %v1145_v36 = vadd.f32 1e-05, %v1137_v34  ;;  %v1146_v37 = vadd.f32 1e-05, %v1138_v35 }
 0x290   : > { %v1123_v38 = vpop.xlane.xlu1 %1122  ;;  %v1126_v42 = vpop.xlane.xlu0 %1125 }
 0x291   : > { %1482 = vrsqrt.f32 %v1145_v36  ;;  %v1139_v43 = vmul.f32 0.00390625, %v1123_v38  ;;  %v1140_v44 = vmul.f32 0.00390625, %v1126_v42 }
 0x292   : > { %1484 = vrsqrt.f32 %v1146_v37 }
 0x293   : > { %v1147_v45 = vadd.f32 1e-05, %v1139_v43  ;;  %v1148_v46 = vadd.f32 1e-05, %v1140_v44 }
 0x294   : > { %v1129_v47 = vpop.xlane.xlu1 %1128  ;;  %v1132_v48 = vpop.xlane.xlu0 %1131 }
 0x295   : > { %1486 = vrsqrt.f32 %v1147_v45  ;;  %v1141_v49 = vmul.f32 0.00390625, %v1129_v47  ;;  %v1142_v54 = vmul.f32 0.00390625, %v1132_v48 }
 0x296   : > { %1488 = vrsqrt.f32 %v1148_v46 }
 0x297   : > { %v1149_v61 = vadd.f32 1e-05, %v1141_v49  ;;  %v1150_v62 = vadd.f32 1e-05, %v1142_v54 }
 0x298   : > { %v1135_v63 = vpop.xlane.xlu1 %1134 }
 0x299   : > { %1490 = vrsqrt.f32 %v1149_v61  ;;  %v1143_v59 = vmul.f32 0.00390625, %v1135_v63 }
 0x29a   : > { %v1481_v60 = vpop.eup %1480  ;;  %1492 = vrsqrt.f32 %v1150_v62 }
 0x29b   : > { %v1160_v6 = vmul.f32 %v1481_v60, %v1925_v39  ;;  %v1161_v7 = vmul.f32 %v1481_v60, %v1927_v30  ;;  %v1151_v8 = vadd.f32 1e-05, %v1143_v59 }
 0x29d   : > { %v1188_v9 = vmul.f32 %v2000_v57, %v1160_v6  ;;  %v1189_v10 = vmul.f32 %v2003_v58, %v1161_v7  ;;  %1494 = vrsqrt.f32 %v1151_v8 }
 0x29e   : > { %v1483_v11 = vpop.eup %1482 }
 0x29f   : > { %v1485_v12 = vpop.eup %1484  ;;  %v1216_v13 = vadd.f32 %v2006_v4, %v1188_v9  ;;  %v1217_v22 = vadd.f32 %v2009_v5, %v1189_v10  ;;  %v1162_v18 = vmul.f32 %v1483_v11, %v1942_v50  ;;  %v1163_v23 = vmul.f32 %v1483_v11, %v1945_v51 }
 0x2a0   : > { %v1164_v39 = vmul.f32 %v1485_v12, %v1929_v40  ;;  %v1165_v30 = vmul.f32 %v1485_v12, %v1931_v41 }
 0x2a1   : > { %1232 = vst [vmem:[%s2128_s6] sm:$0xff] %v1216_v13  ;;  %1233 = vst [vmem:[%s2128_s6 + $0x8] sm:$0xff] %v1217_v22  ;;  %v1190_v19 = vmul.f32 %v2000_v57, %v1162_v18  ;;  %v1191_v20 = vmul.f32 %v2003_v58, %v1163_v23 }
 0x2a2   : > { %v1487_v21 = vpop.eup %1486  ;;  %v1192_v50 = vmul.f32 %v2000_v57, %v1164_v39  ;;  %v1193_v51 = vmul.f32 %v2003_v58, %v1165_v30 }
 0x2a3   : > { %v1489_v40 = vpop.eup %1488  ;;  %v1218_v41 = vadd.f32 %v2006_v4, %v1190_v19  ;;  %v1219_v24 = vadd.f32 %v2009_v5, %v1191_v20  ;;  %v1166_v25 = vmul.f32 %v1487_v21, %v1948_v52  ;;  %v1167_v26 = vmul.f32 %v1487_v21, %v1951_v53 }
 0x2a4   : > { %v1220_v27 = vadd.f32 %v2006_v4, %v1192_v50  ;;  %v1221_v28 = vadd.f32 %v2009_v5, %v1193_v51  ;;  %v1168_v31 = vmul.f32 %v1489_v40, %v1961_v0  ;;  %v1169_v32 = vmul.f32 %v1489_v40, %v1963_v1 }
 0x2a5   : > { %1234 = vst [vmem:[%s2128_s6 + $0x10] sm:$0xff] %v1218_v41  ;;  %1235 = vst [vmem:[%s2128_s6 + $0x18] sm:$0xff] %v1219_v24  ;;  %v1194_v52 = vmul.f32 %v2000_v57, %v1166_v25  ;;  %v1195_v53 = vmul.f32 %v2003_v58, %v1167_v26 }
 0x2a6   : > { %v1491_v33 = vpop.eup %1490  ;;  %1236 = vst [vmem:[%s2128_s6 + $0x20] sm:$0xff] %v1220_v27  ;;  %1237 = vst [vmem:[%s2128_s6 + $0x28] sm:$0xff] %v1221_v28  ;;  %v1196_v0 = vmul.f32 %v2000_v57, %v1168_v31  ;;  %v1197_v1 = vmul.f32 %v2003_v58, %v1169_v32 }
 0x2a7   : > { %v1493_v29 = vpop.eup %1492  ;;  %v1222_v34 = vadd.f32 %v2006_v4, %v1194_v52  ;;  %v1223_v35 = vadd.f32 %v2009_v5, %v1195_v53  ;;  %v1170_v36 = vmul.f32 %v1491_v33, %v1965_v2  ;;  %v1171_v37 = vmul.f32 %v1491_v33, %v1967_v3 }
 0x2a8   : > { %v1224_v38 = vadd.f32 %v2006_v4, %v1196_v0  ;;  %v1225_v42 = vadd.f32 %v2009_v5, %v1197_v1  ;;  %v1172_v43 = vmul.f32 %v1493_v29, %v1977_v14  ;;  %v1173_v44 = vmul.f32 %v1493_v29, %v1979_v15 }
 0x2a9   : > { %1238 = vst [vmem:[%s2128_s6 + $0x30] sm:$0xff] %v1222_v34  ;;  %1239 = vst [vmem:[%s2128_s6 + $0x38] sm:$0xff] %v1223_v35  ;;  %v1198_v2 = vmul.f32 %v2000_v57, %v1170_v36  ;;  %v1199_v3 = vmul.f32 %v2003_v58, %v1171_v37 }
 0x2aa   : > { %v1495_v45 = vpop.eup %1494  ;;  %1240 = vst [vmem:[%s2128_s6 + $0x40] sm:$0xff] %v1224_v38  ;;  %1241 = vst [vmem:[%s2128_s6 + $0x48] sm:$0xff] %v1225_v42  ;;  %v1200_v14 = vmul.f32 %v2000_v57, %v1172_v43  ;;  %v1201_v15 = vmul.f32 %v2003_v58, %v1173_v44 }
 0x2ab   : > { %v1226_v46 = vadd.f32 %v2006_v4, %v1198_v2  ;;  %v1227_v47 = vadd.f32 %v2009_v5, %v1199_v3  ;;  %v1174_v48 = vmul.f32 %v1495_v45, %v1981_v16  ;;  %v1175_v49 = vmul.f32 %v1495_v45, %v1983_v17 }
 0x2ac   : > { %v1228_v54 = vadd.f32 %v2006_v4, %v1200_v14  ;;  %v1229_v55 = vadd.f32 %v2009_v5, %v1201_v15 }
 0x2ad   : > { %1242 = vst [vmem:[%s2128_s6 + $0x50] sm:$0xff] %v1226_v46  ;;  %1243 = vst [vmem:[%s2128_s6 + $0x58] sm:$0xff] %v1227_v47  ;;  %v1202_v56 = vmul.f32 %v2000_v57, %v1174_v48  ;;  %v1203_v61 = vmul.f32 %v2003_v58, %v1175_v49 }
 0x2ae   : > { %1244 = vst [vmem:[%s2128_s6 + $0x60] sm:$0xff] %v1228_v54  ;;  %1245 = vst [vmem:[%s2128_s6 + $0x68] sm:$0xff] %v1229_v55 }
 0x2af   : > { %v1230_v16 = vadd.f32 %v2006_v4, %v1202_v56  ;;  %v1231_v17 = vadd.f32 %v2009_v5, %v1203_v61 }
 0x2b1   : > { %1246 = vst [vmem:[%s2128_s6 + $0x70] sm:$0xff] %v1230_v16  ;;  %1247 = vst [vmem:[%s2128_s6 + $0x78] sm:$0xff] %v1231_v17 }
 0x2b2 PF: > { %s16_s25 = sadd.s32 1, %s1534_s25   ;;  %s2129_s21 = smov %s1522_s22 }
 0x2b3   : > { %p13_p12 = scmp.ge.s32.totalorder %s16_s25, 4   ;;  %s2130_s22 = smov %s1607_s29 }
 0x2b4   : > { %s2131_s23 = smov %s1530_s24  ;;  %s2132_s24 = smov %s2134_s26 }
 0x2b5   :  { %15 = sbr.rel (!%p13_p12) target bundleno = 3 (0x3), region = 125 }

// kernel: ltxv_wrapper_forward.22
= control target key start
LH: loop header
LB: loop body
LE: loop exit
PB: predicated region body
PF: predicated region fallthrough
CT: control target
= control target key end

     0   :  { %s2148_s18 = smov 0   ;;  %s2150_s19 = smov 0   ;;  %s3239_s0 = inlined_call_operand.vmem [shape: f32[64,256], index: 0, kind: input, shape index: {}]   ;;  %s3240_s1 = inlined_call_operand.vmem [shape: f32[256,1024], index: 1, kind: input, shape index: {}]   ;;  %s3241_s2 = inlined_call_operand.vmem [shape: f32[1,1024], index: 2, kind: input, shape index: {}]   ;;  %s3242_s3 = inlined_call_operand.vmem [shape: f32[1,256], index: 3, kind: input, shape index: {}]   ;;  %s3243_s4 = inlined_call_operand.vmem [shape: f32[1,256], index: 4, kind: input, shape index: {}]   ;;  %s3244_s5 = inlined_call_operand.vmem [shape: f32[64,1024], index: 5, kind: output, shape index: {}]  }
   0x1   :  { %s2152_s20 = smov 0   ;;  %s2154_s21 = smov 0  }
   0x2   :  { %s2156_s22 = smov 0  }
   0x3 LB: > { %s30_s23 = sadd.s32 1, %s2112_s21  ;;  %s1937_s24 = sadd.s32 4294967295, %s2116_s22   ;;  %s2116_s22 = sphi %s2156_s22, %s15_s22   ;;  %s2112_s21 = sphi %s2154_s21, %s3249_s21   ;;  %s2108_s20 = sphi %s2152_s20, %s3248_s20   ;;  %s2104_s19 = sphi %s2150_s19, %s3247_s19   ;;  %s2100_s18 = sphi %s2148_s18, %s3246_s18  }
   0x4   : > { %p32_p0 = scmp.ge.s32.totalorder %s30_s23, 2  ;;  %p78_p1 = scmp.ne.s32.totalorder %s2104_s19, %s2100_s18 }
   0x5   : > { %p79_p2 = scmp.eq.s32.totalorder %s2116_s22, 0  ;;  %p188_p4 = scmp.eq.s32.totalorder %s1937_s24, 1 }
   0x6   : > { %s3251_s23 = smov (%p32_p0, %s30_s23), 0  ;;  %s71_s26 = sadd.s32 1, %s2104_s19 }
   0x7   : > { %p80_p3 = por %p79_p2, %p78_p1  ;;  %s67_s25 = ssub.s32 %s2112_s21, %s3251_s23 }
   0x8   : > { %p69_p5 = scmp.eq.s32.totalorder %s67_s25, 0  ;;  %p2183_p6 = por %p188_p4, %p78_p1 }
   0x9   : > { %p1943_p7 = scmp.ge.s32.totalorder %s2116_s22, 2 }
   0xa   : > { %s2188_s28 = scalar_select %p69_p5, %s2104_s19, %s71_s26  }
   0xb   : > { %241 = sbr.rel (%p1943_p7) target bundleno = 84 (0x54), region = 28 }
  0x10   : > { %244 = sbr.rel (!%p80_p3) target bundleno = 84 (0x54), region = 32  ;;  %s246_s29 = sand.u32 (%p80_p3), 1, %s2104_s19  }
  0x11   : > { %s1956_s30 = sshll.u32 (%p80_p3), %s2112_s21, 5  ;;  %s1944_s6 = sshll.u32 (%p80_p3), %s246_s29, 10 }
  0x12   : > { %s2196_s9 = scalar_lea.vmem (%p80_p3), %s3240_s1, %s1956_s30  ;;  %s2201_s10 = scalar_lea.vmem (%p80_p3), [#allocation3], %s1944_s6 }
  0x13   : > { %v267_v0 = vld [vmem:[%s2196_s9] sm:$0xff] (%p80_p3)  ;;  %v269_v1 = vld [vmem:[%s2196_s9 + $0x8] sm:$0xff] (%p80_p3)  ;;  %v271_v2 = vld [vmem:[%s2196_s9 + $0x10] sm:$0xff] (%p80_p3) }
  0x14   : > { %268 = vst [vmem:[%s2201_s10] sm:$0xff] (%p80_p3), %v267_v0  ;;  %270 = vst [vmem:[%s2201_s10 + $0x8] sm:$0xff] (%p80_p3), %v269_v1  ;;  %v273_v3 = vld [vmem:[%s2196_s9 + $0x18] sm:$0xff] (%p80_p3)  ;;  %v275_v4 = vld [vmem:[%s2196_s9 + $0x40] sm:$0xff] (%p80_p3) }
  0x15   : > { %272 = vst [vmem:[%s2201_s10 + $0x10] sm:$0xff] %v271_v2  ;;  %v277_v5 = vld [vmem:[%s2196_s9 + $0x48] sm:$0xff]  ;;  %274 = vst [vmem:[%s2201_s10 + $0x18] sm:$0xff] %v273_v3  ;;  %v279_v6 = vld [vmem:[%s2196_s9 + $0x50] sm:$0xff] }
  0x16   : > { %276 = vst [vmem:[%s2201_s10 + $0x20] sm:$0xff] %v275_v4  ;;  %278 = vst [vmem:[%s2201_s10 + $0x28] sm:$0xff] %v277_v5  ;;  %v281_v7 = vld [vmem:[%s2196_s9 + $0x58] sm:$0xff]  ;;  %v283_v8 = vld [vmem:[%s2196_s9 + $0x80] sm:$0xff] }
  0x17   : > { %280 = vst [vmem:[%s2201_s10 + $0x30] sm:$0xff] %v279_v6  ;;  %282 = vst [vmem:[%s2201_s10 + $0x38] sm:$0xff] %v281_v7  ;;  %v285_v9 = vld [vmem:[%s2196_s9 + $0x88] sm:$0xff]  ;;  %v287_v10 = vld [vmem:[%s2196_s9 + $0x90] sm:$0xff] }
  0x18   : > { %284 = vst [vmem:[%s2201_s10 + $0x40] sm:$0xff] %v283_v8  ;;  %v289_v11 = vld [vmem:[%s2196_s9 + $0x98] sm:$0xff]  ;;  %286 = vst [vmem:[%s2201_s10 + $0x48] sm:$0xff] %v285_v9  ;;  %v291_v12 = vld [vmem:[%s2196_s9 + $0xc0] sm:$0xff] }
  0x19   : > { %288 = vst [vmem:[%s2201_s10 + $0x50] sm:$0xff] %v287_v10  ;;  %290 = vst [vmem:[%s2201_s10 + $0x58] sm:$0xff] %v289_v11  ;;  %v293_v13 = vld [vmem:[%s2196_s9 + $0xc8] sm:$0xff]  ;;  %v295_v14 = vld [vmem:[%s2196_s9 + $0xd0] sm:$0xff] }
  0x1a   : > { %292 = vst [vmem:[%s2201_s10 + $0x60] sm:$0xff] %v291_v12  ;;  %294 = vst [vmem:[%s2201_s10 + $0x68] sm:$0xff] %v293_v13  ;;  %v297_v15 = vld [vmem:[%s2196_s9 + $0xd8] sm:$0xff]  ;;  %v299_v16 = vld [vmem:[%s2196_s9 + $0x100] sm:$0xff] }
  0x1b   : > { %296 = vst [vmem:[%s2201_s10 + $0x70] sm:$0xff] %v295_v14  ;;  %v301_v17 = vld [vmem:[%s2196_s9 + $0x108] sm:$0xff]  ;;  %298 = vst [vmem:[%s2201_s10 + $0x78] sm:$0xff] %v297_v15  ;;  %v303_v18 = vld [vmem:[%s2196_s9 + $0x110] sm:$0xff] }
  0x1c   : > { %300 = vst [vmem:[%s2201_s10 + $0x80] sm:$0xff] %v299_v16  ;;  %302 = vst [vmem:[%s2201_s10 + $0x88] sm:$0xff] %v301_v17  ;;  %v305_v19 = vld [vmem:[%s2196_s9 + $0x118] sm:$0xff]  ;;  %v307_v20 = vld [vmem:[%s2196_s9 + $0x140] sm:$0xff] }
  0x1d   : > { %304 = vst [vmem:[%s2201_s10 + $0x90] sm:$0xff] %v303_v18  ;;  %306 = vst [vmem:[%s2201_s10 + $0x98] sm:$0xff] %v305_v19  ;;  %v309_v21 = vld [vmem:[%s2196_s9 + $0x148] sm:$0xff]  ;;  %v311_v22 = vld [vmem:[%s2196_s9 + $0x150] sm:$0xff] }
  0x1e   : > { %308 = vst [vmem:[%s2201_s10 + $0xa0] sm:$0xff] %v307_v20  ;;  %v313_v23 = vld [vmem:[%s2196_s9 + $0x158] sm:$0xff]  ;;  %310 = vst [vmem:[%s2201_s10 + $0xa8] sm:$0xff] %v309_v21  ;;  %v315_v24 = vld [vmem:[%s2196_s9 + $0x180] sm:$0xff] }
  0x1f   : > { %312 = vst [vmem:[%s2201_s10 + $0xb0] sm:$0xff] %v311_v22  ;;  %314 = vst [vmem:[%s2201_s10 + $0xb8] sm:$0xff] %v313_v23  ;;  %v317_v25 = vld [vmem:[%s2196_s9 + $0x188] sm:$0xff]  ;;  %v319_v26 = vld [vmem:[%s2196_s9 + $0x190] sm:$0xff] }
  0x20   : > { %316 = vst [vmem:[%s2201_s10 + $0xc0] sm:$0xff] %v315_v24  ;;  %318 = vst [vmem:[%s2201_s10 + $0xc8] sm:$0xff] %v317_v25  ;;  %v321_v27 = vld [vmem:[%s2196_s9 + $0x198] sm:$0xff]  ;;  %v323_v28 = vld [vmem:[%s2196_s9 + $0x1c0] sm:$0xff] }
  0x21   : > { %320 = vst [vmem:[%s2201_s10 + $0xd0] sm:$0xff] %v319_v26  ;;  %v325_v29 = vld [vmem:[%s2196_s9 + $0x1c8] sm:$0xff]  ;;  %322 = vst [vmem:[%s2201_s10 + $0xd8] sm:$0xff] %v321_v27  ;;  %v327_v30 = vld [vmem:[%s2196_s9 + $0x1d0] sm:$0xff] }
  0x22   : > { %324 = vst [vmem:[%s2201_s10 + $0xe0] sm:$0xff] %v323_v28  ;;  %326 = vst [vmem:[%s2201_s10 + $0xe8] sm:$0xff] %v325_v29  ;;  %v329_v31 = vld [vmem:[%s2196_s9 + $0x1d8] sm:$0xff]  ;;  %v331_v32 = vld [vmem:[%s2196_s9 + $0x200] sm:$0xff] }
  0x23   : > { %328 = vst [vmem:[%s2201_s10 + $0xf0] sm:$0xff] %v327_v30  ;;  %330 = vst [vmem:[%s2201_s10 + $0xf8] sm:$0xff] %v329_v31  ;;  %v333_v33 = vld [vmem:[%s2196_s9 + $0x208] sm:$0xff]  ;;  %v335_v34 = vld [vmem:[%s2196_s9 + $0x210] sm:$0xff] }
  0x24   : > { %332 = vst [vmem:[%s2201_s10 + $0x100] sm:$0xff] %v331_v32  ;;  %v337_v35 = vld [vmem:[%s2196_s9 + $0x218] sm:$0xff]  ;;  %334 = vst [vmem:[%s2201_s10 + $0x108] sm:$0xff] %v333_v33  ;;  %v339_v36 = vld [vmem:[%s2196_s9 + $0x240] sm:$0xff] }
  0x25   : > { %336 = vst [vmem:[%s2201_s10 + $0x110] sm:$0xff] %v335_v34  ;;  %338 = vst [vmem:[%s2201_s10 + $0x118] sm:$0xff] %v337_v35  ;;  %v341_v37 = vld [vmem:[%s2196_s9 + $0x248] sm:$0xff]  ;;  %v343_v38 = vld [vmem:[%s2196_s9 + $0x250] sm:$0xff] }
  0x26   : > { %340 = vst [vmem:[%s2201_s10 + $0x120] sm:$0xff] %v339_v36  ;;  %342 = vst [vmem:[%s2201_s10 + $0x128] sm:$0xff] %v341_v37  ;;  %v345_v39 = vld [vmem:[%s2196_s9 + $0x258] sm:$0xff]  ;;  %v347_v40 = vld [vmem:[%s2196_s9 + $0x280] sm:$0xff] }
  0x27   : > { %344 = vst [vmem:[%s2201_s10 + $0x130] sm:$0xff] %v343_v38  ;;  %v349_v41 = vld [vmem:[%s2196_s9 + $0x288] sm:$0xff]  ;;  %346 = vst [vmem:[%s2201_s10 + $0x138] sm:$0xff] %v345_v39  ;;  %v351_v42 = vld [vmem:[%s2196_s9 + $0x290] sm:$0xff] }
  0x28   : > { %348 = vst [vmem:[%s2201_s10 + $0x140] sm:$0xff] %v347_v40  ;;  %350 = vst [vmem:[%s2201_s10 + $0x148] sm:$0xff] %v349_v41  ;;  %v353_v43 = vld [vmem:[%s2196_s9 + $0x298] sm:$0xff]  ;;  %v355_v44 = vld [vmem:[%s2196_s9 + $0x2c0] sm:$0xff] }
  0x29   : > { %352 = vst [vmem:[%s2201_s10 + $0x150] sm:$0xff] %v351_v42  ;;  %354 = vst [vmem:[%s2201_s10 + $0x158] sm:$0xff] %v353_v43  ;;  %v357_v45 = vld [vmem:[%s2196_s9 + $0x2c8] sm:$0xff]  ;;  %v359_v46 = vld [vmem:[%s2196_s9 + $0x2d0] sm:$0xff] }
  0x2a   : > { %356 = vst [vmem:[%s2201_s10 + $0x160] sm:$0xff] %v355_v44  ;;  %v361_v47 = vld [vmem:[%s2196_s9 + $0x2d8] sm:$0xff]  ;;  %358 = vst [vmem:[%s2201_s10 + $0x168] sm:$0xff] %v357_v45  ;;  %v363_v48 = vld [vmem:[%s2196_s9 + $0x300] sm:$0xff] }
  0x2b   : > { %360 = vst [vmem:[%s2201_s10 + $0x170] sm:$0xff] %v359_v46  ;;  %362 = vst [vmem:[%s2201_s10 + $0x178] sm:$0xff] %v361_v47  ;;  %v365_v49 = vld [vmem:[%s2196_s9 + $0x308] sm:$0xff]  ;;  %v367_v50 = vld [vmem:[%s2196_s9 + $0x310] sm:$0xff] }
  0x2c   : > { %364 = vst [vmem:[%s2201_s10 + $0x180] sm:$0xff] %v363_v48  ;;  %366 = vst [vmem:[%s2201_s10 + $0x188] sm:$0xff] %v365_v49  ;;  %v369_v51 = vld [vmem:[%s2196_s9 + $0x318] sm:$0xff]  ;;  %v371_v52 = vld [vmem:[%s2196_s9 + $0x340] sm:$0xff] }
  0x2d   : > { %368 = vst [vmem:[%s2201_s10 + $0x190] sm:$0xff] %v367_v50  ;;  %v373_v53 = vld [vmem:[%s2196_s9 + $0x348] sm:$0xff]  ;;  %370 = vst [vmem:[%s2201_s10 + $0x198] sm:$0xff] %v369_v51  ;;  %v375_v54 = vld [vmem:[%s2196_s9 + $0x350] sm:$0xff] }
  0x2e   : > { %372 = vst [vmem:[%s2201_s10 + $0x1a0] sm:$0xff] %v371_v52  ;;  %374 = vst [vmem:[%s2201_s10 + $0x1a8] sm:$0xff] %v373_v53  ;;  %v377_v55 = vld [vmem:[%s2196_s9 + $0x358] sm:$0xff]  ;;  %v379_v56 = vld [vmem:[%s2196_s9 + $0x380] sm:$0xff] }
  0x2f   : > { %376 = vst [vmem:[%s2201_s10 + $0x1b0] sm:$0xff] %v375_v54  ;;  %378 = vst [vmem:[%s2201_s10 + $0x1b8] sm:$0xff] %v377_v55  ;;  %v381_v57 = vld [vmem:[%s2196_s9 + $0x388] sm:$0xff]  ;;  %v383_v58 = vld [vmem:[%s2196_s9 + $0x390] sm:$0xff] }
  0x30   : > { %380 = vst [vmem:[%s2201_s10 + $0x1c0] sm:$0xff] %v379_v56  ;;  %v385_v59 = vld [vmem:[%s2196_s9 + $0x398] sm:$0xff]  ;;  %382 = vst [vmem:[%s2201_s10 + $0x1c8] sm:$0xff] %v381_v57  ;;  %v387_v60 = vld [vmem:[%s2196_s9 + $0x3c0] sm:$0xff] }
  0x31   : > { %384 = vst [vmem:[%s2201_s10 + $0x1d0] sm:$0xff] %v383_v58  ;;  %386 = vst [vmem:[%s2201_s10 + $0x1d8] sm:$0xff] %v385_v59  ;;  %v389_v61 = vld [vmem:[%s2196_s9 + $0x3c8] sm:$0xff]  ;;  %v391_v62 = vld [vmem:[%s2196_s9 + $0x3d0] sm:$0xff] }
  0x32   : > { %388 = vst [vmem:[%s2201_s10 + $0x1e0] sm:$0xff] %v387_v60  ;;  %390 = vst [vmem:[%s2201_s10 + $0x1e8] sm:$0xff] %v389_v61  ;;  %v393_v63 = vld [vmem:[%s2196_s9 + $0x3d8] sm:$0xff]  ;;  %v395_v0 = vld [vmem:[%s2196_s9 + $0x400] sm:$0xff] }
  0x33   : > { %392 = vst [vmem:[%s2201_s10 + $0x1f0] sm:$0xff] %v391_v62  ;;  %v397_v1 = vld [vmem:[%s2196_s9 + $0x408] sm:$0xff]  ;;  %394 = vst [vmem:[%s2201_s10 + $0x1f8] sm:$0xff] %v393_v63  ;;  %v399_v2 = vld [vmem:[%s2196_s9 + $0x410] sm:$0xff] }
  0x34   : > { %396 = vst [vmem:[%s2201_s10 + $0x200] sm:$0xff] %v395_v0  ;;  %398 = vst [vmem:[%s2201_s10 + $0x208] sm:$0xff] %v397_v1  ;;  %v401_v3 = vld [vmem:[%s2196_s9 + $0x418] sm:$0xff]  ;;  %v403_v4 = vld [vmem:[%s2196_s9 + $0x440] sm:$0xff] }
  0x35   : > { %400 = vst [vmem:[%s2201_s10 + $0x210] sm:$0xff] %v399_v2  ;;  %402 = vst [vmem:[%s2201_s10 + $0x218] sm:$0xff] %v401_v3  ;;  %v405_v5 = vld [vmem:[%s2196_s9 + $0x448] sm:$0xff]  ;;  %v407_v6 = vld [vmem:[%s2196_s9 + $0x450] sm:$0xff] }
  0x36   : > { %404 = vst [vmem:[%s2201_s10 + $0x220] sm:$0xff] %v403_v4  ;;  %v409_v7 = vld [vmem:[%s2196_s9 + $0x458] sm:$0xff]  ;;  %406 = vst [vmem:[%s2201_s10 + $0x228] sm:$0xff] %v405_v5  ;;  %v411_v8 = vld [vmem:[%s2196_s9 + $0x480] sm:$0xff] }
  0x37   : > { %408 = vst [vmem:[%s2201_s10 + $0x230] sm:$0xff] %v407_v6  ;;  %410 = vst [vmem:[%s2201_s10 + $0x238] sm:$0xff] %v409_v7  ;;  %v413_v9 = vld [vmem:[%s2196_s9 + $0x488] sm:$0xff]  ;;  %v415_v10 = vld [vmem:[%s2196_s9 + $0x490] sm:$0xff] }
  0x38   : > { %412 = vst [vmem:[%s2201_s10 + $0x240] sm:$0xff] %v411_v8  ;;  %414 = vst [vmem:[%s2201_s10 + $0x248] sm:$0xff] %v413_v9  ;;  %v417_v11 = vld [vmem:[%s2196_s9 + $0x498] sm:$0xff]  ;;  %v419_v12 = vld [vmem:[%s2196_s9 + $0x4c0] sm:$0xff] }
  0x39   : > { %416 = vst [vmem:[%s2201_s10 + $0x250] sm:$0xff] %v415_v10  ;;  %v421_v13 = vld [vmem:[%s2196_s9 + $0x4c8] sm:$0xff]  ;;  %418 = vst [vmem:[%s2201_s10 + $0x258] sm:$0xff] %v417_v11  ;;  %v423_v14 = vld [vmem:[%s2196_s9 + $0x4d0] sm:$0xff] }
  0x3a   : > { %420 = vst [vmem:[%s2201_s10 + $0x260] sm:$0xff] %v419_v12  ;;  %422 = vst [vmem:[%s2201_s10 + $0x268] sm:$0xff] %v421_v13  ;;  %v425_v15 = vld [vmem:[%s2196_s9 + $0x4d8] sm:$0xff]  ;;  %v427_v16 = vld [vmem:[%s2196_s9 + $0x500] sm:$0xff] }
  0x3b   : > { %424 = vst [vmem:[%s2201_s10 + $0x270] sm:$0xff] %v423_v14  ;;  %426 = vst [vmem:[%s2201_s10 + $0x278] sm:$0xff] %v425_v15  ;;  %v429_v17 = vld [vmem:[%s2196_s9 + $0x508] sm:$0xff]  ;;  %v431_v18 = vld [vmem:[%s2196_s9 + $0x510] sm:$0xff] }
  0x3c   : > { %428 = vst [vmem:[%s2201_s10 + $0x280] sm:$0xff] %v427_v16  ;;  %v433_v19 = vld [vmem:[%s2196_s9 + $0x518] sm:$0xff]  ;;  %430 = vst [vmem:[%s2201_s10 + $0x288] sm:$0xff] %v429_v17  ;;  %v435_v20 = vld [vmem:[%s2196_s9 + $0x540] sm:$0xff] }
  0x3d   : > { %432 = vst [vmem:[%s2201_s10 + $0x290] sm:$0xff] %v431_v18  ;;  %434 = vst [vmem:[%s2201_s10 + $0x298] sm:$0xff] %v433_v19  ;;  %v437_v21 = vld [vmem:[%s2196_s9 + $0x548] sm:$0xff]  ;;  %v439_v22 = vld [vmem:[%s2196_s9 + $0x550] sm:$0xff] }
  0x3e   : > { %436 = vst [vmem:[%s2201_s10 + $0x2a0] sm:$0xff] %v435_v20  ;;  %438 = vst [vmem:[%s2201_s10 + $0x2a8] sm:$0xff] %v437_v21  ;;  %v441_v23 = vld [vmem:[%s2196_s9 + $0x558] sm:$0xff]  ;;  %v443_v24 = vld [vmem:[%s2196_s9 + $0x580] sm:$0xff] }
  0x3f   : > { %440 = vst [vmem:[%s2201_s10 + $0x2b0] sm:$0xff] %v439_v22  ;;  %v445_v25 = vld [vmem:[%s2196_s9 + $0x588] sm:$0xff]  ;;  %442 = vst [vmem:[%s2201_s10 + $0x2b8] sm:$0xff] %v441_v23  ;;  %v447_v26 = vld [vmem:[%s2196_s9 + $0x590] sm:$0xff] }
  0x40   : > { %444 = vst [vmem:[%s2201_s10 + $0x2c0] sm:$0xff] %v443_v24  ;;  %446 = vst [vmem:[%s2201_s10 + $0x2c8] sm:$0xff] %v445_v25  ;;  %v449_v27 = vld [vmem:[%s2196_s9 + $0x598] sm:$0xff]  ;;  %v451_v28 = vld [vmem:[%s2196_s9 + $0x5c0] sm:$0xff] }
  0x41   : > { %448 = vst [vmem:[%s2201_s10 + $0x2d0] sm:$0xff] %v447_v26  ;;  %450 = vst [vmem:[%s2201_s10 + $0x2d8] sm:$0xff] %v449_v27  ;;  %v453_v29 = vld [vmem:[%s2196_s9 + $0x5c8] sm:$0xff]  ;;  %v455_v30 = vld [vmem:[%s2196_s9 + $0x5d0] sm:$0xff] }
  0x42   : > { %452 = vst [vmem:[%s2201_s10 + $0x2e0] sm:$0xff] %v451_v28  ;;  %v457_v31 = vld [vmem:[%s2196_s9 + $0x5d8] sm:$0xff]  ;;  %454 = vst [vmem:[%s2201_s10 + $0x2e8] sm:$0xff] %v453_v29  ;;  %v459_v32 = vld [vmem:[%s2196_s9 + $0x600] sm:$0xff] }
  0x43   : > { %456 = vst [vmem:[%s2201_s10 + $0x2f0] sm:$0xff] %v455_v30  ;;  %458 = vst [vmem:[%s2201_s10 + $0x2f8] sm:$0xff] %v457_v31  ;;  %v461_v33 = vld [vmem:[%s2196_s9 + $0x608] sm:$0xff]  ;;  %v463_v34 = vld [vmem:[%s2196_s9 + $0x610] sm:$0xff] }
  0x44   : > { %460 = vst [vmem:[%s2201_s10 + $0x300] sm:$0xff] %v459_v32  ;;  %462 = vst [vmem:[%s2201_s10 + $0x308] sm:$0xff] %v461_v33  ;;  %v465_v35 = vld [vmem:[%s2196_s9 + $0x618] sm:$0xff]  ;;  %v467_v36 = vld [vmem:[%s2196_s9 + $0x640] sm:$0xff] }
  0x45   : > { %464 = vst [vmem:[%s2201_s10 + $0x310] sm:$0xff] %v463_v34  ;;  %v469_v37 = vld [vmem:[%s2196_s9 + $0x648] sm:$0xff]  ;;  %466 = vst [vmem:[%s2201_s10 + $0x318] sm:$0xff] %v465_v35  ;;  %v471_v38 = vld [vmem:[%s2196_s9 + $0x650] sm:$0xff] }
  0x46   : > { %468 = vst [vmem:[%s2201_s10 + $0x320] sm:$0xff] %v467_v36  ;;  %470 = vst [vmem:[%s2201_s10 + $0x328] sm:$0xff] %v469_v37  ;;  %v473_v39 = vld [vmem:[%s2196_s9 + $0x658] sm:$0xff]  ;;  %v475_v40 = vld [vmem:[%s2196_s9 + $0x680] sm:$0xff] }
  0x47   : > { %472 = vst [vmem:[%s2201_s10 + $0x330] sm:$0xff] %v471_v38  ;;  %474 = vst [vmem:[%s2201_s10 + $0x338] sm:$0xff] %v473_v39  ;;  %v477_v41 = vld [vmem:[%s2196_s9 + $0x688] sm:$0xff]  ;;  %v479_v42 = vld [vmem:[%s2196_s9 + $0x690] sm:$0xff] }
  0x48   : > { %476 = vst [vmem:[%s2201_s10 + $0x340] sm:$0xff] %v475_v40  ;;  %v481_v43 = vld [vmem:[%s2196_s9 + $0x698] sm:$0xff]  ;;  %478 = vst [vmem:[%s2201_s10 + $0x348] sm:$0xff] %v477_v41  ;;  %v483_v44 = vld [vmem:[%s2196_s9 + $0x6c0] sm:$0xff] }
  0x49   : > { %480 = vst [vmem:[%s2201_s10 + $0x350] sm:$0xff] %v479_v42  ;;  %482 = vst [vmem:[%s2201_s10 + $0x358] sm:$0xff] %v481_v43  ;;  %v485_v45 = vld [vmem:[%s2196_s9 + $0x6c8] sm:$0xff]  ;;  %v487_v46 = vld [vmem:[%s2196_s9 + $0x6d0] sm:$0xff] }
  0x4a   : > { %484 = vst [vmem:[%s2201_s10 + $0x360] sm:$0xff] %v483_v44  ;;  %486 = vst [vmem:[%s2201_s10 + $0x368] sm:$0xff] %v485_v45  ;;  %v489_v47 = vld [vmem:[%s2196_s9 + $0x6d8] sm:$0xff]  ;;  %v491_v48 = vld [vmem:[%s2196_s9 + $0x700] sm:$0xff] }
  0x4b   : > { %488 = vst [vmem:[%s2201_s10 + $0x370] sm:$0xff] %v487_v46  ;;  %v493_v49 = vld [vmem:[%s2196_s9 + $0x708] sm:$0xff]  ;;  %490 = vst [vmem:[%s2201_s10 + $0x378] sm:$0xff] %v489_v47  ;;  %v495_v50 = vld [vmem:[%s2196_s9 + $0x710] sm:$0xff] }
  0x4c   : > { %492 = vst [vmem:[%s2201_s10 + $0x380] sm:$0xff] %v491_v48  ;;  %494 = vst [vmem:[%s2201_s10 + $0x388] sm:$0xff] %v493_v49  ;;  %v497_v51 = vld [vmem:[%s2196_s9 + $0x718] sm:$0xff]  ;;  %v499_v52 = vld [vmem:[%s2196_s9 + $0x740] sm:$0xff] }
  0x4d   : > { %496 = vst [vmem:[%s2201_s10 + $0x390] sm:$0xff] %v495_v50  ;;  %498 = vst [vmem:[%s2201_s10 + $0x398] sm:$0xff] %v497_v51  ;;  %v501_v53 = vld [vmem:[%s2196_s9 + $0x748] sm:$0xff]  ;;  %v503_v54 = vld [vmem:[%s2196_s9 + $0x750] sm:$0xff] }
  0x4e   : > { %500 = vst [vmem:[%s2201_s10 + $0x3a0] sm:$0xff] %v499_v52  ;;  %v505_v55 = vld [vmem:[%s2196_s9 + $0x758] sm:$0xff]  ;;  %502 = vst [vmem:[%s2201_s10 + $0x3a8] sm:$0xff] %v501_v53  ;;  %v507_v56 = vld [vmem:[%s2196_s9 + $0x780] sm:$0xff] }
  0x4f   : > { %504 = vst [vmem:[%s2201_s10 + $0x3b0] sm:$0xff] %v503_v54  ;;  %506 = vst [vmem:[%s2201_s10 + $0x3b8] sm:$0xff] %v505_v55  ;;  %v509_v57 = vld [vmem:[%s2196_s9 + $0x788] sm:$0xff]  ;;  %v511_v58 = vld [vmem:[%s2196_s9 + $0x790] sm:$0xff] }
  0x50   : > { %508 = vst [vmem:[%s2201_s10 + $0x3c0] sm:$0xff] %v507_v56  ;;  %510 = vst [vmem:[%s2201_s10 + $0x3c8] sm:$0xff] %v509_v57  ;;  %v513_v59 = vld [vmem:[%s2196_s9 + $0x798] sm:$0xff]  ;;  %v515_v60 = vld [vmem:[%s2196_s9 + $0x7c0] sm:$0xff] }
  0x51   : > { %512 = vst [vmem:[%s2201_s10 + $0x3d0] sm:$0xff] %v511_v58  ;;  %v517_v61 = vld [vmem:[%s2196_s9 + $0x7c8] sm:$0xff]  ;;  %514 = vst [vmem:[%s2201_s10 + $0x3d8] sm:$0xff] %v513_v59  ;;  %v519_v62 = vld [vmem:[%s2196_s9 + $0x7d0] sm:$0xff] }
  0x52   : > { %516 = vst [vmem:[%s2201_s10 + $0x3e0] sm:$0xff] %v515_v60  ;;  %518 = vst [vmem:[%s2201_s10 + $0x3e8] sm:$0xff] %v517_v61  ;;  %v521_v63 = vld [vmem:[%s2196_s9 + $0x7d8] sm:$0xff] }
  0x53   : > { %520 = vst [vmem:[%s2201_s10 + $0x3f0] sm:$0xff] %v519_v62  ;;  %522 = vst [vmem:[%s2201_s10 + $0x3f8] sm:$0xff] %v521_v63 }
  0x54 PF: > { %p1947_p8 = scmp.ge.s32.totalorder %s2116_s22, 1  ;;  %p535_p9 = scmp.lt.s32.totalorder %s2116_s22, 3 }
  0x56   : > { %p536_p10 = pnand %p1947_p8, %p535_p9 }
  0x57   : > { %s542_s9 = sand.u32 (!%p536_p10), 1, %s2100_s18   ;;  %s1950_s16 = sshll.u32 (!%p536_p10), %s2108_s20, 2 }
  0x58   : > { %539 = sbr.rel (%p536_p10) target bundleno = 708 (0x2c4), region = 59  ;;  %s1948_s10 = sshll.u32 (!%p536_p10), %s542_s9, 10 }
  0x59   : > { %s2557_s11 = scalar_lea.vmem (!%p536_p10), [#allocation3], %s1948_s10  ;;  %p605_p11 = scmp.lt.s32.totalorder (!%p536_p10), %s1950_s16, 7 }
  0x5a   : > { %s2967_s26 = sshll.u32 (!%p536_p10), %s542_s9, 8 }
  0x5b   : > { %s2977_s18 = scalar_lea.vmem (!%p536_p10), [#allocation4], %s2967_s26 }
  0x5d   : > { %v2461_v0 = vld [vmem:[%s3239_s0] sm:$0xff]  ;;  %v2466_v1 = vld [vmem:[%s3239_s0 + $0x8] sm:$0xff]  ;;  %v2483_v5 = vld [vmem:[%s3239_s0 + $0x10] sm:$0xff]  ;;  %s3253_s16 = smov (!%p605_p11, %s1950_s16), 7  ;;  %s1957_s29 = sshll.u32 (%p2183_p6), %s2108_s20, 5 }
  0x5e   : > { %v2471_v2 = vld [vmem:[%s3239_s0 + $0x20] sm:$0xff]  ;;  %v673_v3 = vadd.f32 %v2466_v1, %v2461_v0  ;;  %v2478_v4 = vld [vmem:[%s3239_s0 + $0x28] sm:$0xff]  ;;  %v2488_v6 = vld [vmem:[%s3239_s0 + $0x18] sm:$0xff]  ;;  %s607_s25 = scalar_lea.vmem %s3241_s2, %s3253_s16  ;;  %s3161_s7 = scalar_lea.vmem (%p2183_p6), %s3244_s5, %s1957_s29 }
  0x5f   : > { %v679_v7 = vadd.f32 %v2478_v4, %v2471_v2  ;;  %v2495_v8 = vld [vmem:[%s3239_s0 + $0x30] sm:$0xff]  ;;  %v2500_v9 = vld [vmem:[%s3239_s0 + $0x38] sm:$0xff]  ;;  %v676_v10 = vadd.f32 %v2488_v6, %v2483_v5  ;;  %v2509_v12 = vld [vmem:[%s3239_s0 + $0x40] sm:$0xff] }
  0x60   : > { %674 = vadd.xlane.f32.xlu0 %v673_v3  ;;  %v682_v11 = vadd.f32 %v2500_v9, %v2495_v8  ;;  %v2514_v13 = vld [vmem:[%s3239_s0 + $0x48] sm:$0xff]  ;;  %v2519_v14 = vld [vmem:[%s3239_s0 + $0x50] sm:$0xff]  ;;  %v2524_v15 = vld [vmem:[%s3239_s0 + $0x58] sm:$0xff] }
  0x61   : > { %680 = vadd.xlane.f32.xlu1 %v679_v7  ;;  %v685_v16 = vadd.f32 %v2514_v13, %v2509_v12  ;;  %v688_v17 = vadd.f32 %v2524_v15, %v2519_v14  ;;  %v2533_v18 = vld [vmem:[%s3239_s0 + $0x60] sm:$0xff]  ;;  %v2538_v19 = vld [vmem:[%s3239_s0 + $0x68] sm:$0xff]  ;;  %v2543_v20 = vld [vmem:[%s3239_s0 + $0x70] sm:$0xff] }
  0x62   : > { %v2548_v21 = vld [vmem:[%s3239_s0 + $0x78] sm:$0xff]  ;;  %v691_v22 = vadd.f32 %v2538_v19, %v2533_v18  ;;  %v951_v24 = vld [vmem:[%s2557_s11 + $0x1e8] sm:$0xff]  ;;  %v950_v26 = vld [vmem:[%s2557_s11 + $0x1e0] sm:$0xff] }
  0x63   : > { %v694_v23 = vadd.f32 %v2548_v21, %v2543_v20  ;;  %v953_v25 = vld [vmem:[%s2557_s11 + $0x1f8] sm:$0xff]  ;;  %1018 = vmatprep.subr.mxu0 %v951_v24  ;;  %v952_v27 = vld [vmem:[%s2557_s11 + $0x1f0] sm:$0xff]  ;;  %v947_v28 = vld [vmem:[%s2557_s11 + $0x1c8] sm:$0xff] }
  0x64   : > { %677 = vadd.xlane.f32.xlu0 %v676_v10  ;;  %1131 = vmatprep.subr.mxu1 %v953_v25  ;;  %v949_v29 = vld [vmem:[%s2557_s11 + $0x1d8] sm:$0xff]  ;;  %v946_v30 = vld [vmem:[%s2557_s11 + $0x1c0] sm:$0xff]  ;;  %v948_v31 = vld [vmem:[%s2557_s11 + $0x1d0] sm:$0xff] }
  0x65   : > { %683 = vadd.xlane.f32.xlu1 %v682_v11  ;;  %1019 = vmatpush1.msra.mxu0 %v950_v26  ;;  %v943_v32 = vld [vmem:[%s2557_s11 + $0x1a8] sm:$0xff]  ;;  %v945_v33 = vld [vmem:[%s2557_s11 + $0x1b8] sm:$0xff]  ;;  %v942_v34 = vld [vmem:[%s2557_s11 + $0x1a0] sm:$0xff] }
  0x66   : > { %1132 = vmatpush1.msra.mxu1 %v952_v27  ;;  %1020 = vmatprep.subr.mxu0 %v947_v28  ;;  %v944_v35 = vld [vmem:[%s2557_s11 + $0x1b0] sm:$0xff]  ;;  %v939_v36 = vld [vmem:[%s2557_s11 + $0x188] sm:$0xff]  ;;  %v941_v37 = vld [vmem:[%s2557_s11 + $0x198] sm:$0xff] }
  0x67   : > { %1133 = vmatprep.subr.mxu1 %v949_v29  ;;  %1021 = vmatpush1.msra.mxu0 %v946_v30  ;;  %v938_v38 = vld [vmem:[%s2557_s11 + $0x180] sm:$0xff]  ;;  %v940_v39 = vld [vmem:[%s2557_s11 + $0x190] sm:$0xff]  ;;  %v935_v40 = vld [vmem:[%s2557_s11 + $0x168] sm:$0xff] }
  0x68   : > { %686 = vadd.xlane.f32.xlu0 %v685_v16  ;;  %1134 = vmatpush1.msra.mxu1 %v948_v31  ;;  %v937_v41 = vld [vmem:[%s2557_s11 + $0x178] sm:$0xff]  ;;  %v934_v42 = vld [vmem:[%s2557_s11 + $0x160] sm:$0xff]  ;;  %v936_v43 = vld [vmem:[%s2557_s11 + $0x170] sm:$0xff] }
  0x69   : > { %689 = vadd.xlane.f32.xlu1 %v688_v17  ;;  %1022 = vmatprep.subr.mxu0 %v943_v32  ;;  %v931_v44 = vld [vmem:[%s2557_s11 + $0x148] sm:$0xff]  ;;  %v933_v45 = vld [vmem:[%s2557_s11 + $0x158] sm:$0xff]  ;;  %v930_v46 = vld [vmem:[%s2557_s11 + $0x140] sm:$0xff] }
  0x6a   : > { %1135 = vmatprep.subr.mxu1 %v945_v33  ;;  %1023 = vmatpush1.msra.mxu0 %v942_v34  ;;  %v932_v47 = vld [vmem:[%s2557_s11 + $0x150] sm:$0xff]  ;;  %v927_v48 = vld [vmem:[%s2557_s11 + $0x128] sm:$0xff]  ;;  %v929_v49 = vld [vmem:[%s2557_s11 + $0x138] sm:$0xff] }
  0x6b   : > { %1136 = vmatpush1.msra.mxu1 %v944_v35  ;;  %1024 = vmatprep.subr.mxu0 %v939_v36  ;;  %v926_v50 = vld [vmem:[%s2557_s11 + $0x120] sm:$0xff]  ;;  %v928_v51 = vld [vmem:[%s2557_s11 + $0x130] sm:$0xff]  ;;  %v923_v52 = vld [vmem:[%s2557_s11 + $0x108] sm:$0xff] }
  0x6c   : > { %692 = vadd.xlane.f32.xlu0 %v691_v22  ;;  %1137 = vmatprep.subr.mxu1 %v941_v37  ;;  %v925_v53 = vld [vmem:[%s2557_s11 + $0x118] sm:$0xff]  ;;  %v922_v54 = vld [vmem:[%s2557_s11 + $0x100] sm:$0xff]  ;;  %v924_v55 = vld [vmem:[%s2557_s11 + $0x110] sm:$0xff] }
  0x6d   : > { %695 = vadd.xlane.f32.xlu1 %v694_v23  ;;  %1025 = vmatpush1.msra.mxu0 %v938_v38  ;;  %v919_v56 = vld [vmem:[%s2557_s11 + $0xe8] sm:$0xff]  ;;  %v921_v57 = vld [vmem:[%s2557_s11 + $0xf8] sm:$0xff]  ;;  %v918_v58 = vld [vmem:[%s2557_s11 + $0xe0] sm:$0xff] }
  0x6e   : > { %1138 = vmatpush1.msra.mxu1 %v940_v39  ;;  %1026 = vmatprep.subr.mxu0 %v935_v40  ;;  %v920_v59 = vld [vmem:[%s2557_s11 + $0xf0] sm:$0xff]  ;;  %v915_v60 = vld [vmem:[%s2557_s11 + $0xc8] sm:$0xff]  ;;  %v917_v61 = vld [vmem:[%s2557_s11 + $0xd8] sm:$0xff] }
  0x6f   : > { %1139 = vmatprep.subr.mxu1 %v937_v41  ;;  %1027 = vmatpush1.msra.mxu0 %v934_v42  ;;  %v914_v62 = vld [vmem:[%s2557_s11 + $0xc0] sm:$0xff]  ;;  %v916_v63 = vld [vmem:[%s2557_s11 + $0xd0] sm:$0xff]  ;;  %v911_v3 = vld [vmem:[%s2557_s11 + $0xa8] sm:$0xff] }
  0x70   : > { %1140 = vmatpush1.msra.mxu1 %v936_v43  ;;  %1028 = vmatprep.subr.mxu0 %v931_v44  ;;  %v913_v7 = vld [vmem:[%s2557_s11 + $0xb8] sm:$0xff]  ;;  %v910_v10 = vld [vmem:[%s2557_s11 + $0xa0] sm:$0xff]  ;;  %v912_v11 = vld [vmem:[%s2557_s11 + $0xb0] sm:$0xff] }
  0x71   : > { %1141 = vmatprep.subr.mxu1 %v933_v45  ;;  %1029 = vmatpush1.msra.mxu0 %v930_v46  ;;  %v907_v16 = vld [vmem:[%s2557_s11 + $0x88] sm:$0xff]  ;;  %v909_v17 = vld [vmem:[%s2557_s11 + $0x98] sm:$0xff]  ;;  %v906_v22 = vld [vmem:[%s2557_s11 + $0x80] sm:$0xff] }
  0x72   : > { %1142 = vmatpush1.msra.mxu1 %v932_v47  ;;  %1030 = vmatprep.subr.mxu0 %v927_v48  ;;  %v908_v23 = vld [vmem:[%s2557_s11 + $0x90] sm:$0xff]  ;;  %v903_v24 = vld [vmem:[%s2557_s11 + $0x68] sm:$0xff]  ;;  %v905_v25 = vld [vmem:[%s2557_s11 + $0x78] sm:$0xff] }
  0x73   : > { %1143 = vmatprep.subr.mxu1 %v929_v49  ;;  %1031 = vmatpush1.msra.mxu0 %v926_v50  ;;  %v902_v26 = vld [vmem:[%s2557_s11 + $0x60] sm:$0xff]  ;;  %v904_v27 = vld [vmem:[%s2557_s11 + $0x70] sm:$0xff]  ;;  %v899_v28 = vld [vmem:[%s2557_s11 + $0x48] sm:$0xff] }
  0x74   : > { %1144 = vmatpush1.msra.mxu1 %v928_v51  ;;  %1032 = vmatprep.subr.mxu0 %v923_v52  ;;  %v901_v29 = vld [vmem:[%s2557_s11 + $0x58] sm:$0xff]  ;;  %v898_v30 = vld [vmem:[%s2557_s11 + $0x40] sm:$0xff]  ;;  %v900_v31 = vld [vmem:[%s2557_s11 + $0x50] sm:$0xff] }
  0x75   : > { %1145 = vmatprep.subr.mxu1 %v925_v53  ;;  %1033 = vmatpush1.msra.mxu0 %v922_v54  ;;  %v895_v32 = vld [vmem:[%s2557_s11 + $0x28] sm:$0xff]  ;;  %v897_v33 = vld [vmem:[%s2557_s11 + $0x38] sm:$0xff]  ;;  %v894_v34 = vld [vmem:[%s2557_s11 + $0x20] sm:$0xff] }
  0x76   : > { %1146 = vmatpush1.msra.mxu1 %v924_v55  ;;  %1034 = vmatprep.subr.mxu0 %v919_v56  ;;  %v896_v35 = vld [vmem:[%s2557_s11 + $0x30] sm:$0xff]  ;;  %v891_v36 = vld [vmem:[%s2557_s11 + $0x8] sm:$0xff]  ;;  %v893_v37 = vld [vmem:[%s2557_s11 + $0x18] sm:$0xff] }
  0x77   : > { %1147 = vmatprep.subr.mxu1 %v921_v57  ;;  %1035 = vmatpush1.msra.mxu0 %v918_v58  ;;  %v890_v38 = vld [vmem:[%s2557_s11] sm:$0xff]  ;;  %v892_v39 = vld [vmem:[%s2557_s11 + $0x10] sm:$0xff]  ;;  %v1015_v40 = vld [vmem:[%s2557_s11 + $0x3e8] sm:$0xff] }
  0x78   : > { %1148 = vmatpush1.msra.mxu1 %v920_v59  ;;  %1036 = vmatprep.subr.mxu0 %v915_v60  ;;  %v1017_v41 = vld [vmem:[%s2557_s11 + $0x3f8] sm:$0xff]  ;;  %v1014_v42 = vld [vmem:[%s2557_s11 + $0x3e0] sm:$0xff]  ;;  %v1016_v43 = vld [vmem:[%s2557_s11 + $0x3f0] sm:$0xff] }
  0x79   : > { %1149 = vmatprep.subr.mxu1 %v917_v61  ;;  %1037 = vmatpush1.msra.mxu0 %v914_v62  ;;  %v1011_v44 = vld [vmem:[%s2557_s11 + $0x3c8] sm:$0xff]  ;;  %v1013_v45 = vld [vmem:[%s2557_s11 + $0x3d8] sm:$0xff]  ;;  %v1010_v46 = vld [vmem:[%s2557_s11 + $0x3c0] sm:$0xff] }
  0x7a   : > { %1150 = vmatpush1.msra.mxu1 %v916_v63  ;;  %1038 = vmatprep.subr.mxu0 %v911_v3  ;;  %v1012_v47 = vld [vmem:[%s2557_s11 + $0x3d0] sm:$0xff]  ;;  %v1007_v48 = vld [vmem:[%s2557_s11 + $0x3a8] sm:$0xff]  ;;  %v1009_v49 = vld [vmem:[%s2557_s11 + $0x3b8] sm:$0xff] }
  0x7b   : > { %1151 = vmatprep.subr.mxu1 %v913_v7  ;;  %1039 = vmatpush1.msra.mxu0 %v910_v10  ;;  %v1006_v50 = vld [vmem:[%s2557_s11 + $0x3a0] sm:$0xff]  ;;  %v1008_v51 = vld [vmem:[%s2557_s11 + $0x3b0] sm:$0xff] }
  0x7c   : > { %1152 = vmatpush1.msra.mxu1 %v912_v11  ;;  %1040 = vmatprep.subr.mxu0 %v907_v16 }
  0x7d   : > { %1153 = vmatprep.subr.mxu1 %v909_v17  ;;  %1041 = vmatpush1.msra.mxu0 %v906_v22 }
  0x7e   : > { %1154 = vmatpush1.msra.mxu1 %v908_v23  ;;  %1042 = vmatprep.subr.mxu0 %v903_v24 }
  0x7f   : > { %1155 = vmatprep.subr.mxu1 %v905_v25  ;;  %1043 = vmatpush1.msra.mxu0 %v902_v26 }
  0x80   : > { %1156 = vmatpush1.msra.mxu1 %v904_v27  ;;  %1044 = vmatprep.subr.mxu0 %v899_v28 }
  0x81   : > { %1157 = vmatprep.subr.mxu1 %v901_v29  ;;  %1045 = vmatpush1.msra.mxu0 %v898_v30 }
  0x82   : > { %1158 = vmatpush1.msra.mxu1 %v900_v31  ;;  %1046 = vmatprep.subr.mxu0 %v895_v32 }
  0x83   : > { %1159 = vmatprep.subr.mxu1 %v897_v33  ;;  %1047 = vmatpush1.msra.mxu0 %v894_v34 }
  0x84   : > { %1160 = vmatpush1.msra.mxu1 %v896_v35  ;;  %1048 = vmatprep.subr.mxu0 %v891_v36 }
  0x85   : > { %1161 = vmatprep.subr.mxu1 %v893_v37  ;;  %1049 = vmatpush1.msra.mxu0 %v890_v38 }
  0x86   : > { %1162 = vmatpush1.msra.mxu1 %v892_v39  ;;  %1050 = vmatprep.subr.mxu0 %v1015_v40 }
  0x87   : > { %1163 = vmatprep.subr.mxu1 %v1017_v41  ;;  %1051 = vmatpush2.msra.mxu0 %v1014_v42  ;;  %v1003_v42 = vld [vmem:[%s2557_s11 + $0x388] sm:$0xff] }
  0x88   : > { %1164 = vmatpush2.msra.mxu1 %v1016_v43  ;;  %1052 = vmatprep.subr.mxu0 %v1011_v44  ;;  %v1005_v43 = vld [vmem:[%s2557_s11 + $0x398] sm:$0xff]  ;;  %v1002_v44 = vld [vmem:[%s2557_s11 + $0x380] sm:$0xff] }
  0x89   : > { %1165 = vmatprep.subr.mxu1 %v1013_v45  ;;  %1053 = vmatpush2.msra.mxu0 %v1010_v46  ;;  %v1004_v45 = vld [vmem:[%s2557_s11 + $0x390] sm:$0xff] }
  0x8a   : > { %1166 = vmatpush2.msra.mxu1 %v1012_v47  ;;  %1054 = vmatprep.subr.mxu0 %v1007_v48  ;;  %v999_v47 = vld [vmem:[%s2557_s11 + $0x368] sm:$0xff]  ;;  %v1001_v48 = vld [vmem:[%s2557_s11 + $0x378] sm:$0xff] }
  0x8b   : > { %1167 = vmatprep.subr.mxu1 %v1009_v49  ;;  %1055 = vmatpush2.msra.mxu0 %v1006_v50  ;;  %v998_v49 = vld [vmem:[%s2557_s11 + $0x360] sm:$0xff]  ;;  %v1000_v50 = vld [vmem:[%s2557_s11 + $0x370] sm:$0xff] }
  0x8c   : > { %1168 = vmatpush2.msra.mxu1 %v1008_v51  ;;  %1056 = vmatprep.subr.mxu0 %v1003_v42  ;;  %v959_v42 = vld [vmem:[%s2557_s11 + $0x228] sm:$0xff] }
  0x8d   : > { %1169 = vmatprep.subr.mxu1 %v1005_v43  ;;  %1057 = vmatpush2.msra.mxu0 %v1002_v44  ;;  %v961_v43 = vld [vmem:[%s2557_s11 + $0x238] sm:$0xff]  ;;  %v955_v44 = vld [vmem:[%s2557_s11 + $0x208] sm:$0xff] }
  0x8e   : > { %1170 = vmatpush2.msra.mxu1 %v1004_v45  ;;  %1058 = vmatprep.subr.mxu0 %v999_v47  ;;  %v957_v45 = vld [vmem:[%s2557_s11 + $0x218] sm:$0xff]  ;;  %v956_v47 = vld [vmem:[%s2557_s11 + $0x210] sm:$0xff] }
  0x8f   : > { %1171 = vmatprep.subr.mxu1 %v1001_v48  ;;  %1059 = vmatpush2.msra.mxu0 %v998_v49 }
  0x90   : > { %1172 = vmatpush2.msra.mxu1 %v1000_v50 }
  0xe9   : > { %v675_v52 = vpop.xlane.xlu0 %674 }
  0xea   : > { %v698_v53 = vmul.f32 0.00390625, %v675_v52  ;;  %v681_v54 = vpop.xlane.xlu1 %680  ;;  %v995_v52 = vld [vmem:[%s2557_s11 + $0x348] sm:$0xff] }
  0xeb   : > { %v700_v55 = vmul.f32 0.00390625, %v681_v54  ;;  %1060 = vmatprep.subr.mxu0 %v995_v52  ;;  %v994_v54 = vld [vmem:[%s2557_s11 + $0x340] sm:$0xff] }
  0xec   : > { %v2636_v56 = vsub.f32 %v2461_v0, %v698_v53  ;;  %v2639_v57 = vsub.f32 %v2466_v1, %v698_v53  ;;  %v997_v53 = vld [vmem:[%s2557_s11 + $0x358] sm:$0xff]  ;;  %1061 = vmatpush2.msra.mxu0 %v994_v54 }
  0xed   : > { %v2642_v58 = vsub.f32 %v2471_v2, %v700_v55  ;;  %v2645_v59 = vsub.f32 %v2478_v4, %v700_v55  ;;  %v678_v60 = vpop.xlane.xlu0 %677  ;;  %1173 = vmatprep.subr.mxu1 %v997_v53  ;;  %v996_v55 = vld [vmem:[%s2557_s11 + $0x350] sm:$0xff]  ;;  %v804_v53 = vlaneseq }
  0xee   : > { %v699_v61 = vmul.f32 0.00390625, %v678_v60  ;;  %v684_v62 = vpop.xlane.xlu1 %683  ;;  %v722_v63 = vmul.f32 %v2636_v56, %v2636_v56  ;;  %v723_v3 = vmul.f32 %v2639_v57, %v2639_v57  ;;  %1174 = vmatpush2.msra.mxu1 %v996_v55  ;;  %v991_v60 = vld [vmem:[%s2557_s11 + $0x328] sm:$0xff] }
  0xef   : > { %v701_v0 = vmul.f32 0.00390625, %v684_v62  ;;  %v726_v1 = vmul.f32 %v2642_v58, %v2642_v58  ;;  %v727_v2 = vmul.f32 %v2645_v59, %v2645_v59  ;;  %1062 = vmatprep.subr.mxu0 %v991_v60  ;;  %v990_v62 = vld [vmem:[%s2557_s11 + $0x320] sm:$0xff] }
  0xf0   : > { %v2656_v7 = vsub.f32 %v2483_v5, %v699_v61  ;;  %v2659_v4 = vsub.f32 %v2488_v6, %v699_v61  ;;  %v738_v10 = vadd.f32 %v723_v3, %v722_v63  ;;  %v993_v61 = vld [vmem:[%s2557_s11 + $0x338] sm:$0xff]  ;;  %v992_v63 = vld [vmem:[%s2557_s11 + $0x330] sm:$0xff]  ;;  %1063 = vmatpush2.msra.mxu0 %v990_v62  ;;  %v987_v3 = vld [vmem:[%s2557_s11 + $0x308] sm:$0xff] }
  0xf1   : > { %v2662_v11 = vsub.f32 %v2495_v8, %v701_v0  ;;  %v2665_v16 = vsub.f32 %v2500_v9, %v701_v0  ;;  %v687_v17 = vpop.xlane.xlu0 %686  ;;  %v744_v24 = vadd.f32 %v727_v2, %v726_v1  ;;  %1175 = vmatprep.subr.mxu1 %v993_v61  ;;  %v989_v0 = vld [vmem:[%s2557_s11 + $0x318] sm:$0xff]  ;;  %1064 = vmatprep.subr.mxu0 %v987_v3  ;;  %v986_v1 = vld [vmem:[%s2557_s11 + $0x300] sm:$0xff]  ;;  %v988_v2 = vld [vmem:[%s2557_s11 + $0x310] sm:$0xff]  ;;  %v2767_v3 = vshrl.u32 %v804_v53, 7 }
  0xf2   : > { %v702_v22 = vmul.f32 0.00390625, %v687_v17  ;;  %739 = vadd.xlane.f32.xlu0 %v738_v10  ;;  %v690_v23 = vpop.xlane.xlu1 %689  ;;  %v724_v25 = vmul.f32 %v2656_v7, %v2656_v7  ;;  %v725_v5 = vmul.f32 %v2659_v4, %v2659_v4  ;;  %1176 = vmatpush2.msra.mxu1 %v992_v63  ;;  %v983_v10 = vld [vmem:[%s2557_s11 + $0x2e8] sm:$0xff]  ;;  %v985_v17 = vld [vmem:[%s2557_s11 + $0x2f8] sm:$0xff] }
  0xf3   : > { %v703_v6 = vmul.f32 0.00390625, %v690_v23  ;;  %v728_v26 = vmul.f32 %v2662_v11, %v2662_v11  ;;  %v729_v8 = vmul.f32 %v2665_v16, %v2665_v16  ;;  %1177 = vmatprep.subr.mxu1 %v989_v0  ;;  %1065 = vmatpush2.msra.mxu0 %v986_v1  ;;  %v984_v23 = vld [vmem:[%s2557_s11 + $0x2f0] sm:$0xff] }
  0xf4   : > { %v2676_v9 = vsub.f32 %v2509_v12, %v702_v22  ;;  %v2679_v27 = vsub.f32 %v2514_v13, %v702_v22  ;;  %v741_v28 = vadd.f32 %v725_v5, %v724_v25  ;;  %1178 = vmatpush2.msra.mxu1 %v988_v2  ;;  %1066 = vmatprep.subr.mxu0 %v983_v10  ;;  %v982_v22 = vld [vmem:[%s2557_s11 + $0x2e0] sm:$0xff]  ;;  %v981_v25 = vld [vmem:[%s2557_s11 + $0x2d8] sm:$0xff] }
  0xf5   : > { %v2682_v29 = vsub.f32 %v2519_v14, %v703_v6  ;;  %v2685_v30 = vsub.f32 %v2524_v15, %v703_v6  ;;  %v693_v31 = vpop.xlane.xlu0 %692  ;;  %v747_v34 = vadd.f32 %v729_v8, %v728_v26  ;;  %1179 = vmatprep.subr.mxu1 %v985_v17  ;;  %1067 = vmatpush2.msra.mxu0 %v982_v22  ;;  %v978_v5 = vld [vmem:[%s2557_s11 + $0x2c0] sm:$0xff]  ;;  %v980_v6 = vld [vmem:[%s2557_s11 + $0x2d0] sm:$0xff]  ;;  %v975_v26 = vld [vmem:[%s2557_s11 + $0x2a8] sm:$0xff] }
  0xf6   : > { %v704_v32 = vmul.f32 0.00390625, %v693_v31  ;;  %745 = vadd.xlane.f32.xlu0 %v744_v24  ;;  %742 = vadd.xlane.f32.xlu1 %v741_v28  ;;  %v696_v33 = vpop.xlane.xlu1 %695  ;;  %v730_v12 = vmul.f32 %v2676_v9, %v2676_v9  ;;  %v731_v13 = vmul.f32 %v2679_v27, %v2679_v27  ;;  %v979_v24 = vld [vmem:[%s2557_s11 + $0x2c8] sm:$0xff]  ;;  %v977_v8 = vld [vmem:[%s2557_s11 + $0x2b8] sm:$0xff]  ;;  %v974_v28 = vld [vmem:[%s2557_s11 + $0x2a0] sm:$0xff] }
  0xf7   : > { %v705_v35 = vmul.f32 0.00390625, %v696_v33  ;;  %v732_v14 = vmul.f32 %v2682_v29, %v2682_v29  ;;  %v733_v15 = vmul.f32 %v2685_v30, %v2685_v30  ;;  %1180 = vmatpush2.msra.mxu1 %v984_v23  ;;  %1068 = vmatprep.subr.mxu0 %v979_v24  ;;  %v976_v31 = vld [vmem:[%s2557_s11 + $0x2b0] sm:$0xff]  ;;  %v973_v33 = vld [vmem:[%s2557_s11 + $0x298] sm:$0xff]  ;;  %v2770_v23 = vsub.s32 0, %v2767_v3 }
  0xf8   : > { %v2696_v36 = vsub.f32 %v2533_v18, %v704_v32  ;;  %v2699_v37 = vsub.f32 %v2538_v19, %v704_v32  ;;  %v750_v38 = vadd.f32 %v731_v13, %v730_v12  ;;  %1181 = vmatprep.subr.mxu1 %v981_v25  ;;  %1069 = vmatpush2.msra.mxu0 %v978_v5  ;;  %v971_v32 = vld [vmem:[%s2557_s11 + $0x288] sm:$0xff]  ;;  %v972_v12 = vld [vmem:[%s2557_s11 + $0x290] sm:$0xff]  ;;  %v802_v5 = vld [vmem:[%s3242_s3] sm:$0x3] }
  0xf9   : > { %v2702_v39 = vsub.f32 %v2543_v20, %v705_v35  ;;  %v2705_v40 = vsub.f32 %v2548_v21, %v705_v35  ;;  %v753_v41 = vadd.f32 %v733_v15, %v732_v14  ;;  %1182 = vmatpush2.msra.mxu1 %v980_v6  ;;  %1070 = vmatprep.subr.mxu0 %v975_v26  ;;  %v967_v13 = vld [vmem:[%s2557_s11 + $0x268] sm:$0xff]  ;;  %v969_v35 = vld [vmem:[%s2557_s11 + $0x278] sm:$0xff]  ;;  %v966_v14 = vld [vmem:[%s2557_s11 + $0x260] sm:$0xff]  ;;  %v2776_v6 = vsub.s32 1, %v2767_v3 }
  0xfa   : > { %748 = vadd.xlane.f32.xlu1 %v747_v34  ;;  %751 = vadd.xlane.f32.xlu0 %v750_v38  ;;  %v734_v18 = vmul.f32 %v2696_v36, %v2696_v36  ;;  %v735_v19 = vmul.f32 %v2699_v37, %v2699_v37  ;;  %v970_v34 = vld [vmem:[%s2557_s11 + $0x280] sm:$0xff]  ;;  %v968_v15 = vld [vmem:[%s2557_s11 + $0x270] sm:$0xff]  ;;  %v963_v38 = vld [vmem:[%s2557_s11 + $0x248] sm:$0xff] }
  0xfb   : > { %v736_v20 = vmul.f32 %v2702_v39, %v2702_v39  ;;  %v737_v21 = vmul.f32 %v2705_v40, %v2705_v40  ;;  %1183 = vmatprep.subr.mxu1 %v977_v8  ;;  %1071 = vmatpush2.msra.mxu0 %v974_v28  ;;  %v2779_v28 = vrot.slane %v802_v5, %v2770_v23 }
  0xfc   : > { %v756_v46 = vadd.f32 %v735_v19, %v734_v18  ;;  %1184 = vmatpush2.msra.mxu1 %v976_v31  ;;  %1072 = vmatprep.subr.mxu0 %v971_v32  ;;  %v962_v18 = vld [vmem:[%s2557_s11 + $0x240] sm:$0xff]  ;;  %v964_v19 = vld [vmem:[%s2557_s11 + $0x250] sm:$0xff] }
  0xfd   : > { %v759_v51 = vadd.f32 %v737_v21, %v736_v20  ;;  %1185 = vmatprep.subr.mxu1 %v973_v33  ;;  %1073 = vmatpush2.msra.mxu0 %v970_v34  ;;  %v958_v20 = vld [vmem:[%s2557_s11 + $0x220] sm:$0xff]  ;;  %v960_v21 = vld [vmem:[%s2557_s11 + $0x230] sm:$0xff]  ;;  %v2785_v34 = vrot.slane %v802_v5, %v2776_v6 }
  0xfe   : > { %754 = vadd.xlane.f32.xlu1 %v753_v41  ;;  %757 = vadd.xlane.f32.xlu0 %v756_v46  ;;  %v965_v41 = vld [vmem:[%s2557_s11 + $0x258] sm:$0xff]  ;;  %v954_v46 = vld [vmem:[%s2557_s11 + $0x200] sm:$0xff] }
  0xff   : > { %1186 = vmatpush2.msra.mxu1 %v972_v12  ;;  %1074 = vmatprep.subr.mxu0 %v967_v13  ;;  %v830_v31 = vld [vmem:[%s3243_s4] sm:$0x3] }
 0x100   : > { %1187 = vmatprep.subr.mxu1 %v969_v35  ;;  %1075 = vmatpush2.msra.mxu0 %v966_v14  ;;  %v2789_v35 = vrot.slane %v830_v31, %v2770_v23  ;;  %v2792_v14 = vrot.slane %v830_v31, %v2776_v6 }
 0x101   : > { %1188 = vmatpush2.msra.mxu1 %v968_v15  ;;  %1076 = vmatprep.subr.mxu0 %v963_v38 }
 0x102   : > { %760 = vadd.xlane.f32.xlu1 %v759_v51  ;;  %1189 = vmatprep.subr.mxu1 %v965_v41 }
 0x103   : > { %1077 = vmatpush2.msra.mxu0 %v962_v18  ;;  %1190 = vmatpush2.msra.mxu1 %v964_v19 }
 0x104   : > { %1078 = vmatprep.subr.mxu0 %v959_v42  ;;  %1191 = vmatprep.subr.mxu1 %v961_v43 }
 0x105   : > { %1079 = vmatpush2.msra.mxu0 %v958_v20  ;;  %1192 = vmatpush2.msra.mxu1 %v960_v21 }
 0x106   : > { %1080 = vmatprep.subr.mxu0 %v955_v44  ;;  %1193 = vmatprep.subr.mxu1 %v957_v45 }
 0x107   : > { %1081 = vmatpush2.msra.mxu0 %v954_v46  ;;  %1194 = vmatpush2.msra.mxu1 %v956_v47 }
 0x17b   : > { %v740_v48 = vpop.xlane.xlu0 %739 }
 0x17c   : > { %v762_v49 = vmul.f32 0.00390625, %v740_v48 }
 0x17e   : > { %v770_v50 = vadd.f32 1e-05, %v762_v49 }
 0x17f   : > { %v743_v51 = vpop.xlane.xlu1 %742  ;;  %v746_v52 = vpop.xlane.xlu0 %745 }
 0x180   : > { %1998 = vrsqrt.f32 %v770_v50  ;;  %v763_v54 = vmul.f32 0.00390625, %v743_v51  ;;  %v764_v55 = vmul.f32 0.00390625, %v746_v52 }
 0x182   : > { %v771_v60 = vadd.f32 1e-05, %v763_v54  ;;  %v772_v61 = vadd.f32 1e-05, %v764_v55 }
 0x183   : > { %v749_v62 = vpop.xlane.xlu1 %748  ;;  %v752_v63 = vpop.xlane.xlu0 %751 }
 0x184   : > { %2000 = vrsqrt.f32 %v771_v60  ;;  %v765_v0 = vmul.f32 0.00390625, %v749_v62  ;;  %v766_v1 = vmul.f32 0.00390625, %v752_v63 }
 0x185   : > { %2002 = vrsqrt.f32 %v772_v61 }
 0x186   : > { %v773_v2 = vadd.f32 1e-05, %v765_v0  ;;  %v774_v10 = vadd.f32 1e-05, %v766_v1 }
 0x187   : > { %v755_v17 = vpop.xlane.xlu1 %754  ;;  %v758_v22 = vpop.xlane.xlu0 %757 }
 0x188   : > { %2004 = vrsqrt.f32 %v773_v2  ;;  %v767_v24 = vmul.f32 0.00390625, %v755_v17  ;;  %v768_v25 = vmul.f32 0.00390625, %v758_v22 }
 0x189   : > { %2006 = vrsqrt.f32 %v774_v10 }
 0x18a   : > { %v775_v26 = vadd.f32 1e-05, %v767_v24  ;;  %v776_v32 = vadd.f32 1e-05, %v768_v25 }
 0x18b   : > { %v761_v8 = vpop.xlane.xlu1 %760 }
 0x18c   : > { %2008 = vrsqrt.f32 %v775_v26  ;;  %v769_v33 = vmul.f32 0.00390625, %v761_v8 }
 0x18d   : > { %v1999_v12 = vpop.eup %1998  ;;  %2010 = vrsqrt.f32 %v776_v32 }
 0x18e   : > { %v787_v13 = vmul.f32 %v1999_v12, %v2639_v57  ;;  %v786_v15 = vmul.f32 %v1999_v12, %v2636_v56  ;;  %v777_v38 = vadd.f32 1e-05, %v769_v33  ;;  %v1359_v12 = vsub.s32 3, %v2767_v3 }
 0x190   : > { %v815_v41 = vmul.f32 %v2785_v34, %v787_v13  ;;  %v814_v18 = vmul.f32 %v2779_v28, %v786_v15  ;;  %2012 = vrsqrt.f32 %v777_v38 }
 0x191   : > { %v2001_v19 = vpop.eup %2000 }
 0x192   : > { %v2003_v42 = vpop.eup %2002  ;;  %v843_v43 = vadd.f32 %v2792_v14, %v815_v41  ;;  %v842_v57 = vadd.f32 %v2789_v35, %v814_v18  ;;  %v789_v20 = vmul.f32 %v2001_v19, %v2659_v4  ;;  %v788_v21 = vmul.f32 %v2001_v19, %v2656_v7 }
 0x193   : > { %v791_v44 = vmul.f32 %v2003_v42, %v2645_v59  ;;  %v790_v56 = vmul.f32 %v2003_v42, %v2642_v58 }
 0x194   : > { %1082 = vmatprep.mubr.f32.mxu0 %v843_v43  ;;  %1195 = vmatprep.mubr.f32.mxu1 %v843_v43  ;;  %v817_v45 = vmul.f32 %v2785_v34, %v789_v20  ;;  %v816_v46 = vmul.f32 %v2779_v28, %v788_v21 }
 0x195   : > { %v2005_v47 = vpop.eup %2004  ;;  %1083 = vmatmul.mubr.f32.vlgmr.msra.gmra.mxu0 %v842_v57  ;;  %1196 = vmatmul.mubr.f32.vlgmr.msra.gmra.mxu1 %v842_v57  ;;  %v819_v48 = vmul.f32 %v2785_v34, %v791_v44  ;;  %v818_v58 = vmul.f32 %v2779_v28, %v790_v56 }
 0x196   : > { %v2007_v49 = vpop.eup %2006  ;;  %v845_v4 = vadd.f32 %v2792_v14, %v817_v45  ;;  %v844_v7 = vadd.f32 %v2789_v35, %v816_v46  ;;  %v793_v59 = vmul.f32 %v2005_v47, %v2665_v16  ;;  %v792_v50 = vmul.f32 %v2005_v47, %v2662_v11 }
 0x197   : > { %v847_v51 = vadd.f32 %v2792_v14, %v819_v48  ;;  %v795_v53 = vmul.f32 %v2007_v49, %v2679_v27  ;;  %v846_v55 = vadd.f32 %v2789_v35, %v818_v58  ;;  %v794_v60 = vmul.f32 %v2007_v49, %v2676_v9 }
 0x198   : > { %1088 = vmatprep.mubr.f32.mxu0 %v845_v4  ;;  %1201 = vmatprep.mubr.f32.mxu1 %v845_v4  ;;  %v821_v52 = vmul.f32 %v2785_v34, %v793_v59  ;;  %v820_v16 = vmul.f32 %v2779_v28, %v792_v50 }
 0x199   : > { %v2009_v54 = vpop.eup %2008  ;;  %1089 = vmatmul.mubr.f32.gmra.mxu0 %v844_v7  ;;  %1202 = vmatmul.mubr.f32.gmra.mxu1 %v844_v7  ;;  %v823_v61 = vmul.f32 %v2785_v34, %v795_v53  ;;  %v822_v0 = vmul.f32 %v2779_v28, %v794_v60 }
 0x19a   : > { %1094 = vmatprep.mubr.f32.mxu0 %v847_v51  ;;  %1207 = vmatprep.mubr.f32.mxu1 %v847_v51  ;;  %v849_v11 = vadd.f32 %v2792_v14, %v821_v52  ;;  %v797_v62 = vmul.f32 %v2009_v54, %v2685_v30  ;;  %v2011_v63 = vpop.eup %2010  ;;  %v848_v27 = vadd.f32 %v2789_v35, %v820_v16 }
 0x19b   : > { %v796_v1 = vmul.f32 %v2009_v54, %v2682_v29  ;;  %v851_v2 = vadd.f32 %v2792_v14, %v823_v61  ;;  %v799_v10 = vmul.f32 %v2011_v63, %v2699_v37  ;;  %v850_v30 = vadd.f32 %v2789_v35, %v822_v0 }
 0x19c   : > { %v825_v9 = vmul.f32 %v2785_v34, %v797_v62  ;;  %v798_v24 = vmul.f32 %v2011_v63, %v2696_v36 }
 0x19d   : > { %1095 = vmatmul.mubr.f32.gmra.mxu0 %v846_v55  ;;  %1208 = vmatmul.mubr.f32.gmra.mxu1 %v846_v55  ;;  %v2013_v17 = vpop.eup %2012  ;;  %v824_v22 = vmul.f32 %v2779_v28, %v796_v1  ;;  %v827_v29 = vmul.f32 %v2785_v34, %v799_v10 }
 0x19e   : > { %1100 = vmatprep.mubr.f32.mxu0 %v849_v11  ;;  %1213 = vmatprep.mubr.f32.mxu1 %v849_v11  ;;  %v853_v25 = vadd.f32 %v2792_v14, %v825_v9  ;;  %v801_v5 = vmul.f32 %v2013_v17, %v2705_v40  ;;  %v826_v26 = vmul.f32 %v2779_v28, %v798_v24 }
 0x19f   : > { %v852_v37 = vadd.f32 %v2789_v35, %v824_v22  ;;  %v800_v8 = vmul.f32 %v2013_v17, %v2702_v39  ;;  %v855_v31 = vadd.f32 %v2792_v14, %v827_v29 }
 0x1a0   : > { %v829_v36 = vmul.f32 %v2785_v34, %v801_v5  ;;  %v854_v40 = vadd.f32 %v2789_v35, %v826_v26  ;;  %v1355_v34 = vsub.s32 2, %v2767_v3 }
 0x1a1   : > { %1101 = vmatmul.mubr.f32.gmra.mxu0 %v848_v27  ;;  %1214 = vmatmul.mubr.f32.gmra.mxu1 %v848_v27  ;;  %v828_v32 = vmul.f32 %v2779_v28, %v800_v8  ;;  %v1343_v28 = vld [vmem:[%s607_s25] sm:$0xf] }
 0x1a2   : > { %1106 = vmatprep.mubr.f32.mxu0 %v851_v2  ;;  %1219 = vmatprep.mubr.f32.mxu1 %v851_v2  ;;  %v857_v33 = vadd.f32 %v2792_v14, %v829_v36  ;;  %v2848_v13 = vrot.slane %v1343_v28, %v2770_v23  ;;  %v2850_v14 = vrot.slane %v1343_v28, %v1355_v34 }
 0x1a3   : > { %v856_v39 = vadd.f32 %v2789_v35, %v828_v32  ;;  %v2853_v35 = vrot.slane %v1343_v28, %v2776_v6  ;;  %v2855_v15 = vrot.slane %v1343_v28, %v1359_v12 }
 0x1a5   : > { %1107 = vmatmul.mubr.f32.gmra.mxu0 %v850_v30  ;;  %1220 = vmatmul.mubr.f32.gmra.mxu1 %v850_v30 }
 0x1a6   : > { %1112 = vmatprep.mubr.f32.mxu0 %v853_v25  ;;  %1225 = vmatprep.mubr.f32.mxu1 %v853_v25 }
 0x1a9   : > { %1113 = vmatmul.mubr.f32.gmra.mxu0 %v852_v37  ;;  %1226 = vmatmul.mubr.f32.gmra.mxu1 %v852_v37 }
 0x1aa   : > { %1118 = vmatprep.mubr.f32.mxu0 %v855_v31  ;;  %1231 = vmatprep.mubr.f32.mxu1 %v855_v31 }
 0x1ad   : > { %1119 = vmatmul.mubr.f32.gmra.mxu0 %v854_v40  ;;  %1232 = vmatmul.mubr.f32.gmra.mxu1 %v854_v40 }
 0x1ae   : > { %1124 = vmatprep.mubr.f32.mxu0 %v857_v33  ;;  %1237 = vmatprep.mubr.f32.mxu1 %v857_v33 }
 0x1b1   : > { %1125 = vmatmul.mubr.f32.gmra.mxu0 %v856_v39  ;;  %1238 = vmatmul.mubr.f32.gmra.mxu1 %v856_v39 }
 0x255   : > { %v1084_v38 = vpop.f32.mrf.mxu0  ;;  %v1197_v41 = vpop.f32.mrf.mxu1 }
 0x256   : > { %v2858_v18 = vadd.f32 %v2848_v13, %v1084_v38  ;;  %v2861_v19 = vadd.f32 %v2850_v14, %v1197_v41 }
 0x257   : > { %v1086_v42 = vpop.f32.mrf.mxu0  ;;  %v1199_v3 = vpop.f32.mrf.mxu1 }
 0x258   : > { %v1397_v23 = vmul.f32 %v2858_v18, %v2858_v18  ;;  %v1399_v43 = vmul.f32 %v2861_v19, %v2861_v19  ;;  %v2868_v6 = vadd.f32 %v2853_v35, %v1086_v42  ;;  %v2871_v57 = vadd.f32 %v2855_v15, %v1199_v3 }
 0x259   : > { %v1090_v20 = vpop.f32.mrf.mxu0  ;;  %v1203_v21 = vpop.f32.mrf.mxu1 }
 0x25a   : > { %v1429_v44 = vmul.f32 %v1397_v23, %v2858_v18  ;;  %v1431_v56 = vmul.f32 %v1399_v43, %v2861_v19  ;;  %v1398_v45 = vmul.f32 %v2868_v6, %v2868_v6  ;;  %v1400_v46 = vmul.f32 %v2871_v57, %v2871_v57 }
 0x25b   : > { %v2880_v47 = vadd.f32 %v2848_v13, %v1090_v20  ;;  %v2883_v48 = vadd.f32 %v2850_v14, %v1203_v21  ;;  %v1092_v49 = vpop.f32.mrf.mxu0  ;;  %v1205_v4 = vpop.f32.mrf.mxu1 }
 0x25c   : > { %v1461_v7 = vmul.f32 0.044715, %v1429_v44  ;;  %v1463_v59 = vmul.f32 0.044715, %v1431_v56  ;;  %v1430_v58 = vmul.f32 %v1398_v45, %v2868_v6  ;;  %v1432_v50 = vmul.f32 %v1400_v46, %v2871_v57 }
 0x25d   : > { %v1401_v51 = vmul.f32 %v2880_v47, %v2880_v47  ;;  %v1403_v52 = vmul.f32 %v2883_v48, %v2883_v48  ;;  %v2892_v53 = vadd.f32 %v2853_v35, %v1092_v49  ;;  %v2895_v54 = vadd.f32 %v2855_v15, %v1205_v4  ;;  %v1096_v55 = vpop.f32.mrf.mxu0  ;;  %v1209_v16 = vpop.f32.mrf.mxu1 }
 0x25e   : > { %v1493_v60 = vadd.f32 %v1461_v7, %v2858_v18  ;;  %v1495_v11 = vadd.f32 %v1463_v59, %v2861_v19  ;;  %v1462_v61 = vmul.f32 0.044715, %v1430_v58  ;;  %v1464_v62 = vmul.f32 0.044715, %v1432_v50 }
 0x25f   : > { %v1433_v63 = vmul.f32 %v1401_v51, %v2880_v47  ;;  %v1435_v27 = vmul.f32 %v1403_v52, %v2883_v48  ;;  %v1402_v0 = vmul.f32 %v2892_v53, %v2892_v53  ;;  %v1404_v1 = vmul.f32 %v2895_v54, %v2895_v54  ;;  %v1098_v30 = vpop.f32.mrf.mxu0  ;;  %v1211_v5 = vpop.f32.mrf.mxu1 }
 0x260   : > { %v1525_v2 = vmul.f32 0.7978846, %v1493_v60  ;;  %v1527_v9 = vmul.f32 0.7978846, %v1495_v11  ;;  %v1494_v10 = vadd.f32 %v1462_v61, %v2868_v6  ;;  %v1496_v17 = vadd.f32 %v1464_v62, %v2871_v57 }
 0x261   : > { %v1465_v22 = vmul.f32 0.044715, %v1433_v63  ;;  %v1467_v24 = vmul.f32 0.044715, %v1435_v27  ;;  %v1434_v25 = vmul.f32 %v1402_v0, %v2892_v53  ;;  %v1436_v29 = vmul.f32 %v1404_v1, %v2895_v54  ;;  %v1102_v34 = vpop.f32.mrf.mxu0  ;;  %v1215_v41 = vpop.f32.mrf.mxu1 }
 0x262   : > { %2014 = vtanh.f32 %v1525_v2  ;;  %v1526_v37 = vmul.f32 0.7978846, %v1494_v10  ;;  %v1528_v26 = vmul.f32 0.7978846, %v1496_v17  ;;  %v2910_v8 = vadd.f32 %v2848_v13, %v1096_v55 }
 0x263   : > { %2016 = vtanh.f32 %v1527_v9  ;;  %v1497_v31 = vadd.f32 %v1465_v22, %v2880_v47  ;;  %v1499_v36 = vadd.f32 %v1467_v24, %v2883_v48  ;;  %v1466_v40 = vmul.f32 0.044715, %v1434_v25  ;;  %v1104_v49 = vpop.f32.mrf.mxu0  ;;  %v1217_v58 = vpop.f32.mrf.mxu1 }
 0x264   : > { %2018 = vtanh.f32 %v1526_v37  ;;  %v1468_v32 = vmul.f32 0.044715, %v1436_v29  ;;  %v1405_v33 = vmul.f32 %v2910_v8, %v2910_v8  ;;  %v2917_v39 = vadd.f32 %v2850_v14, %v1209_v16 }
 0x265   : > { %2020 = vtanh.f32 %v1528_v26  ;;  %v1529_v28 = vmul.f32 0.7978846, %v1497_v31  ;;  %v1531_v12 = vmul.f32 0.7978846, %v1499_v36  ;;  %v1498_v38 = vadd.f32 %v1466_v40, %v2892_v53  ;;  %v1108_v22 = vpop.f32.mrf.mxu0 }
 0x266   : > { %v1500_v42 = vadd.f32 %v1468_v32, %v2895_v54  ;;  %v1437_v3 = vmul.f32 %v1405_v33, %v2910_v8  ;;  %v1407_v23 = vmul.f32 %v2917_v39, %v2917_v39  ;;  %v2925_v43 = vadd.f32 %v2853_v35, %v1098_v30 }
 0x267   : > { %2022 = vtanh.f32 %v1529_v28  ;;  %v1530_v20 = vmul.f32 0.7978846, %v1498_v38  ;;  %v2928_v21 = vadd.f32 %v2855_v15, %v1211_v5  ;;  %v2931_v44 = vadd.f32 %v2848_v13, %v1102_v34 }
 0x268   : > { %2024 = vtanh.f32 %v1531_v12  ;;  %v1532_v56 = vmul.f32 0.7978846, %v1500_v42  ;;  %v1469_v45 = vmul.f32 0.044715, %v1437_v3  ;;  %v1439_v46 = vmul.f32 %v1407_v23, %v2917_v39 }
 0x269   : > { %2026 = vtanh.f32 %v1530_v20  ;;  %v1406_v4 = vmul.f32 %v2925_v43, %v2925_v43  ;;  %v1408_v7 = vmul.f32 %v2928_v21, %v2928_v21  ;;  %v1409_v59 = vmul.f32 %v2931_v44, %v2931_v44 }
 0x26a   : > { %2028 = vtanh.f32 %v1532_v56  ;;  %v1501_v50 = vadd.f32 %v1469_v45, %v2910_v8  ;;  %v1471_v51 = vmul.f32 0.044715, %v1439_v46  ;;  %v2942_v52 = vadd.f32 %v2850_v14, %v1215_v41 }
 0x26b   : > { %v1438_v55 = vmul.f32 %v1406_v4, %v2925_v43  ;;  %v1440_v16 = vmul.f32 %v1408_v7, %v2928_v21  ;;  %v1441_v60 = vmul.f32 %v1409_v59, %v2931_v44  ;;  %v2948_v11 = vadd.f32 %v2853_v35, %v1104_v49  ;;  %v1221_v59 = vpop.f32.mrf.mxu1 }
 0x26c   : > { %v1533_v61 = vmul.f32 0.7978846, %v1501_v50  ;;  %v1503_v62 = vadd.f32 %v1471_v51, %v2917_v39  ;;  %v1411_v63 = vmul.f32 %v2942_v52, %v2942_v52  ;;  %v2954_v27 = vadd.f32 %v2855_v15, %v1217_v58 }
 0x26d   : > { %v1470_v0 = vmul.f32 0.044715, %v1438_v55  ;;  %v1472_v1 = vmul.f32 0.044715, %v1440_v16  ;;  %v1473_v2 = vmul.f32 0.044715, %v1441_v60  ;;  %v1410_v9 = vmul.f32 %v2948_v11, %v2948_v11 }
 0x26e   : > { %2030 = vtanh.f32 %v1533_v61  ;;  %v1535_v10 = vmul.f32 0.7978846, %v1503_v62  ;;  %v1443_v17 = vmul.f32 %v1411_v63, %v2942_v52  ;;  %v1412_v30 = vmul.f32 %v2954_v27, %v2954_v27  ;;  %v1110_v62 = vpop.f32.mrf.mxu0 }
 0x26f   : > { %v2015_v24 = vpop.eup %2014  ;;  %v1502_v25 = vadd.f32 %v1470_v0, %v2925_v43  ;;  %v1504_v29 = vadd.f32 %v1472_v1, %v2928_v21  ;;  %v1505_v5 = vadd.f32 %v1473_v2, %v2931_v44  ;;  %v1442_v37 = vmul.f32 %v1410_v9, %v2948_v11 }
 0x270   : > { %v2017_v26 = vpop.eup %2016  ;;  %v1589_v31 = vadd.f32 1.0, %v2015_v24  ;;  %2032 = vtanh.f32 %v1535_v10  ;;  %v1475_v36 = vmul.f32 0.044715, %v1443_v17  ;;  %v1444_v40 = vmul.f32 %v1412_v30, %v2954_v27  ;;  %v1223_v30 = vpop.f32.mrf.mxu1 }
 0x271   : > { %v2019_v32 = vpop.eup %2018  ;;  %v1591_v33 = vadd.f32 1.0, %v2017_v26  ;;  %v1534_v34 = vmul.f32 0.7978846, %v1502_v25  ;;  %v1536_v28 = vmul.f32 0.7978846, %v1504_v29  ;;  %v2971_v12 = vadd.f32 %v2848_v13, %v1108_v22  ;;  %v1114_v26 = vpop.f32.mrf.mxu0 }
 0x272   : > { %v2021_v38 = vpop.eup %2020  ;;  %v1621_v41 = vmul.f32 0.5, %v1589_v31  ;;  %v1590_v42 = vadd.f32 1.0, %v2019_v32  ;;  %v1537_v3 = vmul.f32 0.7978846, %v1505_v5  ;;  %v1507_v23 = vadd.f32 %v1475_v36, %v2942_v52 }
 0x273   : > { %v1623_v20 = vmul.f32 0.5, %v1591_v33  ;;  %v1592_v56 = vadd.f32 1.0, %v2021_v38  ;;  %2034 = vtanh.f32 %v1534_v34  ;;  %v1474_v45 = vmul.f32 0.044715, %v1442_v37  ;;  %v1227_v38 = vpop.f32.mrf.mxu1 }
 0x274   : > { %v2023_v46 = vpop.eup %2022  ;;  %v1653_v49 = vmul.f32 %v1621_v41, %v2858_v18  ;;  %v1622_v4 = vmul.f32 0.5, %v1590_v42  ;;  %2036 = vtanh.f32 %v1536_v28  ;;  %v1539_v7 = vmul.f32 0.7978846, %v1507_v23 }
 0x275   : > { %v2025_v58 = vpop.eup %2024  ;;  %v1655_v50 = vmul.f32 %v1623_v20, %v2861_v19  ;;  %v1624_v51 = vmul.f32 0.5, %v1592_v56  ;;  %v1593_v55 = vadd.f32 1.0, %v2023_v46  ;;  %2038 = vtanh.f32 %v1537_v3 }
 0x276   : > { %v2027_v16 = vpop.eup %2026  ;;  %1685 = vst [vmem:[%s2977_s18] sm:$0xff] %v1653_v49  ;;  %v1654_v60 = vmul.f32 %v1622_v4, %v2868_v6  ;;  %v1595_v18 = vadd.f32 1.0, %v2025_v58  ;;  %2040 = vtanh.f32 %v1539_v7  ;;  %v1506_v61 = vadd.f32 %v1474_v45, %v2948_v11  ;;  %v1116_v7 = vpop.f32.mrf.mxu0 }
 0x277   : > { %v2029_v63 = vpop.eup %2028  ;;  %1687 = vst [vmem:[%s2977_s18 + $0x10] sm:$0xff] %v1655_v50  ;;  %v1656_v19 = vmul.f32 %v1624_v51, %v2871_v57  ;;  %v1625_v0 = vmul.f32 0.5, %v1593_v55  ;;  %v1594_v1 = vadd.f32 1.0, %v2027_v16  ;;  %v1476_v2 = vmul.f32 0.044715, %v1444_v40 }
 0x278   : > { %1686 = vst [vmem:[%s2977_s18 + $0x8] sm:$0xff] %v1654_v60  ;;  %v1627_v9 = vmul.f32 0.5, %v1595_v18  ;;  %v1596_v10 = vadd.f32 1.0, %v2029_v63  ;;  %v1538_v17 = vmul.f32 0.7978846, %v1506_v61  ;;  %v1413_v6 = vmul.f32 %v2971_v12, %v2971_v12 }
 0x279   : > { %1688 = vst [vmem:[%s2977_s18 + $0x18] sm:$0xff] %v1656_v19  ;;  %v1657_v22 = vmul.f32 %v1625_v0, %v2880_v47  ;;  %v1626_v24 = vmul.f32 0.5, %v1594_v1  ;;  %v1508_v25 = vadd.f32 %v1476_v2, %v2954_v27  ;;  %v2991_v57 = vadd.f32 %v2850_v14, %v1221_v59 }
 0x27a   : > { %v1659_v29 = vmul.f32 %v1627_v9, %v2883_v48  ;;  %v1628_v5 = vmul.f32 0.5, %v1596_v10  ;;  %2042 = vtanh.f32 %v1538_v17  ;;  %v1445_v37 = vmul.f32 %v1413_v6, %v2971_v12  ;;  %v1229_v6 = vpop.f32.mrf.mxu1 }
 0x27b   : > { %v2031_v31 = vpop.eup %2030  ;;  %1689 = vst [vmem:[%s2977_s18 + $0x20] sm:$0xff] %v1657_v22  ;;  %v1658_v36 = vmul.f32 %v1626_v24, %v2892_v53  ;;  %v1540_v47 = vmul.f32 0.7978846, %v1508_v25  ;;  %v1415_v40 = vmul.f32 %v2991_v57, %v2991_v57  ;;  %v3000_v32 = vadd.f32 %v2853_v35, %v1110_v62 }
 0x27c   : > { %1691 = vst [vmem:[%s2977_s18 + $0x30] sm:$0xff] %v1659_v29  ;;  %v1660_v48 = vmul.f32 %v1628_v5, %v2895_v54  ;;  %v1597_v33 = vadd.f32 1.0, %v2031_v31  ;;  %v1477_v34 = vmul.f32 0.044715, %v1445_v37  ;;  %v3005_v28 = vadd.f32 %v2855_v15, %v1223_v30  ;;  %v1120_v30 = vpop.f32.mrf.mxu0 }
 0x27d   : > { %v2033_v41 = vpop.eup %2032  ;;  %1690 = vst [vmem:[%s2977_s18 + $0x28] sm:$0xff] %v1658_v36  ;;  %2044 = vtanh.f32 %v1540_v47  ;;  %v1447_v53 = vmul.f32 %v1415_v40, %v2991_v57  ;;  %v1414_v42 = vmul.f32 %v3000_v32, %v3000_v32  ;;  %v3012_v3 = vadd.f32 %v2848_v13, %v1114_v26 }
 0x27e   : > { %1692 = vst [vmem:[%s2977_s18 + $0x38] sm:$0xff] %v1660_v48  ;;  %v1629_v23 = vmul.f32 0.5, %v1597_v33  ;;  %v1599_v54 = vadd.f32 1.0, %v2033_v41  ;;  %v1509_v20 = vadd.f32 %v1477_v34, %v2971_v12  ;;  %v1416_v56 = vmul.f32 %v3005_v28, %v3005_v28  ;;  %v1233_v34 = vpop.f32.mrf.mxu1 }
 0x27f   : > { %v1479_v45 = vmul.f32 0.044715, %v1447_v53  ;;  %v1446_v46 = vmul.f32 %v1414_v42, %v3000_v32  ;;  %v1417_v49 = vmul.f32 %v3012_v3, %v3012_v3  ;;  %v3022_v4 = vadd.f32 %v2850_v14, %v1227_v38  ;;  %v1122_v38 = vpop.f32.mrf.mxu0 }
 0x280   : > { %v2035_v59 = vpop.eup %2034  ;;  %v1661_v58 = vmul.f32 %v1629_v23, %v2910_v8  ;;  %v1631_v50 = vmul.f32 0.5, %v1599_v54  ;;  %v1541_v51 = vmul.f32 0.7978846, %v1509_v20  ;;  %v1448_v55 = vmul.f32 %v1416_v56, %v3005_v28 }
 0x281   : > { %v2037_v16 = vpop.eup %2036  ;;  %v1598_v60 = vadd.f32 1.0, %v2035_v59  ;;  %v1511_v18 = vadd.f32 %v1479_v45, %v2991_v57  ;;  %v1478_v61 = vmul.f32 0.044715, %v1446_v46  ;;  %v1449_v62 = vmul.f32 %v1417_v49, %v3012_v3 }
 0x282   : > { %v2039_v63 = vpop.eup %2038  ;;  %1693 = vst [vmem:[%s2977_s18 + $0x40] sm:$0xff] %v1661_v58  ;;  %v1663_v19 = vmul.f32 %v1631_v50, %v2917_v39  ;;  %v1600_v0 = vadd.f32 1.0, %v2037_v16  ;;  %2046 = vtanh.f32 %v1541_v51  ;;  %v1480_v1 = vmul.f32 0.044715, %v1448_v55  ;;  %v1235_v58 = vpop.f32.mrf.mxu1 }
 0x283   : > { %v2041_v8 = vpop.eup %2040  ;;  %v1630_v2 = vmul.f32 0.5, %v1598_v60  ;;  %v1601_v9 = vadd.f32 1.0, %v2039_v63  ;;  %v1543_v10 = vmul.f32 0.7978846, %v1511_v18  ;;  %v1510_v17 = vadd.f32 %v1478_v61, %v3000_v32 }
 0x284   : > { %1695 = vst [vmem:[%s2977_s18 + $0x50] sm:$0xff] %v1663_v19  ;;  %v1632_v22 = vmul.f32 0.5, %v1600_v0  ;;  %v1603_v24 = vadd.f32 1.0, %v2041_v8  ;;  %v1512_v25 = vadd.f32 %v1480_v1, %v3005_v28  ;;  %v1481_v29 = vmul.f32 0.044715, %v1449_v62 }
 0x285   : > { %v1662_v39 = vmul.f32 %v1630_v2, %v2925_v43  ;;  %v1633_v5 = vmul.f32 0.5, %v1601_v9  ;;  %2048 = vtanh.f32 %v1543_v10  ;;  %v1542_v37 = vmul.f32 0.7978846, %v1510_v17 }
 0x286   : > { %v1664_v26 = vmul.f32 %v1632_v22, %v2928_v21  ;;  %v1635_v31 = vmul.f32 0.5, %v1603_v24  ;;  %v1544_v36 = vmul.f32 0.7978846, %v1512_v25  ;;  %v1513_v47 = vadd.f32 %v1481_v29, %v3012_v3 }
 0x287   : > { %v2043_v40 = vpop.eup %2042  ;;  %1694 = vst [vmem:[%s2977_s18 + $0x48] sm:$0xff] %v1662_v39  ;;  %v1665_v48 = vmul.f32 %v1633_v5, %v2931_v44  ;;  %2050 = vtanh.f32 %v1542_v37  ;;  %v1419_v43 = vmul.f32 %v3022_v4, %v3022_v4  ;;  %v3041_v33 = vadd.f32 %v2853_v35, %v1116_v7 }
 0x288   : > { %1696 = vst [vmem:[%s2977_s18 + $0x58] sm:$0xff] %v1664_v26  ;;  %v1667_v21 = vmul.f32 %v1635_v31, %v2942_v52  ;;  %v1602_v41 = vadd.f32 1.0, %v2043_v40  ;;  %2052 = vtanh.f32 %v1544_v36  ;;  %v1545_v53 = vmul.f32 0.7978846, %v1513_v47  ;;  %v1126_v31 = vpop.f32.mrf.mxu0 }
 0x289   : > { %1697 = vst [vmem:[%s2977_s18 + $0x60] sm:$0xff] %v1665_v48  ;;  %v1451_v42 = vmul.f32 %v1419_v43, %v3022_v4  ;;  %v1418_v44 = vmul.f32 %v3041_v33, %v3041_v33  ;;  %v3050_v23 = vadd.f32 %v2855_v15, %v1229_v6  ;;  %v3053_v54 = vadd.f32 %v2848_v13, %v1120_v30  ;;  %v1239_v48 = vpop.f32.mrf.mxu1 }
 0x28a   : > { %v2045_v20 = vpop.eup %2044  ;;  %1699 = vst [vmem:[%s2977_s18 + $0x70] sm:$0xff] %v1667_v21  ;;  %v1634_v56 = vmul.f32 0.5, %v1602_v41  ;;  %2054 = vtanh.f32 %v1545_v53  ;;  %v3057_v52 = vadd.f32 %v2850_v14, %v1233_v34  ;;  %v3060_v45 = vadd.f32 %v2853_v35, %v1122_v38 }
 0x28b   : > { %v1604_v46 = vadd.f32 1.0, %v2045_v20  ;;  %v1483_v49 = vmul.f32 0.044715, %v1451_v42  ;;  %v1450_v7 = vmul.f32 %v1418_v44, %v3041_v33  ;;  %v1420_v59 = vmul.f32 %v3050_v23, %v3050_v23 }
 0x28c   : > { %v1666_v50 = vmul.f32 %v1634_v56, %v2948_v11  ;;  %v1421_v51 = vmul.f32 %v3053_v54, %v3053_v54  ;;  %v1423_v55 = vmul.f32 %v3057_v52, %v3057_v52  ;;  %v1422_v16 = vmul.f32 %v3060_v45, %v3060_v45 }
 0x28d   : > { %v1636_v60 = vmul.f32 0.5, %v1604_v46  ;;  %v1515_v18 = vadd.f32 %v1483_v49, %v3022_v4  ;;  %v1482_v61 = vmul.f32 0.044715, %v1450_v7  ;;  %v1452_v62 = vmul.f32 %v1420_v59, %v3050_v23  ;;  %v1128_v7 = vpop.f32.mrf.mxu0 }
 0x28e   : > { %1698 = vst [vmem:[%s2977_s18 + $0x68] sm:$0xff] %v1666_v50  ;;  %v1453_v63 = vmul.f32 %v1421_v51, %v3053_v54  ;;  %v1455_v11 = vmul.f32 %v1423_v55, %v3057_v52  ;;  %v1454_v19 = vmul.f32 %v1422_v16, %v3060_v45  ;;  %v3079_v0 = vadd.f32 %v2855_v15, %v1235_v58  ;;  %v1241_v51 = vpop.f32.mrf.mxu1 }
 0x28f   : > { %v2047_v1 = vpop.eup %2046  ;;  %v1668_v8 = vmul.f32 %v1636_v60, %v2954_v27  ;;  %v1547_v2 = vmul.f32 0.7978846, %v1515_v18  ;;  %v1514_v9 = vadd.f32 %v1482_v61, %v3041_v33  ;;  %v1484_v10 = vmul.f32 0.044715, %v1452_v62 }
 0x290   : > { %v1605_v17 = vadd.f32 1.0, %v2047_v1  ;;  %v1485_v6 = vmul.f32 0.044715, %v1453_v63  ;;  %v1487_v30 = vmul.f32 0.044715, %v1455_v11  ;;  %v1424_v22 = vmul.f32 %v3079_v0, %v3079_v0 }
 0x291   : > { %1700 = vst [vmem:[%s2977_s18 + $0x78] sm:$0xff] %v1668_v8  ;;  %2056 = vtanh.f32 %v1547_v2  ;;  %v1546_v24 = vmul.f32 0.7978846, %v1514_v9  ;;  %v1516_v25 = vadd.f32 %v1484_v10, %v3050_v23  ;;  %v1486_v29 = vmul.f32 0.044715, %v1454_v19 }
 0x292   : > { %v2049_v39 = vpop.eup %2048  ;;  %v1637_v5 = vmul.f32 0.5, %v1605_v17  ;;  %v1517_v27 = vadd.f32 %v1485_v6, %v3053_v54  ;;  %v1519_v37 = vadd.f32 %v1487_v30, %v3057_v52  ;;  %v1456_v26 = vmul.f32 %v1424_v22, %v3079_v0 }
 0x293   : > { %v1607_v36 = vadd.f32 1.0, %v2049_v39  ;;  %2058 = vtanh.f32 %v1546_v24  ;;  %v1548_v47 = vmul.f32 0.7978846, %v1516_v25  ;;  %v1518_v40 = vadd.f32 %v1486_v29, %v3060_v45 }
 0x294   : > { %v2051_v43 = vpop.eup %2050  ;;  %v1669_v34 = vmul.f32 %v1637_v5, %v2971_v12  ;;  %v1549_v38 = vmul.f32 0.7978846, %v1517_v27  ;;  %v1551_v21 = vmul.f32 0.7978846, %v1519_v37  ;;  %v1488_v41 = vmul.f32 0.044715, %v1456_v26 }
 0x295   : > { %v2053_v53 = vpop.eup %2052  ;;  %v1639_v42 = vmul.f32 0.5, %v1607_v36  ;;  %v1606_v44 = vadd.f32 1.0, %v2051_v43  ;;  %2060 = vtanh.f32 %v1548_v47  ;;  %v1550_v20 = vmul.f32 0.7978846, %v1518_v40 }
 0x296   : > { %1701 = vst [vmem:[%s2977_s18 + $0x80] sm:$0xff] %v1669_v34  ;;  %v1608_v56 = vadd.f32 1.0, %v2053_v53  ;;  %2062 = vtanh.f32 %v1549_v38  ;;  %v1520_v46 = vadd.f32 %v1488_v41, %v3079_v0  ;;  %v3095_v49 = vadd.f32 %v2848_v13, %v1126_v31 }
 0x297   : > { %v2055_v59 = vpop.eup %2054  ;;  %v1671_v12 = vmul.f32 %v1639_v42, %v2991_v57  ;;  %v1638_v58 = vmul.f32 0.5, %v1606_v44  ;;  %2064 = vtanh.f32 %v1551_v21  ;;  %v3099_v50 = vadd.f32 %v2850_v14, %v1239_v48 }
 0x298   : > { %v1640_v55 = vmul.f32 0.5, %v1608_v56  ;;  %v1609_v16 = vadd.f32 1.0, %v2055_v59  ;;  %2066 = vtanh.f32 %v1550_v20  ;;  %v1552_v60 = vmul.f32 0.7978846, %v1520_v46 }
 0x299   : > { %1703 = vst [vmem:[%s2977_s18 + $0x90] sm:$0xff] %v1671_v12  ;;  %v1670_v13 = vmul.f32 %v1638_v58, %v3000_v32  ;;  %v1425_v18 = vmul.f32 %v3095_v49, %v3095_v49  ;;  %v1427_v57 = vmul.f32 %v3099_v50, %v3099_v50  ;;  %v3108_v61 = vadd.f32 %v2853_v35, %v1128_v7 }
 0x29a   : > { %v1672_v14 = vmul.f32 %v1640_v55, %v3005_v28  ;;  %v1641_v62 = vmul.f32 0.5, %v1609_v16  ;;  %2068 = vtanh.f32 %v1552_v60  ;;  %v3112_v63 = vadd.f32 %v2855_v15, %v1241_v51 }
 0x29b   : > { %1702 = vst [vmem:[%s2977_s18 + $0x88] sm:$0xff] %v1670_v13  ;;  %v1457_v32 = vmul.f32 %v1425_v18, %v3095_v49  ;;  %v1459_v11 = vmul.f32 %v1427_v57, %v3099_v50  ;;  %v1426_v19 = vmul.f32 %v3108_v61, %v3108_v61 }
 0x29c   : > { %1704 = vst [vmem:[%s2977_s18 + $0x98] sm:$0xff] %v1672_v14  ;;  %v1673_v35 = vmul.f32 %v1641_v62, %v3012_v3  ;;  %v1428_v1 = vmul.f32 %v3112_v63, %v3112_v63 }
 0x29d   : > { %v1489_v28 = vmul.f32 0.044715, %v1457_v32  ;;  %v1491_v8 = vmul.f32 0.044715, %v1459_v11  ;;  %v1458_v2 = vmul.f32 %v1426_v19, %v3108_v61 }
 0x29e   : > { %v2057_v15 = vpop.eup %2056  ;;  %1705 = vst [vmem:[%s2977_s18 + $0xa0] sm:$0xff] %v1673_v35  ;;  %v1460_v9 = vmul.f32 %v1428_v1, %v3112_v63  ;;  %v1750_v35 = vld [vmem:[%s2977_s18 + $0x20] sm:$0xff] (%p2183_p6)  ;;  %v1752_v1 = vld [vmem:[%s2977_s18 + $0x28] sm:$0xff] (%p2183_p6) }
 0x29f   : > { %v1611_v10 = vadd.f32 1.0, %v2057_v15  ;;  %v1521_v17 = vadd.f32 %v1489_v28, %v3095_v49  ;;  %v1523_v6 = vadd.f32 %v1491_v8, %v3099_v50  ;;  %v1490_v30 = vmul.f32 0.044715, %v1458_v2  ;;  %1751 = vst [vmem:[%s3161_s7 + $0x40] sm:$0xff] (%p2183_p6), %v1750_v35  ;;  %1753 = vst [vmem:[%s3161_s7 + $0x48] sm:$0xff] (%p2183_p6), %v1752_v1  ;;  %v1754_v28 = vld [vmem:[%s2977_s18 + $0x30] sm:$0xff] (%p2183_p6) }
 0x2a0   : > { %v2059_v22 = vpop.eup %2058  ;;  %v1492_v24 = vmul.f32 0.044715, %v1460_v9  ;;  %v1756_v8 = vld [vmem:[%s2977_s18 + $0x38] sm:$0xff] (%p2183_p6)  ;;  %v1758_v2 = vld [vmem:[%s2977_s18 + $0x40] sm:$0xff] (%p2183_p6)  ;;  %1755 = vst [vmem:[%s3161_s7 + $0x50] sm:$0xff] (%p2183_p6), %v1754_v28  ;;  %v1760_v15 = vld [vmem:[%s2977_s18 + $0x48] sm:$0xff] (%p2183_p6) }
 0x2a1   : > { %v1643_v3 = vmul.f32 0.5, %v1611_v10  ;;  %v1610_v25 = vadd.f32 1.0, %v2059_v22  ;;  %v1553_v29 = vmul.f32 0.7978846, %v1521_v17  ;;  %v1555_v39 = vmul.f32 0.7978846, %v1523_v6 }
 0x2a2   : > { %v2061_v5 = vpop.eup %2060  ;;  %v1522_v27 = vadd.f32 %v1490_v30, %v3108_v61  ;;  %v1524_v37 = vadd.f32 %v1492_v24, %v3112_v63  ;;  %1757 = vst [vmem:[%s3161_s7 + $0x58] sm:$0xff] (%p2183_p6), %v1756_v8  ;;  %1759 = vst [vmem:[%s3161_s7 + $0x80] sm:$0xff] (%p2183_p6), %v1758_v2  ;;  %v1762_v9 = vld [vmem:[%s2977_s18 + $0x50] sm:$0xff] (%p2183_p6)  ;;  %v1764_v10 = vld [vmem:[%s2977_s18 + $0x58] sm:$0xff] (%p2183_p6) }
 0x2a3   : > { %v2063_v26 = vpop.eup %2062  ;;  %v1675_v31 = vmul.f32 %v1643_v3, %v3022_v4  ;;  %v1642_v36 = vmul.f32 0.5, %v1610_v25  ;;  %v1612_v47 = vadd.f32 1.0, %v2061_v5  ;;  %2070 = vtanh.f32 %v1553_v29  ;;  %1761 = vst [vmem:[%s3161_s7 + $0x88] sm:$0xff] (%p2183_p6), %v1760_v15  ;;  %1763 = vst [vmem:[%s3161_s7 + $0x90] sm:$0xff] (%p2183_p6), %v1762_v9  ;;  %v1766_v17 = vld [vmem:[%s2977_s18 + $0x60] sm:$0xff] (%p2183_p6)  ;;  %v1768_v6 = vld [vmem:[%s2977_s18 + $0x68] sm:$0xff] (%p2183_p6) }
 0x2a4   : > { %v2065_v40 = vpop.eup %2064  ;;  %v1613_v48 = vadd.f32 1.0, %v2063_v26  ;;  %2072 = vtanh.f32 %v1555_v39  ;;  %v1554_v43 = vmul.f32 0.7978846, %v1522_v27  ;;  %v1556_v34 = vmul.f32 0.7978846, %v1524_v37  ;;  %1765 = vst [vmem:[%s3161_s7 + $0x98] sm:$0xff] (%p2183_p6), %v1764_v10 }
 0x2a5   : > { %v2067_v38 = vpop.eup %2066  ;;  %1707 = vst [vmem:[%s2977_s18 + $0xb0] sm:$0xff] %v1675_v31  ;;  %v1674_v21 = vmul.f32 %v1642_v36, %v3041_v33  ;;  %v1644_v41 = vmul.f32 0.5, %v1612_v47  ;;  %v1615_v53 = vadd.f32 1.0, %v2065_v40  ;;  %v1770_v30 = vld [vmem:[%s2977_s18 + $0x70] sm:$0xff] (%p2183_p6)  ;;  %1767 = vst [vmem:[%s3161_s7 + $0xc0] sm:$0xff] (%p2183_p6), %v1766_v17  ;;  %v1772_v22 = vld [vmem:[%s2977_s18 + $0x78] sm:$0xff] (%p2183_p6) }
 0x2a6   : > { %v1645_v42 = vmul.f32 0.5, %v1613_v48  ;;  %v1614_v4 = vadd.f32 1.0, %v2067_v38  ;;  %2074 = vtanh.f32 %v1554_v43  ;;  %1769 = vst [vmem:[%s3161_s7 + $0xc8] sm:$0xff] (%p2183_p6), %v1768_v6  ;;  %1771 = vst [vmem:[%s3161_s7 + $0xd0] sm:$0xff] (%p2183_p6), %v1770_v30  ;;  %v1774_v24 = vld [vmem:[%s2977_s18 + $0x80] sm:$0xff] (%p2183_p6)  ;;  %v1776_v3 = vld [vmem:[%s2977_s18 + $0x88] sm:$0xff] (%p2183_p6) }
 0x2a7   : > { %v2069_v44 = vpop.eup %2068  ;;  %1706 = vst [vmem:[%s2977_s18 + $0xa8] sm:$0xff] %v1674_v21  ;;  %v1676_v20 = vmul.f32 %v1644_v41, %v3050_v23  ;;  %v1647_v56 = vmul.f32 0.5, %v1615_v53  ;;  %2076 = vtanh.f32 %v1556_v34  ;;  %1773 = vst [vmem:[%s3161_s7 + $0xd8] sm:$0xff] (%p2183_p6), %v1772_v22  ;;  %v1778_v25 = vld [vmem:[%s2977_s18 + $0x90] sm:$0xff] (%p2183_p6)  ;;  %v1780_v29 = vld [vmem:[%s2977_s18 + $0x98] sm:$0xff] (%p2183_p6) }
 0x2a8   : > { %v1677_v46 = vmul.f32 %v1645_v42, %v3053_v54  ;;  %v1646_v7 = vmul.f32 0.5, %v1614_v4  ;;  %v1616_v59 = vadd.f32 1.0, %v2069_v44  ;;  %1775 = vst [vmem:[%s3161_s7 + $0x100] sm:$0xff] (%p2183_p6), %v1774_v24  ;;  %1777 = vst [vmem:[%s3161_s7 + $0x108] sm:$0xff] (%p2183_p6), %v1776_v3  ;;  %v1782_v39 = vld [vmem:[%s2977_s18 + $0xa0] sm:$0xff] (%p2183_p6) }
 0x2a9   : > { %1708 = vst [vmem:[%s2977_s18 + $0xb8] sm:$0xff] %v1676_v20  ;;  %v1679_v33 = vmul.f32 %v1647_v56, %v3057_v52  ;;  %1779 = vst [vmem:[%s3161_s7 + $0x110] sm:$0xff] (%p2183_p6), %v1778_v25 }
 0x2aa   : > { %1709 = vst [vmem:[%s2977_s18 + $0xc0] sm:$0xff] %v1677_v46  ;;  %v1678_v12 = vmul.f32 %v1646_v7, %v3060_v45  ;;  %v1648_v58 = vmul.f32 0.5, %v1616_v59  ;;  %1781 = vst [vmem:[%s3161_s7 + $0x118] sm:$0xff] (%p2183_p6), %v1780_v29 }
 0x2ab   : > { %1711 = vst [vmem:[%s2977_s18 + $0xd0] sm:$0xff] %v1679_v33  ;;  %1783 = vst [vmem:[%s3161_s7 + $0x140] sm:$0xff] (%p2183_p6), %v1782_v39 }
 0x2ac   : > { %1710 = vst [vmem:[%s2977_s18 + $0xc8] sm:$0xff] %v1678_v12  ;;  %v1680_v51 = vmul.f32 %v1648_v58, %v3079_v0  ;;  %v1786_v27 = vld [vmem:[%s2977_s18 + $0xb0] sm:$0xff] (%p2183_p6) }
 0x2ad   : > { %1787 = vst [vmem:[%s3161_s7 + $0x150] sm:$0xff] (%p2183_p6), %v1786_v27 }
 0x2ae   : > { %1712 = vst [vmem:[%s2977_s18 + $0xd8] sm:$0xff] %v1680_v51  ;;  %v1784_v5 = vld [vmem:[%s2977_s18 + $0xa8] sm:$0xff] (%p2183_p6) }
 0x2af   : > { %1785 = vst [vmem:[%s3161_s7 + $0x148] sm:$0xff] (%p2183_p6), %v1784_v5 }
 0x2b0   : > { %v2071_v23 = vpop.eup %2070  ;;  %v1788_v37 = vld [vmem:[%s2977_s18 + $0xb8] sm:$0xff] (%p2183_p6) }
 0x2b1   : > { %v2073_v55 = vpop.eup %2072  ;;  %v1617_v16 = vadd.f32 1.0, %v2071_v23  ;;  %1789 = vst [vmem:[%s3161_s7 + $0x158] sm:$0xff] (%p2183_p6), %v1788_v37  ;;  %v1790_v26 = vld [vmem:[%s2977_s18 + $0xc0] sm:$0xff] (%p2183_p6) }
 0x2b2   : > { %v1619_v54 = vadd.f32 1.0, %v2073_v55  ;;  %v1794_v36 = vld [vmem:[%s2977_s18 + $0xd0] sm:$0xff] (%p2183_p6)  ;;  %1791 = vst [vmem:[%s3161_s7 + $0x180] sm:$0xff] (%p2183_p6), %v1790_v26 }
 0x2b3   : > { %v2075_v60 = vpop.eup %2074  ;;  %v1649_v13 = vmul.f32 0.5, %v1617_v16  ;;  %v1792_v31 = vld [vmem:[%s2977_s18 + $0xc8] sm:$0xff] (%p2183_p6)  ;;  %1795 = vst [vmem:[%s3161_s7 + $0x190] sm:$0xff] (%p2183_p6), %v1794_v36 }
 0x2b4   : > { %v2077_v52 = vpop.eup %2076  ;;  %v1651_v18 = vmul.f32 0.5, %v1619_v54  ;;  %v1618_v57 = vadd.f32 1.0, %v2075_v60  ;;  %1793 = vst [vmem:[%s3161_s7 + $0x188] sm:$0xff] (%p2183_p6), %v1792_v31 }
 0x2b5   : > { %v1681_v45 = vmul.f32 %v1649_v13, %v3095_v49  ;;  %v1620_v14 = vadd.f32 1.0, %v2077_v52  ;;  %v1742_v49 = vld [vmem:[%s2977_s18] sm:$0xff] (%p2183_p6)  ;;  %v1796_v47 = vld [vmem:[%s2977_s18 + $0xd8] sm:$0xff] (%p2183_p6) }
 0x2b6   : > { %v1683_v62 = vmul.f32 %v1651_v18, %v3099_v50  ;;  %v1650_v32 = vmul.f32 0.5, %v1618_v57  ;;  %v1744_v50 = vld [vmem:[%s2977_s18 + $0x8] sm:$0xff] (%p2183_p6)  ;;  %1743 = vst [vmem:[%s3161_s7] sm:$0xff] (%p2183_p6), %v1742_v49  ;;  %1797 = vst [vmem:[%s3161_s7 + $0x198] sm:$0xff] (%p2183_p6), %v1796_v47 }
 0x2b7   : > { %1713 = vst [vmem:[%s2977_s18 + $0xe0] sm:$0xff] %v1681_v45  ;;  %v1652_v0 = vmul.f32 0.5, %v1620_v14  ;;  %1723 = sbr.rel (!%p2183_p6) target bundleno = 708 (0x2c4), region = 75  ;;  %1745 = vst [vmem:[%s3161_s7 + $0x8] sm:$0xff] (%p2183_p6), %v1744_v50 }
 0x2b8   : > { %1715 = vst [vmem:[%s2977_s18 + $0xf0] sm:$0xff] %v1683_v62  ;;  %v1682_v11 = vmul.f32 %v1650_v32, %v3108_v61  ;;  %v1746_v61 = vld [vmem:[%s2977_s18 + $0x10] sm:$0xff] (%p2183_p6) }
 0x2b9   : > { %v1684_v19 = vmul.f32 %v1652_v0, %v3112_v63  ;;  %v1748_v63 = vld [vmem:[%s2977_s18 + $0x18] sm:$0xff] (%p2183_p6)  ;;  %1747 = vst [vmem:[%s3161_s7 + $0x10] sm:$0xff] (%p2183_p6), %v1746_v61 }
 0x2ba   : > { %1714 = vst [vmem:[%s2977_s18 + $0xe8] sm:$0xff] %v1682_v11  ;;  %1749 = vst [vmem:[%s3161_s7 + $0x18] sm:$0xff] (%p2183_p6), %v1748_v63 }
 0x2bb   : > { %1716 = vst [vmem:[%s2977_s18 + $0xf8] sm:$0xff] %v1684_v19 }
 0x2be   : > { %v1798_v40 = vld [vmem:[%s2977_s18 + $0xe0] sm:$0xff] }
 0x2bf   : > { %1799 = vst [vmem:[%s3161_s7 + $0x1c0] sm:$0xff] %v1798_v40  ;;  %v1802_v43 = vld [vmem:[%s2977_s18 + $0xf0] sm:$0xff] }
 0x2c0   : > { %1803 = vst [vmem:[%s3161_s7 + $0x1d0] sm:$0xff] %v1802_v43 }
 0x2c1   : > { %v1800_v48 = vld [vmem:[%s2977_s18 + $0xe8] sm:$0xff] }
 0x2c2   : > { %1801 = vst [vmem:[%s3161_s7 + $0x1c8] sm:$0xff] %v1800_v48  ;;  %v1804_v34 = vld [vmem:[%s2977_s18 + $0xf8] sm:$0xff] }
 0x2c3   : > { %1805 = vst [vmem:[%s3161_s7 + $0x1d8] sm:$0xff] %v1804_v34 }
 0x2c4 PF: > { %s15_s22 = sadd.s32 1, %s2116_s22   ;;  %s3246_s18 = smov %s2104_s19 }
 0x2c5   : > { %p12_p12 = scmp.ge.s32.totalorder %s15_s22, 4   ;;  %s3247_s19 = smov %s2188_s28 }
 0x2c6   : > { %s3248_s20 = smov %s2112_s21  ;;  %s3249_s21 = smov %s3251_s23 }
 0x2c7   :  { %14 = sbr.rel (!%p12_p12) target bundleno = 3 (0x3), region = 141 }

</bundles_post_ra>
